<compile_context>
chip_gen: v5e
topology: v5e:2x2
jax: 0.10.0
libtpu: 0.0.40
codegen_flags: <defaults>
</compile_context>

<pallas_src>
import functools

import jax
import jax.numpy as jnp
from jax import lax
from jax.experimental import pallas as pl
from jax.experimental.pallas import tpu as pltpu

C_PAD = 128                       # lane-dense channel padding for all outputs
_VMEM_LIMIT = 32 * 1024 * 1024    # safe on v5e/v6e (128 MiB) and v7x (64 MiB)


def _round_up(x, m):
    return (x + m - 1) // m * m


def _choose_tile_m(m_pad):
    # Big tiles amortize per-grid-step overhead (~0.35us); keep >=2 blocks
    # when there is enough work so both v7x TensorCores get a share.
    for cand in (512, 256, 128):
        if m_pad % cand == 0 and m_pad // cand >= 2:
            return cand
    return min(m_pad, 512)


# ---------------------------------------------------------------------------
# Pallas kernels
# ---------------------------------------------------------------------------
def _conv_bn_kernel(p_ref, w_ref, b_ref, o_ref, *, relu):
    # P[tm, K] bf16 @ W[K, 128] bf16 -> f32 acc; BN scale already in W.
    acc = jnp.dot(p_ref[...], w_ref[...], preferred_element_type=jnp.float32)
    y = acc + b_ref[...]
    if relu:
        y = jnp.maximum(y, 0.0)
    o_ref[...] = y.astype(o_ref.dtype)


def _conv_bn_res_kernel(p_ref, w_ref, b_ref, r_ref, o_ref, *, relu):
    acc = jnp.dot(p_ref[...], w_ref[...], preferred_element_type=jnp.float32)
    y = acc + b_ref[...] + r_ref[...].astype(jnp.float32)
    if relu:
        y = jnp.maximum(y, 0.0)
    o_ref[...] = y.astype(o_ref.dtype)


def _final_block_kernel(p_ref, w_ref, b_ref, r_ref, pool_ref, fcw_ref,
                        fcb_ref, o_ref):
    """Last block conv2 + BN + residual + ReLU + AvgPool(8) + Linear, fused."""
    acc = jnp.dot(p_ref[...], w_ref[...], preferred_element_type=jnp.float32)
    y = jnp.maximum(acc + b_ref[...] + r_ref[...].astype(jnp.float32), 0.0)
    # Global average pool as a small matmul with a constant pooling matrix.
    pooled = jnp.dot(pool_ref[...], y, preferred_element_type=jnp.float32)
    logits = jnp.dot(pooled, fcw_ref[...],
                     preferred_element_type=jnp.float32) + fcb_ref[...]
    o_ref[...] = logits.astype(o_ref.dtype)


# ---------------------------------------------------------------------------
# Wrappers (glue: padding / im2col / reshapes)
# ---------------------------------------------------------------------------
def _im2col(x, stride):
    """x: [N,H,W,C] -> P: [N*Ho*Wo, 9*C] with (dy, dx, c) column ordering."""
    N, H, W, C = x.shape
    Ho = (H + 2 - 3) // stride + 1
    Wo = (W + 2 - 3) // stride + 1
    xp = jnp.pad(x, ((0, 0), (1, 1), (1, 1), (0, 0)))
    cols = []
    for dy in range(3):
        for dx in range(3):
            cols.append(xp[:, dy:dy + (Ho - 1) * stride + 1:stride,
                           dx:dx + (Wo - 1) * stride + 1:stride, :])
    P = jnp.concatenate(cols, axis=-1).reshape(N * Ho * Wo, 9 * C)
    return P, Ho, Wo


def conv3x3_bn(x, prep, *, stride=1, relu=False, residual_flat=None):
    """3x3 conv (pad=1, no bias) + folded BN (+residual) (+ReLU).

    x: [N, H, W, Cin] bf16 (natural channels).
    prep["w"]: [9*Cin, 128] bf16 (BN scale folded, Cout zero-padded to 128),
    prep["b"]: [1, 128] f32.  residual_flat: [M_pad, 128] bf16 or None.
    Returns (out_nhwc [N,Ho,Wo,Cout] bf16, out_flat [M_pad, 128] bf16).
    """
    N, _, _, _ = x.shape
    Cout = prep["cout"]
    P, Ho, Wo = _im2col(x, stride)
    M, K = P.shape
    M_pad = _round_up(M, 128)
    tm = _choose_tile_m(M_pad)
    P = jnp.pad(P, ((0, M_pad - M), (0, 0))).astype(jnp.bfloat16)

    in_specs = [
        pl.BlockSpec((tm, K), lambda i: (i, 0)),
        pl.BlockSpec((K, C_PAD), lambda i: (0, 0)),
        pl.BlockSpec((1, C_PAD), lambda i: (0, 0)),
    ]
    args = [P, prep["w"], prep["b"]]
    if residual_flat is not None:
        assert residual_flat.shape == (M_pad, C_PAD)
        in_specs.append(pl.BlockSpec((tm, C_PAD), lambda i: (i, 0)))
        args.append(residual_flat)
        kernel = functools.partial(_conv_bn_res_kernel, relu=relu)
    else:
        kernel = functools.partial(_conv_bn_kernel, relu=relu)

    out_flat = pl.pallas_call(
        kernel,
        out_shape=jax.ShapeDtypeStruct((M_pad, C_PAD), jnp.bfloat16),
        grid=(M_pad // tm,),
        in_specs=in_specs,
        out_specs=pl.BlockSpec((tm, C_PAD), lambda i: (i, 0)),
        compiler_params=pltpu.CompilerParams(
            dimension_semantics=("parallel",),
            vmem_limit_bytes=_VMEM_LIMIT),
    )(*args)
    out_nhwc = out_flat[:M, :Cout].reshape(N, Ho, Wo, Cout)
    return out_nhwc, out_flat


def final_block_conv_pool_fc(h, prep, residual_flat, fc_w_pad, fc_b_pad,
                             num_classes):
    """Second conv of the last block fused with residual/ReLU/avgpool(8)/FC."""
    N = h.shape[0]
    P, Ho, Wo = _im2col(h, 1)
    assert Ho == 8 and Wo == 8, "AvgPool2d(8) fusion expects an 8x8 feature map"
    M, K = P.shape
    HW = Ho * Wo
    M_pad = _round_up(M, 128)
    P = jnp.pad(P, ((0, M_pad - M), (0, 0))).astype(jnp.bfloat16)
    assert residual_flat.shape == (M_pad, C_PAD)

    # pooling matrix: pool_mat[b, b*HW : (b+1)*HW] = 1/HW, zeros elsewhere.
    pool_mat = ((jnp.arange(M_pad)[None, :] // HW) ==
                jnp.arange(N)[:, None]).astype(jnp.float32) / HW

    out = pl.pallas_call(
        _final_block_kernel,
        out_shape=jax.ShapeDtypeStruct((N, C_PAD), jnp.float32),
        grid=(1,),
        in_specs=[
            pl.BlockSpec((M_pad, K), lambda i: (0, 0)),
            pl.BlockSpec((K, C_PAD), lambda i: (0, 0)),
            pl.BlockSpec((1, C_PAD), lambda i: (0, 0)),
            pl.BlockSpec((M_pad, C_PAD), lambda i: (0, 0)),
            pl.BlockSpec((N, M_pad), lambda i: (0, 0)),
            pl.BlockSpec((C_PAD, C_PAD), lambda i: (0, 0)),
            pl.BlockSpec((1, C_PAD), lambda i: (0, 0)),
        ],
        out_specs=pl.BlockSpec((N, C_PAD), lambda i: (0, 0)),
        compiler_params=pltpu.CompilerParams(
            dimension_semantics=("arbitrary",),
            vmem_limit_bytes=_VMEM_LIMIT),
    )(P, prep["w"], prep["b"], residual_flat, pool_mat, fc_w_pad, fc_b_pad)
    return out[:, :num_classes]


# ---------------------------------------------------------------------------
# Parameters: raw init (f32, PyTorch-like) + one-time kernel-ready prep
# ---------------------------------------------------------------------------
def _fold_bn(gamma, beta, mean, var, eps=1e-5):
    scale = gamma / jnp.sqrt(var + eps)
    shift = beta - mean * scale
    return scale, shift


def _prepare_conv(w_hwio, bn):
    """Fold BN scale into HWIO weights; pad Cout to 128; bf16 weights."""
    cout = w_hwio.shape[-1]
    scale, shift = _fold_bn(*bn)
    wmat = (w_hwio * scale).reshape(-1, cout)        # (dy, dx, cin) row order
    w_pad = jnp.pad(wmat, ((0, 0), (0, C_PAD - cout))).astype(jnp.bfloat16)
    b_pad = jnp.pad(shift.reshape(1, -1),
                    ((0, 0), (0, C_PAD - cout))).astype(jnp.float32)
    return {"w": w_pad, "b": b_pad, "cout": cout}


def prepare_params(params, num_classes=10):
    prep = {"stem": _prepare_conv(params["stem_w"], params["stem_bn"]),
            "blocks": [], "num_classes": num_classes}
    for layer in params["layers"]:
        for bp in layer:
            prep["blocks"].append({
                "stride": bp["stride"],
                "c1": _prepare_conv(bp["w1"], bp["bn1"]),
                "c2": _prepare_conv(bp["w2"], bp["bn2"]),
                "cd": (_prepare_conv(bp["wd"], bp["bnd"])
                       if bp["wd"] is not None else None),
            })
    cfeat = params["fc_w"].shape[0]
    prep["fc_w"] = jnp.pad(params["fc_w"].astype(jnp.float32),
                           ((0, C_PAD - cfeat), (0, C_PAD - num_classes)))
    prep["fc_b"] = jnp.pad(params["fc_b"].astype(jnp.float32),
                           ((0, 0), (0, C_PAD - num_classes)))
    return prep


def init_params(key, layers=(1, 1), num_classes=10):
    keys = iter(jax.random.split(key, 256))
    nk = lambda: next(keys)

    def conv_w(cin, cout):
        return (jax.random.normal(nk(), (3, 3, cin, cout), jnp.float32)
                * (1.0 / jnp.sqrt(9.0 * cin)))

    def bn_p(c):
        gamma = 1.0 + 0.1 * jax.random.normal(nk(), (c,), jnp.float32)
        beta = 0.1 * jax.random.normal(nk(), (c,), jnp.float32)
        mean = 0.1 * jax.random.normal(nk(), (c,), jnp.float32)
        var = 1.0 + jax.random.uniform(nk(), (c,), jnp.float32)
        return (gamma, beta, mean, var)

    params = {"stem_w": conv_w(3, 16), "stem_bn": bn_p(16)}
    in_c = 16
    layer_specs = [(16, layers[0], 1), (32, layers[0], 2), (64, layers[1], 2)]
    all_layers = []
    for out_c, nblocks, stride in layer_specs:
        blocks = []
        for b in range(nblocks):
            s = stride if b == 0 else 1
            need_ds = (s != 1) or (in_c != out_c)
            bp = {
                "stride": s,
                "w1": conv_w(in_c, out_c), "bn1": bn_p(out_c),
                "w2": conv_w(out_c, out_c), "bn2": bn_p(out_c),
                "wd": conv_w(in_c, out_c) if need_ds else None,
                "bnd": bn_p(out_c) if need_ds else None,
            }
            blocks.append(bp)
            in_c = out_c
        all_layers.append(blocks)
    params["layers"] = all_layers
    params["fc_w"] = jax.random.normal(nk(), (64, num_classes), jnp.float32) * 0.1
    params["fc_b"] = jax.random.normal(nk(), (1, num_classes), jnp.float32) * 0.1
    return params


# ---------------------------------------------------------------------------
# Forward pass (Pallas)
# ---------------------------------------------------------------------------
def net_forward(x_nchw, prep):
    # layout: NCHW (PyTorch) -> NHWC bf16 for the Pallas kernels.
    x = jnp.transpose(x_nchw, (0, 2, 3, 1)).astype(jnp.bfloat16)
    out_nhwc, out_flat = conv3x3_bn(x, prep["stem"], stride=1, relu=True)

    blocks = prep["blocks"]
    logits = None
    for bi, bp in enumerate(blocks):
        h_nhwc, _ = conv3x3_bn(out_nhwc, bp["c1"], stride=bp["stride"],
                               relu=True)
        if bp["cd"] is not None:
            _, res_flat = conv3x3_bn(out_nhwc, bp["cd"], stride=bp["stride"],
                                     relu=False)
        else:
            res_flat = out_flat        # identity skip, already [M_pad, 128]
        if bi == len(blocks) - 1:
            logits = final_block_conv_pool_fc(
                h_nhwc, bp["c2"], res_flat, prep["fc_w"], prep["fc_b"],
                prep["num_classes"])
        else:
            out_nhwc, out_flat = conv3x3_bn(h_nhwc, bp["c2"], stride=1,
                                            relu=True, residual_flat=res_flat)
    return logits


# ---------------------------------------------------------------------------
# Pure-JAX f32 reference (correctness check only)
# ---------------------------------------------------------------------------
def _conv_ref(x, w, stride):
    return lax.conv_general_dilated(
        x, w, window_strides=(stride, stride), padding=((1, 1), (1, 1)),
        dimension_numbers=("NHWC", "HWIO", "NHWC"))


def net_forward_ref(x_nchw, params):
    x = jnp.transpose(x_nchw, (0, 2, 3, 1)).astype(jnp.float32)

    def cb(x, w, bn, stride, relu):
        sc, sh = _fold_bn(*bn)
        y = _conv_ref(x, w, stride) * sc + sh
        return jnp.maximum(y, 0.0) if relu else y

    out = cb(x, params["stem_w"], params["stem_bn"], 1, True)
    for layer in params["layers"]:
        for bp in layer:
            s = bp["stride"]
            h = cb(out, bp["w1"], bp["bn1"], s, True)
            if bp["wd"] is not None:
                res = cb(out, bp["wd"], bp["bnd"], s, False)
            else:
                res = out
            sc2, sh2 = _fold_bn(*bp["bn2"])
            out = jnp.maximum(_conv_ref(h, bp["w2"], 1) * sc2 + sh2 + res, 0.0)
    pooled = out.mean(axis=(1, 2))
    return pooled @ params["fc_w"] + params["fc_b"]


# ---------------------------------------------------------------------------
if __name__ == "__main__":
    key = jax.random.PRNGKey(0)
    k_in, k_par = jax.random.split(key)

    # CIFAR-sized input: NCHW [2, 3, 32, 32] (spatial 32 is required so that
    # AvgPool2d(8) after two stride-2 stages is a full 8x8 global pool).
    x = jax.random.normal(k_in, (2, 3, 32, 32), jnp.float32)
    params = init_params(k_par, layers=(1, 1), num_classes=10)
    prep = prepare_params(params, num_classes=10)

    fwd = jax.jit(lambda xi: net_forward(xi, prep))
    logits = jax.block_until_ready(fwd(x))

    ref = jax.block_until_ready(net_forward_ref(x, params))
    assert logits.shape == (2, 10)
    rel_err = float(jnp.max(jnp.abs(logits - ref)) /
                    (jnp.max(jnp.abs(ref)) + 1e-6))
    # bf16 MXU inputs through ~8 conv layers -> allow a few percent drift.
    assert rel_err < 0.08, (
        f"Pallas output mismatch vs JAX reference (rel err={rel_err:.4f})")

    print("KERNEL_OK")
</pallas_src>

<mosaic_0001>
module attributes {stable_mosaic.version = 11 : i64} {
  func.func @_conv_bn_kernel(%arg0: i32, %arg1: memref<512x27xbf16, #tpu.memory_space<vmem>>, %arg2: memref<27x128xbf16, #tpu.memory_space<vmem>>, %arg3: memref<1x128xf32, #tpu.memory_space<vmem>>, %arg4: memref<512x128xbf16, #tpu.memory_space<vmem>>) attributes {dimension_semantics = [#tpu.dimension_semantics<parallel>], iteration_bounds = array<i64: 4>, scalar_prefetch = 0 : i64, scratch_operands = 0 : i64, tpu.core_type = #tpu.core_type<tc>, window_params = [{transform_indices = @transform_0, window_bounds = array<i64: 512, 27>}, {pipeline_mode = #tpu.pipeline_mode<synchronous>, transform_indices = @transform_1, window_bounds = array<i64: 27, 128>}, {pipeline_mode = #tpu.pipeline_mode<synchronous>, transform_indices = @transform_2, window_bounds = array<i64: 1, 128>}, {transform_indices = @transform_3, window_bounds = array<i64: 512, 128>}]} {
    %c0 = arith.constant 0 : index
    %c0_0 = arith.constant 0 : index
    %0 = vector.load %arg1[%c0, %c0_0] : memref<512x27xbf16, #tpu.memory_space<vmem>>, vector<512x27xbf16>
    %c0_1 = arith.constant 0 : index
    %c0_2 = arith.constant 0 : index
    %1 = vector.load %arg2[%c0_1, %c0_2] : memref<27x128xbf16, #tpu.memory_space<vmem>>, vector<27x128xbf16>
    %cst = arith.constant dense<0.000000e+00> : vector<512x128xf32>
    %2 = tpu.matmul %0, %1, %cst {dimension_numbers = #tpu.dot_dimension_numbers<[1], [0], [0], [1], [0, 0, 1, 1], [], []>} : vector<512x27xbf16>, vector<27x128xbf16>, vector<512x128xf32> -> vector<512x128xf32>
    %c0_3 = arith.constant 0 : index
    %c0_4 = arith.constant 0 : index
    %3 = vector.load %arg3[%c0_3, %c0_4] : memref<1x128xf32, #tpu.memory_space<vmem>>, vector<1x128xf32>
    %4 = vector.broadcast %3 : vector<1x128xf32> to vector<512x128xf32>
    %5 = arith.addf %2, %4 : vector<512x128xf32>
    %cst_5 = arith.constant 0.000000e+00 : f32
    %6 = vector.broadcast %cst_5 : f32 to vector<512x128xf32>
    %7 = arith.maximumf %5, %6 : vector<512x128xf32>
    %8 = arith.truncf %7 : vector<512x128xf32> to vector<512x128xbf16>
    %c0_6 = arith.constant 0 : index
    %c0_7 = arith.constant 0 : index
    %9 = vector.load %arg4[%c0_6, %c0_7] : memref<512x128xbf16, #tpu.memory_space<vmem>>, vector<512x128xbf16>
    tpu.vector_store %arg4[%c0_6, %c0_7], %8 {strides = array<i32>} : memref<512x128xbf16, #tpu.memory_space<vmem>>, vector<512x128xbf16>,
    return
  }
  func.func @transform_0(%arg0: i32) -> (i32, i32) {
    %c0_i32 = arith.constant 0 : i32
    %c0_i32_0 = arith.constant 0 : i32
    return %arg0, %c0_i32 : i32, i32
  }
  func.func @transform_1(%arg0: i32) -> (i32, i32) {
    %c0_i32 = arith.constant 0 : i32
    %c0_i32_0 = arith.constant 0 : i32
    %c0_i32_1 = arith.constant 0 : i32
    return %c0_i32, %c0_i32_0 : i32, i32
  }
  func.func @transform_2(%arg0: i32) -> (i32, i32) {
    %c0_i32 = arith.constant 0 : i32
    %c0_i32_0 = arith.constant 0 : i32
    %c0_i32_1 = arith.constant 0 : i32
    return %c0_i32, %c0_i32_0 : i32, i32
  }
  func.func @transform_3(%arg0: i32) -> (i32, i32) {
    %c0_i32 = arith.constant 0 : i32
    %c0_i32_0 = arith.constant 0 : i32
    return %arg0, %c0_i32 : i32, i32
  }
}

module attributes {stable_mosaic.version = 11 : i64} {
  func.func @_conv_bn_kernel(%arg0: i32, %arg1: memref<512x144xbf16, #tpu.memory_space<vmem>>, %arg2: memref<144x128xbf16, #tpu.memory_space<vmem>>, %arg3: memref<1x128xf32, #tpu.memory_space<vmem>>, %arg4: memref<512x128xbf16, #tpu.memory_space<vmem>>) attributes {dimension_semantics = [#tpu.dimension_semantics<parallel>], iteration_bounds = array<i64: 4>, scalar_prefetch = 0 : i64, scratch_operands = 0 : i64, tpu.core_type = #tpu.core_type<tc>, window_params = [{transform_indices = @transform_0, window_bounds = array<i64: 512, 144>}, {pipeline_mode = #tpu.pipeline_mode<synchronous>, transform_indices = @transform_1, window_bounds = array<i64: 144, 128>}, {pipeline_mode = #tpu.pipeline_mode<synchronous>, transform_indices = @transform_2, window_bounds = array<i64: 1, 128>}, {transform_indices = @transform_3, window_bounds = array<i64: 512, 128>}]} {
    %c0 = arith.constant 0 : index
    %c0_0 = arith.constant 0 : index
    %0 = vector.load %arg1[%c0, %c0_0] : memref<512x144xbf16, #tpu.memory_space<vmem>>, vector<512x144xbf16>
    %c0_1 = arith.constant 0 : index
    %c0_2 = arith.constant 0 : index
    %1 = vector.load %arg2[%c0_1, %c0_2] : memref<144x128xbf16, #tpu.memory_space<vmem>>, vector<144x128xbf16>
    %cst = arith.constant dense<0.000000e+00> : vector<512x128xf32>
    %2 = tpu.matmul %0, %1, %cst {dimension_numbers = #tpu.dot_dimension_numbers<[1], [0], [0], [1], [0, 0, 1, 1], [], []>} : vector<512x144xbf16>, vector<144x128xbf16>, vector<512x128xf32> -> vector<512x128xf32>
    %c0_3 = arith.constant 0 : index
    %c0_4 = arith.constant 0 : index
    %3 = vector.load %arg3[%c0_3, %c0_4] : memref<1x128xf32, #tpu.memory_space<vmem>>, vector<1x128xf32>
    %4 = vector.broadcast %3 : vector<1x128xf32> to vector<512x128xf32>
    %5 = arith.addf %2, %4 : vector<512x128xf32>
    %cst_5 = arith.constant 0.000000e+00 : f32
    %6 = vector.broadcast %cst_5 : f32 to vector<512x128xf32>
    %7 = arith.maximumf %5, %6 : vector<512x128xf32>
    %8 = arith.truncf %7 : vector<512x128xf32> to vector<512x128xbf16>
    %c0_6 = arith.constant 0 : index
    %c0_7 = arith.constant 0 : index
    %9 = vector.load %arg4[%c0_6, %c0_7] : memref<512x128xbf16, #tpu.memory_space<vmem>>, vector<512x128xbf16>
    tpu.vector_store %arg4[%c0_6, %c0_7], %8 {strides = array<i32>} : memref<512x128xbf16, #tpu.memory_space<vmem>>, vector<512x128xbf16>,
    return
  }
  func.func @transform_0(%arg0: i32) -> (i32, i32) {
    %c0_i32 = arith.constant 0 : i32
    %c0_i32_0 = arith.constant 0 : i32
    return %arg0, %c0_i32 : i32, i32
  }
  func.func @transform_1(%arg0: i32) -> (i32, i32) {
    %c0_i32 = arith.constant 0 : i32
    %c0_i32_0 = arith.constant 0 : i32
    %c0_i32_1 = arith.constant 0 : i32
    return %c0_i32, %c0_i32_0 : i32, i32
  }
  func.func @transform_2(%arg0: i32) -> (i32, i32) {
    %c0_i32 = arith.constant 0 : i32
    %c0_i32_0 = arith.constant 0 : i32
    %c0_i32_1 = arith.constant 0 : i32
    return %c0_i32, %c0_i32_0 : i32, i32
  }
  func.func @transform_3(%arg0: i32) -> (i32, i32) {
    %c0_i32 = arith.constant 0 : i32
    %c0_i32_0 = arith.constant 0 : i32
    return %arg0, %c0_i32 : i32, i32
  }
}

module attributes {stable_mosaic.version = 11 : i64} {
  func.func @_conv_bn_res_kernel(%arg0: i32, %arg1: memref<512x144xbf16, #tpu.memory_space<vmem>>, %arg2: memref<144x128xbf16, #tpu.memory_space<vmem>>, %arg3: memref<1x128xf32, #tpu.memory_space<vmem>>, %arg4: memref<512x128xbf16, #tpu.memory_space<vmem>>, %arg5: memref<512x128xbf16, #tpu.memory_space<vmem>>) attributes {dimension_semantics = [#tpu.dimension_semantics<parallel>], iteration_bounds = array<i64: 4>, scalar_prefetch = 0 : i64, scratch_operands = 0 : i64, tpu.core_type = #tpu.core_type<tc>, window_params = [{transform_indices = @transform_0, window_bounds = array<i64: 512, 144>}, {pipeline_mode = #tpu.pipeline_mode<synchronous>, transform_indices = @transform_1, window_bounds = array<i64: 144, 128>}, {pipeline_mode = #tpu.pipeline_mode<synchronous>, transform_indices = @transform_2, window_bounds = array<i64: 1, 128>}, {transform_indices = @transform_3, window_bounds = array<i64: 512, 128>}, {transform_indices = @transform_4, window_bounds = array<i64: 512, 128>}]} {
    %c0 = arith.constant 0 : index
    %c0_0 = arith.constant 0 : index
    %0 = vector.load %arg1[%c0, %c0_0] : memref<512x144xbf16, #tpu.memory_space<vmem>>, vector<512x144xbf16>
    %c0_1 = arith.constant 0 : index
    %c0_2 = arith.constant 0 : index
    %1 = vector.load %arg2[%c0_1, %c0_2] : memref<144x128xbf16, #tpu.memory_space<vmem>>, vector<144x128xbf16>
    %cst = arith.constant dense<0.000000e+00> : vector<512x128xf32>
    %2 = tpu.matmul %0, %1, %cst {dimension_numbers = #tpu.dot_dimension_numbers<[1], [0], [0], [1], [0, 0, 1, 1], [], []>} : vector<512x144xbf16>, vector<144x128xbf16>, vector<512x128xf32> -> vector<512x128xf32>
    %c0_3 = arith.constant 0 : index
    %c0_4 = arith.constant 0 : index
    %3 = vector.load %arg3[%c0_3, %c0_4] : memref<1x128xf32, #tpu.memory_space<vmem>>, vector<1x128xf32>
    %4 = vector.broadcast %3 : vector<1x128xf32> to vector<512x128xf32>
    %5 = arith.addf %2, %4 : vector<512x128xf32>
    %c0_5 = arith.constant 0 : index
    %c0_6 = arith.constant 0 : index
    %6 = vector.load %arg4[%c0_5, %c0_6] : memref<512x128xbf16, #tpu.memory_space<vmem>>, vector<512x128xbf16>
    %7 = arith.extf %6 : vector<512x128xbf16> to vector<512x128xf32>
    %8 = arith.addf %5, %7 : vector<512x128xf32>
    %cst_7 = arith.constant 0.000000e+00 : f32
    %9 = vector.broadcast %cst_7 : f32 to vector<512x128xf32>
    %10 = arith.maximumf %8, %9 : vector<512x128xf32>
    %11 = arith.truncf %10 : vector<512x128xf32> to vector<512x128xbf16>
    %c0_8 = arith.constant 0 : index
    %c0_9 = arith.constant 0 : index
    %12 = vector.load %arg5[%c0_8, %c0_9] : memref<512x128xbf16, #tpu.memory_space<vmem>>, vector<512x128xbf16>
    tpu.vector_store %arg5[%c0_8, %c0_9], %11 {strides = array<i32>} : memref<512x128xbf16, #tpu.memory_space<vmem>>, vector<512x128xbf16>,
    return
  }
  func.func @transform_0(%arg0: i32) -> (i32, i32) {
    %c0_i32 = arith.constant 0 : i32
    %c0_i32_0 = arith.constant 0 : i32
    return %arg0, %c0_i32 : i32, i32
  }
  func.func @transform_1(%arg0: i32) -> (i32, i32) {
    %c0_i32 = arith.constant 0 : i32
    %c0_i32_0 = arith.constant 0 : i32
    %c0_i32_1 = arith.constant 0 : i32
    return %c0_i32, %c0_i32_0 : i32, i32
  }
  func.func @transform_2(%arg0: i32) -> (i32, i32) {
    %c0_i32 = arith.constant 0 : i32
    %c0_i32_0 = arith.constant 0 : i32
    %c0_i32_1 = arith.constant 0 : i32
    return %c0_i32, %c0_i32_0 : i32, i32
  }
  func.func @transform_3(%arg0: i32) -> (i32, i32) {
    %c0_i32 = arith.constant 0 : i32
    %c0_i32_0 = arith.constant 0 : i32
    return %arg0, %c0_i32 : i32, i32
  }
  func.func @transform_4(%arg0: i32) -> (i32, i32) {
    %c0_i32 = arith.constant 0 : i32
    %c0_i32_0 = arith.constant 0 : i32
    return %arg0, %c0_i32 : i32, i32
  }
}

module attributes {stable_mosaic.version = 11 : i64} {
  func.func @_conv_bn_kernel(%arg0: i32, %arg1: memref<256x144xbf16, #tpu.memory_space<vmem>>, %arg2: memref<144x128xbf16, #tpu.memory_space<vmem>>, %arg3: memref<1x128xf32, #tpu.memory_space<vmem>>, %arg4: memref<256x128xbf16, #tpu.memory_space<vmem>>) attributes {dimension_semantics = [#tpu.dimension_semantics<parallel>], iteration_bounds = array<i64: 2>, scalar_prefetch = 0 : i64, scratch_operands = 0 : i64, tpu.core_type = #tpu.core_type<tc>, window_params = [{transform_indices = @transform_0, window_bounds = array<i64: 256, 144>}, {pipeline_mode = #tpu.pipeline_mode<synchronous>, transform_indices = @transform_1, window_bounds = array<i64: 144, 128>}, {pipeline_mode = #tpu.pipeline_mode<synchronous>, transform_indices = @transform_2, window_bounds = array<i64: 1, 128>}, {transform_indices = @transform_3, window_bounds = array<i64: 256, 128>}]} {
    %c0 = arith.constant 0 : index
    %c0_0 = arith.constant 0 : index
    %0 = vector.load %arg1[%c0, %c0_0] : memref<256x144xbf16, #tpu.memory_space<vmem>>, vector<256x144xbf16>
    %c0_1 = arith.constant 0 : index
    %c0_2 = arith.constant 0 : index
    %1 = vector.load %arg2[%c0_1, %c0_2] : memref<144x128xbf16, #tpu.memory_space<vmem>>, vector<144x128xbf16>
    %cst = arith.constant dense<0.000000e+00> : vector<256x128xf32>
    %2 = tpu.matmul %0, %1, %cst {dimension_numbers = #tpu.dot_dimension_numbers<[1], [0], [0], [1], [0, 0, 1, 1], [], []>} : vector<256x144xbf16>, vector<144x128xbf16>, vector<256x128xf32> -> vector<256x128xf32>
    %c0_3 = arith.constant 0 : index
    %c0_4 = arith.constant 0 : index
    %3 = vector.load %arg3[%c0_3, %c0_4] : memref<1x128xf32, #tpu.memory_space<vmem>>, vector<1x128xf32>
    %4 = vector.broadcast %3 : vector<1x128xf32> to vector<256x128xf32>
    %5 = arith.addf %2, %4 : vector<256x128xf32>
    %cst_5 = arith.constant 0.000000e+00 : f32
    %6 = vector.broadcast %cst_5 : f32 to vector<256x128xf32>
    %7 = arith.maximumf %5, %6 : vector<256x128xf32>
    %8 = arith.truncf %7 : vector<256x128xf32> to vector<256x128xbf16>
    %c0_6 = arith.constant 0 : index
    %c0_7 = arith.constant 0 : index
    %9 = vector.load %arg4[%c0_6, %c0_7] : memref<256x128xbf16, #tpu.memory_space<vmem>>, vector<256x128xbf16>
    tpu.vector_store %arg4[%c0_6, %c0_7], %8 {strides = array<i32>} : memref<256x128xbf16, #tpu.memory_space<vmem>>, vector<256x128xbf16>,
    return
  }
  func.func @transform_0(%arg0: i32) -> (i32, i32) {
    %c0_i32 = arith.constant 0 : i32
    %c0_i32_0 = arith.constant 0 : i32
    return %arg0, %c0_i32 : i32, i32
  }
  func.func @transform_1(%arg0: i32) -> (i32, i32) {
    %c0_i32 = arith.constant 0 : i32
    %c0_i32_0 = arith.constant 0 : i32
    %c0_i32_1 = arith.constant 0 : i32
    return %c0_i32, %c0_i32_0 : i32, i32
  }
  func.func @transform_2(%arg0: i32) -> (i32, i32) {
    %c0_i32 = arith.constant 0 : i32
    %c0_i32_0 = arith.constant 0 : i32
    %c0_i32_1 = arith.constant 0 : i32
    return %c0_i32, %c0_i32_0 : i32, i32
  }
  func.func @transform_3(%arg0: i32) -> (i32, i32) {
    %c0_i32 = arith.constant 0 : i32
    %c0_i32_0 = arith.constant 0 : i32
    return %arg0, %c0_i32 : i32, i32
  }
}

module attributes {stable_mosaic.version = 11 : i64} {
  func.func @_conv_bn_kernel(%arg0: i32, %arg1: memref<256x144xbf16, #tpu.memory_space<vmem>>, %arg2: memref<144x128xbf16, #tpu.memory_space<vmem>>, %arg3: memref<1x128xf32, #tpu.memory_space<vmem>>, %arg4: memref<256x128xbf16, #tpu.memory_space<vmem>>) attributes {dimension_semantics = [#tpu.dimension_semantics<parallel>], iteration_bounds = array<i64: 2>, scalar_prefetch = 0 : i64, scratch_operands = 0 : i64, tpu.core_type = #tpu.core_type<tc>, window_params = [{transform_indices = @transform_0, window_bounds = array<i64: 256, 144>}, {pipeline_mode = #tpu.pipeline_mode<synchronous>, transform_indices = @transform_1, window_bounds = array<i64: 144, 128>}, {pipeline_mode = #tpu.pipeline_mode<synchronous>, transform_indices = @transform_2, window_bounds = array<i64: 1, 128>}, {transform_indices = @transform_3, window_bounds = array<i64: 256, 128>}]} {
    %c0 = arith.constant 0 : index
    %c0_0 = arith.constant 0 : index
    %0 = vector.load %arg1[%c0, %c0_0] : memref<256x144xbf16, #tpu.memory_space<vmem>>, vector<256x144xbf16>
    %c0_1 = arith.constant 0 : index
    %c0_2 = arith.constant 0 : index
    %1 = vector.load %arg2[%c0_1, %c0_2] : memref<144x128xbf16, #tpu.memory_space<vmem>>, vector<144x128xbf16>
    %cst = arith.constant dense<0.000000e+00> : vector<256x128xf32>
    %2 = tpu.matmul %0, %1, %cst {dimension_numbers = #tpu.dot_dimension_numbers<[1], [0], [0], [1], [0, 0, 1, 1], [], []>} : vector<256x144xbf16>, vector<144x128xbf16>, vector<256x128xf32> -> vector<256x128xf32>
    %c0_3 = arith.constant 0 : index
    %c0_4 = arith.constant 0 : index
    %3 = vector.load %arg3[%c0_3, %c0_4] : memref<1x128xf32, #tpu.memory_space<vmem>>, vector<1x128xf32>
    %4 = vector.broadcast %3 : vector<1x128xf32> to vector<256x128xf32>
    %5 = arith.addf %2, %4 : vector<256x128xf32>
    %6 = arith.truncf %5 : vector<256x128xf32> to vector<256x128xbf16>
    %c0_5 = arith.constant 0 : index
    %c0_6 = arith.constant 0 : index
    %7 = vector.load %arg4[%c0_5, %c0_6] : memref<256x128xbf16, #tpu.memory_space<vmem>>, vector<256x128xbf16>
    tpu.vector_store %arg4[%c0_5, %c0_6], %6 {strides = array<i32>} : memref<256x128xbf16, #tpu.memory_space<vmem>>, vector<256x128xbf16>,
    return
  }
  func.func @transform_0(%arg0: i32) -> (i32, i32) {
    %c0_i32 = arith.constant 0 : i32
    %c0_i32_0 = arith.constant 0 : i32
    return %arg0, %c0_i32 : i32, i32
  }
  func.func @transform_1(%arg0: i32) -> (i32, i32) {
    %c0_i32 = arith.constant 0 : i32
    %c0_i32_0 = arith.constant 0 : i32
    %c0_i32_1 = arith.constant 0 : i32
    return %c0_i32, %c0_i32_0 : i32, i32
  }
  func.func @transform_2(%arg0: i32) -> (i32, i32) {
    %c0_i32 = arith.constant 0 : i32
    %c0_i32_0 = arith.constant 0 : i32
    %c0_i32_1 = arith.constant 0 : i32
    return %c0_i32, %c0_i32_0 : i32, i32
  }
  func.func @transform_3(%arg0: i32) -> (i32, i32) {
    %c0_i32 = arith.constant 0 : i32
    %c0_i32_0 = arith.constant 0 : i32
    return %arg0, %c0_i32 : i32, i32
  }
}

module attributes {stable_mosaic.version = 11 : i64} {
  func.func @_conv_bn_res_kernel(%arg0: i32, %arg1: memref<256x288xbf16, #tpu.memory_space<vmem>>, %arg2: memref<288x128xbf16, #tpu.memory_space<vmem>>, %arg3: memref<1x128xf32, #tpu.memory_space<vmem>>, %arg4: memref<256x128xbf16, #tpu.memory_space<vmem>>, %arg5: memref<256x128xbf16, #tpu.memory_space<vmem>>) attributes {dimension_semantics = [#tpu.dimension_semantics<parallel>], iteration_bounds = array<i64: 2>, scalar_prefetch = 0 : i64, scratch_operands = 0 : i64, tpu.core_type = #tpu.core_type<tc>, window_params = [{transform_indices = @transform_0, window_bounds = array<i64: 256, 288>}, {pipeline_mode = #tpu.pipeline_mode<synchronous>, transform_indices = @transform_1, window_bounds = array<i64: 288, 128>}, {pipeline_mode = #tpu.pipeline_mode<synchronous>, transform_indices = @transform_2, window_bounds = array<i64: 1, 128>}, {transform_indices = @transform_3, window_bounds = array<i64: 256, 128>}, {transform_indices = @transform_4, window_bounds = array<i64: 256, 128>}]} {
    %c0 = arith.constant 0 : index
    %c0_0 = arith.constant 0 : index
    %0 = vector.load %arg1[%c0, %c0_0] : memref<256x288xbf16, #tpu.memory_space<vmem>>, vector<256x288xbf16>
    %c0_1 = arith.constant 0 : index
    %c0_2 = arith.constant 0 : index
    %1 = vector.load %arg2[%c0_1, %c0_2] : memref<288x128xbf16, #tpu.memory_space<vmem>>, vector<288x128xbf16>
    %cst = arith.constant dense<0.000000e+00> : vector<256x128xf32>
    %2 = tpu.matmul %0, %1, %cst {dimension_numbers = #tpu.dot_dimension_numbers<[1], [0], [0], [1], [0, 0, 1, 1], [], []>} : vector<256x288xbf16>, vector<288x128xbf16>, vector<256x128xf32> -> vector<256x128xf32>
    %c0_3 = arith.constant 0 : index
    %c0_4 = arith.constant 0 : index
    %3 = vector.load %arg3[%c0_3, %c0_4] : memref<1x128xf32, #tpu.memory_space<vmem>>, vector<1x128xf32>
    %4 = vector.broadcast %3 : vector<1x128xf32> to vector<256x128xf32>
    %5 = arith.addf %2, %4 : vector<256x128xf32>
    %c0_5 = arith.constant 0 : index
    %c0_6 = arith.constant 0 : index
    %6 = vector.load %arg4[%c0_5, %c0_6] : memref<256x128xbf16, #tpu.memory_space<vmem>>, vector<256x128xbf16>
    %7 = arith.extf %6 : vector<256x128xbf16> to vector<256x128xf32>
    %8 = arith.addf %5, %7 : vector<256x128xf32>
    %cst_7 = arith.constant 0.000000e+00 : f32
    %9 = vector.broadcast %cst_7 : f32 to vector<256x128xf32>
    %10 = arith.maximumf %8, %9 : vector<256x128xf32>
    %11 = arith.truncf %10 : vector<256x128xf32> to vector<256x128xbf16>
    %c0_8 = arith.constant 0 : index
    %c0_9 = arith.constant 0 : index
    %12 = vector.load %arg5[%c0_8, %c0_9] : memref<256x128xbf16, #tpu.memory_space<vmem>>, vector<256x128xbf16>
    tpu.vector_store %arg5[%c0_8, %c0_9], %11 {strides = array<i32>} : memref<256x128xbf16, #tpu.memory_space<vmem>>, vector<256x128xbf16>,
    return
  }
  func.func @transform_0(%arg0: i32) -> (i32, i32) {
    %c0_i32 = arith.constant 0 : i32
    %c0_i32_0 = arith.constant 0 : i32
    return %arg0, %c0_i32 : i32, i32
  }
  func.func @transform_1(%arg0: i32) -> (i32, i32) {
    %c0_i32 = arith.constant 0 : i32
    %c0_i32_0 = arith.constant 0 : i32
    %c0_i32_1 = arith.constant 0 : i32
    return %c0_i32, %c0_i32_0 : i32, i32
  }
  func.func @transform_2(%arg0: i32) -> (i32, i32) {
    %c0_i32 = arith.constant 0 : i32
    %c0_i32_0 = arith.constant 0 : i32
    %c0_i32_1 = arith.constant 0 : i32
    return %c0_i32, %c0_i32_0 : i32, i32
  }
  func.func @transform_3(%arg0: i32) -> (i32, i32) {
    %c0_i32 = arith.constant 0 : i32
    %c0_i32_0 = arith.constant 0 : i32
    return %arg0, %c0_i32 : i32, i32
  }
  func.func @transform_4(%arg0: i32) -> (i32, i32) {
    %c0_i32 = arith.constant 0 : i32
    %c0_i32_0 = arith.constant 0 : i32
    return %arg0, %c0_i32 : i32, i32
  }
}

module attributes {stable_mosaic.version = 11 : i64} {
  func.func @_conv_bn_kernel(%arg0: i32, %arg1: memref<128x288xbf16, #tpu.memory_space<vmem>>, %arg2: memref<288x128xbf16, #tpu.memory_space<vmem>>, %arg3: memref<1x128xf32, #tpu.memory_space<vmem>>, %arg4: memref<128x128xbf16, #tpu.memory_space<vmem>>) attributes {dimension_semantics = [#tpu.dimension_semantics<parallel>], iteration_bounds = array<i64: 1>, scalar_prefetch = 0 : i64, scratch_operands = 0 : i64, tpu.core_type = #tpu.core_type<tc>, window_params = [{transform_indices = @transform_0, window_bounds = array<i64: 128, 288>}, {pipeline_mode = #tpu.pipeline_mode<synchronous>, transform_indices = @transform_1, window_bounds = array<i64: 288, 128>}, {pipeline_mode = #tpu.pipeline_mode<synchronous>, transform_indices = @transform_2, window_bounds = array<i64: 1, 128>}, {transform_indices = @transform_3, window_bounds = array<i64: 128, 128>}]} {
    %c0 = arith.constant 0 : index
    %c0_0 = arith.constant 0 : index
    %0 = vector.load %arg1[%c0, %c0_0] : memref<128x288xbf16, #tpu.memory_space<vmem>>, vector<128x288xbf16>
    %c0_1 = arith.constant 0 : index
    %c0_2 = arith.constant 0 : index
    %1 = vector.load %arg2[%c0_1, %c0_2] : memref<288x128xbf16, #tpu.memory_space<vmem>>, vector<288x128xbf16>
    %cst = arith.constant dense<0.000000e+00> : vector<128x128xf32>
    %2 = tpu.matmul %0, %1, %cst {dimension_numbers = #tpu.dot_dimension_numbers<[1], [0], [0], [1], [0, 0, 1, 1], [], []>} : vector<128x288xbf16>, vector<288x128xbf16>, vector<128x128xf32> -> vector<128x128xf32>
    %c0_3 = arith.constant 0 : index
    %c0_4 = arith.constant 0 : index
    %3 = vector.load %arg3[%c0_3, %c0_4] : memref<1x128xf32, #tpu.memory_space<vmem>>, vector<1x128xf32>
    %4 = vector.broadcast %3 : vector<1x128xf32> to vector<128x128xf32>
    %5 = arith.addf %2, %4 : vector<128x128xf32>
    %cst_5 = arith.constant 0.000000e+00 : f32
    %6 = vector.broadcast %cst_5 : f32 to vector<128x128xf32>
    %7 = arith.maximumf %5, %6 : vector<128x128xf32>
    %8 = arith.truncf %7 : vector<128x128xf32> to vector<128x128xbf16>
    %c0_6 = arith.constant 0 : index
    %c0_7 = arith.constant 0 : index
    %9 = vector.load %arg4[%c0_6, %c0_7] : memref<128x128xbf16, #tpu.memory_space<vmem>>, vector<128x128xbf16>
    tpu.vector_store %arg4[%c0_6, %c0_7], %8 {strides = array<i32>} : memref<128x128xbf16, #tpu.memory_space<vmem>>, vector<128x128xbf16>,
    return
  }
  func.func @transform_0(%arg0: i32) -> (i32, i32) {
    %c0_i32 = arith.constant 0 : i32
    %c0_i32_0 = arith.constant 0 : i32
    return %arg0, %c0_i32 : i32, i32
  }
  func.func @transform_1(%arg0: i32) -> (i32, i32) {
    %c0_i32 = arith.constant 0 : i32
    %c0_i32_0 = arith.constant 0 : i32
    %c0_i32_1 = arith.constant 0 : i32
    return %c0_i32, %c0_i32_0 : i32, i32
  }
  func.func @transform_2(%arg0: i32) -> (i32, i32) {
    %c0_i32 = arith.constant 0 : i32
    %c0_i32_0 = arith.constant 0 : i32
    %c0_i32_1 = arith.constant 0 : i32
    return %c0_i32, %c0_i32_0 : i32, i32
  }
  func.func @transform_3(%arg0: i32) -> (i32, i32) {
    %c0_i32 = arith.constant 0 : i32
    %c0_i32_0 = arith.constant 0 : i32
    return %arg0, %c0_i32 : i32, i32
  }
}

module attributes {stable_mosaic.version = 11 : i64} {
  func.func @_conv_bn_kernel(%arg0: i32, %arg1: memref<128x288xbf16, #tpu.memory_space<vmem>>, %arg2: memref<288x128xbf16, #tpu.memory_space<vmem>>, %arg3: memref<1x128xf32, #tpu.memory_space<vmem>>, %arg4: memref<128x128xbf16, #tpu.memory_space<vmem>>) attributes {dimension_semantics = [#tpu.dimension_semantics<parallel>], iteration_bounds = array<i64: 1>, scalar_prefetch = 0 : i64, scratch_operands = 0 : i64, tpu.core_type = #tpu.core_type<tc>, window_params = [{transform_indices = @transform_0, window_bounds = array<i64: 128, 288>}, {pipeline_mode = #tpu.pipeline_mode<synchronous>, transform_indices = @transform_1, window_bounds = array<i64: 288, 128>}, {pipeline_mode = #tpu.pipeline_mode<synchronous>, transform_indices = @transform_2, window_bounds = array<i64: 1, 128>}, {transform_indices = @transform_3, window_bounds = array<i64: 128, 128>}]} {
    %c0 = arith.constant 0 : index
    %c0_0 = arith.constant 0 : index
    %0 = vector.load %arg1[%c0, %c0_0] : memref<128x288xbf16, #tpu.memory_space<vmem>>, vector<128x288xbf16>
    %c0_1 = arith.constant 0 : index
    %c0_2 = arith.constant 0 : index
    %1 = vector.load %arg2[%c0_1, %c0_2] : memref<288x128xbf16, #tpu.memory_space<vmem>>, vector<288x128xbf16>
    %cst = arith.constant dense<0.000000e+00> : vector<128x128xf32>
    %2 = tpu.matmul %0, %1, %cst {dimension_numbers = #tpu.dot_dimension_numbers<[1], [0], [0], [1], [0, 0, 1, 1], [], []>} : vector<128x288xbf16>, vector<288x128xbf16>, vector<128x128xf32> -> vector<128x128xf32>
    %c0_3 = arith.constant 0 : index
    %c0_4 = arith.constant 0 : index
    %3 = vector.load %arg3[%c0_3, %c0_4] : memref<1x128xf32, #tpu.memory_space<vmem>>, vector<1x128xf32>
    %4 = vector.broadcast %3 : vector<1x128xf32> to vector<128x128xf32>
    %5 = arith.addf %2, %4 : vector<128x128xf32>
    %6 = arith.truncf %5 : vector<128x128xf32> to vector<128x128xbf16>
    %c0_5 = arith.constant 0 : index
    %c0_6 = arith.constant 0 : index
    %7 = vector.load %arg4[%c0_5, %c0_6] : memref<128x128xbf16, #tpu.memory_space<vmem>>, vector<128x128xbf16>
    tpu.vector_store %arg4[%c0_5, %c0_6], %6 {strides = array<i32>} : memref<128x128xbf16, #tpu.memory_space<vmem>>, vector<128x128xbf16>,
    return
  }
  func.func @transform_0(%arg0: i32) -> (i32, i32) {
    %c0_i32 = arith.constant 0 : i32
    %c0_i32_0 = arith.constant 0 : i32
    return %arg0, %c0_i32 : i32, i32
  }
  func.func @transform_1(%arg0: i32) -> (i32, i32) {
    %c0_i32 = arith.constant 0 : i32
    %c0_i32_0 = arith.constant 0 : i32
    %c0_i32_1 = arith.constant 0 : i32
    return %c0_i32, %c0_i32_0 : i32, i32
  }
  func.func @transform_2(%arg0: i32) -> (i32, i32) {
    %c0_i32 = arith.constant 0 : i32
    %c0_i32_0 = arith.constant 0 : i32
    %c0_i32_1 = arith.constant 0 : i32
    return %c0_i32, %c0_i32_0 : i32, i32
  }
  func.func @transform_3(%arg0: i32) -> (i32, i32) {
    %c0_i32 = arith.constant 0 : i32
    %c0_i32_0 = arith.constant 0 : i32
    return %arg0, %c0_i32 : i32, i32
  }
}

module attributes {stable_mosaic.version = 11 : i64} {
  func.func @_final_block_kernel(%arg0: i32, %arg1: memref<128x576xbf16, #tpu.memory_space<vmem>>, %arg2: memref<576x128xbf16, #tpu.memory_space<vmem>>, %arg3: memref<1x128xf32, #tpu.memory_space<vmem>>, %arg4: memref<128x128xbf16, #tpu.memory_space<vmem>>, %arg5: memref<2x128xf32, #tpu.memory_space<vmem>>, %arg6: memref<128x128xf32, #tpu.memory_space<vmem>>, %arg7: memref<1x128xf32, #tpu.memory_space<vmem>>, %arg8: memref<2x128xf32, #tpu.memory_space<vmem>>) attributes {dimension_semantics = [#tpu.dimension_semantics<arbitrary>], iteration_bounds = array<i64: 1>, scalar_prefetch = 0 : i64, scratch_operands = 0 : i64, tpu.core_type = #tpu.core_type<tc>, window_params = [{pipeline_mode = #tpu.pipeline_mode<synchronous>, transform_indices = @transform_0, window_bounds = array<i64: 128, 576>}, {pipeline_mode = #tpu.pipeline_mode<synchronous>, transform_indices = @transform_1, window_bounds = array<i64: 576, 128>}, {pipeline_mode = #tpu.pipeline_mode<synchronous>, transform_indices = @transform_2, window_bounds = array<i64: 1, 128>}, {pipeline_mode = #tpu.pipeline_mode<synchronous>, transform_indices = @transform_3, window_bounds = array<i64: 128, 128>}, {pipeline_mode = #tpu.pipeline_mode<synchronous>, transform_indices = @transform_4, window_bounds = array<i64: 2, 128>}, {pipeline_mode = #tpu.pipeline_mode<synchronous>, transform_indices = @transform_5, window_bounds = array<i64: 128, 128>}, {pipeline_mode = #tpu.pipeline_mode<synchronous>, transform_indices = @transform_6, window_bounds = array<i64: 1, 128>}, {pipeline_mode = #tpu.pipeline_mode<synchronous>, transform_indices = @transform_7, window_bounds = array<i64: 2, 128>}]} {
    %c0 = arith.constant 0 : index
    %c0_0 = arith.constant 0 : index
    %0 = vector.load %arg1[%c0, %c0_0] : memref<128x576xbf16, #tpu.memory_space<vmem>>, vector<128x576xbf16>
    %c0_1 = arith.constant 0 : index
    %c0_2 = arith.constant 0 : index
    %1 = vector.load %arg2[%c0_1, %c0_2] : memref<576x128xbf16, #tpu.memory_space<vmem>>, vector<576x128xbf16>
    %cst = arith.constant dense<0.000000e+00> : vector<128x128xf32>
    %2 = tpu.matmul %0, %1, %cst {dimension_numbers = #tpu.dot_dimension_numbers<[1], [0], [0], [1], [0, 0, 1, 1], [], []>} : vector<128x576xbf16>, vector<576x128xbf16>, vector<128x128xf32> -> vector<128x128xf32>
    %c0_3 = arith.constant 0 : index
    %c0_4 = arith.constant 0 : index
    %3 = vector.load %arg3[%c0_3, %c0_4] : memref<1x128xf32, #tpu.memory_space<vmem>>, vector<1x128xf32>
    %4 = vector.broadcast %3 : vector<1x128xf32> to vector<128x128xf32>
    %5 = arith.addf %2, %4 : vector<128x128xf32>
    %c0_5 = arith.constant 0 : index
    %c0_6 = arith.constant 0 : index
    %6 = vector.load %arg4[%c0_5, %c0_6] : memref<128x128xbf16, #tpu.memory_space<vmem>>, vector<128x128xbf16>
    %7 = arith.extf %6 : vector<128x128xbf16> to vector<128x128xf32>
    %8 = arith.addf %5, %7 : vector<128x128xf32>
    %cst_7 = arith.constant 0.000000e+00 : f32
    %9 = vector.broadcast %cst_7 : f32 to vector<128x128xf32>
    %10 = arith.maximumf %8, %9 : vector<128x128xf32>
    %c0_8 = arith.constant 0 : index
    %c0_9 = arith.constant 0 : index
    %11 = vector.load %arg5[%c0_8, %c0_9] : memref<2x128xf32, #tpu.memory_space<vmem>>, vector<2x128xf32>
    %cst_10 = arith.constant dense<0.000000e+00> : vector<2x128xf32>
    %12 = tpu.matmul %11, %10, %cst_10 {dimension_numbers = #tpu.dot_dimension_numbers<[1], [0], [0], [1], [0, 0, 1, 1], [], []>} : vector<2x128xf32>, vector<128x128xf32>, vector<2x128xf32> -> vector<2x128xf32>
    %c0_11 = arith.constant 0 : index
    %c0_12 = arith.constant 0 : index
    %13 = vector.load %arg6[%c0_11, %c0_12] : memref<128x128xf32, #tpu.memory_space<vmem>>, vector<128x128xf32>
    %cst_13 = arith.constant dense<0.000000e+00> : vector<2x128xf32>
    %14 = tpu.matmul %12, %13, %cst_13 {dimension_numbers = #tpu.dot_dimension_numbers<[1], [0], [0], [1], [0, 0, 1, 1], [], []>} : vector<2x128xf32>, vector<128x128xf32>, vector<2x128xf32> -> vector<2x128xf32>
    %c0_14 = arith.constant 0 : index
    %c0_15 = arith.constant 0 : index
    %15 = vector.load %arg7[%c0_14, %c0_15] : memref<1x128xf32, #tpu.memory_space<vmem>>, vector<1x128xf32>
    %16 = vector.broadcast %15 : vector<1x128xf32> to vector<2x128xf32>
    %17 = arith.addf %14, %16 : vector<2x128xf32>
    %c0_16 = arith.constant 0 : index
    %c0_17 = arith.constant 0 : index
    %18 = vector.load %arg8[%c0_16, %c0_17] : memref<2x128xf32, #tpu.memory_space<vmem>>, vector<2x128xf32>
    tpu.vector_store %arg8[%c0_16, %c0_17], %17 {strides = array<i32>} : memref<2x128xf32, #tpu.memory_space<vmem>>, vector<2x128xf32>,
    return
  }
  func.func @transform_0(%arg0: i32) -> (i32, i32) {
    %c0_i32 = arith.constant 0 : i32
    %c0_i32_0 = arith.constant 0 : i32
    %c0_i32_1 = arith.constant 0 : i32
    return %c0_i32, %c0_i32_0 : i32, i32
  }
  func.func @transform_1(%arg0: i32) -> (i32, i32) {
    %c0_i32 = arith.constant 0 : i32
    %c0_i32_0 = arith.constant 0 : i32
    %c0_i32_1 = arith.constant 0 : i32
    return %c0_i32, %c0_i32_0 : i32, i32
  }
  func.func @transform_2(%arg0: i32) -> (i32, i32) {
    %c0_i32 = arith.constant 0 : i32
    %c0_i32_0 = arith.constant 0 : i32
    %c0_i32_1 = arith.constant 0 : i32
    return %c0_i32, %c0_i32_0 : i32, i32
  }
  func.func @transform_3(%arg0: i32) -> (i32, i32) {
    %c0_i32 = arith.constant 0 : i32
    %c0_i32_0 = arith.constant 0 : i32
    %c0_i32_1 = arith.constant 0 : i32
    return %c0_i32, %c0_i32_0 : i32, i32
  }
  func.func @transform_4(%arg0: i32) -> (i32, i32) {
    %c0_i32 = arith.constant 0 : i32
    %c0_i32_0 = arith.constant 0 : i32
    %c0_i32_1 = arith.constant 0 : i32
    return %c0_i32, %c0_i32_0 : i32, i32
  }
  func.func @transform_5(%arg0: i32) -> (i32, i32) {
    %c0_i32 = arith.constant 0 : i32
    %c0_i32_0 = arith.constant 0 : i32
    %c0_i32_1 = arith.constant 0 : i32
    return %c0_i32, %c0_i32_0 : i32, i32
  }
  func.func @transform_6(%arg0: i32) -> (i32, i32) {
    %c0_i32 = arith.constant 0 : i32
    %c0_i32_0 = arith.constant 0 : i32
    %c0_i32_1 = arith.constant 0 : i32
    return %c0_i32, %c0_i32_0 : i32, i32
  }
  func.func @transform_7(%arg0: i32) -> (i32, i32) {
    %c0_i32 = arith.constant 0 : i32
    %c0_i32_0 = arith.constant 0 : i32
    %c0_i32_1 = arith.constant 0 : i32
    return %c0_i32, %c0_i32_0 : i32, i32
  }
}

</mosaic_0001>

<bundles_post_ra>
// kernel: _lambda_.9
= control target key start
LH: loop header
LB: loop body
LE: loop exit
PB: predicated region body
PF: predicated region fallthrough
CT: control target
= control target key end

     0   :  { %s1388_s12 = smov 0   ;;  %s1590_s0 = inlined_call_operand.vmem [shape: bf16[2048,27], index: 0, kind: input, shape index: {}]   ;;  %s1591_s1 = inlined_call_operand.vmem [shape: bf16[27,128], index: 1, kind: input, shape index: {}]   ;;  %s1592_s2 = inlined_call_operand.vmem [shape: f32[1,128], index: 2, kind: input, shape index: {}]   ;;  %s1593_s3 = inlined_call_operand.vmem [shape: bf16[2048,128], index: 3, kind: output, shape index: {}]  }
   0x1 LB: > { %s939_s13 = sadd.s32 4294967295, %s1365_s12   ;;  %p943_p0 = scmp.ge.s32.totalorder %s1365_s12, 1  ;;  %s1365_s12 = sphi %s1388_s12, %s13_s12  }
   0x2   : > { %p138_p1 = scmp.lt.s32.totalorder %s1365_s12, 5 }
   0x4   : > { %p139_p2 = pnand %p943_p0, %p138_p1 }
   0x5   : > { %s944_s18 = sshll.u32 (!%p139_p2), %s939_s13, 6 }
   0x6   : > { %142 = sbr.rel (%p139_p2) target bundleno = 285 (0x11d), region = 32  ;;  %p163_p3 = scmp.lt.s32.totalorder (!%p139_p2), %s944_s18, 255 }
   0xb   : > { %v1082_v0 = vld [vmem:[%s1591_s1 + $0x8] sm:$0xf]  ;;  %v1151_v1 = vld [vmem:[%s1591_s1 + $0x8] sm:$0x30]  ;;  %vm515_vm0 = vcmask 1044480   ;;  %vm516_vm1 = vcmask 1045504  }
   0xc   : > { %v1083_v2 = vor.u32 %v1151_v1, %v1082_v0  ;;  %v1367_v3 = vmov 65535   ;;  %s1595_s18 = smov (!%p163_p3, %s944_s18), 255  ;;  %v1150_v7 = vld [vmem:[%s1591_s1] sm:$0xff]  ;;  %vm418_vm2 = vcmask 220160  }
   0xd   : > { %v517_v4 = vsel %vm515_vm0, 4294967295, %v1367_v3  ;;  %s945_s21 = sshll.u32 %s1595_s18, 2  ;;  %v1482_v42 = vld [vmem:[%s1592_s2] ss:$0 sm:$0xff] }
   0xe   : > { %v518_v5 = vsel %vm516_vm1, %v517_v4, 0  ;;  %s1413_s24 = scalar_lea.vmem %s1590_s0, %s945_s21  ;;  %s1493_s29 = scalar_lea.vmem %s1593_s3, %s945_s21 }
   0xf   : > { %v520_v6 = vand.u32 %v1083_v2, %v518_v5  ;;  %v1118_v8 = vld [vmem:[%s1413_s24] sm:$0xff]  ;;  %v1119_v12 = vld [vmem:[%s1413_s24 + $0x8] sm:$0xff]  ;;  %v1120_v16 = vld [vmem:[%s1413_s24 + $0x10] sm:$0xff] }
  0x10   : > { %v1126_v9 = vld [vmem:[%s1413_s24 + $0x40] sm:$0xff]  ;;  %v1127_v13 = vld [vmem:[%s1413_s24 + $0x48] sm:$0xff]  ;;  %v1128_v17 = vld [vmem:[%s1413_s24 + $0x50] sm:$0xff] }
  0x11   : > { %528 = vmatpush.bf16.msra.mxu0 %v520_v6  ;;  %1343 = vmatpush.bf16.msra.mxu1 %v520_v6  ;;  %v1134_v10 = vld [vmem:[%s1413_s24 + $0x80] sm:$0xff]  ;;  %v1135_v14 = vld [vmem:[%s1413_s24 + $0x88] sm:$0xff]  ;;  %v1136_v18 = vld [vmem:[%s1413_s24 + $0x90] sm:$0xff] }
  0x12   : > { %1344 = vmatpush.bf16.msra.mxu2 %v520_v6  ;;  %1345 = vmatpush.bf16.msra.mxu3 %v520_v6  ;;  %v1142_v11 = vld [vmem:[%s1413_s24 + $0xc0] sm:$0xff]  ;;  %v1143_v15 = vld [vmem:[%s1413_s24 + $0xc8] sm:$0xff]  ;;  %v1144_v19 = vld [vmem:[%s1413_s24 + $0xd0] sm:$0xff] }
  0x13   : > { %v1121_v20 = vld [vmem:[%s1413_s24 + $0x18] sm:$0xff]  ;;  %v1122_v24 = vld [vmem:[%s1413_s24 + $0x20] sm:$0xff]  ;;  %v1123_v28 = vld [vmem:[%s1413_s24 + $0x28] sm:$0xff] }
  0x14   : > { %v1129_v21 = vld [vmem:[%s1413_s24 + $0x58] sm:$0xff]  ;;  %v1130_v25 = vld [vmem:[%s1413_s24 + $0x60] sm:$0xff]  ;;  %v1131_v29 = vld [vmem:[%s1413_s24 + $0x68] sm:$0xff] }
  0x15   : > { %529 = vmatpush.bf16.msra.mxu0 %v1150_v7  ;;  %1346 = vmatpush.bf16.msra.mxu1 %v1150_v7  ;;  %v1137_v22 = vld [vmem:[%s1413_s24 + $0x98] sm:$0xff]  ;;  %v1138_v26 = vld [vmem:[%s1413_s24 + $0xa0] sm:$0xff]  ;;  %v1139_v30 = vld [vmem:[%s1413_s24 + $0xa8] sm:$0xff] }
  0x16   : > { %1347 = vmatpush.bf16.msra.mxu2 %v1150_v7  ;;  %1348 = vmatpush.bf16.msra.mxu3 %v1150_v7  ;;  %v1145_v23 = vld [vmem:[%s1413_s24 + $0xd8] sm:$0xff]  ;;  %v1146_v27 = vld [vmem:[%s1413_s24 + $0xe0] sm:$0xff]  ;;  %v1147_v31 = vld [vmem:[%s1413_s24 + $0xe8] sm:$0xff] }
  0x17   : > { %v1124_v32 = vld [vmem:[%s1413_s24 + $0x30] sm:$0xff]  ;;  %v1125_v36 = vld [vmem:[%s1413_s24 + $0x38] sm:$0xff] }
  0x18   : > { %1084 = vmatmul.msk.bf16.vlgmr.msra.gmra.mxu0 %vm418_vm2, %v1118_v8  ;;  %1092 = vmatmul.msk.bf16.vlgmr.msra.gmra.mxu1 %vm418_vm2, %v1126_v9  ;;  %v1132_v33 = vld [vmem:[%s1413_s24 + $0x70] sm:$0xff]  ;;  %v1133_v37 = vld [vmem:[%s1413_s24 + $0x78] sm:$0xff] }
  0x19   : > { %1100 = vmatmul.msk.bf16.vlgmr.msra.gmra.mxu2 %vm418_vm2, %v1134_v10  ;;  %1108 = vmatmul.msk.bf16.vlgmr.msra.gmra.mxu3 %vm418_vm2, %v1142_v11  ;;  %v1140_v34 = vld [vmem:[%s1413_s24 + $0xb0] sm:$0xff]  ;;  %v1141_v38 = vld [vmem:[%s1413_s24 + $0xb8] sm:$0xff] }
  0x1a   : > { %v1148_v35 = vld [vmem:[%s1413_s24 + $0xf0] sm:$0xff]  ;;  %v1149_v39 = vld [vmem:[%s1413_s24 + $0xf8] sm:$0xff] }
  0x28   : > { %1085 = vmatmul.msk.bf16.gmra.mxu0 %vm418_vm2, %v1119_v12  ;;  %1093 = vmatmul.msk.bf16.gmra.mxu1 %vm418_vm2, %v1127_v13 }
  0x29   : > { %1101 = vmatmul.msk.bf16.gmra.mxu2 %vm418_vm2, %v1135_v14  ;;  %1109 = vmatmul.msk.bf16.gmra.mxu3 %vm418_vm2, %v1143_v15 }
  0x38   : > { %1086 = vmatmul.msk.bf16.gmra.mxu0 %vm418_vm2, %v1120_v16  ;;  %1094 = vmatmul.msk.bf16.gmra.mxu1 %vm418_vm2, %v1128_v17 }
  0x39   : > { %1102 = vmatmul.msk.bf16.gmra.mxu2 %vm418_vm2, %v1136_v18  ;;  %1110 = vmatmul.msk.bf16.gmra.mxu3 %vm418_vm2, %v1144_v19 }
  0x48   : > { %1087 = vmatmul.msk.bf16.gmra.mxu0 %vm418_vm2, %v1121_v20  ;;  %1095 = vmatmul.msk.bf16.gmra.mxu1 %vm418_vm2, %v1129_v21 }
  0x49   : > { %1103 = vmatmul.msk.bf16.gmra.mxu2 %vm418_vm2, %v1137_v22  ;;  %1111 = vmatmul.msk.bf16.gmra.mxu3 %vm418_vm2, %v1145_v23 }
  0x58   : > { %1088 = vmatmul.msk.bf16.gmra.mxu0 %vm418_vm2, %v1122_v24  ;;  %1096 = vmatmul.msk.bf16.gmra.mxu1 %vm418_vm2, %v1130_v25 }
  0x59   : > { %1104 = vmatmul.msk.bf16.gmra.mxu2 %vm418_vm2, %v1138_v26  ;;  %1112 = vmatmul.msk.bf16.gmra.mxu3 %vm418_vm2, %v1146_v27 }
  0x68   : > { %1089 = vmatmul.msk.bf16.gmra.mxu0 %vm418_vm2, %v1123_v28  ;;  %1097 = vmatmul.msk.bf16.gmra.mxu1 %vm418_vm2, %v1131_v29 }
  0x69   : > { %1105 = vmatmul.msk.bf16.gmra.mxu2 %vm418_vm2, %v1139_v30  ;;  %1113 = vmatmul.msk.bf16.gmra.mxu3 %vm418_vm2, %v1147_v31 }
  0x78   : > { %1090 = vmatmul.msk.bf16.gmra.mxu0 %vm418_vm2, %v1124_v32  ;;  %1098 = vmatmul.msk.bf16.gmra.mxu1 %vm418_vm2, %v1132_v33 }
  0x79   : > { %1106 = vmatmul.msk.bf16.gmra.mxu2 %vm418_vm2, %v1140_v34  ;;  %1114 = vmatmul.msk.bf16.gmra.mxu3 %vm418_vm2, %v1148_v35 }
  0x88   : > { %1091 = vmatmul.msk.bf16.gmra.mxu0 %vm418_vm2, %v1125_v36  ;;  %1099 = vmatmul.msk.bf16.gmra.mxu1 %vm418_vm2, %v1133_v37 }
  0x89   : > { %1107 = vmatmul.msk.bf16.gmra.mxu2 %vm418_vm2, %v1141_v38  ;;  %1115 = vmatmul.msk.bf16.gmra.mxu3 %vm418_vm2, %v1149_v39 }
  0x95   : > { %v531_v40 = vpop.f32.mrf.mxu0  ;;  %v571_v41 = vpop.f32.mrf.mxu1 }
  0x96   : > { %v532_v43 = vadd.f32 %v1482_v42, %v531_v40  ;;  %v572_v44 = vadd.f32 %v1482_v42, %v571_v41 }
  0x98   : > { %v691_v51 = vmax.f32 %v532_v43, 0.0  ;;  %v707_v52 = vmax.f32 %v572_v44, 0.0 }
  0x9c   : > { %v611_v45 = vpop.f32.mrf.mxu2  ;;  %v651_v46 = vpop.f32.mrf.mxu3 }
  0x9d   : > { %v533_v47 = vpop.f32.mrf.mxu0  ;;  %v573_v48 = vpop.f32.mrf.mxu1  ;;  %v612_v57 = vadd.f32 %v1482_v42, %v611_v45  ;;  %v652_v58 = vadd.f32 %v1482_v42, %v651_v46 }
  0x9e   : > { %v534_v49 = vadd.f32 %v1482_v42, %v533_v47  ;;  %v574_v50 = vadd.f32 %v1482_v42, %v573_v48 }
  0x9f   : > { %v723_v1 = vmax.f32 %v612_v57, 0.0  ;;  %v739_v2 = vmax.f32 %v652_v58, 0.0 }
  0xa0   : > { %v692_v53 = vmax.f32 %v534_v49, 0.0  ;;  %v708_v54 = vmax.f32 %v574_v50, 0.0 }
  0xa2   : > { %v1155_v55 = vpack.c.bf16 %v692_v53, %v691_v51  ;;  %v1195_v56 = vpack.c.bf16 %v708_v54, %v707_v52 }
  0xa4   : > { %1156 = vst [vmem:[%s1493_s29] sm:$0xff] %v1155_v55   ;;  %v613_v59 = vpop.f32.mrf.mxu2  ;;  %v653_v60 = vpop.f32.mrf.mxu3 }
  0xa5   : > { %1319 = vst [vmem:[%s1493_s29 + $0x40] sm:$0xff] %v1195_v56   ;;  %v614_v61 = vadd.f32 %v1482_v42, %v613_v59  ;;  %v654_v62 = vadd.f32 %v1482_v42, %v653_v60  ;;  %v536_v63 = vpop.f32.mrf.mxu0  ;;  %v576_v0 = vpop.f32.mrf.mxu1 }
  0xa6   : > { %v537_v7 = vadd.f32 %v1482_v42, %v536_v63  ;;  %v577_v8 = vadd.f32 %v1482_v42, %v576_v0 }
  0xa7   : > { %v724_v3 = vmax.f32 %v614_v61, 0.0  ;;  %v740_v4 = vmax.f32 %v654_v62, 0.0 }
  0xa8   : > { %v693_v15 = vmax.f32 %v537_v7, 0.0  ;;  %v709_v16 = vmax.f32 %v577_v8, 0.0 }
  0xa9   : > { %v1235_v5 = vpack.c.bf16 %v724_v3, %v723_v1  ;;  %v1275_v6 = vpack.c.bf16 %v740_v4, %v739_v2 }
  0xab   : > { %1327 = vst [vmem:[%s1493_s29 + $0x80] sm:$0xff] %v1235_v5  }
  0xac   : > { %1335 = vst [vmem:[%s1493_s29 + $0xc0] sm:$0xff] %v1275_v6   ;;  %v616_v9 = vpop.f32.mrf.mxu2  ;;  %v656_v10 = vpop.f32.mrf.mxu3 }
  0xad   : > { %v538_v11 = vpop.f32.mrf.mxu0  ;;  %v578_v12 = vpop.f32.mrf.mxu1  ;;  %v617_v21 = vadd.f32 %v1482_v42, %v616_v9  ;;  %v657_v22 = vadd.f32 %v1482_v42, %v656_v10 }
  0xae   : > { %v539_v13 = vadd.f32 %v1482_v42, %v538_v11  ;;  %v579_v14 = vadd.f32 %v1482_v42, %v578_v12 }
  0xaf   : > { %v725_v29 = vmax.f32 %v617_v21, 0.0  ;;  %v741_v30 = vmax.f32 %v657_v22, 0.0 }
  0xb0   : > { %v694_v17 = vmax.f32 %v539_v13, 0.0  ;;  %v710_v18 = vmax.f32 %v579_v14, 0.0 }
  0xb2   : > { %v1160_v19 = vpack.c.bf16 %v694_v17, %v693_v15  ;;  %v1200_v20 = vpack.c.bf16 %v710_v18, %v709_v16 }
  0xb4   : > { %1312 = vst [vmem:[%s1493_s29 + $0x8] sm:$0xff] %v1160_v19   ;;  %v618_v23 = vpop.f32.mrf.mxu2  ;;  %v658_v24 = vpop.f32.mrf.mxu3 }
  0xb5   : > { %1320 = vst [vmem:[%s1493_s29 + $0x48] sm:$0xff] %v1200_v20   ;;  %v619_v25 = vadd.f32 %v1482_v42, %v618_v23  ;;  %v659_v26 = vadd.f32 %v1482_v42, %v658_v24  ;;  %v541_v27 = vpop.f32.mrf.mxu0  ;;  %v581_v28 = vpop.f32.mrf.mxu1 }
  0xb6   : > { %v542_v35 = vadd.f32 %v1482_v42, %v541_v27  ;;  %v582_v36 = vadd.f32 %v1482_v42, %v581_v28 }
  0xb7   : > { %v726_v31 = vmax.f32 %v619_v25, 0.0  ;;  %v742_v32 = vmax.f32 %v659_v26, 0.0 }
  0xb8   : > { %v695_v44 = vmax.f32 %v542_v35, 0.0  ;;  %v711_v45 = vmax.f32 %v582_v36, 0.0 }
  0xb9   : > { %v1240_v33 = vpack.c.bf16 %v726_v31, %v725_v29  ;;  %v1280_v34 = vpack.c.bf16 %v742_v32, %v741_v30 }
  0xbb   : > { %1328 = vst [vmem:[%s1493_s29 + $0x88] sm:$0xff] %v1240_v33  }
  0xbc   : > { %1336 = vst [vmem:[%s1493_s29 + $0xc8] sm:$0xff] %v1280_v34   ;;  %v621_v37 = vpop.f32.mrf.mxu2  ;;  %v661_v38 = vpop.f32.mrf.mxu3 }
  0xbd   : > { %v543_v39 = vpop.f32.mrf.mxu0  ;;  %v583_v40 = vpop.f32.mrf.mxu1  ;;  %v622_v50 = vadd.f32 %v1482_v42, %v621_v37  ;;  %v662_v51 = vadd.f32 %v1482_v42, %v661_v38 }
  0xbe   : > { %v544_v41 = vadd.f32 %v1482_v42, %v543_v39  ;;  %v584_v43 = vadd.f32 %v1482_v42, %v583_v40 }
  0xbf   : > { %v727_v58 = vmax.f32 %v622_v50, 0.0  ;;  %v743_v59 = vmax.f32 %v662_v51, 0.0 }
  0xc0   : > { %v696_v46 = vmax.f32 %v544_v41, 0.0  ;;  %v712_v47 = vmax.f32 %v584_v43, 0.0 }
  0xc2   : > { %v1165_v48 = vpack.c.bf16 %v696_v46, %v695_v44  ;;  %v1205_v49 = vpack.c.bf16 %v712_v47, %v711_v45 }
  0xc4   : > { %1313 = vst [vmem:[%s1493_s29 + $0x10] sm:$0xff] %v1165_v48   ;;  %v623_v52 = vpop.f32.mrf.mxu2  ;;  %v663_v53 = vpop.f32.mrf.mxu3 }
  0xc5   : > { %1321 = vst [vmem:[%s1493_s29 + $0x50] sm:$0xff] %v1205_v49   ;;  %v624_v54 = vadd.f32 %v1482_v42, %v623_v52  ;;  %v664_v55 = vadd.f32 %v1482_v42, %v663_v53  ;;  %v546_v56 = vpop.f32.mrf.mxu0  ;;  %v586_v57 = vpop.f32.mrf.mxu1 }
  0xc6   : > { %v547_v0 = vadd.f32 %v1482_v42, %v546_v56  ;;  %v587_v1 = vadd.f32 %v1482_v42, %v586_v57 }
  0xc7   : > { %v728_v60 = vmax.f32 %v624_v54, 0.0  ;;  %v744_v61 = vmax.f32 %v664_v55, 0.0 }
  0xc8   : > { %v697_v8 = vmax.f32 %v547_v0, 0.0  ;;  %v713_v9 = vmax.f32 %v587_v1, 0.0 }
  0xc9   : > { %v1245_v62 = vpack.c.bf16 %v728_v60, %v727_v58  ;;  %v1285_v63 = vpack.c.bf16 %v744_v61, %v743_v59 }
  0xcb   : > { %1329 = vst [vmem:[%s1493_s29 + $0x90] sm:$0xff] %v1245_v62  }
  0xcc   : > { %1337 = vst [vmem:[%s1493_s29 + $0xd0] sm:$0xff] %v1285_v63   ;;  %v626_v2 = vpop.f32.mrf.mxu2  ;;  %v666_v3 = vpop.f32.mrf.mxu3 }
  0xcd   : > { %v548_v4 = vpop.f32.mrf.mxu0  ;;  %v588_v5 = vpop.f32.mrf.mxu1  ;;  %v627_v14 = vadd.f32 %v1482_v42, %v626_v2  ;;  %v667_v15 = vadd.f32 %v1482_v42, %v666_v3 }
  0xce   : > { %v549_v6 = vadd.f32 %v1482_v42, %v548_v4  ;;  %v589_v7 = vadd.f32 %v1482_v42, %v588_v5 }
  0xcf   : > { %v729_v22 = vmax.f32 %v627_v14, 0.0  ;;  %v745_v23 = vmax.f32 %v667_v15, 0.0 }
  0xd0   : > { %v698_v10 = vmax.f32 %v549_v6, 0.0  ;;  %v714_v11 = vmax.f32 %v589_v7, 0.0 }
  0xd2   : > { %v1170_v12 = vpack.c.bf16 %v698_v10, %v697_v8  ;;  %v1210_v13 = vpack.c.bf16 %v714_v11, %v713_v9 }
  0xd4   : > { %1314 = vst [vmem:[%s1493_s29 + $0x18] sm:$0xff] %v1170_v12   ;;  %v628_v16 = vpop.f32.mrf.mxu2  ;;  %v668_v17 = vpop.f32.mrf.mxu3 }
  0xd5   : > { %1322 = vst [vmem:[%s1493_s29 + $0x58] sm:$0xff] %v1210_v13   ;;  %v629_v18 = vadd.f32 %v1482_v42, %v628_v16  ;;  %v669_v19 = vadd.f32 %v1482_v42, %v668_v17  ;;  %v551_v20 = vpop.f32.mrf.mxu0  ;;  %v591_v21 = vpop.f32.mrf.mxu1 }
  0xd6   : > { %v552_v28 = vadd.f32 %v1482_v42, %v551_v20  ;;  %v592_v29 = vadd.f32 %v1482_v42, %v591_v21 }
  0xd7   : > { %v730_v24 = vmax.f32 %v629_v18, 0.0  ;;  %v746_v25 = vmax.f32 %v669_v19, 0.0 }
  0xd8   : > { %v699_v36 = vmax.f32 %v552_v28, 0.0  ;;  %v715_v37 = vmax.f32 %v592_v29, 0.0 }
  0xd9   : > { %v1250_v26 = vpack.c.bf16 %v730_v24, %v729_v22  ;;  %v1290_v27 = vpack.c.bf16 %v746_v25, %v745_v23 }
  0xdb   : > { %1330 = vst [vmem:[%s1493_s29 + $0x98] sm:$0xff] %v1250_v26  }
  0xdc   : > { %1338 = vst [vmem:[%s1493_s29 + $0xd8] sm:$0xff] %v1290_v27   ;;  %v631_v30 = vpop.f32.mrf.mxu2  ;;  %v671_v31 = vpop.f32.mrf.mxu3 }
  0xdd   : > { %v553_v32 = vpop.f32.mrf.mxu0  ;;  %v593_v33 = vpop.f32.mrf.mxu1  ;;  %v632_v43 = vadd.f32 %v1482_v42, %v631_v30  ;;  %v672_v44 = vadd.f32 %v1482_v42, %v671_v31 }
  0xde   : > { %v554_v34 = vadd.f32 %v1482_v42, %v553_v32  ;;  %v594_v35 = vadd.f32 %v1482_v42, %v593_v33 }
  0xdf   : > { %v731_v51 = vmax.f32 %v632_v43, 0.0  ;;  %v747_v52 = vmax.f32 %v672_v44, 0.0 }
  0xe0   : > { %v700_v38 = vmax.f32 %v554_v34, 0.0  ;;  %v716_v39 = vmax.f32 %v594_v35, 0.0 }
  0xe2   : > { %v1175_v40 = vpack.c.bf16 %v700_v38, %v699_v36  ;;  %v1215_v41 = vpack.c.bf16 %v716_v39, %v715_v37 }
  0xe4   : > { %1315 = vst [vmem:[%s1493_s29 + $0x20] sm:$0xff] %v1175_v40   ;;  %v633_v45 = vpop.f32.mrf.mxu2  ;;  %v673_v46 = vpop.f32.mrf.mxu3 }
  0xe5   : > { %1323 = vst [vmem:[%s1493_s29 + $0x60] sm:$0xff] %v1215_v41   ;;  %v634_v47 = vadd.f32 %v1482_v42, %v633_v45  ;;  %v674_v48 = vadd.f32 %v1482_v42, %v673_v46  ;;  %v556_v49 = vpop.f32.mrf.mxu0  ;;  %v596_v50 = vpop.f32.mrf.mxu1 }
  0xe6   : > { %v557_v57 = vadd.f32 %v1482_v42, %v556_v49  ;;  %v597_v58 = vadd.f32 %v1482_v42, %v596_v50 }
  0xe7   : > { %v732_v53 = vmax.f32 %v634_v47, 0.0  ;;  %v748_v54 = vmax.f32 %v674_v48, 0.0 }
  0xe8   : > { %v701_v1 = vmax.f32 %v557_v57, 0.0  ;;  %v717_v2 = vmax.f32 %v597_v58, 0.0 }
  0xe9   : > { %v1255_v55 = vpack.c.bf16 %v732_v53, %v731_v51  ;;  %v1295_v56 = vpack.c.bf16 %v748_v54, %v747_v52 }
  0xeb   : > { %1331 = vst [vmem:[%s1493_s29 + $0xa0] sm:$0xff] %v1255_v55  }
  0xec   : > { %1339 = vst [vmem:[%s1493_s29 + $0xe0] sm:$0xff] %v1295_v56   ;;  %v636_v59 = vpop.f32.mrf.mxu2  ;;  %v676_v60 = vpop.f32.mrf.mxu3 }
  0xed   : > { %v558_v61 = vpop.f32.mrf.mxu0  ;;  %v598_v62 = vpop.f32.mrf.mxu1  ;;  %v637_v7 = vadd.f32 %v1482_v42, %v636_v59  ;;  %v677_v8 = vadd.f32 %v1482_v42, %v676_v60 }
  0xee   : > { %v559_v63 = vadd.f32 %v1482_v42, %v558_v61  ;;  %v599_v0 = vadd.f32 %v1482_v42, %v598_v62 }
  0xef   : > { %v733_v15 = vmax.f32 %v637_v7, 0.0  ;;  %v749_v16 = vmax.f32 %v677_v8, 0.0 }
  0xf0   : > { %v702_v3 = vmax.f32 %v559_v63, 0.0  ;;  %v718_v4 = vmax.f32 %v599_v0, 0.0 }
  0xf2   : > { %v1180_v5 = vpack.c.bf16 %v702_v3, %v701_v1  ;;  %v1220_v6 = vpack.c.bf16 %v718_v4, %v717_v2 }
  0xf4   : > { %1316 = vst [vmem:[%s1493_s29 + $0x28] sm:$0xff] %v1180_v5   ;;  %v638_v9 = vpop.f32.mrf.mxu2  ;;  %v678_v10 = vpop.f32.mrf.mxu3 }
  0xf5   : > { %1324 = vst [vmem:[%s1493_s29 + $0x68] sm:$0xff] %v1220_v6   ;;  %v639_v11 = vadd.f32 %v1482_v42, %v638_v9  ;;  %v679_v12 = vadd.f32 %v1482_v42, %v678_v10  ;;  %v561_v13 = vpop.f32.mrf.mxu0  ;;  %v601_v14 = vpop.f32.mrf.mxu1 }
  0xf6   : > { %v562_v21 = vadd.f32 %v1482_v42, %v561_v13  ;;  %v602_v22 = vadd.f32 %v1482_v42, %v601_v14 }
  0xf7   : > { %v734_v17 = vmax.f32 %v639_v11, 0.0  ;;  %v750_v18 = vmax.f32 %v679_v12, 0.0 }
  0xf8   : > { %v703_v29 = vmax.f32 %v562_v21, 0.0  ;;  %v719_v30 = vmax.f32 %v602_v22, 0.0 }
  0xf9   : > { %v1260_v19 = vpack.c.bf16 %v734_v17, %v733_v15  ;;  %v1300_v20 = vpack.c.bf16 %v750_v18, %v749_v16 }
  0xfb   : > { %1332 = vst [vmem:[%s1493_s29 + $0xa8] sm:$0xff] %v1260_v19  }
  0xfc   : > { %1340 = vst [vmem:[%s1493_s29 + $0xe8] sm:$0xff] %v1300_v20   ;;  %v641_v23 = vpop.f32.mrf.mxu2  ;;  %v681_v24 = vpop.f32.mrf.mxu3 }
  0xfd   : > { %v563_v25 = vpop.f32.mrf.mxu0  ;;  %v603_v26 = vpop.f32.mrf.mxu1  ;;  %v642_v35 = vadd.f32 %v1482_v42, %v641_v23  ;;  %v682_v36 = vadd.f32 %v1482_v42, %v681_v24 }
  0xfe   : > { %v564_v27 = vadd.f32 %v1482_v42, %v563_v25  ;;  %v604_v28 = vadd.f32 %v1482_v42, %v603_v26 }
  0xff   : > { %v735_v44 = vmax.f32 %v642_v35, 0.0  ;;  %v751_v45 = vmax.f32 %v682_v36, 0.0 }
 0x100   : > { %v704_v31 = vmax.f32 %v564_v27, 0.0  ;;  %v720_v32 = vmax.f32 %v604_v28, 0.0 }
 0x102   : > { %v1185_v33 = vpack.c.bf16 %v704_v31, %v703_v29  ;;  %v1225_v34 = vpack.c.bf16 %v720_v32, %v719_v30 }
 0x104   : > { %1317 = vst [vmem:[%s1493_s29 + $0x30] sm:$0xff] %v1185_v33   ;;  %v643_v37 = vpop.f32.mrf.mxu2  ;;  %v683_v38 = vpop.f32.mrf.mxu3 }
 0x105   : > { %1325 = vst [vmem:[%s1493_s29 + $0x70] sm:$0xff] %v1225_v34   ;;  %v644_v39 = vadd.f32 %v1482_v42, %v643_v37  ;;  %v684_v40 = vadd.f32 %v1482_v42, %v683_v38  ;;  %v566_v41 = vpop.f32.mrf.mxu0  ;;  %v606_v43 = vpop.f32.mrf.mxu1 }
 0x106   : > { %v567_v50 = vadd.f32 %v1482_v42, %v566_v41  ;;  %v607_v51 = vadd.f32 %v1482_v42, %v606_v43 }
 0x107   : > { %v736_v46 = vmax.f32 %v644_v39, 0.0  ;;  %v752_v47 = vmax.f32 %v684_v40, 0.0 }
 0x108   : > { %v705_v58 = vmax.f32 %v567_v50, 0.0  ;;  %v721_v59 = vmax.f32 %v607_v51, 0.0 }
 0x109   : > { %v1265_v48 = vpack.c.bf16 %v736_v46, %v735_v44  ;;  %v1305_v49 = vpack.c.bf16 %v752_v47, %v751_v45 }
 0x10b   : > { %1333 = vst [vmem:[%s1493_s29 + $0xb0] sm:$0xff] %v1265_v48  }
 0x10c   : > { %1341 = vst [vmem:[%s1493_s29 + $0xf0] sm:$0xff] %v1305_v49   ;;  %v646_v52 = vpop.f32.mrf.mxu2  ;;  %v686_v53 = vpop.f32.mrf.mxu3 }
 0x10d   : > { %v568_v54 = vpop.f32.mrf.mxu0  ;;  %v608_v55 = vpop.f32.mrf.mxu1  ;;  %v647_v0 = vadd.f32 %v1482_v42, %v646_v52  ;;  %v687_v1 = vadd.f32 %v1482_v42, %v686_v53 }
 0x10e   : > { %v569_v56 = vadd.f32 %v1482_v42, %v568_v54  ;;  %v609_v57 = vadd.f32 %v1482_v42, %v608_v55 }
 0x10f   : > { %v737_v6 = vmax.f32 %v647_v0, 0.0  ;;  %v753_v7 = vmax.f32 %v687_v1, 0.0 }
 0x110   : > { %v706_v60 = vmax.f32 %v569_v56, 0.0  ;;  %v722_v61 = vmax.f32 %v609_v57, 0.0 }
 0x112   : > { %v1190_v62 = vpack.c.bf16 %v706_v60, %v705_v58  ;;  %v1230_v63 = vpack.c.bf16 %v722_v61, %v721_v59 }
 0x114   : > { %1318 = vst [vmem:[%s1493_s29 + $0x38] sm:$0xff] %v1190_v62   ;;  %v648_v2 = vpop.f32.mrf.mxu2  ;;  %v688_v3 = vpop.f32.mrf.mxu3 }
 0x115   : > { %1326 = vst [vmem:[%s1493_s29 + $0x78] sm:$0xff] %v1230_v63   ;;  %v649_v4 = vadd.f32 %v1482_v42, %v648_v2  ;;  %v689_v5 = vadd.f32 %v1482_v42, %v688_v3 }
 0x117   : > { %v738_v8 = vmax.f32 %v649_v4, 0.0  ;;  %v754_v9 = vmax.f32 %v689_v5, 0.0 }
 0x119   : > { %v1270_v10 = vpack.c.bf16 %v738_v8, %v737_v6  ;;  %v1310_v11 = vpack.c.bf16 %v754_v9, %v753_v7 }
 0x11b   : > { %1334 = vst [vmem:[%s1493_s29 + $0xb8] sm:$0xff] %v1270_v10  }
 0x11c   : > { %1342 = vst [vmem:[%s1493_s29 + $0xf8] sm:$0xff] %v1310_v11  }
 0x11d PF: > { %s13_s12 = sadd.s32 1, %s1365_s12  }
 0x11e   : > { %p10_p4 = scmp.ge.s32.totalorder %s13_s12, 6  }
 0x120   :  { %12 = sbr.rel (!%p10_p4) target bundleno = 1 (0x1), region = 62 }

// kernel: _lambda_.10
= control target key start
LH: loop header
LB: loop body
LE: loop exit
PB: predicated region body
PF: predicated region fallthrough
CT: control target
= control target key end

     0   :  { %s1936_s12 = smov 0   ;;  %s2312_s0 = inlined_call_operand.vmem [shape: bf16[2048,144], index: 0, kind: input, shape index: {}]   ;;  %s2313_s1 = inlined_call_operand.vmem [shape: bf16[144,128], index: 1, kind: input, shape index: {}]   ;;  %s2314_s2 = inlined_call_operand.vmem [shape: f32[1,128], index: 2, kind: input, shape index: {}]   ;;  %s2315_s3 = inlined_call_operand.vmem [shape: bf16[2048,128], index: 3, kind: output, shape index: {}]  }
   0x1 LB: > { %s1289_s13 = sadd.s32 4294967295, %s1914_s12   ;;  %p1293_p0 = scmp.ge.s32.totalorder %s1914_s12, 1  ;;  %s1914_s12 = sphi %s1936_s12, %s13_s12  }
   0x2   : > { %p139_p1 = scmp.lt.s32.totalorder %s1914_s12, 5 }
   0x4   : > { %p140_p2 = pnand %p1293_p0, %p139_p1 }
   0x5   : > { %s1294_s18 = sshll.u32 (!%p140_p2), %s1289_s13, 6 }
   0x6   : > { %143 = sbr.rel (%p140_p2) target bundleno = 432 (0x1b0), region = 32  ;;  %p165_p3 = scmp.lt.s32.totalorder (!%p140_p2), %s1294_s18, 255 }
   0xb   : > { %v1697_v0 = vld [vmem:[%s2313_s1 + $0x38] sm:$0xff]  ;;  %v1698_v1 = vld [vmem:[%s2313_s1 + $0x40] sm:$0xff]  ;;  %v1696_v2 = vld [vmem:[%s2313_s1 + $0x30] sm:$0xff]  ;;  %s2317_s18 = smov (!%p165_p3, %s1294_s18), 255  ;;  %vm606_vm0 = vcmask 130048  }
   0xc   : > { %703 = vmatpush.bf16.msra.mxu0 %v1697_v0  ;;  %1890 = vmatpush.bf16.msra.mxu2 %v1697_v0  ;;  %s1625_s21 = sshll.u32 %s2317_s18, 3  ;;  %v1695_v3 = vld [vmem:[%s2313_s1 + $0x28] sm:$0xff]  ;;  %v1694_v7 = vld [vmem:[%s2313_s1 + $0x20] sm:$0xff]  ;;  %v1693_v11 = vld [vmem:[%s2313_s1 + $0x18] sm:$0xff]  ;;  %s1298_s13 = sshll.u32 %s2317_s18, 2 }
   0xd   : > { %879 = vmatpush.bf16.msra.mxu1 %v1698_v1  ;;  %1898 = vmatpush.bf16.msra.mxu3 %v1698_v1  ;;  %s1959_s24 = scalar_lea.vmem %s2312_s0, %s1625_s21  ;;  %v1692_v12 = vld [vmem:[%s2313_s1 + $0x10] sm:$0xff]  ;;  %v1691_v16 = vld [vmem:[%s2313_s1 + $0x8] sm:$0xff]  ;;  %v1690_v19 = vld [vmem:[%s2313_s1] sm:$0xff]  ;;  %s2107_s16 = scalar_lea.vmem %s2315_s3, %s1298_s13 }
   0xe   : > { %v1626_v4 = vld [vmem:[%s1959_s24 + $0x4] sm:$0xf]  ;;  %v1303_v5 = vld [vmem:[%s1959_s24 + $0x8] sm:$0xf0]  ;;  %v1660_v8 = vld [vmem:[%s1959_s24 + $0x114] sm:$0xf] }
   0xf   : > { %v1306_v6 = vor.u32 %v1626_v4, %v1303_v5  ;;  %v1439_v9 = vld [vmem:[%s1959_s24 + $0x118] sm:$0xf0]  ;;  %v1628_v13 = vld [vmem:[%s1959_s24 + $0x14] sm:$0xf]  ;;  %v1662_v17 = vld [vmem:[%s1959_s24 + $0x124] sm:$0xf] }
  0x10   : > { %704 = vmatpush.bf16.msra.mxu0 %v1696_v2  ;;  %1891 = vmatpush.bf16.msra.mxu2 %v1696_v2  ;;  %v1442_v10 = vor.u32 %v1660_v8, %v1439_v9  ;;  %v1311_v14 = vld [vmem:[%s1959_s24 + $0x18] sm:$0xf0]  ;;  %v1447_v18 = vld [vmem:[%s1959_s24 + $0x128] sm:$0xf0]  ;;  %v1301_v20 = vld [vmem:[%s1959_s24] sm:$0xf] }
  0x11   : > { %1591 = vmatmul.msk.bf16.vlgmr.msra.gmra.mxu1 %vm606_vm0, %v1306_v6  ;;  %v1314_v15 = vor.u32 %v1628_v13, %v1311_v14  ;;  %v1627_v21 = vld [vmem:[%s1959_s24 + $0x4] sm:$0xf0]  ;;  %v1450_v22 = vor.u32 %v1662_v17, %v1447_v18  ;;  %v1429_v23 = vld [vmem:[%s1959_s24 + $0x100] sm:$0xf]  ;;  %v1630_v27 = vld [vmem:[%s1959_s24 + $0x24] sm:$0xf] }
  0x12   : > { %1608 = vmatmul.msk.bf16.vlgmr.msra.gmra.mxu3 %vm606_vm0, %v1442_v10  ;;  %v1659_v24 = vld [vmem:[%s1959_s24 + $0x104] sm:$0xf0]  ;;  %v1302_v25 = vor.u32 %v1627_v21, %v1301_v20  ;;  %v1319_v28 = vld [vmem:[%s1959_s24 + $0x28] sm:$0xf0]  ;;  %v1664_v30 = vld [vmem:[%s1959_s24 + $0x134] sm:$0xf] }
  0x13   : > { %v1430_v26 = vor.u32 %v1659_v24, %v1429_v23  ;;  %v1322_v29 = vor.u32 %v1630_v27, %v1319_v28  ;;  %v1455_v31 = vld [vmem:[%s1959_s24 + $0x138] sm:$0xf0]  ;;  %v1309_v32 = vld [vmem:[%s1959_s24 + $0x10] sm:$0xf]  ;;  %v1629_v33 = vld [vmem:[%s1959_s24 + $0x14] sm:$0xf0] }
  0x14   : > { %705 = vmatpush.bf16.msra.mxu0 %v1695_v3  ;;  %1892 = vmatpush.bf16.msra.mxu2 %v1695_v3  ;;  %v1458_v34 = vor.u32 %v1664_v30, %v1455_v31  ;;  %v1437_v35 = vld [vmem:[%s1959_s24 + $0x110] sm:$0xf]  ;;  %v1661_v36 = vld [vmem:[%s1959_s24 + $0x114] sm:$0xf0]  ;;  %v1310_v37 = vor.u32 %v1629_v33, %v1309_v32  ;;  %v1632_v39 = vld [vmem:[%s1959_s24 + $0x34] sm:$0xf] }
  0x15   : > { %v1438_v38 = vor.u32 %v1661_v36, %v1437_v35  ;;  %v1327_v40 = vld [vmem:[%s1959_s24 + $0x38] sm:$0xf0]  ;;  %v1666_v42 = vld [vmem:[%s1959_s24 + $0x144] sm:$0xf]  ;;  %v1463_v43 = vld [vmem:[%s1959_s24 + $0x148] sm:$0xf0] }
  0x16   : > { %v1330_v41 = vor.u32 %v1632_v39, %v1327_v40  ;;  %v1317_v44 = vld [vmem:[%s1959_s24 + $0x20] sm:$0xf]  ;;  %v1631_v45 = vld [vmem:[%s1959_s24 + $0x24] sm:$0xf0]  ;;  %v1466_v46 = vor.u32 %v1666_v42, %v1463_v43  ;;  %v1634_v51 = vld [vmem:[%s1959_s24 + $0x44] sm:$0xf] }
  0x17   : > { %v1445_v47 = vld [vmem:[%s1959_s24 + $0x120] sm:$0xf]  ;;  %v1663_v48 = vld [vmem:[%s1959_s24 + $0x124] sm:$0xf0]  ;;  %v1318_v49 = vor.u32 %v1631_v45, %v1317_v44  ;;  %v1335_v52 = vld [vmem:[%s1959_s24 + $0x48] sm:$0xf0] }
  0x18   : > { %706 = vmatpush.bf16.msra.mxu0 %v1694_v7  ;;  %1893 = vmatpush.bf16.msra.mxu2 %v1694_v7  ;;  %v1446_v50 = vor.u32 %v1663_v48, %v1445_v47  ;;  %v1338_v53 = vor.u32 %v1634_v51, %v1335_v52  ;;  %v1668_v54 = vld [vmem:[%s1959_s24 + $0x154] sm:$0xf]  ;;  %v1471_v55 = vld [vmem:[%s1959_s24 + $0x158] sm:$0xf0]  ;;  %v1325_v56 = vld [vmem:[%s1959_s24 + $0x30] sm:$0xf] }
  0x19   : > { %v1633_v57 = vld [vmem:[%s1959_s24 + $0x34] sm:$0xf0]  ;;  %v1474_v58 = vor.u32 %v1668_v54, %v1471_v55  ;;  %v1453_v59 = vld [vmem:[%s1959_s24 + $0x130] sm:$0xf]  ;;  %v1636_v63 = vld [vmem:[%s1959_s24 + $0x54] sm:$0xf] }
  0x1a   : > { %v1665_v60 = vld [vmem:[%s1959_s24 + $0x134] sm:$0xf0]  ;;  %v1326_v61 = vor.u32 %v1633_v57, %v1325_v56  ;;  %v1343_v0 = vld [vmem:[%s1959_s24 + $0x58] sm:$0xf0]  ;;  %v1670_v2 = vld [vmem:[%s1959_s24 + $0x164] sm:$0xf] }
  0x1b   : > { %v1454_v62 = vor.u32 %v1665_v60, %v1453_v59  ;;  %v1346_v1 = vor.u32 %v1636_v63, %v1343_v0  ;;  %v1479_v3 = vld [vmem:[%s1959_s24 + $0x168] sm:$0xf0]  ;;  %v1333_v4 = vld [vmem:[%s1959_s24 + $0x40] sm:$0xf]  ;;  %v1635_v5 = vld [vmem:[%s1959_s24 + $0x44] sm:$0xf0] }
  0x1c   : > { %707 = vmatpush.bf16.msra.mxu0 %v1693_v11  ;;  %1894 = vmatpush.bf16.msra.mxu2 %v1693_v11  ;;  %v1482_v6 = vor.u32 %v1670_v2, %v1479_v3  ;;  %v1461_v7 = vld [vmem:[%s1959_s24 + $0x140] sm:$0xf]  ;;  %v1667_v8 = vld [vmem:[%s1959_s24 + $0x144] sm:$0xf0]  ;;  %v1334_v9 = vor.u32 %v1635_v5, %v1333_v4  ;;  %v1638_v11 = vld [vmem:[%s1959_s24 + $0x64] sm:$0xf] }
  0x1d   : > { %v1462_v10 = vor.u32 %v1667_v8, %v1461_v7  ;;  %v1672_v14 = vld [vmem:[%s1959_s24 + $0x174] sm:$0xf]  ;;  %v1637_v17 = vld [vmem:[%s1959_s24 + $0x54] sm:$0xf0]  ;;  %v1359_v24 = vld [vmem:[%s1959_s24 + $0x78] sm:$0xf0] }
  0x1e   : > { %v1669_v20 = vld [vmem:[%s1959_s24 + $0x154] sm:$0xf0]  ;;  %v1640_v23 = vld [vmem:[%s1959_s24 + $0x74] sm:$0xf]  ;;  %v1495_v27 = vld [vmem:[%s1959_s24 + $0x188] sm:$0xf0] }
  0x1f   : > { %v1349_v28 = vld [vmem:[%s1959_s24 + $0x60] sm:$0xf]  ;;  %v1671_v32 = vld [vmem:[%s1959_s24 + $0x164] sm:$0xf0]  ;;  %v1642_v35 = vld [vmem:[%s1959_s24 + $0x84] sm:$0xf] }
  0x20   : > { %708 = vmatpush.bf16.msra.mxu0 %v1692_v12  ;;  %1895 = vmatpush.bf16.msra.mxu2 %v1692_v12  ;;  %v1351_v12 = vld [vmem:[%s1959_s24 + $0x68] sm:$0xf0]  ;;  %v1477_v31 = vld [vmem:[%s1959_s24 + $0x160] sm:$0xf]  ;;  %v1676_v39 = vld [vmem:[%s1959_s24 + $0x194] sm:$0xf] }
  0x21   : > { %1592 = vmatmul.msk.bf16.gmra.mxu1 %vm606_vm0, %v1314_v15  ;;  %v1354_v13 = vor.u32 %v1638_v11, %v1351_v12  ;;  %v1487_v15 = vld [vmem:[%s1959_s24 + $0x178] sm:$0xf0]  ;;  %v1367_v36 = vld [vmem:[%s1959_s24 + $0x88] sm:$0xf0]  ;;  %v1641_v42 = vld [vmem:[%s1959_s24 + $0x74] sm:$0xf0] }
  0x22   : > { %1609 = vmatmul.msk.bf16.gmra.mxu3 %vm606_vm0, %v1450_v22  ;;  %v1490_v18 = vor.u32 %v1672_v14, %v1487_v15  ;;  %v1503_v40 = vld [vmem:[%s1959_s24 + $0x198] sm:$0xf0]  ;;  %v1485_v44 = vld [vmem:[%s1959_s24 + $0x170] sm:$0xf]  ;;  %v1673_v45 = vld [vmem:[%s1959_s24 + $0x174] sm:$0xf0] }
  0x23   : > { %v1506_v43 = vor.u32 %v1676_v39, %v1503_v40  ;;  %v1486_v47 = vor.u32 %v1673_v45, %v1485_v44  ;;  %v1375_v51 = vld [vmem:[%s1959_s24 + $0x98] sm:$0xf0]  ;;  %v1678_v55 = vld [vmem:[%s1959_s24 + $0x1a4] sm:$0xf]  ;;  %v1511_v56 = vld [vmem:[%s1959_s24 + $0x1a8] sm:$0xf0] }
  0x24   : > { %709 = vmatpush.bf16.msra.mxu0 %v1691_v16  ;;  %1896 = vmatpush.bf16.msra.mxu2 %v1691_v16  ;;  %v1341_v16 = vld [vmem:[%s1959_s24 + $0x50] sm:$0xf]  ;;  %v1365_v57 = vld [vmem:[%s1959_s24 + $0x80] sm:$0xf]  ;;  %v1514_v59 = vor.u32 %v1678_v55, %v1511_v56  ;;  %v1646_v5 = vld [vmem:[%s1959_s24 + $0xa4] sm:$0xf] }
  0x25   : > { %v1342_v21 = vor.u32 %v1637_v17, %v1341_v16  ;;  %v1493_v60 = vld [vmem:[%s1959_s24 + $0x180] sm:$0xf]  ;;  %v1680_v15 = vld [vmem:[%s1959_s24 + $0x1b4] sm:$0xf]  ;;  %v1519_v16 = vld [vmem:[%s1959_s24 + $0x1b8] sm:$0xf0] }
  0x26   : > { %v1373_v17 = vld [vmem:[%s1959_s24 + $0x90] sm:$0xf]  ;;  %v1381_v45 = vld [vmem:[%s1959_s24 + $0xa0] sm:$0xf] }
  0x28   : > { %710 = vmatpush.bf16.msra.mxu0 %v1690_v19  ;;  %1897 = vmatpush.bf16.msra.mxu2 %v1690_v19  ;;  %v1469_v19 = vld [vmem:[%s1959_s24 + $0x150] sm:$0xf] }
  0x29   : > { %v1470_v22 = vor.u32 %v1669_v20, %v1469_v19  ;;  %v1522_v19 = vor.u32 %v1680_v15, %v1519_v16 }
  0x2b   : > { %711 = vmatmul.bf16.vlgmr.msra.gmra.mxu0 %v1302_v25  ;;  %791 = vmatmul.bf16.vlgmr.msra.gmra.mxu2 %v1430_v26  ;;  %v1362_v25 = vor.u32 %v1640_v23, %v1359_v24  ;;  %v1674_v26 = vld [vmem:[%s1959_s24 + $0x184] sm:$0xf]  ;;  %v1677_v23 = vld [vmem:[%s1959_s24 + $0x194] sm:$0xf0] }
  0x2c   : > { %v1498_v30 = vor.u32 %v1674_v26, %v1495_v27 }
  0x31   : > { %1593 = vmatmul.msk.bf16.gmra.mxu1 %vm606_vm0, %v1322_v29  ;;  %v1639_v29 = vld [vmem:[%s1959_s24 + $0x64] sm:$0xf0] }
  0x32   : > { %1610 = vmatmul.msk.bf16.gmra.mxu3 %vm606_vm0, %v1458_v34  ;;  %v1350_v33 = vor.u32 %v1639_v29, %v1349_v28  ;;  %v1478_v34 = vor.u32 %v1671_v32, %v1477_v31  ;;  %v1648_v32 = vld [vmem:[%s1959_s24 + $0xb4] sm:$0xf] }
  0x3b   : > { %716 = vmatmul.bf16.gmra.mxu0 %v1310_v37  ;;  %796 = vmatmul.bf16.gmra.mxu2 %v1438_v38  ;;  %v1370_v37 = vor.u32 %v1642_v35, %v1367_v36 }
  0x41   : > { %1594 = vmatmul.msk.bf16.gmra.mxu1 %vm606_vm0, %v1330_v41  ;;  %v1357_v41 = vld [vmem:[%s1959_s24 + $0x70] sm:$0xf] }
  0x42   : > { %1611 = vmatmul.msk.bf16.gmra.mxu3 %vm606_vm0, %v1466_v46  ;;  %v1358_v46 = vor.u32 %v1641_v42, %v1357_v41  ;;  %v1682_v42 = vld [vmem:[%s1959_s24 + $0x1c4] sm:$0xf] }
  0x4b   : > { %721 = vmatmul.bf16.gmra.mxu0 %v1318_v49  ;;  %801 = vmatmul.bf16.gmra.mxu2 %v1446_v50  ;;  %v1644_v50 = vld [vmem:[%s1959_s24 + $0x94] sm:$0xf] }
  0x4c   : > { %v1378_v52 = vor.u32 %v1644_v50, %v1375_v51  ;;  %v1509_v51 = vld [vmem:[%s1959_s24 + $0x1a0] sm:$0xf] }
  0x51   : > { %1595 = vmatmul.msk.bf16.gmra.mxu1 %vm606_vm0, %v1338_v53 }
  0x52   : > { %1612 = vmatmul.msk.bf16.gmra.mxu3 %vm606_vm0, %v1474_v58  ;;  %v1643_v58 = vld [vmem:[%s1959_s24 + $0x84] sm:$0xf0] }
  0x5b   : > { %726 = vmatmul.bf16.gmra.mxu0 %v1326_v61  ;;  %806 = vmatmul.bf16.gmra.mxu2 %v1454_v62  ;;  %v1675_v61 = vld [vmem:[%s1959_s24 + $0x184] sm:$0xf0]  ;;  %v1366_v62 = vor.u32 %v1643_v58, %v1365_v57 }
  0x5c   : > { %v1494_v0 = vor.u32 %v1675_v61, %v1493_v60 }
  0x61   : > { %1596 = vmatmul.msk.bf16.gmra.mxu1 %vm606_vm0, %v1346_v1  ;;  %v2082_v1 = vld [vmem:[%s2314_s2] ss:$0 sm:$0xff] }
  0x62   : > { %1613 = vmatmul.msk.bf16.gmra.mxu3 %vm606_vm0, %v1482_v6  ;;  %v1383_v6 = vld [vmem:[%s1959_s24 + $0xa8] sm:$0xf0] }
  0x6b   : > { %731 = vmatmul.bf16.gmra.mxu0 %v1334_v9  ;;  %811 = vmatmul.bf16.gmra.mxu2 %v1462_v10  ;;  %v1386_v9 = vor.u32 %v1646_v5, %v1383_v6  ;;  %v1399_v5 = vld [vmem:[%s1959_s24 + $0xc8] sm:$0xf0] }
  0x71   : > { %1597 = vmatmul.msk.bf16.gmra.mxu1 %vm606_vm0, %v1354_v13 }
  0x72   : > { %1614 = vmatmul.msk.bf16.gmra.mxu3 %vm606_vm0, %v1490_v18  ;;  %v1645_v18 = vld [vmem:[%s1959_s24 + $0x94] sm:$0xf0] }
  0x73   : > { %v1374_v26 = vor.u32 %v1645_v18, %v1373_v17  ;;  %v1684_v17 = vld [vmem:[%s1959_s24 + $0x1d4] sm:$0xf]  ;;  %v1535_v18 = vld [vmem:[%s1959_s24 + $0x1d8] sm:$0xf0] }
  0x7b   : > { %736 = vmatmul.bf16.gmra.mxu0 %v1342_v21  ;;  %816 = vmatmul.bf16.gmra.mxu2 %v1470_v22  ;;  %v1501_v22 = vld [vmem:[%s1959_s24 + $0x190] sm:$0xf] }
  0x7c   : > { %v1502_v28 = vor.u32 %v1677_v23, %v1501_v22  ;;  %v1538_v22 = vor.u32 %v1684_v17, %v1535_v18  ;;  %v1415_v18 = vld [vmem:[%s1959_s24 + $0xe8] sm:$0xf0] }
  0x81   : > { %1598 = vmatmul.msk.bf16.gmra.mxu1 %vm606_vm0, %v1362_v25 }
  0x82   : > { %1615 = vmatmul.msk.bf16.gmra.mxu3 %vm606_vm0, %v1498_v30 }
  0x8b   : > { %741 = vmatmul.bf16.gmra.mxu0 %v1350_v33  ;;  %821 = vmatmul.bf16.gmra.mxu2 %v1478_v34  ;;  %v1391_v33 = vld [vmem:[%s1959_s24 + $0xb8] sm:$0xf0] }
  0x8c   : > { %v1394_v36 = vor.u32 %v1648_v32, %v1391_v33 }
  0x8e   : > { %v881_v38 = vpop.f32.mrf.mxu1 }
  0x91   : > { %1599 = vmatmul.msk.bf16.gmra.mxu1 %vm606_vm0, %v1370_v37 }
  0x92   : > { %1616 = vmatmul.msk.bf16.gmra.mxu3 %vm606_vm0, %v1506_v43  ;;  %v1527_v43 = vld [vmem:[%s1959_s24 + $0x1c8] sm:$0xf0] }
  0x95   : > { %v2065_v49 = vpop.f32.mrf.mxu3 }
  0x96   : > { %v883_v48 = vpop.f32.mrf.mxu1 }
  0x9b   : > { %746 = vmatmul.bf16.gmra.mxu0 %v1358_v46  ;;  %826 = vmatmul.bf16.gmra.mxu2 %v1486_v47  ;;  %v1647_v46 = vld [vmem:[%s1959_s24 + $0xa4] sm:$0xf0]  ;;  %v1530_v47 = vor.u32 %v1682_v42, %v1527_v43  ;;  %v1407_v43 = vld [vmem:[%s1959_s24 + $0xd8] sm:$0xf0] }
  0x9c   : > { %v1382_v56 = vor.u32 %v1647_v46, %v1381_v45 }
  0x9d   : > { %v2069_v54 = vpop.f32.mrf.mxu3 }
  0x9e   : > { %v886_v53 = vpop.f32.mrf.mxu1 }
  0xa1   : > { %1600 = vmatmul.msk.bf16.gmra.mxu1 %vm606_vm0, %v1378_v52  ;;  %v1679_v52 = vld [vmem:[%s1959_s24 + $0x1a4] sm:$0xf0] }
  0xa2   : > { %1617 = vmatmul.msk.bf16.gmra.mxu3 %vm606_vm0, %v1514_v59  ;;  %v1510_v60 = vor.u32 %v1679_v52, %v1509_v51 }
  0xa5   : > { %v2084_v3 = vpop.f32.mrf.mxu3 }
  0xa6   : > { %v888_v2 = vpop.f32.mrf.mxu1 }
  0xa8   : > { %v712_v63 = vpop.f32.mrf.mxu0 }
  0xa9   : > { %v713_v4 = vadd.f32 %v2082_v1, %v712_v63 }
  0xab   : > { %751 = vmatmul.bf16.gmra.mxu0 %v1366_v62  ;;  %831 = vmatmul.bf16.gmra.mxu2 %v1494_v0  ;;  %v882_v10 = vadd.f32 %v881_v38, %v713_v4 }
  0xad   : > { %v2094_v13 = vpop.f32.mrf.mxu3  ;;  %v1041_v20 = vmax.f32 %v882_v10, 0.0 }
  0xae   : > { %v2089_v7 = vpop.f32.mrf.mxu2  ;;  %v2092_v12 = vpop.f32.mrf.mxu1 }
  0xb0   : > { %v714_v8 = vpop.f32.mrf.mxu0 }
  0xb1   : > { %v715_v11 = vadd.f32 %v2082_v1, %v714_v8  ;;  %1601 = vmatmul.msk.bf16.gmra.mxu1 %vm606_vm0, %v1386_v9 }
  0xb2   : > { %1618 = vmatmul.msk.bf16.gmra.mxu3 %vm606_vm0, %v1522_v19 }
  0xb3   : > { %v884_v14 = vadd.f32 %v883_v48, %v715_v11 }
  0xb5   : > { %v1042_v21 = vmax.f32 %v884_v14, 0.0  ;;  %v2113_v30 = vpop.f32.mrf.mxu3 }
  0xb6   : > { %v2109_v25 = vpop.f32.mrf.mxu2  ;;  %v893_v29 = vpop.f32.mrf.mxu1 }
  0xb7   : > { %v1702_v24 = vpack.c.bf16 %v1042_v21, %v1041_v20  ;;  %v1389_v20 = vld [vmem:[%s1959_s24 + $0xb0] sm:$0xf]  ;;  %v1649_v21 = vld [vmem:[%s1959_s24 + $0xb4] sm:$0xf0] }
  0xb8   : > { %v717_v27 = vpop.f32.mrf.mxu0 }
  0xb9   : > { %1703 = vst [vmem:[%s2107_s16] sm:$0xff] %v1702_v24   ;;  %v718_v31 = vadd.f32 %v2082_v1, %v717_v27 }
  0xbb   : > { %756 = vmatmul.bf16.gmra.mxu0 %v1374_v26  ;;  %836 = vmatmul.bf16.gmra.mxu2 %v1502_v28  ;;  %v887_v37 = vadd.f32 %v886_v53, %v718_v31  ;;  %v1681_v26 = vld [vmem:[%s1959_s24 + $0x1b4] sm:$0xf0]  ;;  %v1390_v31 = vor.u32 %v1649_v21, %v1389_v20 }
  0xbd   : > { %v2121_v40 = vpop.f32.mrf.mxu3  ;;  %v1043_v48 = vmax.f32 %v887_v37, 0.0 }
  0xbe   : > { %v797_v34 = vpop.f32.mrf.mxu2  ;;  %v2119_v39 = vpop.f32.mrf.mxu1 }
  0xbf   : > { %v798_v44 = vadd.f32 %v2082_v1, %v797_v34 }
  0xc0   : > { %v719_v35 = vpop.f32.mrf.mxu0 }
  0xc1   : > { %v720_v38 = vadd.f32 %v2082_v1, %v719_v35  ;;  %1602 = vmatmul.msk.bf16.gmra.mxu1 %vm606_vm0, %v1394_v36  ;;  %v967_v57 = vadd.f32 %v2065_v49, %v798_v44  ;;  %v1650_v49 = vld [vmem:[%s1959_s24 + $0xc4] sm:$0xf] }
  0xc2   : > { %1619 = vmatmul.msk.bf16.gmra.mxu3 %vm606_vm0, %v1530_v47 }
  0xc3   : > { %v889_v41 = vadd.f32 %v888_v2, %v720_v38  ;;  %v1075_v0 = vmax.f32 %v967_v57, 0.0  ;;  %v1397_v57 = vld [vmem:[%s1959_s24 + $0xc0] sm:$0xf] }
  0xc5   : > { %v1044_v50 = vmax.f32 %v889_v41, 0.0  ;;  %v2136_v63 = vpop.f32.mrf.mxu3 }
  0xc6   : > { %v799_v55 = vpop.f32.mrf.mxu2  ;;  %v898_v61 = vpop.f32.mrf.mxu1 }
  0xc7   : > { %v1707_v53 = vpack.c.bf16 %v1044_v50, %v1043_v48  ;;  %v800_v58 = vadd.f32 %v2082_v1, %v799_v55  ;;  %v1543_v55 = vld [vmem:[%s1959_s24 + $0x1e8] sm:$0xf0] }
  0xc8   : > { %v722_v59 = vpop.f32.mrf.mxu0 }
  0xc9   : > { %1859 = vst [vmem:[%s2107_s16 + $0x8] sm:$0xff] %v1707_v53   ;;  %v969_v62 = vadd.f32 %v2069_v54, %v800_v58  ;;  %v723_v4 = vadd.f32 %v2082_v1, %v722_v59  ;;  %v1402_v54 = vor.u32 %v1650_v49, %v1399_v5  ;;  %v1686_v53 = vld [vmem:[%s1959_s24 + $0x1e4] sm:$0xf]  ;;  %v1651_v58 = vld [vmem:[%s1959_s24 + $0xc4] sm:$0xf0] }
  0xca   : > { %v1546_v59 = vor.u32 %v1686_v53, %v1543_v55  ;;  %v1398_v49 = vor.u32 %v1651_v58, %v1397_v57  ;;  %v1656_v53 = vld [vmem:[%s1959_s24 + $0xf4] sm:$0xf]  ;;  %v1423_v55 = vld [vmem:[%s1959_s24 + $0xf8] sm:$0xf0] }
  0xcb   : > { %761 = vmatmul.bf16.gmra.mxu0 %v1382_v56  ;;  %v1076_v2 = vmax.f32 %v969_v62, 0.0  ;;  %841 = vmatmul.bf16.gmra.mxu2 %v1510_v60  ;;  %v892_v10 = vadd.f32 %v2092_v12, %v723_v4  ;;  %v1517_v12 = vld [vmem:[%s1959_s24 + $0x1b0] sm:$0xf] }
  0xcc   : > { %v1518_v34 = vor.u32 %v1681_v26, %v1517_v12  ;;  %v1688_v26 = vld [vmem:[%s1959_s24 + $0x1f4] sm:$0xf] }
  0xcd   : > { %v1787_v6 = vpack.c.bf16 %v1076_v2, %v1075_v0  ;;  %v2146_v15 = vpop.f32.mrf.mxu3  ;;  %v1045_v23 = vmax.f32 %v892_v10, 0.0  ;;  %v1683_v0 = vld [vmem:[%s1959_s24 + $0x1c4] sm:$0xf0] }
  0xce   : > { %v802_v8 = vpop.f32.mrf.mxu2  ;;  %v2144_v14 = vpop.f32.mrf.mxu1 }
  0xcf   : > { %1875 = vst [vmem:[%s2107_s16 + $0x88] sm:$0xff] %v1787_v6   ;;  %v803_v19 = vadd.f32 %v2082_v1, %v802_v8 }
  0xd0   : > { %v724_v9 = vpop.f32.mrf.mxu0 }
  0xd1   : > { %v725_v11 = vadd.f32 %v2082_v1, %v724_v9  ;;  %1603 = vmatmul.msk.bf16.gmra.mxu1 %vm606_vm0, %v1402_v54 }
  0xd2   : > { %1620 = vmatmul.msk.bf16.gmra.mxu3 %vm606_vm0, %v1538_v22 }
  0xd3   : > { %v894_v16 = vadd.f32 %v893_v29, %v725_v11  ;;  %v972_v29 = vadd.f32 %v2084_v3, %v803_v19  ;;  %v1652_v3 = vld [vmem:[%s1959_s24 + $0xd4] sm:$0xf] }
  0xd5   : > { %v1046_v24 = vmax.f32 %v894_v16, 0.0  ;;  %v2161_v37 = vpop.f32.mrf.mxu3  ;;  %v1077_v38 = vmax.f32 %v972_v29, 0.0  ;;  %v1653_v29 = vld [vmem:[%s1959_s24 + $0xd4] sm:$0xf0] }
  0xd6   : > { %v804_v28 = vpop.f32.mrf.mxu2  ;;  %v903_v35 = vpop.f32.mrf.mxu1 }
  0xd7   : > { %v1712_v27 = vpack.c.bf16 %v1046_v24, %v1045_v23  ;;  %v805_v32 = vadd.f32 %v2082_v1, %v804_v28 }
  0xd8   : > { %v727_v33 = vpop.f32.mrf.mxu0 }
  0xd9   : > { %1860 = vst [vmem:[%s2107_s16 + $0x10] sm:$0xff] %v1712_v27   ;;  %v974_v36 = vadd.f32 %v2094_v13, %v805_v32  ;;  %v728_v42 = vadd.f32 %v2082_v1, %v727_v33  ;;  %v1410_v13 = vor.u32 %v1652_v3, %v1407_v43  ;;  %v1551_v27 = vld [vmem:[%s1959_s24 + $0x1f8] sm:$0xf0] }
  0xda   : > { %v1554_v32 = vor.u32 %v1688_v26, %v1551_v27 }
  0xdb   : > { %766 = vmatmul.bf16.gmra.mxu0 %v1390_v31  ;;  %v1078_v41 = vmax.f32 %v974_v36, 0.0  ;;  %846 = vmatmul.bf16.gmra.mxu2 %v1518_v34  ;;  %v897_v47 = vadd.f32 %v2119_v39, %v728_v42  ;;  %v1525_v39 = vld [vmem:[%s1959_s24 + $0x1c0] sm:$0xf]  ;;  %v1405_v31 = vld [vmem:[%s1959_s24 + $0xd0] sm:$0xf] }
  0xdc   : > { %v1526_v8 = vor.u32 %v1683_v0, %v1525_v39  ;;  %v1533_v36 = vld [vmem:[%s1959_s24 + $0x1d0] sm:$0xf] }
  0xdd   : > { %v1792_v44 = vpack.c.bf16 %v1078_v41, %v1077_v38  ;;  %v2171_v51 = vpop.f32.mrf.mxu3  ;;  %v1047_v60 = vmax.f32 %v897_v47, 0.0  ;;  %v1685_v38 = vld [vmem:[%s1959_s24 + $0x1d4] sm:$0xf0] }
  0xde   : > { %v807_v45 = vpop.f32.mrf.mxu2  ;;  %v2169_v50 = vpop.f32.mrf.mxu1 }
  0xdf   : > { %1876 = vst [vmem:[%s2107_s16 + $0x90] sm:$0xff] %v1792_v44   ;;  %v808_v56 = vadd.f32 %v2082_v1, %v807_v45  ;;  %v1534_v45 = vor.u32 %v1685_v38, %v1533_v36  ;;  %v1657_v36 = vld [vmem:[%s1959_s24 + $0xf4] sm:$0xf0] }
  0xe0   : > { %v729_v46 = vpop.f32.mrf.mxu0 }
  0xe1   : > { %v730_v48 = vadd.f32 %v2082_v1, %v729_v46  ;;  %1604 = vmatmul.msk.bf16.gmra.mxu1 %vm606_vm0, %v1410_v13 }
  0xe2   : > { %1621 = vmatmul.msk.bf16.gmra.mxu3 %vm606_vm0, %v1546_v59  ;;  %v1426_v59 = vor.u32 %v1656_v53, %v1423_v55 }
  0xe3   : > { %v899_v52 = vadd.f32 %v898_v61, %v730_v48  ;;  %v977_v61 = vadd.f32 %v2113_v30, %v808_v56  ;;  %v1654_v30 = vld [vmem:[%s1959_s24 + $0xe4] sm:$0xf] }
  0xe5   : > { %v1048_v62 = vmax.f32 %v899_v52, 0.0  ;;  %v2186_v10 = vpop.f32.mrf.mxu3  ;;  %v1079_v11 = vmax.f32 %v977_v61, 0.0 }
  0xe6   : > { %v809_v4 = vpop.f32.mrf.mxu2  ;;  %v908_v9 = vpop.f32.mrf.mxu1 }
  0xe7   : > { %v1717_v2 = vpack.c.bf16 %v1048_v62, %v1047_v60  ;;  %v810_v5 = vadd.f32 %v2082_v1, %v809_v4  ;;  %v1655_v4 = vld [vmem:[%s1959_s24 + $0xe4] sm:$0xf0] }
  0xe8   : > { %v732_v6 = vpop.f32.mrf.mxu0 }
  0xe9   : > { %1861 = vst [vmem:[%s2107_s16 + $0x18] sm:$0xff] %v1717_v2   ;;  %v979_v54 = vadd.f32 %v2121_v40, %v810_v5  ;;  %v733_v17 = vadd.f32 %v2082_v1, %v732_v6  ;;  %v1418_v40 = vor.u32 %v1654_v30, %v1415_v18  ;;  %v1413_v2 = vld [vmem:[%s1959_s24 + $0xe0] sm:$0xf]  ;;  %v1687_v6 = vld [vmem:[%s1959_s24 + $0x1e4] sm:$0xf0] }
  0xea   : > { %v1541_v5 = vld [vmem:[%s1959_s24 + $0x1e0] sm:$0xf] }
  0xeb   : > { %771 = vmatmul.bf16.gmra.mxu0 %v1398_v49  ;;  %v1080_v16 = vmax.f32 %v979_v54, 0.0  ;;  %851 = vmatmul.bf16.gmra.mxu2 %v1526_v8  ;;  %v902_v22 = vadd.f32 %v2144_v14, %v733_v17  ;;  %v1542_v17 = vor.u32 %v1687_v6, %v1541_v5 }
  0xed   : > { %v1797_v19 = vpack.c.bf16 %v1080_v16, %v1079_v11  ;;  %v1049_v33 = vmax.f32 %v902_v22, 0.0  ;;  %v2204_v14 = vpop.f32.mrf.mxu3  ;;  %v1658_v22 = vld [vmem:[%s1959_s24 + $0x104] sm:$0xf] }
  0xee   : > { %v812_v20 = vpop.f32.mrf.mxu2  ;;  %v2194_v24 = vpop.f32.mrf.mxu1 }
  0xef   : > { %1877 = vst [vmem:[%s2107_s16 + $0x98] sm:$0xff] %v1797_v19   ;;  %v813_v28 = vadd.f32 %v2082_v1, %v812_v20 }
  0xf0   : > { %v734_v21 = vpop.f32.mrf.mxu0 }
  0xf1   : > { %v735_v23 = vadd.f32 %v2082_v1, %v734_v21  ;;  %1605 = vmatmul.msk.bf16.gmra.mxu1 %vm606_vm0, %v1418_v40  ;;  %v982_v3 = vadd.f32 %v2136_v63, %v813_v28 }
  0xf2   : > { %1622 = vmatmul.msk.bf16.gmra.mxu3 %vm606_vm0, %v1554_v32 }
  0xf3   : > { %v904_v12 = vadd.f32 %v903_v35, %v735_v23  ;;  %v1406_v35 = vor.u32 %v1653_v29, %v1405_v31  ;;  %v1081_v47 = vmax.f32 %v982_v3, 0.0 }
  0xf5   : > { %v1050_v34 = vmax.f32 %v904_v12, 0.0  ;;  %v2214_v57 = vpop.f32.mrf.mxu3 }
  0xf6   : > { %v814_v42 = vpop.f32.mrf.mxu2  ;;  %v913_v46 = vpop.f32.mrf.mxu1 }
  0xf7   : > { %v1722_v41 = vpack.c.bf16 %v1050_v34, %v1049_v33  ;;  %v815_v43 = vadd.f32 %v2082_v1, %v814_v42  ;;  %v1421_v34 = vld [vmem:[%s1959_s24 + $0xf0] sm:$0xf] }
  0xf8   : > { %v737_v44 = vpop.f32.mrf.mxu0  ;;  %v1549_v42 = vld [vmem:[%s1959_s24 + $0x1f0] sm:$0xf] }
  0xf9   : > { %1862 = vst [vmem:[%s2107_s16 + $0x20] sm:$0xff] %v1722_v41   ;;  %v984_v13 = vadd.f32 %v2146_v15, %v815_v43  ;;  %v738_v52 = vadd.f32 %v2082_v1, %v737_v44  ;;  %v1422_v44 = vor.u32 %v1657_v36, %v1421_v34 }
  0xfb   : > { %776 = vmatmul.bf16.gmra.mxu0 %v1406_v35  ;;  %v1082_v48 = vmax.f32 %v984_v13, 0.0  ;;  %856 = vmatmul.bf16.gmra.mxu2 %v1534_v45  ;;  %v907_v15 = vadd.f32 %v2169_v50, %v738_v52  ;;  %v1414_v50 = vor.u32 %v1655_v4, %v1413_v2  ;;  %v1689_v35 = vld [vmem:[%s1959_s24 + $0x1f4] sm:$0xf0] }
  0xfc   : > { %v1550_v13 = vor.u32 %v1689_v35, %v1549_v42 }
  0xfd   : > { %v1802_v63 = vpack.c.bf16 %v1082_v48, %v1081_v47  ;;  %v1051_v49 = vmax.f32 %v907_v15, 0.0  ;;  %v998_v18 = vpop.f32.mrf.mxu3 }
  0xfe   : > { %v817_v56 = vpop.f32.mrf.mxu2  ;;  %v2219_v62 = vpop.f32.mrf.mxu1 }
  0xff   : > { %1878 = vst [vmem:[%s2107_s16 + $0xa0] sm:$0xff] %v1802_v63   ;;  %v818_v0 = vadd.f32 %v2082_v1, %v817_v56 }
 0x100   : > { %v739_v58 = vpop.f32.mrf.mxu0 }
 0x101   : > { %v740_v60 = vadd.f32 %v2082_v1, %v739_v58  ;;  %1606 = vmatmul.msk.bf16.gmra.mxu1 %vm606_vm0, %v1426_v59  ;;  %v987_v11 = vadd.f32 %v2161_v37, %v818_v0  ;;  %v1431_v37 = vld [vmem:[%s1959_s24 + $0x108] sm:$0xf0] }
 0x102   : > { %v1434_v27 = vor.u32 %v1658_v22, %v1431_v37 }
 0x103   : > { %v909_v39 = vadd.f32 %v908_v9, %v740_v60  ;;  %v1083_v20 = vmax.f32 %v987_v11, 0.0 }
 0x105   : > { %v1052_v61 = vmax.f32 %v909_v39, 0.0  ;;  %v1001_v32 = vpop.f32.mrf.mxu3 }
 0x106   : > { %v819_v54 = vpop.f32.mrf.mxu2  ;;  %v918_v30 = vpop.f32.mrf.mxu1 }
 0x107   : > { %v1727_v8 = vpack.c.bf16 %v1052_v61, %v1051_v49  ;;  %v820_v9 = vadd.f32 %v2082_v1, %v819_v54 }
 0x108   : > { %v742_v16 = vpop.f32.mrf.mxu0 }
 0x109   : > { %1863 = vst [vmem:[%s2107_s16 + $0x28] sm:$0xff] %v1727_v8   ;;  %v989_v19 = vadd.f32 %v2171_v51, %v820_v9  ;;  %v743_v40 = vadd.f32 %v2082_v1, %v742_v16 }
 0x10b   : > { %781 = vmatmul.bf16.gmra.mxu0 %v1414_v50  ;;  %v1084_v21 = vmax.f32 %v989_v19, 0.0  ;;  %861 = vmatmul.bf16.gmra.mxu2 %v1542_v17  ;;  %v912_v28 = vadd.f32 %v2194_v24, %v743_v40 }
 0x10d   : > { %v1807_v23 = vpack.c.bf16 %v1084_v21, %v1083_v20  ;;  %v1053_v38 = vmax.f32 %v912_v28, 0.0  ;;  %v1003_v63 = vpop.f32.mrf.mxu3 }
 0x10e   : > { %v822_v12 = vpop.f32.mrf.mxu2  ;;  %v921_v31 = vpop.f32.mrf.mxu1 }
 0x10f   : > { %1879 = vst [vmem:[%s2107_s16 + $0xa8] sm:$0xff] %v1807_v23   ;;  %v823_v33 = vadd.f32 %v2082_v1, %v822_v12 }
 0x110   : > { %v744_v26 = vpop.f32.mrf.mxu0 }
 0x111   : > { %v745_v51 = vadd.f32 %v2082_v1, %v744_v26  ;;  %1607 = vmatmul.msk.bf16.gmra.mxu1 %vm606_vm0, %v1434_v27  ;;  %v992_v24 = vadd.f32 %v2186_v10, %v823_v33 }
 0x113   : > { %v914_v29 = vadd.f32 %v913_v46, %v745_v51  ;;  %v1085_v52 = vmax.f32 %v992_v24, 0.0 }
 0x115   : > { %v1054_v41 = vmax.f32 %v914_v29, 0.0  ;;  %v1006_v61 = vpop.f32.mrf.mxu3 }
 0x116   : > { %v824_v43 = vpop.f32.mrf.mxu2  ;;  %v923_v47 = vpop.f32.mrf.mxu1 }
 0x117   : > { %v1732_v3 = vpack.c.bf16 %v1054_v41, %v1053_v38  ;;  %v825_v45 = vadd.f32 %v2082_v1, %v824_v43 }
 0x118   : > { %v747_v46 = vpop.f32.mrf.mxu0 }
 0x119   : > { %1864 = vst [vmem:[%s2107_s16 + $0x30] sm:$0xff] %v1732_v3   ;;  %v994_v48 = vadd.f32 %v2204_v14, %v825_v45  ;;  %v748_v55 = vadd.f32 %v2082_v1, %v747_v46 }
 0x11b   : > { %786 = vmatmul.bf16.gmra.mxu0 %v1422_v44  ;;  %v1086_v53 = vmax.f32 %v994_v48, 0.0  ;;  %866 = vmatmul.bf16.gmra.mxu2 %v1550_v13  ;;  %v917_v59 = vadd.f32 %v2219_v62, %v748_v55 }
 0x11d   : > { %v1812_v56 = vpack.c.bf16 %v1086_v53, %v1085_v52  ;;  %v1055_v0 = vmax.f32 %v917_v59, 0.0 }
 0x11e   : > { %v827_v58 = vpop.f32.mrf.mxu2  ;;  %v926_v60 = vpop.f32.mrf.mxu1 }
 0x11f   : > { %1880 = vst [vmem:[%s2107_s16 + $0xb0] sm:$0xff] %v1812_v56   ;;  %v828_v14 = vadd.f32 %v2082_v1, %v827_v58 }
 0x120   : > { %v749_v10 = vpop.f32.mrf.mxu0 }
 0x121   : > { %v750_v15 = vadd.f32 %v2082_v1, %v749_v10  ;;  %v997_v5 = vadd.f32 %v2214_v57, %v828_v14  ;;  %v1008_v57 = vpop.f32.mrf.mxu3 }
 0x123   : > { %v919_v39 = vadd.f32 %v918_v30, %v750_v15  ;;  %v1087_v50 = vmax.f32 %v997_v5, 0.0 }
 0x125   : > { %v1056_v2 = vmax.f32 %v919_v39, 0.0 }
 0x126   : > { %v829_v49 = vpop.f32.mrf.mxu2  ;;  %v928_v54 = vpop.f32.mrf.mxu1 }
 0x127   : > { %v1737_v4 = vpack.c.bf16 %v1056_v2, %v1055_v0  ;;  %v830_v6 = vadd.f32 %v2082_v1, %v829_v49 }
 0x128   : > { %v752_v8 = vpop.f32.mrf.mxu0 }
 0x129   : > { %1865 = vst [vmem:[%s2107_s16 + $0x38] sm:$0xff] %v1737_v4   ;;  %v999_v62 = vadd.f32 %v998_v18, %v830_v6  ;;  %v753_v9 = vadd.f32 %v2082_v1, %v752_v8 }
 0x12b   : > { %v1088_v11 = vmax.f32 %v999_v62, 0.0  ;;  %v922_v19 = vadd.f32 %v921_v31, %v753_v9  ;;  %v1011_v31 = vpop.f32.mrf.mxu3 }
 0x12d   : > { %v1817_v16 = vpack.c.bf16 %v1088_v11, %v1087_v50  ;;  %v1057_v37 = vmax.f32 %v922_v19, 0.0 }
 0x12e   : > { %v832_v17 = vpop.f32.mrf.mxu2  ;;  %v931_v21 = vpop.f32.mrf.mxu1 }
 0x12f   : > { %1881 = vst [vmem:[%s2107_s16 + $0xb8] sm:$0xff] %v1817_v16   ;;  %v833_v22 = vadd.f32 %v2082_v1, %v832_v17 }
 0x130   : > { %v754_v30 = vpop.f32.mrf.mxu0 }
 0x131   : > { %v755_v20 = vadd.f32 %v2082_v1, %v754_v30  ;;  %v1002_v26 = vadd.f32 %v1001_v32, %v833_v22 }
 0x133   : > { %v924_v40 = vadd.f32 %v923_v47, %v755_v20  ;;  %v1089_v33 = vmax.f32 %v1002_v26, 0.0  ;;  %v1013_v46 = vpop.f32.mrf.mxu3 }
 0x135   : > { %v1058_v18 = vmax.f32 %v924_v40, 0.0 }
 0x136   : > { %v834_v12 = vpop.f32.mrf.mxu2  ;;  %v933_v51 = vpop.f32.mrf.mxu1 }
 0x137   : > { %v1742_v23 = vpack.c.bf16 %v1058_v18, %v1057_v37  ;;  %v835_v27 = vadd.f32 %v2082_v1, %v834_v12 }
 0x138   : > { %v757_v28 = vpop.f32.mrf.mxu0 }
 0x139   : > { %1866 = vst [vmem:[%s2107_s16 + $0x40] sm:$0xff] %v1742_v23   ;;  %v1004_v29 = vadd.f32 %v1003_v63, %v835_v27  ;;  %v758_v36 = vadd.f32 %v2082_v1, %v757_v28 }
 0x13b   : > { %v1090_v34 = vmax.f32 %v1004_v29, 0.0  ;;  %v927_v35 = vadd.f32 %v926_v60, %v758_v36  ;;  %v1016_v60 = vpop.f32.mrf.mxu3 }
 0x13d   : > { %v1822_v38 = vpack.c.bf16 %v1090_v34, %v1089_v33  ;;  %v1059_v24 = vmax.f32 %v927_v35, 0.0 }
 0x13e   : > { %v837_v41 = vpop.f32.mrf.mxu2  ;;  %v936_v32 = vpop.f32.mrf.mxu1 }
 0x13f   : > { %1882 = vst [vmem:[%s2107_s16 + $0xc0] sm:$0xff] %v1822_v38   ;;  %v838_v44 = vadd.f32 %v2082_v1, %v837_v41 }
 0x140   : > { %v759_v42 = vpop.f32.mrf.mxu0 }
 0x141   : > { %v760_v3 = vadd.f32 %v2082_v1, %v759_v42  ;;  %v1007_v48 = vadd.f32 %v1006_v61, %v838_v44 }
 0x143   : > { %v929_v43 = vadd.f32 %v928_v54, %v760_v3  ;;  %v1091_v56 = vmax.f32 %v1007_v48, 0.0  ;;  %v1018_v9 = vpop.f32.mrf.mxu3 }
 0x145   : > { %v1060_v45 = vmax.f32 %v929_v43, 0.0 }
 0x146   : > { %v839_v47 = vpop.f32.mrf.mxu2  ;;  %v938_v55 = vpop.f32.mrf.mxu1 }
 0x147   : > { %v1747_v13 = vpack.c.bf16 %v1060_v45, %v1059_v24  ;;  %v840_v52 = vadd.f32 %v2082_v1, %v839_v47 }
 0x148   : > { %v762_v53 = vpop.f32.mrf.mxu0 }
 0x149   : > { %1867 = vst [vmem:[%s2107_s16 + $0x48] sm:$0xff] %v1747_v13   ;;  %v1009_v63 = vadd.f32 %v1008_v57, %v840_v52  ;;  %v763_v10 = vadd.f32 %v2082_v1, %v762_v53 }
 0x14b   : > { %v1092_v58 = vmax.f32 %v1009_v63, 0.0  ;;  %v932_v14 = vadd.f32 %v931_v21, %v763_v10  ;;  %v1021_v23 = vpop.f32.mrf.mxu3 }
 0x14d   : > { %v1827_v59 = vpack.c.bf16 %v1092_v58, %v1091_v56  ;;  %v1061_v61 = vmax.f32 %v932_v14, 0.0 }
 0x14e   : > { %v842_v15 = vpop.f32.mrf.mxu2  ;;  %v941_v2 = vpop.f32.mrf.mxu1 }
 0x14f   : > { %1883 = vst [vmem:[%s2107_s16 + $0xc8] sm:$0xff] %v1827_v59   ;;  %v843_v49 = vadd.f32 %v2082_v1, %v842_v15 }
 0x150   : > { %v764_v39 = vpop.f32.mrf.mxu0 }
 0x151   : > { %v765_v0 = vadd.f32 %v2082_v1, %v764_v39  ;;  %v1012_v54 = vadd.f32 %v1011_v31, %v843_v49 }
 0x153   : > { %v934_v4 = vadd.f32 %v933_v51, %v765_v0  ;;  %v1093_v17 = vmax.f32 %v1012_v54, 0.0  ;;  %v1023_v35 = vpop.f32.mrf.mxu3 }
 0x155   : > { %v1062_v5 = vmax.f32 %v934_v4, 0.0 }
 0x156   : > { %v844_v8 = vpop.f32.mrf.mxu2  ;;  %v943_v11 = vpop.f32.mrf.mxu1 }
 0x157   : > { %v1752_v6 = vpack.c.bf16 %v1062_v5, %v1061_v61  ;;  %v845_v62 = vadd.f32 %v2082_v1, %v844_v8 }
 0x158   : > { %v767_v50 = vpop.f32.mrf.mxu0 }
 0x159   : > { %1868 = vst [vmem:[%s2107_s16 + $0x50] sm:$0xff] %v1752_v6   ;;  %v1014_v16 = vadd.f32 %v1013_v46, %v845_v62  ;;  %v768_v19 = vadd.f32 %v2082_v1, %v767_v50 }
 0x15b   : > { %v1094_v30 = vmax.f32 %v1014_v16, 0.0  ;;  %v937_v40 = vadd.f32 %v936_v32, %v768_v19 }
 0x15d   : > { %v1832_v20 = vpack.c.bf16 %v1094_v30, %v1093_v17  ;;  %v1063_v26 = vmax.f32 %v937_v40, 0.0 }
 0x15e   : > { %v847_v21 = vpop.f32.mrf.mxu2  ;;  %v946_v37 = vpop.f32.mrf.mxu1 }
 0x15f   : > { %1884 = vst [vmem:[%s2107_s16 + $0xd0] sm:$0xff] %v1832_v20   ;;  %v848_v12 = vadd.f32 %v2082_v1, %v847_v21 }
 0x160   : > { %v769_v57 = vpop.f32.mrf.mxu0 }
 0x161   : > { %v770_v22 = vadd.f32 %v2082_v1, %v769_v57  ;;  %v1017_v29 = vadd.f32 %v1016_v60, %v848_v12 }
 0x163   : > { %v939_v18 = vadd.f32 %v938_v55, %v770_v22  ;;  %v1095_v38 = vmax.f32 %v1017_v29, 0.0  ;;  %v1026_v55 = vpop.f32.mrf.mxu3 }
 0x165   : > { %v1064_v27 = vmax.f32 %v939_v18, 0.0 }
 0x166   : > { %v849_v51 = vpop.f32.mrf.mxu2  ;;  %v948_v34 = vpop.f32.mrf.mxu1 }
 0x167   : > { %v1757_v28 = vpack.c.bf16 %v1064_v27, %v1063_v26  ;;  %v850_v31 = vadd.f32 %v2082_v1, %v849_v51 }
 0x168   : > { %v772_v33 = vpop.f32.mrf.mxu0 }
 0x169   : > { %1869 = vst [vmem:[%s2107_s16 + $0x58] sm:$0xff] %v1757_v28   ;;  %v1019_v36 = vadd.f32 %v1018_v9, %v850_v31  ;;  %v773_v42 = vadd.f32 %v2082_v1, %v772_v33  ;;  %v793_v33 = vadd.f32 %v2082_v1, %v2089_v7 }
 0x16b   : > { %v1096_v41 = vmax.f32 %v1019_v36, 0.0  ;;  %v942_v44 = vadd.f32 %v941_v2, %v773_v42  ;;  %v1028_v5 = vpop.f32.mrf.mxu3 }
 0x16d   : > { %v1837_v3 = vpack.c.bf16 %v1096_v41, %v1095_v38  ;;  %v1065_v47 = vmax.f32 %v942_v44, 0.0  ;;  %v795_v38 = vadd.f32 %v2082_v1, %v2109_v25 }
 0x16e   : > { %v852_v32 = vpop.f32.mrf.mxu2  ;;  %v951_v45 = vpop.f32.mrf.mxu1 }
 0x16f   : > { %1885 = vst [vmem:[%s2107_s16 + $0xd8] sm:$0xff] %v1837_v3   ;;  %v853_v13 = vadd.f32 %v2082_v1, %v852_v32 }
 0x170   : > { %v774_v43 = vpop.f32.mrf.mxu0 }
 0x171   : > { %v775_v24 = vadd.f32 %v2082_v1, %v774_v43  ;;  %v1022_v63 = vadd.f32 %v1021_v23, %v853_v13 }
 0x173   : > { %v944_v46 = vadd.f32 %v943_v11, %v775_v24  ;;  %v1097_v15 = vmax.f32 %v1022_v63, 0.0  ;;  %v1031_v20 = vpop.f32.mrf.mxu3 }
 0x175   : > { %v1066_v48 = vmax.f32 %v944_v46, 0.0 }
 0x176   : > { %v854_v53 = vpop.f32.mrf.mxu2  ;;  %v953_v10 = vpop.f32.mrf.mxu1 }
 0x177   : > { %v1762_v52 = vpack.c.bf16 %v1066_v48, %v1065_v47  ;;  %v855_v56 = vadd.f32 %v2082_v1, %v854_v53 }
 0x178   : > { %v777_v58 = vpop.f32.mrf.mxu0 }
 0x179   : > { %1870 = vst [vmem:[%s2107_s16 + $0x60] sm:$0xff] %v1762_v52   ;;  %v1024_v59 = vadd.f32 %v1023_v35, %v855_v56  ;;  %v778_v39 = vadd.f32 %v2082_v1, %v777_v58 }
 0x17b   : > { %v1098_v60 = vmax.f32 %v1024_v59, 0.0  ;;  %v947_v4 = vadd.f32 %v946_v37, %v778_v39  ;;  %v1033_v31 = vpop.f32.mrf.mxu3 }
 0x17d   : > { %v1842_v14 = vpack.c.bf16 %v1098_v60, %v1097_v15  ;;  %v1067_v54 = vmax.f32 %v947_v4, 0.0 }
 0x17e   : > { %v857_v0 = vpop.f32.mrf.mxu2  ;;  %v956_v61 = vpop.f32.mrf.mxu1 }
 0x17f   : > { %1886 = vst [vmem:[%s2107_s16 + $0xe0] sm:$0xff] %v1842_v14   ;;  %v858_v8 = vadd.f32 %v2082_v1, %v857_v0 }
 0x180   : > { %v779_v2 = vpop.f32.mrf.mxu0 }
 0x181   : > { %v780_v49 = vadd.f32 %v2082_v1, %v779_v2  ;;  %v1027_v9 = vadd.f32 %v1026_v55, %v858_v8 }
 0x183   : > { %v949_v6 = vadd.f32 %v948_v34, %v780_v49  ;;  %v1099_v21 = vmax.f32 %v1027_v9, 0.0  ;;  %v1036_v25 = vpop.f32.mrf.mxu3 }
 0x185   : > { %v1068_v62 = vmax.f32 %v949_v6, 0.0 }
 0x186   : > { %v859_v11 = vpop.f32.mrf.mxu2  ;;  %v958_v30 = vpop.f32.mrf.mxu1 }
 0x187   : > { %v1767_v50 = vpack.c.bf16 %v1068_v62, %v1067_v54  ;;  %v860_v16 = vadd.f32 %v2082_v1, %v859_v11 }
 0x188   : > { %v782_v17 = vpop.f32.mrf.mxu0 }
 0x189   : > { %1871 = vst [vmem:[%s2107_s16 + $0x68] sm:$0xff] %v1767_v50   ;;  %v1029_v19 = vadd.f32 %v1028_v5, %v860_v16  ;;  %v783_v40 = vadd.f32 %v2082_v1, %v782_v17 }
 0x18b   : > { %v1100_v57 = vmax.f32 %v1029_v19, 0.0  ;;  %v952_v23 = vadd.f32 %v951_v45, %v783_v40  ;;  %v1038_v0 = vpop.f32.mrf.mxu3 }
 0x18d   : > { %v1847_v22 = vpack.c.bf16 %v1100_v57, %v1099_v21  ;;  %v1069_v51 = vmax.f32 %v952_v23, 0.0 }
 0x18e   : > { %v862_v37 = vpop.f32.mrf.mxu2  ;;  %v961_v26 = vpop.f32.mrf.mxu1 }
 0x18f   : > { %1887 = vst [vmem:[%s2107_s16 + $0xe8] sm:$0xff] %v1847_v22   ;;  %v863_v28 = vadd.f32 %v2082_v1, %v862_v37  ;;  %v962_v42 = vadd.f32 %v961_v26, %v793_v33 }
 0x190   : > { %v784_v18 = vpop.f32.mrf.mxu0 }
 0x191   : > { %v785_v12 = vadd.f32 %v2082_v1, %v784_v18  ;;  %v1032_v41 = vadd.f32 %v1031_v20, %v863_v28  ;;  %v1073_v45 = vmax.f32 %v962_v42, 0.0 }
 0x193   : > { %v954_v27 = vadd.f32 %v953_v10, %v785_v12  ;;  %v1101_v24 = vmax.f32 %v1032_v41, 0.0 }
 0x195   : > { %v1070_v29 = vmax.f32 %v954_v27, 0.0 }
 0x196   : > { %v864_v36 = vpop.f32.mrf.mxu2  ;;  %v963_v32 = vpop.f32.mrf.mxu1 }
 0x197   : > { %v1772_v34 = vpack.c.bf16 %v1070_v29, %v1069_v51  ;;  %v865_v35 = vadd.f32 %v2082_v1, %v864_v36  ;;  %v964_v44 = vadd.f32 %v963_v32, %v795_v38 }
 0x198   : > { %v787_v3 = vpop.f32.mrf.mxu0 }
 0x199   : > { %1872 = vst [vmem:[%s2107_s16 + $0x70] sm:$0xff] %v1772_v34   ;;  %v1034_v43 = vadd.f32 %v1033_v31, %v865_v35  ;;  %v1074_v7 = vmax.f32 %v964_v44, 0.0  ;;  %v788_v13 = vadd.f32 %v2082_v1, %v787_v3 }
 0x19b   : > { %v1102_v46 = vmax.f32 %v1034_v43, 0.0  ;;  %v1782_v48 = vpack.c.bf16 %v1074_v7, %v1073_v45  ;;  %v957_v55 = vadd.f32 %v956_v61, %v788_v13 }
 0x19d   : > { %v1852_v47 = vpack.c.bf16 %v1102_v46, %v1101_v24  ;;  %1874 = vst [vmem:[%s2107_s16 + $0x80] sm:$0xff] %v1782_v48   ;;  %v1071_v10 = vmax.f32 %v957_v55, 0.0 }
 0x19e   : > { %v867_v52 = vpop.f32.mrf.mxu2 }
 0x19f   : > { %1888 = vst [vmem:[%s2107_s16 + $0xf0] sm:$0xff] %v1852_v47   ;;  %v868_v58 = vadd.f32 %v2082_v1, %v867_v52 }
 0x1a0   : > { %v789_v53 = vpop.f32.mrf.mxu0 }
 0x1a1   : > { %v790_v63 = vadd.f32 %v2082_v1, %v789_v53  ;;  %v1037_v39 = vadd.f32 %v1036_v25, %v868_v58 }
 0x1a3   : > { %v959_v56 = vadd.f32 %v958_v30, %v790_v63  ;;  %v1103_v4 = vmax.f32 %v1037_v39, 0.0 }
 0x1a5   : > { %v1072_v59 = vmax.f32 %v959_v56, 0.0 }
 0x1a6   : > { %v869_v60 = vpop.f32.mrf.mxu2 }
 0x1a7   : > { %v1777_v15 = vpack.c.bf16 %v1072_v59, %v1071_v10  ;;  %v870_v14 = vadd.f32 %v2082_v1, %v869_v60 }
 0x1a9   : > { %1873 = vst [vmem:[%s2107_s16 + $0x78] sm:$0xff] %v1777_v15   ;;  %v1039_v2 = vadd.f32 %v1038_v0, %v870_v14 }
 0x1ab   : > { %v1104_v49 = vmax.f32 %v1039_v2, 0.0 }
 0x1ad   : > { %v1857_v61 = vpack.c.bf16 %v1104_v49, %v1103_v4 }
 0x1af   : > { %1889 = vst [vmem:[%s2107_s16 + $0xf8] sm:$0xff] %v1857_v61  }
 0x1b0 PF: > { %s13_s12 = sadd.s32 1, %s1914_s12  }
 0x1b1   : > { %p10_p4 = scmp.ge.s32.totalorder %s13_s12, 6  }
 0x1b3   :  { %12 = sbr.rel (!%p10_p4) target bundleno = 1 (0x1), region = 62 }

// kernel: _lambda_.11
= control target key start
LH: loop header
LB: loop body
LE: loop exit
PB: predicated region body
PF: predicated region fallthrough
CT: control target
= control target key end

     0   :  { %s2356_s15 = smov 0   ;;  %s2817_s0 = inlined_call_operand.vmem [shape: bf16[2048,144], index: 0, kind: input, shape index: {}]   ;;  %s2818_s1 = inlined_call_operand.vmem [shape: bf16[144,128], index: 1, kind: input, shape index: {}]   ;;  %s2819_s2 = inlined_call_operand.vmem [shape: f32[1,128], index: 2, kind: input, shape index: {}]   ;;  %s2820_s3 = inlined_call_operand.vmem [shape: bf16[2048,128], index: 3, kind: input, shape index: {}]   ;;  %s2821_s4 = inlined_call_operand.vmem [shape: bf16[2048,128], index: 4, kind: output, shape index: {}]  }
   0x1 LB: > { %s1542_s16 = sadd.s32 4294967295, %s2329_s15   ;;  %p1546_p0 = scmp.ge.s32.totalorder %s2329_s15, 1  ;;  %s2329_s15 = sphi %s2356_s15, %s14_s15  }
   0x2   : > { %p175_p1 = scmp.lt.s32.totalorder %s2329_s15, 5 }
   0x4   : > { %p176_p2 = pnand %p1546_p0, %p175_p1 }
   0x5   : > { %s1547_s21 = sshll.u32 (!%p176_p2), %s1542_s16, 6 }
   0x6   : > { %179 = sbr.rel (%p176_p2) target bundleno = 434 (0x1b2), region = 36  ;;  %p208_p3 = scmp.lt.s32.totalorder (!%p176_p2), %s1547_s21, 255 }
   0xb   : > { %v1952_v0 = vld [vmem:[%s2818_s1 + $0x38] sm:$0xff]  ;;  %v1953_v1 = vld [vmem:[%s2818_s1 + $0x40] sm:$0xff]  ;;  %v1951_v2 = vld [vmem:[%s2818_s1 + $0x30] sm:$0xff]  ;;  %s2823_s21 = smov (!%p208_p3, %s1547_s21), 255  ;;  %vm655_vm0 = vcmask 130048  }
   0xc   : > { %752 = vmatpush.bf16.msra.mxu0 %v1952_v0  ;;  %2304 = vmatpush.bf16.msra.mxu2 %v1952_v0  ;;  %s1880_s24 = sshll.u32 %s2823_s21, 3  ;;  %v1950_v3 = vld [vmem:[%s2818_s1 + $0x28] sm:$0xff]  ;;  %v1949_v7 = vld [vmem:[%s2818_s1 + $0x20] sm:$0xff]  ;;  %v1948_v11 = vld [vmem:[%s2818_s1 + $0x18] sm:$0xff]  ;;  %s1551_s14 = sshll.u32 %s2823_s21, 2 }
   0xd   : > { %928 = vmatpush.bf16.msra.mxu1 %v1953_v1  ;;  %2312 = vmatpush.bf16.msra.mxu3 %v1953_v1  ;;  %s2379_s27 = scalar_lea.vmem %s2817_s0, %s1880_s24  ;;  %v1947_v12 = vld [vmem:[%s2818_s1 + $0x10] sm:$0xff]  ;;  %v1946_v16 = vld [vmem:[%s2818_s1 + $0x8] sm:$0xff]  ;;  %v1945_v19 = vld [vmem:[%s2818_s1] sm:$0xff]  ;;  %s2512_s20 = scalar_lea.vmem %s2820_s3, %s1551_s14 }
   0xe   : > { %v1881_v4 = vld [vmem:[%s2379_s27 + $0x4] sm:$0xf]  ;;  %v1558_v5 = vld [vmem:[%s2379_s27 + $0x8] sm:$0xf0]  ;;  %v1915_v8 = vld [vmem:[%s2379_s27 + $0x114] sm:$0xf]  ;;  %s2542_s24 = scalar_lea.vmem %s2821_s4, %s1551_s14 }
   0xf   : > { %v1561_v6 = vor.u32 %v1881_v4, %v1558_v5  ;;  %v1694_v9 = vld [vmem:[%s2379_s27 + $0x118] sm:$0xf0]  ;;  %v1883_v13 = vld [vmem:[%s2379_s27 + $0x14] sm:$0xf]  ;;  %v1917_v17 = vld [vmem:[%s2379_s27 + $0x124] sm:$0xf] }
  0x10   : > { %753 = vmatpush.bf16.msra.mxu0 %v1951_v2  ;;  %2305 = vmatpush.bf16.msra.mxu2 %v1951_v2  ;;  %v1697_v10 = vor.u32 %v1915_v8, %v1694_v9  ;;  %v1566_v14 = vld [vmem:[%s2379_s27 + $0x18] sm:$0xf0]  ;;  %v1702_v18 = vld [vmem:[%s2379_s27 + $0x128] sm:$0xf0]  ;;  %v1556_v20 = vld [vmem:[%s2379_s27] sm:$0xf] }
  0x11   : > { %1846 = vmatmul.msk.bf16.vlgmr.msra.gmra.mxu1 %vm655_vm0, %v1561_v6  ;;  %v1569_v15 = vor.u32 %v1883_v13, %v1566_v14  ;;  %v1882_v21 = vld [vmem:[%s2379_s27 + $0x4] sm:$0xf0]  ;;  %v1705_v22 = vor.u32 %v1917_v17, %v1702_v18  ;;  %v1684_v23 = vld [vmem:[%s2379_s27 + $0x100] sm:$0xf]  ;;  %v1885_v27 = vld [vmem:[%s2379_s27 + $0x24] sm:$0xf] }
  0x12   : > { %1863 = vmatmul.msk.bf16.vlgmr.msra.gmra.mxu3 %vm655_vm0, %v1697_v10  ;;  %v1914_v24 = vld [vmem:[%s2379_s27 + $0x104] sm:$0xf0]  ;;  %v1557_v25 = vor.u32 %v1882_v21, %v1556_v20  ;;  %v1574_v28 = vld [vmem:[%s2379_s27 + $0x28] sm:$0xf0]  ;;  %v1919_v30 = vld [vmem:[%s2379_s27 + $0x134] sm:$0xf] }
  0x13   : > { %v1685_v26 = vor.u32 %v1914_v24, %v1684_v23  ;;  %v1577_v29 = vor.u32 %v1885_v27, %v1574_v28  ;;  %v1710_v31 = vld [vmem:[%s2379_s27 + $0x138] sm:$0xf0]  ;;  %v1564_v32 = vld [vmem:[%s2379_s27 + $0x10] sm:$0xf]  ;;  %v1884_v33 = vld [vmem:[%s2379_s27 + $0x14] sm:$0xf0] }
  0x14   : > { %754 = vmatpush.bf16.msra.mxu0 %v1950_v3  ;;  %2306 = vmatpush.bf16.msra.mxu2 %v1950_v3  ;;  %v1713_v34 = vor.u32 %v1919_v30, %v1710_v31  ;;  %v1692_v35 = vld [vmem:[%s2379_s27 + $0x110] sm:$0xf]  ;;  %v1916_v36 = vld [vmem:[%s2379_s27 + $0x114] sm:$0xf0]  ;;  %v1565_v37 = vor.u32 %v1884_v33, %v1564_v32  ;;  %v1887_v39 = vld [vmem:[%s2379_s27 + $0x34] sm:$0xf] }
  0x15   : > { %v1693_v38 = vor.u32 %v1916_v36, %v1692_v35  ;;  %v1582_v40 = vld [vmem:[%s2379_s27 + $0x38] sm:$0xf0]  ;;  %v1921_v42 = vld [vmem:[%s2379_s27 + $0x144] sm:$0xf]  ;;  %v1718_v43 = vld [vmem:[%s2379_s27 + $0x148] sm:$0xf0] }
  0x16   : > { %v1585_v41 = vor.u32 %v1887_v39, %v1582_v40  ;;  %v1572_v44 = vld [vmem:[%s2379_s27 + $0x20] sm:$0xf]  ;;  %v1886_v45 = vld [vmem:[%s2379_s27 + $0x24] sm:$0xf0]  ;;  %v1721_v46 = vor.u32 %v1921_v42, %v1718_v43  ;;  %v1889_v51 = vld [vmem:[%s2379_s27 + $0x44] sm:$0xf] }
  0x17   : > { %v1700_v47 = vld [vmem:[%s2379_s27 + $0x120] sm:$0xf]  ;;  %v1918_v48 = vld [vmem:[%s2379_s27 + $0x124] sm:$0xf0]  ;;  %v1573_v49 = vor.u32 %v1886_v45, %v1572_v44  ;;  %v1590_v52 = vld [vmem:[%s2379_s27 + $0x48] sm:$0xf0] }
  0x18   : > { %755 = vmatpush.bf16.msra.mxu0 %v1949_v7  ;;  %2307 = vmatpush.bf16.msra.mxu2 %v1949_v7  ;;  %v1701_v50 = vor.u32 %v1918_v48, %v1700_v47  ;;  %v1593_v53 = vor.u32 %v1889_v51, %v1590_v52  ;;  %v1923_v54 = vld [vmem:[%s2379_s27 + $0x154] sm:$0xf]  ;;  %v1726_v55 = vld [vmem:[%s2379_s27 + $0x158] sm:$0xf0]  ;;  %v1580_v56 = vld [vmem:[%s2379_s27 + $0x30] sm:$0xf] }
  0x19   : > { %v1888_v57 = vld [vmem:[%s2379_s27 + $0x34] sm:$0xf0]  ;;  %v1729_v58 = vor.u32 %v1923_v54, %v1726_v55  ;;  %v1708_v59 = vld [vmem:[%s2379_s27 + $0x130] sm:$0xf]  ;;  %v1891_v63 = vld [vmem:[%s2379_s27 + $0x54] sm:$0xf] }
  0x1a   : > { %v1920_v60 = vld [vmem:[%s2379_s27 + $0x134] sm:$0xf0]  ;;  %v1581_v61 = vor.u32 %v1888_v57, %v1580_v56  ;;  %v1598_v0 = vld [vmem:[%s2379_s27 + $0x58] sm:$0xf0]  ;;  %v1925_v2 = vld [vmem:[%s2379_s27 + $0x164] sm:$0xf] }
  0x1b   : > { %v1709_v62 = vor.u32 %v1920_v60, %v1708_v59  ;;  %v1601_v1 = vor.u32 %v1891_v63, %v1598_v0  ;;  %v1734_v3 = vld [vmem:[%s2379_s27 + $0x168] sm:$0xf0]  ;;  %v1588_v4 = vld [vmem:[%s2379_s27 + $0x40] sm:$0xf]  ;;  %v1890_v5 = vld [vmem:[%s2379_s27 + $0x44] sm:$0xf0] }
  0x1c   : > { %756 = vmatpush.bf16.msra.mxu0 %v1948_v11  ;;  %2308 = vmatpush.bf16.msra.mxu2 %v1948_v11  ;;  %v1737_v6 = vor.u32 %v1925_v2, %v1734_v3  ;;  %v1716_v7 = vld [vmem:[%s2379_s27 + $0x140] sm:$0xf]  ;;  %v1922_v8 = vld [vmem:[%s2379_s27 + $0x144] sm:$0xf0]  ;;  %v1589_v9 = vor.u32 %v1890_v5, %v1588_v4  ;;  %v1893_v11 = vld [vmem:[%s2379_s27 + $0x64] sm:$0xf] }
  0x1d   : > { %v1717_v10 = vor.u32 %v1922_v8, %v1716_v7  ;;  %v1927_v14 = vld [vmem:[%s2379_s27 + $0x174] sm:$0xf]  ;;  %v1892_v17 = vld [vmem:[%s2379_s27 + $0x54] sm:$0xf0]  ;;  %v1614_v24 = vld [vmem:[%s2379_s27 + $0x78] sm:$0xf0] }
  0x1e   : > { %v1924_v20 = vld [vmem:[%s2379_s27 + $0x154] sm:$0xf0]  ;;  %v1895_v23 = vld [vmem:[%s2379_s27 + $0x74] sm:$0xf]  ;;  %v1750_v27 = vld [vmem:[%s2379_s27 + $0x188] sm:$0xf0] }
  0x1f   : > { %v1604_v28 = vld [vmem:[%s2379_s27 + $0x60] sm:$0xf]  ;;  %v1926_v32 = vld [vmem:[%s2379_s27 + $0x164] sm:$0xf0]  ;;  %v1897_v35 = vld [vmem:[%s2379_s27 + $0x84] sm:$0xf] }
  0x20   : > { %757 = vmatpush.bf16.msra.mxu0 %v1947_v12  ;;  %2309 = vmatpush.bf16.msra.mxu2 %v1947_v12  ;;  %v1606_v12 = vld [vmem:[%s2379_s27 + $0x68] sm:$0xf0]  ;;  %v1732_v31 = vld [vmem:[%s2379_s27 + $0x160] sm:$0xf]  ;;  %v1931_v39 = vld [vmem:[%s2379_s27 + $0x194] sm:$0xf] }
  0x21   : > { %1847 = vmatmul.msk.bf16.gmra.mxu1 %vm655_vm0, %v1569_v15  ;;  %v1609_v13 = vor.u32 %v1893_v11, %v1606_v12  ;;  %v1742_v15 = vld [vmem:[%s2379_s27 + $0x178] sm:$0xf0]  ;;  %v1622_v36 = vld [vmem:[%s2379_s27 + $0x88] sm:$0xf0]  ;;  %v1896_v42 = vld [vmem:[%s2379_s27 + $0x74] sm:$0xf0] }
  0x22   : > { %1864 = vmatmul.msk.bf16.gmra.mxu3 %vm655_vm0, %v1705_v22  ;;  %v1745_v18 = vor.u32 %v1927_v14, %v1742_v15  ;;  %v1758_v40 = vld [vmem:[%s2379_s27 + $0x198] sm:$0xf0]  ;;  %v1740_v44 = vld [vmem:[%s2379_s27 + $0x170] sm:$0xf]  ;;  %v1928_v45 = vld [vmem:[%s2379_s27 + $0x174] sm:$0xf0] }
  0x23   : > { %v1761_v43 = vor.u32 %v1931_v39, %v1758_v40  ;;  %v1741_v47 = vor.u32 %v1928_v45, %v1740_v44  ;;  %v1630_v51 = vld [vmem:[%s2379_s27 + $0x98] sm:$0xf0]  ;;  %v1933_v55 = vld [vmem:[%s2379_s27 + $0x1a4] sm:$0xf]  ;;  %v1766_v56 = vld [vmem:[%s2379_s27 + $0x1a8] sm:$0xf0] }
  0x24   : > { %758 = vmatpush.bf16.msra.mxu0 %v1946_v16  ;;  %2310 = vmatpush.bf16.msra.mxu2 %v1946_v16  ;;  %v1596_v16 = vld [vmem:[%s2379_s27 + $0x50] sm:$0xf]  ;;  %v1620_v57 = vld [vmem:[%s2379_s27 + $0x80] sm:$0xf]  ;;  %v1769_v59 = vor.u32 %v1933_v55, %v1766_v56  ;;  %v1638_v7 = vld [vmem:[%s2379_s27 + $0xa8] sm:$0xf0] }
  0x25   : > { %v1597_v21 = vor.u32 %v1892_v17, %v1596_v16  ;;  %v1748_v60 = vld [vmem:[%s2379_s27 + $0x180] sm:$0xf]  ;;  %v1646_v39 = vld [vmem:[%s2379_s27 + $0xb8] sm:$0xf0]  ;;  %v1937_v55 = vld [vmem:[%s2379_s27 + $0x1c4] sm:$0xf] }
  0x26   : > { %v1955_v5 = vld [vmem:[%s2512_s20] sm:$0xff]   ;;  %v1782_v56 = vld [vmem:[%s2379_s27 + $0x1c8] sm:$0xf0] }
  0x27   : > { %v1957_v14 = vunpack.c.h.bf16 %v1955_v5 }
  0x28   : > { %759 = vmatpush.bf16.msra.mxu0 %v1945_v19  ;;  %2311 = vmatpush.bf16.msra.mxu2 %v1945_v19  ;;  %v1724_v19 = vld [vmem:[%s2379_s27 + $0x150] sm:$0xf] }
  0x29   : > { %v1725_v22 = vor.u32 %v1924_v20, %v1724_v19  ;;  %v1935_v19 = vld [vmem:[%s2379_s27 + $0x1b4] sm:$0xf]  ;;  %v1774_v20 = vld [vmem:[%s2379_s27 + $0x1b8] sm:$0xf0] }
  0x2b   : > { %760 = vmatmul.bf16.vlgmr.msra.gmra.mxu0 %v1557_v25  ;;  %840 = vmatmul.bf16.vlgmr.msra.gmra.mxu2 %v1685_v26  ;;  %v1617_v25 = vor.u32 %v1895_v23, %v1614_v24  ;;  %v1929_v26 = vld [vmem:[%s2379_s27 + $0x184] sm:$0xf]  ;;  %v1777_v23 = vor.u32 %v1935_v19, %v1774_v20  ;;  %v2243_v20 = vld [vmem:[%s2512_s20 + $0x10] sm:$0xff]  }
  0x2c   : > { %v1753_v30 = vor.u32 %v1929_v26, %v1750_v27  ;;  %v1932_v26 = vld [vmem:[%s2379_s27 + $0x194] sm:$0xf0] }
  0x31   : > { %1848 = vmatmul.msk.bf16.gmra.mxu1 %vm655_vm0, %v1577_v29  ;;  %v1894_v29 = vld [vmem:[%s2379_s27 + $0x64] sm:$0xf0] }
  0x32   : > { %1865 = vmatmul.msk.bf16.gmra.mxu3 %vm655_vm0, %v1713_v34  ;;  %v1605_v33 = vor.u32 %v1894_v29, %v1604_v28  ;;  %v1733_v34 = vor.u32 %v1926_v32, %v1732_v31 }
  0x3b   : > { %765 = vmatmul.bf16.gmra.mxu0 %v1565_v37  ;;  %845 = vmatmul.bf16.gmra.mxu2 %v1693_v38  ;;  %v1625_v37 = vor.u32 %v1897_v35, %v1622_v36 }
  0x41   : > { %1849 = vmatmul.msk.bf16.gmra.mxu1 %vm655_vm0, %v1585_v41  ;;  %v1612_v41 = vld [vmem:[%s2379_s27 + $0x70] sm:$0xf] }
  0x42   : > { %1866 = vmatmul.msk.bf16.gmra.mxu3 %vm655_vm0, %v1721_v46  ;;  %v1613_v46 = vor.u32 %v1896_v42, %v1612_v41 }
  0x4b   : > { %770 = vmatmul.bf16.gmra.mxu0 %v1573_v49  ;;  %850 = vmatmul.bf16.gmra.mxu2 %v1701_v50  ;;  %v1899_v50 = vld [vmem:[%s2379_s27 + $0x94] sm:$0xf] }
  0x4c   : > { %v1633_v52 = vor.u32 %v1899_v50, %v1630_v51 }
  0x51   : > { %1850 = vmatmul.msk.bf16.gmra.mxu1 %vm655_vm0, %v1593_v53 }
  0x52   : > { %1867 = vmatmul.msk.bf16.gmra.mxu3 %vm655_vm0, %v1729_v58  ;;  %v1898_v58 = vld [vmem:[%s2379_s27 + $0x84] sm:$0xf0] }
  0x53   : > { %v1621_v63 = vor.u32 %v1898_v58, %v1620_v57  ;;  %v1636_v57 = vld [vmem:[%s2379_s27 + $0xa0] sm:$0xf]  ;;  %v1902_v58 = vld [vmem:[%s2379_s27 + $0xa4] sm:$0xf0] }
  0x5b   : > { %775 = vmatmul.bf16.gmra.mxu0 %v1581_v61  ;;  %855 = vmatmul.bf16.gmra.mxu2 %v1709_v62  ;;  %v1930_v61 = vld [vmem:[%s2379_s27 + $0x184] sm:$0xf0]  ;;  %v2504_v62 = vld [vmem:[%s2819_s2] ss:$0 sm:$0xff] }
  0x61   : > { %1851 = vmatmul.msk.bf16.gmra.mxu1 %vm655_vm0, %v1601_v1  ;;  %v1749_v1 = vor.u32 %v1930_v61, %v1748_v60  ;;  %v1764_v61 = vld [vmem:[%s2379_s27 + $0x1a0] sm:$0xf] }
  0x62   : > { %1868 = vmatmul.msk.bf16.gmra.mxu3 %vm655_vm0, %v1737_v6  ;;  %v1901_v6 = vld [vmem:[%s2379_s27 + $0xa4] sm:$0xf] }
  0x63   : > { %v1641_v12 = vor.u32 %v1901_v6, %v1638_v7  ;;  %v1637_v7 = vor.u32 %v1902_v58, %v1636_v57 }
  0x6b   : > { %780 = vmatmul.bf16.gmra.mxu0 %v1589_v9  ;;  %860 = vmatmul.bf16.gmra.mxu2 %v1717_v10  ;;  %v1956_v9 = vunpack.c.l.bf16 %v1955_v5 }
  0x71   : > { %1852 = vmatmul.msk.bf16.gmra.mxu1 %vm655_vm0, %v1609_v13 }
  0x72   : > { %1869 = vmatmul.msk.bf16.gmra.mxu3 %vm655_vm0, %v1745_v18 }
  0x7b   : > { %785 = vmatmul.bf16.gmra.mxu0 %v1597_v21  ;;  %865 = vmatmul.bf16.gmra.mxu2 %v1725_v22  ;;  %v1628_v21 = vld [vmem:[%s2379_s27 + $0x90] sm:$0xf]  ;;  %v1900_v22 = vld [vmem:[%s2379_s27 + $0x94] sm:$0xf0] }
  0x81   : > { %1853 = vmatmul.msk.bf16.gmra.mxu1 %vm655_vm0, %v1617_v25  ;;  %v1756_v25 = vld [vmem:[%s2379_s27 + $0x190] sm:$0xf] }
  0x82   : > { %1870 = vmatmul.msk.bf16.gmra.mxu3 %vm655_vm0, %v1753_v30  ;;  %v1629_v30 = vor.u32 %v1900_v22, %v1628_v21  ;;  %v1757_v32 = vor.u32 %v1932_v26, %v1756_v25  ;;  %v1905_v21 = vld [vmem:[%s2379_s27 + $0xc4] sm:$0xf]  ;;  %v1654_v22 = vld [vmem:[%s2379_s27 + $0xc8] sm:$0xf0] }
  0x8b   : > { %790 = vmatmul.bf16.gmra.mxu0 %v1605_v33  ;;  %870 = vmatmul.bf16.gmra.mxu2 %v1733_v34 }
  0x8e   : > { %v930_v38 = vpop.f32.mrf.mxu1 }
  0x91   : > { %1854 = vmatmul.msk.bf16.gmra.mxu1 %vm655_vm0, %v1625_v37  ;;  %v2242_v37 = vld [vmem:[%s2512_s20 + $0x8] sm:$0xff]  }
  0x92   : > { %1871 = vmatmul.msk.bf16.gmra.mxu3 %vm655_vm0, %v1761_v43  ;;  %v1960_v41 = vunpack.c.l.bf16 %v2242_v37 }
  0x95   : > { %v2485_v49 = vpop.f32.mrf.mxu3 }
  0x96   : > { %v932_v48 = vpop.f32.mrf.mxu1 }
  0x9b   : > { %795 = vmatmul.bf16.gmra.mxu0 %v1613_v46  ;;  %875 = vmatmul.bf16.gmra.mxu2 %v1741_v47  ;;  %v1961_v46 = vunpack.c.h.bf16 %v2242_v37 }
  0x9d   : > { %v2491_v54 = vpop.f32.mrf.mxu3 }
  0x9e   : > { %v2489_v53 = vpop.f32.mrf.mxu1 }
  0xa1   : > { %1855 = vmatmul.msk.bf16.gmra.mxu1 %vm655_vm0, %v1633_v52  ;;  %v2258_v52 = vld [vmem:[%s2512_s20 + $0x88] sm:$0xff]  }
  0xa2   : > { %1872 = vmatmul.msk.bf16.gmra.mxu3 %vm655_vm0, %v1769_v59  ;;  %v1785_v59 = vor.u32 %v1937_v55, %v1782_v56 }
  0xa5   : > { %v2514_v3 = vpop.f32.mrf.mxu3 }
  0xa6   : > { %v937_v2 = vpop.f32.mrf.mxu1 }
  0xa8   : > { %v761_v0 = vpop.f32.mrf.mxu0 }
  0xa9   : > { %v762_v4 = vadd.f32 %v2504_v62, %v761_v0 }
  0xab   : > { %800 = vmatmul.bf16.gmra.mxu0 %v1621_v63  ;;  %880 = vmatmul.bf16.gmra.mxu2 %v1749_v1  ;;  %v931_v8 = vadd.f32 %v930_v38, %v762_v4  ;;  %v1903_v38 = vld [vmem:[%s2379_s27 + $0xb4] sm:$0xf]  ;;  %v1934_v63 = vld [vmem:[%s2379_s27 + $0x1a4] sm:$0xf0]  ;;  %v2024_v1 = vunpack.c.l.bf16 %v2258_v52 }
  0xac   : > { %v1649_v44 = vor.u32 %v1903_v38, %v1646_v39  ;;  %v2259_v38 = vld [vmem:[%s2512_s20 + $0x90] sm:$0xff]  }
  0xad   : > { %v2525_v16 = vpop.f32.mrf.mxu3  ;;  %v1218_v17 = vadd.f32 %v1956_v9, %v931_v8  ;;  %v2025_v8 = vunpack.c.h.bf16 %v2258_v52  ;;  %v2028_v52 = vunpack.c.l.bf16 %v2259_v38  ;;  %v2029_v58 = vunpack.c.h.bf16 %v2259_v38 }
  0xae   : > { %v2520_v10 = vpop.f32.mrf.mxu2  ;;  %v2523_v15 = vpop.f32.mrf.mxu1 }
  0xaf   : > { %v1282_v27 = vmax.f32 %v1218_v17, 0.0 }
  0xb0   : > { %v763_v11 = vpop.f32.mrf.mxu0 }
  0xb1   : > { %v764_v13 = vadd.f32 %v2504_v62, %v763_v11  ;;  %1856 = vmatmul.msk.bf16.gmra.mxu1 %vm655_vm0, %v1641_v12  ;;  %v1765_v11 = vor.u32 %v1934_v63, %v1764_v61 }
  0xb2   : > { %1873 = vmatmul.msk.bf16.gmra.mxu3 %vm655_vm0, %v1777_v23 }
  0xb3   : > { %v933_v18 = vadd.f32 %v932_v48, %v764_v13 }
  0xb5   : > { %v1219_v24 = vadd.f32 %v1957_v14, %v933_v18  ;;  %v2546_v35 = vpop.f32.mrf.mxu3 }
  0xb6   : > { %v2534_v29 = vpop.f32.mrf.mxu2  ;;  %v2544_v34 = vpop.f32.mrf.mxu1 }
  0xb7   : > { %v1283_v28 = vmax.f32 %v1219_v24, 0.0 }
  0xb8   : > { %v766_v31 = vpop.f32.mrf.mxu0 }
  0xb9   : > { %v2085_v33 = vpack.c.bf16 %v1283_v28, %v1282_v27  ;;  %v767_v36 = vadd.f32 %v2504_v62, %v766_v31 }
  0xbb   : > { %2086 = vst [vmem:[%s2542_s24] sm:$0xff] %v2085_v33   ;;  %805 = vmatmul.bf16.gmra.mxu0 %v1629_v30  ;;  %885 = vmatmul.bf16.gmra.mxu2 %v1757_v32  ;;  %v936_v40 = vadd.f32 %v2489_v53, %v767_v36  ;;  %v1657_v30 = vor.u32 %v1905_v21, %v1654_v22  ;;  %v1965_v32 = vunpack.c.h.bf16 %v2243_v20 }
  0xbd   : > { %v2558_v50 = vpop.f32.mrf.mxu3  ;;  %v1220_v51 = vadd.f32 %v1960_v41, %v936_v40  ;;  %v1939_v40 = vld [vmem:[%s2379_s27 + $0x1d4] sm:$0xf]  ;;  %v1790_v41 = vld [vmem:[%s2379_s27 + $0x1d8] sm:$0xf0] }
  0xbe   : > { %v846_v42 = vpop.f32.mrf.mxu2  ;;  %v2555_v47 = vpop.f32.mrf.mxu1 }
  0xbf   : > { %v847_v48 = vadd.f32 %v2504_v62, %v846_v42  ;;  %v1284_v4 = vmax.f32 %v1220_v51, 0.0  ;;  %v1644_v42 = vld [vmem:[%s2379_s27 + $0xb0] sm:$0xf] }
  0xc0   : > { %v768_v43 = vpop.f32.mrf.mxu0 }
  0xc1   : > { %v769_v45 = vadd.f32 %v2504_v62, %v768_v43  ;;  %1857 = vmatmul.msk.bf16.gmra.mxu1 %vm655_vm0, %v1649_v44  ;;  %v1016_v0 = vadd.f32 %v2485_v49, %v847_v48  ;;  %v1904_v43 = vld [vmem:[%s2379_s27 + $0xb4] sm:$0xf0]  ;;  %v1793_v44 = vor.u32 %v1939_v40, %v1790_v41 }
  0xc2   : > { %1874 = vmatmul.msk.bf16.gmra.mxu3 %vm655_vm0, %v1785_v59  ;;  %v1936_v48 = vld [vmem:[%s2379_s27 + $0x1b4] sm:$0xf0]  ;;  %v1645_v57 = vor.u32 %v1904_v43, %v1644_v42 }
  0xc3   : > { %v938_v53 = vadd.f32 %v937_v2, %v769_v45  ;;  %v1252_v49 = vadd.f32 %v2024_v1, %v1016_v0 }
  0xc5   : > { %v1221_v60 = vadd.f32 %v1961_v46, %v938_v53  ;;  %v2574_v17 = vpop.f32.mrf.mxu3  ;;  %v1316_v23 = vmax.f32 %v1252_v49, 0.0  ;;  %v1772_v46 = vld [vmem:[%s2379_s27 + $0x1b0] sm:$0xf] }
  0xc6   : > { %v848_v6 = vpop.f32.mrf.mxu2  ;;  %v2571_v13 = vpop.f32.mrf.mxu1 }
  0xc7   : > { %v1285_v5 = vmax.f32 %v1221_v60, 0.0  ;;  %v849_v2 = vadd.f32 %v2504_v62, %v848_v6  ;;  %v1773_v60 = vor.u32 %v1936_v48, %v1772_v46  ;;  %v2244_v6 = vld [vmem:[%s2512_s20 + $0x18] sm:$0xff]  }
  0xc8   : > { %v771_v9 = vpop.f32.mrf.mxu0 }
  0xc9   : > { %v2090_v12 = vpack.c.bf16 %v1285_v5, %v1284_v4  ;;  %v1018_v14 = vadd.f32 %v2491_v54, %v849_v2  ;;  %v772_v18 = vadd.f32 %v2504_v62, %v771_v9  ;;  %v1964_v54 = vunpack.c.l.bf16 %v2243_v20  ;;  %v1662_v2 = vld [vmem:[%s2379_s27 + $0xd8] sm:$0xf0] }
  0xca   : > { %v1969_v20 = vunpack.c.h.bf16 %v2244_v6 }
  0xcb   : > { %2273 = vst [vmem:[%s2542_s24 + $0x8] sm:$0xff] %v2090_v12   ;;  %810 = vmatmul.bf16.gmra.mxu0 %v1637_v7  ;;  %v1253_v19 = vadd.f32 %v2025_v8, %v1018_v14  ;;  %890 = vmatmul.bf16.gmra.mxu2 %v1765_v11  ;;  %v941_v25 = vadd.f32 %v2523_v15, %v772_v18  ;;  %v1907_v7 = vld [vmem:[%s2379_s27 + $0xd4] sm:$0xf] }
  0xcc   : > { %v1665_v18 = vor.u32 %v1907_v7, %v1662_v2 }
  0xcd   : > { %v1317_v24 = vmax.f32 %v1253_v19, 0.0  ;;  %v2587_v37 = vpop.f32.mrf.mxu3  ;;  %v1222_v15 = vadd.f32 %v1964_v54, %v941_v25  ;;  %v1941_v54 = vld [vmem:[%s2379_s27 + $0x1e4] sm:$0xf] }
  0xce   : > { %v851_v26 = vpop.f32.mrf.mxu2  ;;  %v2583_v33 = vpop.f32.mrf.mxu1 }
  0xcf   : > { %v2170_v27 = vpack.c.bf16 %v1317_v24, %v1316_v23  ;;  %v852_v36 = vadd.f32 %v2504_v62, %v851_v26  ;;  %v1286_v53 = vmax.f32 %v1222_v15, 0.0  ;;  %v2260_v24 = vld [vmem:[%s2512_s20 + $0x98] sm:$0xff]   ;;  %v1798_v26 = vld [vmem:[%s2379_s27 + $0x1e8] sm:$0xf0] }
  0xd0   : > { %v773_v28 = vpop.f32.mrf.mxu0  ;;  %v2032_v38 = vunpack.c.l.bf16 %v2260_v24  ;;  %v2033_v43 = vunpack.c.h.bf16 %v2260_v24 }
  0xd1   : > { %v774_v31 = vadd.f32 %v2504_v62, %v773_v28  ;;  %2289 = vst [vmem:[%s2542_s24 + $0x88] sm:$0xff] %v2170_v27   ;;  %1858 = vmatmul.msk.bf16.gmra.mxu1 %vm655_vm0, %v1657_v30  ;;  %v1021_v51 = vadd.f32 %v2514_v3, %v852_v36  ;;  %v1652_v27 = vld [vmem:[%s2379_s27 + $0xc0] sm:$0xf]  ;;  %v1906_v28 = vld [vmem:[%s2379_s27 + $0xc4] sm:$0xf0]  ;;  %v1801_v30 = vor.u32 %v1941_v54, %v1798_v26 }
  0xd2   : > { %1875 = vmatmul.msk.bf16.gmra.mxu3 %vm655_vm0, %v1793_v44  ;;  %v1938_v36 = vld [vmem:[%s2379_s27 + $0x1c4] sm:$0xf0]  ;;  %v1653_v42 = vor.u32 %v1906_v28, %v1652_v27 }
  0xd3   : > { %v943_v39 = vadd.f32 %v2544_v34, %v774_v31  ;;  %v1254_v3 = vadd.f32 %v2028_v52, %v1021_v51 }
  0xd5   : > { %v1223_v45 = vadd.f32 %v1965_v32, %v943_v39  ;;  %v2604_v1 = vpop.f32.mrf.mxu3  ;;  %v1318_v8 = vmax.f32 %v1254_v3, 0.0  ;;  %v1780_v32 = vld [vmem:[%s2379_s27 + $0x1c0] sm:$0xf] }
  0xd6   : > { %v853_v56 = vpop.f32.mrf.mxu2  ;;  %v2601_v63 = vpop.f32.mrf.mxu1 }
  0xd7   : > { %v1287_v55 = vmax.f32 %v1223_v45, 0.0  ;;  %v854_v34 = vadd.f32 %v2504_v62, %v853_v56  ;;  %v1781_v45 = vor.u32 %v1938_v36, %v1780_v32  ;;  %v2245_v56 = vld [vmem:[%s2512_s20 + $0x20] sm:$0xff]  }
  0xd8   : > { %v776_v59 = vpop.f32.mrf.mxu0 }
  0xd9   : > { %v2095_v61 = vpack.c.bf16 %v1287_v55, %v1286_v53  ;;  %v1023_v0 = vadd.f32 %v2525_v16, %v854_v34  ;;  %v777_v4 = vadd.f32 %v2504_v62, %v776_v59  ;;  %v1968_v16 = vunpack.c.l.bf16 %v2244_v6  ;;  %v1670_v34 = vld [vmem:[%s2379_s27 + $0xe8] sm:$0xf0] }
  0xda   : > { %v1973_v6 = vunpack.c.h.bf16 %v2245_v56 }
  0xdb   : > { %2274 = vst [vmem:[%s2542_s24 + $0x10] sm:$0xff] %v2095_v61   ;;  %815 = vmatmul.bf16.gmra.mxu0 %v1645_v57  ;;  %v1255_v5 = vadd.f32 %v2029_v58, %v1023_v0  ;;  %895 = vmatmul.bf16.gmra.mxu2 %v1773_v60  ;;  %v946_v11 = vadd.f32 %v2555_v47, %v777_v4  ;;  %v1909_v57 = vld [vmem:[%s2379_s27 + $0xe4] sm:$0xf] }
  0xdc   : > { %v1673_v4 = vor.u32 %v1909_v57, %v1670_v34 }
  0xdd   : > { %v1319_v9 = vmax.f32 %v1255_v5, 0.0  ;;  %v2617_v23 = vpop.f32.mrf.mxu3  ;;  %v1224_v47 = vadd.f32 %v1968_v16, %v946_v11  ;;  %v1943_v11 = vld [vmem:[%s2379_s27 + $0x1f4] sm:$0xf]  ;;  %v1806_v16 = vld [vmem:[%s2379_s27 + $0x1f8] sm:$0xf0] }
  0xde   : > { %v856_v12 = vpop.f32.mrf.mxu2  ;;  %v2613_v21 = vpop.f32.mrf.mxu1 }
  0xdf   : > { %v2175_v49 = vpack.c.bf16 %v1319_v9, %v1318_v8  ;;  %v857_v22 = vadd.f32 %v2504_v62, %v856_v12  ;;  %v1288_v39 = vmax.f32 %v1224_v47, 0.0  ;;  %v2261_v9 = vld [vmem:[%s2512_s20 + $0xa0] sm:$0xff]   ;;  %v1660_v12 = vld [vmem:[%s2379_s27 + $0xd0] sm:$0xf] }
  0xe0   : > { %v778_v14 = vpop.f32.mrf.mxu0  ;;  %v2036_v24 = vunpack.c.l.bf16 %v2261_v9  ;;  %v2037_v28 = vunpack.c.h.bf16 %v2261_v9 }
  0xe1   : > { %v779_v19 = vadd.f32 %v2504_v62, %v778_v14  ;;  %2290 = vst [vmem:[%s2542_s24 + $0x90] sm:$0xff] %v2175_v49   ;;  %1859 = vmatmul.msk.bf16.gmra.mxu1 %vm655_vm0, %v1665_v18  ;;  %v1026_v15 = vadd.f32 %v2546_v35, %v857_v22  ;;  %v1908_v49 = vld [vmem:[%s2379_s27 + $0xd4] sm:$0xf0]  ;;  %v1809_v14 = vor.u32 %v1943_v11, %v1806_v16 }
  0xe2   : > { %1876 = vmatmul.msk.bf16.gmra.mxu3 %vm655_vm0, %v1801_v30  ;;  %v1661_v26 = vor.u32 %v1908_v49, %v1660_v12 }
  0xe3   : > { %v948_v25 = vadd.f32 %v2571_v13, %v779_v19  ;;  %v1256_v51 = vadd.f32 %v2032_v38, %v1026_v15  ;;  %v1788_v19 = vld [vmem:[%s2379_s27 + $0x1d0] sm:$0xf] }
  0xe5   : > { %v1225_v31 = vadd.f32 %v1969_v20, %v948_v25  ;;  %v2636_v53 = vpop.f32.mrf.mxu3  ;;  %v1320_v58 = vmax.f32 %v1256_v51, 0.0  ;;  %v1940_v20 = vld [vmem:[%s2379_s27 + $0x1d4] sm:$0xf0] }
  0xe6   : > { %v858_v41 = vpop.f32.mrf.mxu2  ;;  %v2631_v48 = vpop.f32.mrf.mxu1 }
  0xe7   : > { %v1289_v40 = vmax.f32 %v1225_v31, 0.0  ;;  %v859_v13 = vadd.f32 %v2504_v62, %v858_v41  ;;  %v1789_v31 = vor.u32 %v1940_v20, %v1788_v19  ;;  %v1911_v41 = vld [vmem:[%s2379_s27 + $0xf4] sm:$0xf] }
  0xe8   : > { %v781_v44 = vpop.f32.mrf.mxu0 }
  0xe9   : > { %v2100_v46 = vpack.c.bf16 %v1289_v40, %v1288_v39  ;;  %v1028_v35 = vadd.f32 %v2558_v50, %v859_v13  ;;  %v782_v52 = vadd.f32 %v2504_v62, %v781_v44  ;;  %v1972_v50 = vunpack.c.l.bf16 %v2245_v56  ;;  %v2246_v40 = vld [vmem:[%s2512_s20 + $0x28] sm:$0xff]  }
  0xea   : > { %v1977_v56 = vunpack.c.h.bf16 %v2246_v40 }
  0xeb   : > { %2275 = vst [vmem:[%s2542_s24 + $0x18] sm:$0xff] %v2100_v46   ;;  %820 = vmatmul.bf16.gmra.mxu0 %v1653_v42  ;;  %v1257_v55 = vadd.f32 %v2033_v43, %v1028_v35  ;;  %900 = vmatmul.bf16.gmra.mxu2 %v1781_v45  ;;  %v951_v60 = vadd.f32 %v2583_v33, %v782_v52  ;;  %v1678_v42 = vld [vmem:[%s2379_s27 + $0xf8] sm:$0xf0]  ;;  %v1976_v45 = vunpack.c.l.bf16 %v2246_v40  ;;  %v2263_v40 = vld [vmem:[%s2512_s20 + $0xb0] sm:$0xff]  }
  0xec   : > { %v1681_v52 = vor.u32 %v1911_v41, %v1678_v42  ;;  %v1676_v42 = vld [vmem:[%s2379_s27 + $0xf0] sm:$0xf] }
  0xed   : > { %v1321_v59 = vmax.f32 %v1257_v55, 0.0  ;;  %v1226_v8 = vadd.f32 %v1972_v50, %v951_v60  ;;  %v2656_v22 = vpop.f32.mrf.mxu3  ;;  %v1668_v60 = vld [vmem:[%s2379_s27 + $0xe0] sm:$0xf]  ;;  %v1910_v50 = vld [vmem:[%s2379_s27 + $0xe4] sm:$0xf0] }
  0xee   : > { %v861_v61 = vpop.f32.mrf.mxu2  ;;  %v2643_v7 = vpop.f32.mrf.mxu1  ;;  %v1669_v9 = vor.u32 %v1910_v50, %v1668_v60 }
  0xef   : > { %v2180_v3 = vpack.c.bf16 %v1321_v59, %v1320_v58  ;;  %v862_v2 = vadd.f32 %v2504_v62, %v861_v61  ;;  %v1290_v25 = vmax.f32 %v1226_v8, 0.0  ;;  %v2262_v58 = vld [vmem:[%s2512_s20 + $0xa8] sm:$0xff]  }
  0xf0   : > { %v783_v0 = vpop.f32.mrf.mxu0 }
  0xf1   : > { %v784_v5 = vadd.f32 %v2504_v62, %v783_v0  ;;  %2291 = vst [vmem:[%s2542_s24 + $0x98] sm:$0xff] %v2180_v3   ;;  %1860 = vmatmul.msk.bf16.gmra.mxu1 %vm655_vm0, %v1673_v4  ;;  %v1031_v47 = vadd.f32 %v2574_v17, %v862_v2  ;;  %v1796_v3 = vld [vmem:[%s2379_s27 + $0x1e0] sm:$0xf]  ;;  %v1942_v0 = vld [vmem:[%s2379_s27 + $0x1e4] sm:$0xf0] }
  0xf2   : > { %1877 = vmatmul.msk.bf16.gmra.mxu3 %vm655_vm0, %v1809_v14  ;;  %v1797_v16 = vor.u32 %v1942_v0, %v1796_v3  ;;  %v2248_v0 = vld [vmem:[%s2512_s20 + $0x38] sm:$0xff]  }
  0xf3   : > { %v953_v33 = vadd.f32 %v2601_v63, %v784_v5  ;;  %v1258_v15 = vadd.f32 %v2036_v24, %v1031_v47  ;;  %v2040_v5 = vunpack.c.l.bf16 %v2262_v58  ;;  %v2247_v47 = vld [vmem:[%s2512_s20 + $0x30] sm:$0xff]   ;;  %v1913_v24 = vld [vmem:[%s2379_s27 + $0x104] sm:$0xf] }
  0xf5   : > { %v1227_v18 = vadd.f32 %v1973_v6, %v953_v33  ;;  %v1322_v13 = vmax.f32 %v1258_v15, 0.0  ;;  %v1981_v15 = vunpack.c.h.bf16 %v2247_v47 }
  0xf6   : > { %v863_v63 = vpop.f32.mrf.mxu2  ;;  %v2661_v36 = vpop.f32.mrf.mxu1 }
  0xf7   : > { %v1291_v54 = vmax.f32 %v1227_v18, 0.0  ;;  %v864_v27 = vadd.f32 %v2504_v62, %v863_v63 }
  0xf8   : > { %v786_v30 = vpop.f32.mrf.mxu0 }
  0xf9   : > { %v2105_v32 = vpack.c.bf16 %v1291_v54, %v1290_v25  ;;  %v1033_v17 = vadd.f32 %v2587_v37, %v864_v27  ;;  %v787_v38 = vadd.f32 %v2504_v62, %v786_v30  ;;  %v2670_v37 = vpop.f32.mrf.mxu3  ;;  %v1686_v25 = vld [vmem:[%s2379_s27 + $0x108] sm:$0xf0]  ;;  %v1980_v27 = vunpack.c.l.bf16 %v2247_v47 }
  0xfb   : > { %2276 = vst [vmem:[%s2542_s24 + $0x20] sm:$0xff] %v2105_v32   ;;  %825 = vmatmul.bf16.gmra.mxu0 %v1661_v26  ;;  %v1259_v39 = vadd.f32 %v2037_v28, %v1033_v17  ;;  %905 = vmatmul.bf16.gmra.mxu2 %v1789_v31  ;;  %v956_v44 = vadd.f32 %v2613_v21, %v787_v38 }
  0xfc   : > { %v1689_v31 = vor.u32 %v1913_v24, %v1686_v25 }
  0xfd   : > { %v1323_v43 = vmax.f32 %v1259_v39, 0.0  ;;  %v1228_v21 = vadd.f32 %v1976_v45, %v956_v44  ;;  %v1804_v44 = vld [vmem:[%s2379_s27 + $0x1f0] sm:$0xf]  ;;  %v1944_v45 = vld [vmem:[%s2379_s27 + $0x1f4] sm:$0xf0] }
  0xfe   : > { %v866_v46 = vpop.f32.mrf.mxu2  ;;  %v2673_v57 = vpop.f32.mrf.mxu1 }
  0xff   : > { %v2185_v51 = vpack.c.bf16 %v1323_v43, %v1322_v13  ;;  %v867_v34 = vadd.f32 %v2504_v62, %v866_v46  ;;  %v1292_v6 = vmax.f32 %v1228_v21, 0.0  ;;  %v1912_v13 = vld [vmem:[%s2379_s27 + $0xf4] sm:$0xf0] }
 0x100   : > { %v788_v35 = vpop.f32.mrf.mxu0 }
 0x101   : > { %v789_v55 = vadd.f32 %v2504_v62, %v788_v35  ;;  %2292 = vst [vmem:[%s2542_s24 + $0xa0] sm:$0xff] %v2185_v51   ;;  %1861 = vmatmul.msk.bf16.gmra.mxu1 %vm655_vm0, %v1681_v52  ;;  %v1036_v4 = vadd.f32 %v2604_v1, %v867_v34  ;;  %v2688_v14 = vpop.f32.mrf.mxu3  ;;  %v2044_v51 = vunpack.c.l.bf16 %v2263_v40  ;;  %v2045_v34 = vunpack.c.h.bf16 %v2263_v40 }
 0x103   : > { %v958_v59 = vadd.f32 %v2631_v48, %v789_v55  ;;  %v2041_v48 = vunpack.c.h.bf16 %v2262_v58  ;;  %v1260_v18 = vadd.f32 %v2040_v5, %v1036_v4  ;;  %v1805_v58 = vor.u32 %v1944_v45, %v1804_v44 }
 0x105   : > { %v1229_v61 = vadd.f32 %v1977_v56, %v958_v59  ;;  %v1324_v54 = vmax.f32 %v1260_v18, 0.0  ;;  %v1677_v56 = vor.u32 %v1912_v13, %v1676_v42 }
 0x106   : > { %v868_v8 = vpop.f32.mrf.mxu2  ;;  %v2686_v49 = vpop.f32.mrf.mxu1 }
 0x107   : > { %v1293_v2 = vmax.f32 %v1229_v61, 0.0  ;;  %v869_v33 = vadd.f32 %v2504_v62, %v868_v8  ;;  %v1984_v8 = vunpack.c.l.bf16 %v2248_v0 }
 0x108   : > { %v791_v11 = vpop.f32.mrf.mxu0 }
 0x109   : > { %v2110_v12 = vpack.c.bf16 %v1293_v2, %v1292_v6  ;;  %v1038_v1 = vadd.f32 %v2617_v23, %v869_v33  ;;  %v792_v19 = vadd.f32 %v2504_v62, %v791_v11  ;;  %v2704_v41 = vpop.f32.mrf.mxu3  ;;  %v1985_v11 = vunpack.c.h.bf16 %v2248_v0 }
 0x10b   : > { %2277 = vst [vmem:[%s2542_s24 + $0x28] sm:$0xff] %v2110_v12   ;;  %830 = vmatmul.bf16.gmra.mxu0 %v1669_v9  ;;  %v1261_v20 = vadd.f32 %v2041_v48, %v1038_v1  ;;  %910 = vmatmul.bf16.gmra.mxu2 %v1797_v16  ;;  %v961_v26 = vadd.f32 %v2643_v7, %v792_v19  ;;  %v2264_v1 = vld [vmem:[%s2512_s20 + $0xb8] sm:$0xff]  }
 0x10d   : > { %v1325_v63 = vmax.f32 %v1261_v20, 0.0  ;;  %v1230_v39 = vadd.f32 %v1980_v27, %v961_v26  ;;  %v2049_v27 = vunpack.c.h.bf16 %v2264_v1 }
 0x10e   : > { %v871_v28 = vpop.f32.mrf.mxu2  ;;  %v2698_v17 = vpop.f32.mrf.mxu1 }
 0x10f   : > { %v2190_v23 = vpack.c.bf16 %v1325_v63, %v1324_v54  ;;  %v872_v38 = vadd.f32 %v2504_v62, %v871_v28  ;;  %v1294_v35 = vmax.f32 %v1230_v39, 0.0 }
 0x110   : > { %v793_v30 = vpop.f32.mrf.mxu0 }
 0x111   : > { %v794_v32 = vadd.f32 %v2504_v62, %v793_v30  ;;  %2293 = vst [vmem:[%s2542_s24 + $0xa8] sm:$0xff] %v2190_v23   ;;  %1862 = vmatmul.msk.bf16.gmra.mxu1 %vm655_vm0, %v1689_v31  ;;  %v1041_v46 = vadd.f32 %v2636_v53, %v872_v38  ;;  %v1052_v4 = vpop.f32.mrf.mxu3 }
 0x113   : > { %v963_v7 = vadd.f32 %v2661_v36, %v794_v32  ;;  %v1262_v50 = vadd.f32 %v2044_v51, %v1041_v46 }
 0x115   : > { %v1231_v43 = vadd.f32 %v1981_v15, %v963_v7  ;;  %v1326_v5 = vmax.f32 %v1262_v50, 0.0  ;;  %v2249_v15 = vld [vmem:[%s2512_s20 + $0x40] sm:$0xff]  }
 0x116   : > { %v873_v55 = vpop.f32.mrf.mxu2  ;;  %v972_v60 = vpop.f32.mrf.mxu1  ;;  %v1988_v7 = vunpack.c.l.bf16 %v2249_v15  ;;  %v1989_v45 = vunpack.c.h.bf16 %v2249_v15 }
 0x117   : > { %v1295_v52 = vmax.f32 %v1231_v43, 0.0  ;;  %v874_v36 = vadd.f32 %v2504_v62, %v873_v55 }
 0x118   : > { %v796_v21 = vpop.f32.mrf.mxu0 }
 0x119   : > { %v2115_v59 = vpack.c.bf16 %v1295_v52, %v1294_v35  ;;  %v1043_v61 = vadd.f32 %v2656_v22, %v874_v36  ;;  %v797_v3 = vadd.f32 %v2504_v62, %v796_v21  ;;  %v2724_v63 = vpop.f32.mrf.mxu3  ;;  %v2265_v52 = vld [vmem:[%s2512_s20 + $0xc0] sm:$0xff]  }
 0x11a   : > { %v2053_v50 = vunpack.c.h.bf16 %v2265_v52 }
 0x11b   : > { %2278 = vst [vmem:[%s2542_s24 + $0x30] sm:$0xff] %v2115_v59   ;;  %835 = vmatmul.bf16.gmra.mxu0 %v1677_v56  ;;  %v1263_v53 = vadd.f32 %v2045_v34, %v1043_v61  ;;  %915 = vmatmul.bf16.gmra.mxu2 %v1805_v58  ;;  %v966_v2 = vadd.f32 %v2673_v57, %v797_v3  ;;  %v2048_v57 = vunpack.c.l.bf16 %v2264_v1 }
 0x11d   : > { %v1327_v6 = vmax.f32 %v1263_v53, 0.0  ;;  %v1232_v18 = vadd.f32 %v1984_v8, %v966_v2  ;;  %v2250_v2 = vld [vmem:[%s2512_s20 + $0x48] sm:$0xff]  }
 0x11e   : > { %v876_v9 = vpop.f32.mrf.mxu2  ;;  %v975_v16 = vpop.f32.mrf.mxu1  ;;  %v1993_v1 = vunpack.c.h.bf16 %v2250_v2 }
 0x11f   : > { %v2195_v33 = vpack.c.bf16 %v1327_v6, %v1326_v5  ;;  %v877_v12 = vadd.f32 %v2504_v62, %v876_v9  ;;  %v1296_v24 = vmax.f32 %v1232_v18, 0.0 }
 0x120   : > { %v798_v48 = vpop.f32.mrf.mxu0 }
 0x121   : > { %v799_v22 = vadd.f32 %v2504_v62, %v798_v48  ;;  %2294 = vst [vmem:[%s2542_s24 + $0xb0] sm:$0xff] %v2195_v33   ;;  %v1046_v47 = vadd.f32 %v2670_v37, %v877_v12  ;;  %v1992_v48 = vunpack.c.l.bf16 %v2250_v2 }
 0x123   : > { %v968_v19 = vadd.f32 %v2686_v49, %v799_v22  ;;  %v1264_v31 = vadd.f32 %v2048_v57, %v1046_v47  ;;  %v2266_v47 = vld [vmem:[%s2512_s20 + $0xc8] sm:$0xff]  }
 0x125   : > { %v1233_v20 = vadd.f32 %v1985_v11, %v968_v19  ;;  %v1328_v38 = vmax.f32 %v1264_v31, 0.0  ;;  %v2057_v31 = vunpack.c.h.bf16 %v2266_v47 }
 0x126   : > { %v878_v54 = vpop.f32.mrf.mxu2  ;;  %v977_v30 = vpop.f32.mrf.mxu1 }
 0x127   : > { %v1297_v25 = vmax.f32 %v1233_v20, 0.0  ;;  %v879_v26 = vadd.f32 %v2504_v62, %v878_v54  ;;  %v2056_v54 = vunpack.c.l.bf16 %v2266_v47 }
 0x128   : > { %v801_v28 = vpop.f32.mrf.mxu0 }
 0x129   : > { %v2120_v23 = vpack.c.bf16 %v1297_v25, %v1296_v24  ;;  %v1048_v32 = vadd.f32 %v2688_v14, %v879_v26  ;;  %v802_v37 = vadd.f32 %v2504_v62, %v801_v28  ;;  %v1057_v14 = vpop.f32.mrf.mxu3 }
 0x12b   : > { %2279 = vst [vmem:[%s2542_s24 + $0x38] sm:$0xff] %v2120_v23   ;;  %v1265_v49 = vadd.f32 %v2049_v27, %v1048_v32  ;;  %v971_v40 = vadd.f32 %v2698_v17, %v802_v37  ;;  %v2052_v17 = vunpack.c.l.bf16 %v2265_v52 }
 0x12d   : > { %v1329_v39 = vmax.f32 %v1265_v49, 0.0  ;;  %v1234_v35 = vadd.f32 %v1988_v7, %v971_v40  ;;  %v2251_v40 = vld [vmem:[%s2512_s20 + $0x50] sm:$0xff]  }
 0x12e   : > { %v881_v42 = vpop.f32.mrf.mxu2  ;;  %v980_v46 = vpop.f32.mrf.mxu1  ;;  %v1997_v52 = vunpack.c.h.bf16 %v2251_v40 }
 0x12f   : > { %v2200_v13 = vpack.c.bf16 %v1329_v39, %v1328_v38  ;;  %v882_v51 = vadd.f32 %v2504_v62, %v881_v42  ;;  %v1298_v34 = vmax.f32 %v1234_v35, 0.0 }
 0x130   : > { %v803_v43 = vpop.f32.mrf.mxu0 }
 0x131   : > { %v804_v44 = vadd.f32 %v2504_v62, %v803_v43  ;;  %2295 = vst [vmem:[%s2542_s24 + $0xb8] sm:$0xff] %v2200_v13   ;;  %v1051_v36 = vadd.f32 %v2704_v41, %v882_v51  ;;  %v1060_v6 = vpop.f32.mrf.mxu3  ;;  %v1996_v13 = vunpack.c.l.bf16 %v2251_v40 }
 0x133   : > { %v973_v55 = vadd.f32 %v972_v60, %v804_v44  ;;  %v1266_v0 = vadd.f32 %v2052_v17, %v1051_v36  ;;  %v2267_v36 = vld [vmem:[%s2512_s20 + $0xd0] sm:$0xff]  }
 0x135   : > { %v1235_v56 = vadd.f32 %v1989_v45, %v973_v55  ;;  %v1330_v8 = vmax.f32 %v1266_v0, 0.0 }
 0x136   : > { %v883_v58 = vpop.f32.mrf.mxu2  ;;  %v982_v53 = vpop.f32.mrf.mxu1 }
 0x137   : > { %v1299_v21 = vmax.f32 %v1235_v56, 0.0  ;;  %v884_v59 = vadd.f32 %v2504_v62, %v883_v58 }
 0x138   : > { %v806_v61 = vpop.f32.mrf.mxu0 }
 0x139   : > { %v2125_v3 = vpack.c.bf16 %v1299_v21, %v1298_v34  ;;  %v1053_v5 = vadd.f32 %v1052_v4, %v884_v59  ;;  %v807_v60 = vadd.f32 %v2504_v62, %v806_v61  ;;  %v1062_v25 = vpop.f32.mrf.mxu3 }
 0x13b   : > { %2280 = vst [vmem:[%s2542_s24 + $0x40] sm:$0xff] %v2125_v3   ;;  %v1267_v41 = vadd.f32 %v2053_v50, %v1053_v5  ;;  %v976_v33 = vadd.f32 %v975_v16, %v807_v60  ;;  %v2061_v3 = vunpack.c.h.bf16 %v2267_v36 }
 0x13d   : > { %v1331_v9 = vmax.f32 %v1267_v41, 0.0  ;;  %v1236_v20 = vadd.f32 %v1992_v48, %v976_v33 }
 0x13e   : > { %v886_v22 = vpop.f32.mrf.mxu2  ;;  %v985_v19 = vpop.f32.mrf.mxu1 }
 0x13f   : > { %v2205_v11 = vpack.c.bf16 %v1331_v9, %v1330_v8  ;;  %v887_v4 = vadd.f32 %v2504_v62, %v886_v22  ;;  %v1300_v26 = vmax.f32 %v1236_v20, 0.0  ;;  %v2252_v9 = vld [vmem:[%s2512_s20 + $0x58] sm:$0xff]  }
 0x140   : > { %v808_v12 = vpop.f32.mrf.mxu0  ;;  %v2001_v20 = vunpack.c.h.bf16 %v2252_v9 }
 0x141   : > { %v809_v18 = vadd.f32 %v2504_v62, %v808_v12  ;;  %2296 = vst [vmem:[%s2542_s24 + $0xc0] sm:$0xff] %v2205_v11   ;;  %v1056_v16 = vadd.f32 %v2724_v63, %v887_v4  ;;  %v1065_v44 = vpop.f32.mrf.mxu3  ;;  %v2000_v11 = vunpack.c.l.bf16 %v2252_v9 }
 0x143   : > { %v978_v57 = vadd.f32 %v977_v30, %v809_v18  ;;  %v1268_v15 = vadd.f32 %v2056_v54, %v1056_v16 }
 0x145   : > { %v1237_v24 = vadd.f32 %v1993_v1, %v978_v57  ;;  %v1332_v63 = vmax.f32 %v1268_v15, 0.0 }
 0x146   : > { %v888_v28 = vpop.f32.mrf.mxu2  ;;  %v987_v49 = vpop.f32.mrf.mxu1 }
 0x147   : > { %v1301_v27 = vmax.f32 %v1237_v24, 0.0  ;;  %v889_v23 = vadd.f32 %v2504_v62, %v888_v28 }
 0x148   : > { %v811_v32 = vpop.f32.mrf.mxu0 }
 0x149   : > { %v2130_v37 = vpack.c.bf16 %v1301_v27, %v1300_v26  ;;  %v1058_v38 = vadd.f32 %v1057_v14, %v889_v23  ;;  %v812_v30 = vadd.f32 %v2504_v62, %v811_v32  ;;  %v1067_v41 = vpop.f32.mrf.mxu3 }
 0x14b   : > { %2281 = vst [vmem:[%s2542_s24 + $0x48] sm:$0xff] %v2130_v37   ;;  %v1269_v39 = vadd.f32 %v2057_v31, %v1058_v38  ;;  %v981_v42 = vadd.f32 %v980_v46, %v812_v30  ;;  %v2060_v46 = vunpack.c.l.bf16 %v2267_v36 }
 0x14d   : > { %v1333_v7 = vmax.f32 %v1269_v39, 0.0  ;;  %v1238_v56 = vadd.f32 %v1996_v13, %v981_v42 }
 0x14e   : > { %v891_v43 = vpop.f32.mrf.mxu2  ;;  %v990_v55 = vpop.f32.mrf.mxu1 }
 0x14f   : > { %v2210_v45 = vpack.c.bf16 %v1333_v7, %v1332_v63  ;;  %v892_v14 = vadd.f32 %v2504_v62, %v891_v43  ;;  %v1302_v58 = vmax.f32 %v1238_v56, 0.0  ;;  %v2253_v7 = vld [vmem:[%s2512_s20 + $0x60] sm:$0xff]  }
 0x150   : > { %v813_v51 = vpop.f32.mrf.mxu0  ;;  %v2005_v36 = vunpack.c.h.bf16 %v2253_v7 }
 0x151   : > { %v814_v35 = vadd.f32 %v2504_v62, %v813_v51  ;;  %2297 = vst [vmem:[%s2542_s24 + $0xc8] sm:$0xff] %v2210_v45   ;;  %v1061_v21 = vadd.f32 %v1060_v6, %v892_v14  ;;  %v1070_v54 = vpop.f32.mrf.mxu3  ;;  %v2004_v45 = vunpack.c.l.bf16 %v2253_v7  ;;  %v2769_v14 = vld [vmem:[%s2819_s2] ss:$0 sm:$0xff] }
 0x153   : > { %v983_v17 = vadd.f32 %v982_v53, %v814_v35  ;;  %v1270_v2 = vadd.f32 %v2060_v46, %v1061_v21  ;;  %v2269_v21 = vld [vmem:[%s2512_s20 + $0xe0] sm:$0xff]  }
 0x155   : > { %v1239_v34 = vadd.f32 %v1997_v52, %v983_v17  ;;  %v1334_v33 = vmax.f32 %v1270_v2, 0.0 }
 0x156   : > { %v893_v50 = vpop.f32.mrf.mxu2  ;;  %v992_v60 = vpop.f32.mrf.mxu1 }
 0x157   : > { %v1303_v59 = vmax.f32 %v1239_v34, 0.0  ;;  %v894_v61 = vadd.f32 %v2504_v62, %v893_v50 }
 0x158   : > { %v816_v0 = vpop.f32.mrf.mxu0 }
 0x159   : > { %v2135_v5 = vpack.c.bf16 %v1303_v59, %v1302_v58  ;;  %v1063_v8 = vadd.f32 %v1062_v25, %v894_v61  ;;  %v817_v53 = vadd.f32 %v2504_v62, %v816_v0  ;;  %v2268_v25 = vld [vmem:[%s2512_s20 + $0xd8] sm:$0xff]   ;;  %v1072_v42 = vpop.f32.mrf.mxu3  ;;  %v2068_v59 = vunpack.c.l.bf16 %v2269_v21 }
 0x15a   : > { %v2065_v37 = vunpack.c.h.bf16 %v2268_v25 }
 0x15b   : > { %2282 = vst [vmem:[%s2542_s24 + $0x50] sm:$0xff] %v2135_v5   ;;  %v1271_v6 = vadd.f32 %v2061_v3, %v1063_v8  ;;  %v986_v22 = vadd.f32 %v985_v19, %v817_v53  ;;  %v2064_v19 = vunpack.c.l.bf16 %v2268_v25 }
 0x15d   : > { %v1335_v48 = vmax.f32 %v1271_v6, 0.0  ;;  %v1240_v24 = vadd.f32 %v2000_v11, %v986_v22 }
 0x15e   : > { %v896_v12 = vpop.f32.mrf.mxu2  ;;  %v995_v47 = vpop.f32.mrf.mxu1 }
 0x15f   : > { %v2215_v18 = vpack.c.bf16 %v1335_v48, %v1334_v33  ;;  %v897_v57 = vadd.f32 %v2504_v62, %v896_v12  ;;  %v1304_v28 = vmax.f32 %v1240_v24, 0.0  ;;  %v2254_v48 = vld [vmem:[%s2512_s20 + $0x68] sm:$0xff]  }
 0x160   : > { %v818_v1 = vpop.f32.mrf.mxu0  ;;  %v2009_v24 = vunpack.c.h.bf16 %v2254_v48 }
 0x161   : > { %v819_v4 = vadd.f32 %v2504_v62, %v818_v1  ;;  %2298 = vst [vmem:[%s2542_s24 + $0xd0] sm:$0xff] %v2215_v18   ;;  %v1066_v27 = vadd.f32 %v1065_v44, %v897_v57  ;;  %v1075_v0 = vpop.f32.mrf.mxu3  ;;  %v2008_v18 = vunpack.c.l.bf16 %v2254_v48 }
 0x163   : > { %v988_v16 = vadd.f32 %v987_v49, %v819_v4  ;;  %v1272_v39 = vadd.f32 %v2064_v19, %v1066_v27  ;;  %v2270_v27 = vld [vmem:[%s2512_s20 + $0xe8] sm:$0xff]  }
 0x165   : > { %v1241_v26 = vadd.f32 %v2001_v20, %v988_v16  ;;  %v1336_v13 = vmax.f32 %v1272_v39, 0.0 }
 0x166   : > { %v898_v31 = vpop.f32.mrf.mxu2  ;;  %v997_v30 = vpop.f32.mrf.mxu1 }
 0x167   : > { %v1305_v23 = vmax.f32 %v1241_v26, 0.0  ;;  %v899_v32 = vadd.f32 %v2504_v62, %v898_v31 }
 0x168   : > { %v821_v15 = vpop.f32.mrf.mxu0 }
 0x169   : > { %v2140_v38 = vpack.c.bf16 %v1305_v23, %v1304_v28  ;;  %v1068_v40 = vadd.f32 %v1067_v41, %v899_v32  ;;  %v822_v49 = vadd.f32 %v2504_v62, %v821_v15  ;;  %v2069_v41 = vunpack.c.h.bf16 %v2269_v21  ;;  %v1077_v16 = vpop.f32.mrf.mxu3 }
 0x16b   : > { %2283 = vst [vmem:[%s2542_s24 + $0x58] sm:$0xff] %v2140_v38   ;;  %v1273_v63 = vadd.f32 %v2065_v37, %v1068_v40  ;;  %v991_v44 = vadd.f32 %v990_v55, %v822_v49  ;;  %v2073_v38 = vunpack.c.h.bf16 %v2270_v27 }
 0x16d   : > { %v1337_v43 = vmax.f32 %v1273_v63, 0.0  ;;  %v1242_v34 = vadd.f32 %v2004_v45, %v991_v44 }
 0x16e   : > { %v901_v51 = vpop.f32.mrf.mxu2  ;;  %v1000_v62 = vpop.f32.mrf.mxu1 }
 0x16f   : > { %v2220_v35 = vpack.c.bf16 %v1337_v43, %v1336_v13  ;;  %v902_v17 = vadd.f32 %v2769_v14, %v901_v51  ;;  %v1306_v50 = vmax.f32 %v1242_v34, 0.0  ;;  %v2255_v43 = vld [vmem:[%s2512_s20 + $0x70] sm:$0xff]  }
 0x170   : > { %v823_v52 = vpop.f32.mrf.mxu0  ;;  %v2013_v34 = vunpack.c.h.bf16 %v2255_v43 }
 0x171   : > { %v824_v56 = vadd.f32 %v2769_v14, %v823_v52  ;;  %2299 = vst [vmem:[%s2542_s24 + $0xd8] sm:$0xff] %v2220_v35   ;;  %v1071_v58 = vadd.f32 %v1070_v54, %v902_v17  ;;  %v2012_v35 = vunpack.c.l.bf16 %v2255_v43 }
 0x173   : > { %v993_v55 = vadd.f32 %v992_v60, %v824_v56  ;;  %v1274_v6 = vadd.f32 %v2068_v59, %v1071_v58  ;;  %v2271_v58 = vld [vmem:[%s2512_s20 + $0xf0] sm:$0xff]  }
 0x175   : > { %v1243_v46 = vadd.f32 %v2005_v36, %v993_v55  ;;  %v1338_v22 = vmax.f32 %v1274_v6, 0.0 }
 0x176   : > { %v903_v3 = vpop.f32.mrf.mxu2  ;;  %v1002_v53 = vpop.f32.mrf.mxu1 }
 0x177   : > { %v1307_v61 = vmax.f32 %v1243_v46, 0.0  ;;  %v904_v5 = vadd.f32 %v2769_v14, %v903_v3 }
 0x178   : > { %v826_v2 = vpop.f32.mrf.mxu0 }
 0x179   : > { %v2145_v8 = vpack.c.bf16 %v1307_v61, %v1306_v50  ;;  %v1073_v9 = vadd.f32 %v1072_v42, %v904_v5  ;;  %v827_v60 = vadd.f32 %v2769_v14, %v826_v2  ;;  %v1080_v42 = vpop.f32.mrf.mxu3  ;;  %v2257_v50 = vld [vmem:[%s2512_s20 + $0x80] sm:$0xff]   ;;  %v842_v61 = vadd.f32 %v2769_v14, %v2520_v10 }
 0x17a   : > { %v2076_v5 = vunpack.c.l.bf16 %v2271_v58  ;;  %v2020_v2 = vunpack.c.l.bf16 %v2257_v50 }
 0x17b   : > { %2284 = vst [vmem:[%s2542_s24 + $0x60] sm:$0xff] %v2145_v8   ;;  %v1275_v33 = vadd.f32 %v2069_v41, %v1073_v9  ;;  %v996_v12 = vadd.f32 %v995_v47, %v827_v60  ;;  %v2072_v47 = vunpack.c.l.bf16 %v2270_v27  ;;  %v844_v60 = vadd.f32 %v2769_v14, %v2534_v29 }
 0x17d   : > { %v1339_v11 = vmax.f32 %v1275_v33, 0.0  ;;  %v1244_v26 = vadd.f32 %v2008_v18, %v996_v12  ;;  %v2077_v33 = vunpack.c.h.bf16 %v2271_v58 }
 0x17e   : > { %v906_v1 = vpop.f32.mrf.mxu2  ;;  %v2780_v25 = vpop.f32.mrf.mxu1 }
 0x17f   : > { %v2225_v4 = vpack.c.bf16 %v1339_v11, %v1338_v22  ;;  %v907_v54 = vadd.f32 %v2769_v14, %v906_v1  ;;  %v1308_v31 = vmax.f32 %v1244_v26, 0.0  ;;  %v2021_v22 = vunpack.c.h.bf16 %v2257_v50 }
 0x180   : > { %v828_v20 = vpop.f32.mrf.mxu0 }
 0x181   : > { %v829_v57 = vadd.f32 %v2769_v14, %v828_v20  ;;  %2300 = vst [vmem:[%s2542_s24 + $0xe0] sm:$0xff] %v2225_v4   ;;  %v1076_v23 = vadd.f32 %v1075_v0, %v907_v54 }
 0x183   : > { %v998_v19 = vadd.f32 %v997_v30, %v829_v57  ;;  %v1276_v63 = vadd.f32 %v2072_v47, %v1076_v23 }
 0x185   : > { %v1245_v28 = vadd.f32 %v2009_v24, %v998_v19  ;;  %v1340_v44 = vmax.f32 %v1276_v63, 0.0  ;;  %v2256_v24 = vld [vmem:[%s2512_s20 + $0x78] sm:$0xff]  }
 0x186   : > { %v908_v37 = vpop.f32.mrf.mxu2  ;;  %v2786_v49 = vpop.f32.mrf.mxu1  ;;  %v2272_v63 = vld [vmem:[%s2512_s20 + $0xf8] sm:$0xff]  }
 0x187   : > { %v1309_v32 = vmax.f32 %v1245_v28, 0.0  ;;  %v909_v15 = vadd.f32 %v2769_v14, %v908_v37  ;;  %v2016_v28 = vunpack.c.l.bf16 %v2256_v24 }
 0x188   : > { %v831_v39 = vpop.f32.mrf.mxu0 }
 0x189   : > { %v2150_v40 = vpack.c.bf16 %v1309_v32, %v1308_v31  ;;  %v1078_v7 = vadd.f32 %v1077_v16, %v909_v15  ;;  %v832_v30 = vadd.f32 %v2769_v14, %v831_v39 }
 0x18b   : > { %2285 = vst [vmem:[%s2542_s24 + $0x68] sm:$0xff] %v2150_v40   ;;  %v1277_v13 = vadd.f32 %v2073_v38, %v1078_v7  ;;  %v1001_v51 = vadd.f32 %v1000_v62, %v832_v30  ;;  %v1082_v62 = vpop.f32.mrf.mxu3  ;;  %v2017_v38 = vunpack.c.h.bf16 %v2256_v24 }
 0x18d   : > { %v1341_v45 = vmax.f32 %v1277_v13, 0.0  ;;  %v1246_v46 = vadd.f32 %v2012_v35, %v1001_v51  ;;  %v2081_v51 = vunpack.c.h.bf16 %v2272_v63 }
 0x18e   : > { %v911_v52 = vpop.f32.mrf.mxu2  ;;  %v1010_v21 = vpop.f32.mrf.mxu1 }
 0x18f   : > { %v2230_v56 = vpack.c.bf16 %v1341_v45, %v1340_v44  ;;  %v912_v55 = vadd.f32 %v2769_v14, %v911_v52  ;;  %v1011_v41 = vadd.f32 %v1010_v21, %v842_v61  ;;  %v1310_v8 = vmax.f32 %v1246_v46, 0.0 }
 0x190   : > { %v833_v36 = vpop.f32.mrf.mxu0 }
 0x191   : > { %v834_v17 = vadd.f32 %v2769_v14, %v833_v36  ;;  %2301 = vst [vmem:[%s2542_s24 + $0xe8] sm:$0xff] %v2230_v56   ;;  %v1081_v0 = vadd.f32 %v1080_v42, %v912_v55  ;;  %v1250_v18 = vadd.f32 %v2020_v2, %v1011_v41  ;;  %v2080_v42 = vunpack.c.l.bf16 %v2272_v63 }
 0x193   : > { %v1003_v59 = vadd.f32 %v1002_v53, %v834_v17  ;;  %v1278_v12 = vadd.f32 %v2076_v5, %v1081_v0  ;;  %v1314_v29 = vmax.f32 %v1250_v18, 0.0  ;;  %v1085_v23 = vpop.f32.mrf.mxu3 }
 0x195   : > { %v1247_v3 = vadd.f32 %v2013_v34, %v1003_v59  ;;  %v1342_v54 = vmax.f32 %v1278_v12, 0.0 }
 0x196   : > { %v913_v9 = vpop.f32.mrf.mxu2  ;;  %v1012_v11 = vpop.f32.mrf.mxu1 }
 0x197   : > { %v1311_v6 = vmax.f32 %v1247_v3, 0.0  ;;  %v914_v53 = vadd.f32 %v2769_v14, %v913_v9  ;;  %v1013_v4 = vadd.f32 %v1012_v11, %v844_v60 }
 0x198   : > { %v836_v48 = vpop.f32.mrf.mxu0 }
 0x199   : > { %v2155_v10 = vpack.c.bf16 %v1311_v6, %v1310_v8  ;;  %v1083_v1 = vadd.f32 %v1082_v62, %v914_v53  ;;  %v837_v20 = vadd.f32 %v2769_v14, %v836_v48  ;;  %v1251_v16 = vadd.f32 %v2021_v22, %v1013_v4 }
 0x19b   : > { %2286 = vst [vmem:[%s2542_s24 + $0x70] sm:$0xff] %v2155_v10   ;;  %v1279_v57 = vadd.f32 %v2077_v33, %v1083_v1  ;;  %v1315_v27 = vmax.f32 %v1251_v16, 0.0  ;;  %v1006_v19 = vadd.f32 %v2780_v25, %v837_v20  ;;  %v1087_v52 = vpop.f32.mrf.mxu3 }
 0x19d   : > { %v1343_v26 = vmax.f32 %v1279_v57, 0.0  ;;  %v2165_v32 = vpack.c.bf16 %v1315_v27, %v1314_v29  ;;  %v1248_v40 = vadd.f32 %v2016_v28, %v1006_v19 }
 0x19e   : > { %v916_v47 = vpop.f32.mrf.mxu2 }
 0x19f   : > { %v2235_v31 = vpack.c.bf16 %v1343_v26, %v1342_v54  ;;  %v917_v39 = vadd.f32 %v2769_v14, %v916_v47  ;;  %2288 = vst [vmem:[%s2542_s24 + $0x80] sm:$0xff] %v2165_v32   ;;  %v1312_v13 = vmax.f32 %v1248_v40, 0.0 }
 0x1a0   : > { %v838_v37 = vpop.f32.mrf.mxu0 }
 0x1a1   : > { %v839_v15 = vadd.f32 %v2769_v14, %v838_v37  ;;  %2302 = vst [vmem:[%s2542_s24 + $0xf0] sm:$0xff] %v2235_v31   ;;  %v1086_v25 = vadd.f32 %v1085_v23, %v917_v39 }
 0x1a3   : > { %v1008_v7 = vadd.f32 %v2786_v49, %v839_v15  ;;  %v1280_v56 = vadd.f32 %v2080_v42, %v1086_v25 }
 0x1a5   : > { %v1249_v30 = vadd.f32 %v2017_v38, %v1008_v7  ;;  %v1344_v34 = vmax.f32 %v1280_v56, 0.0 }
 0x1a6   : > { %v918_v44 = vpop.f32.mrf.mxu2 }
 0x1a7   : > { %v1313_v43 = vmax.f32 %v1249_v30, 0.0  ;;  %v919_v45 = vadd.f32 %v2769_v14, %v918_v44 }
 0x1a9   : > { %v2160_v35 = vpack.c.bf16 %v1313_v43, %v1312_v13  ;;  %v1088_v36 = vadd.f32 %v1087_v52, %v919_v45 }
 0x1ab   : > { %2287 = vst [vmem:[%s2542_s24 + $0x78] sm:$0xff] %v2160_v35   ;;  %v1281_v17 = vadd.f32 %v2081_v51, %v1088_v36 }
 0x1ad   : > { %v1345_v21 = vmax.f32 %v1281_v17, 0.0 }
 0x1af   : > { %v2240_v55 = vpack.c.bf16 %v1345_v21, %v1344_v34 }
 0x1b1   : > { %2303 = vst [vmem:[%s2542_s24 + $0xf8] sm:$0xff] %v2240_v55  }
 0x1b2 PF: > { %s14_s15 = sadd.s32 1, %s2329_s15  }
 0x1b3   : > { %p11_p4 = scmp.ge.s32.totalorder %s14_s15, 6  }
 0x1b5   :  { %13 = sbr.rel (!%p11_p4) target bundleno = 1 (0x1), region = 69 }

// kernel: _lambda_.12
= control target key start
LH: loop header
LB: loop body
LE: loop exit
PB: predicated region body
PF: predicated region fallthrough
CT: control target
= control target key end

     0   :  { %s1184_s12 = smov 0   ;;  %s1375_s0 = inlined_call_operand.vmem [shape: bf16[512,144], index: 0, kind: input, shape index: {}]   ;;  %s1376_s1 = inlined_call_operand.vmem [shape: bf16[144,128], index: 1, kind: input, shape index: {}]   ;;  %s1377_s2 = inlined_call_operand.vmem [shape: f32[1,128], index: 2, kind: input, shape index: {}]   ;;  %s1378_s3 = inlined_call_operand.vmem [shape: bf16[512,128], index: 3, kind: output, shape index: {}]  }
   0x1 LB: > { %s809_s13 = sadd.s32 4294967295, %s1162_s12   ;;  %p813_p0 = scmp.ge.s32.totalorder %s1162_s12, 1  ;;  %s1162_s12 = sphi %s1184_s12, %s13_s12  }
   0x2   : > { %p139_p1 = scmp.lt.s32.totalorder %s1162_s12, 3 }
   0x4   : > { %p140_p2 = pnand %p813_p0, %p139_p1 }
   0x5   : > { %s814_s18 = sshll.u32 (!%p140_p2), %s809_s13, 5 }
   0x6   : > { %143 = sbr.rel (%p140_p2) target bundleno = 304 (0x130), region = 32  ;;  %p165_p3 = scmp.lt.s32.totalorder (!%p140_p2), %s814_s18, 63 }
   0xb   : > { %v1041_v0 = vld [vmem:[%s1376_s1 + $0x38] sm:$0xff]  ;;  %v1042_v1 = vld [vmem:[%s1376_s1 + $0x40] sm:$0xff]  ;;  %v1040_v2 = vld [vmem:[%s1376_s1 + $0x30] sm:$0xff]  ;;  %s1380_s18 = smov (!%p165_p3, %s814_s18), 63  ;;  %vm430_vm0 = vcmask 130048  }
   0xc   : > { %479 = vmatpush.bf16.msra.mxu0 %v1041_v0  ;;  %1138 = vmatpush.bf16.msra.mxu2 %v1041_v0  ;;  %s1001_s21 = sshll.u32 %s1380_s18, 3  ;;  %v1039_v3 = vld [vmem:[%s1376_s1 + $0x28] sm:$0xff]  ;;  %v1038_v7 = vld [vmem:[%s1376_s1 + $0x20] sm:$0xff]  ;;  %v1037_v11 = vld [vmem:[%s1376_s1 + $0x18] sm:$0xff]  ;;  %s818_s13 = sshll.u32 %s1380_s18, 2 }
   0xd   : > { %575 = vmatpush.bf16.msra.mxu1 %v1042_v1  ;;  %1146 = vmatpush.bf16.msra.mxu3 %v1042_v1  ;;  %s1207_s24 = scalar_lea.vmem %s1375_s0, %s1001_s21  ;;  %v1036_v12 = vld [vmem:[%s1376_s1 + $0x10] sm:$0xff]  ;;  %v1035_v16 = vld [vmem:[%s1376_s1 + $0x8] sm:$0xff]  ;;  %v1034_v19 = vld [vmem:[%s1376_s1] sm:$0xff]  ;;  %s1320_s16 = scalar_lea.vmem %s1378_s3, %s818_s13 }
   0xe   : > { %v1002_v4 = vld [vmem:[%s1207_s24 + $0x4] sm:$0xf]  ;;  %v823_v5 = vld [vmem:[%s1207_s24 + $0x8] sm:$0xf0]  ;;  %v1020_v8 = vld [vmem:[%s1207_s24 + $0x94] sm:$0xf] }
   0xf   : > { %v826_v6 = vor.u32 %v1002_v4, %v823_v5  ;;  %v895_v9 = vld [vmem:[%s1207_s24 + $0x98] sm:$0xf0]  ;;  %v1004_v13 = vld [vmem:[%s1207_s24 + $0x14] sm:$0xf]  ;;  %v1022_v17 = vld [vmem:[%s1207_s24 + $0xa4] sm:$0xf] }
  0x10   : > { %480 = vmatpush.bf16.msra.mxu0 %v1040_v2  ;;  %1139 = vmatpush.bf16.msra.mxu2 %v1040_v2  ;;  %v898_v10 = vor.u32 %v1020_v8, %v895_v9  ;;  %v831_v14 = vld [vmem:[%s1207_s24 + $0x18] sm:$0xf0]  ;;  %v903_v18 = vld [vmem:[%s1207_s24 + $0xa8] sm:$0xf0]  ;;  %v821_v20 = vld [vmem:[%s1207_s24] sm:$0xf] }
  0x11   : > { %983 = vmatmul.msk.bf16.vlgmr.msra.gmra.mxu1 %vm430_vm0, %v826_v6  ;;  %v834_v15 = vor.u32 %v1004_v13, %v831_v14  ;;  %v1003_v21 = vld [vmem:[%s1207_s24 + $0x4] sm:$0xf0]  ;;  %v906_v22 = vor.u32 %v1022_v17, %v903_v18  ;;  %v885_v23 = vld [vmem:[%s1207_s24 + $0x80] sm:$0xf]  ;;  %v1006_v27 = vld [vmem:[%s1207_s24 + $0x24] sm:$0xf] }
  0x12   : > { %992 = vmatmul.msk.bf16.vlgmr.msra.gmra.mxu3 %vm430_vm0, %v898_v10  ;;  %v1019_v24 = vld [vmem:[%s1207_s24 + $0x84] sm:$0xf0]  ;;  %v822_v25 = vor.u32 %v1003_v21, %v821_v20  ;;  %v839_v28 = vld [vmem:[%s1207_s24 + $0x28] sm:$0xf0]  ;;  %v1024_v30 = vld [vmem:[%s1207_s24 + $0xb4] sm:$0xf] }
  0x13   : > { %v886_v26 = vor.u32 %v1019_v24, %v885_v23  ;;  %v842_v29 = vor.u32 %v1006_v27, %v839_v28  ;;  %v911_v31 = vld [vmem:[%s1207_s24 + $0xb8] sm:$0xf0]  ;;  %v829_v32 = vld [vmem:[%s1207_s24 + $0x10] sm:$0xf]  ;;  %v1005_v33 = vld [vmem:[%s1207_s24 + $0x14] sm:$0xf0] }
  0x14   : > { %481 = vmatpush.bf16.msra.mxu0 %v1039_v3  ;;  %1140 = vmatpush.bf16.msra.mxu2 %v1039_v3  ;;  %v914_v34 = vor.u32 %v1024_v30, %v911_v31  ;;  %v893_v35 = vld [vmem:[%s1207_s24 + $0x90] sm:$0xf]  ;;  %v1021_v36 = vld [vmem:[%s1207_s24 + $0x94] sm:$0xf0]  ;;  %v830_v37 = vor.u32 %v1005_v33, %v829_v32  ;;  %v1008_v39 = vld [vmem:[%s1207_s24 + $0x34] sm:$0xf] }
  0x15   : > { %v894_v38 = vor.u32 %v1021_v36, %v893_v35  ;;  %v847_v40 = vld [vmem:[%s1207_s24 + $0x38] sm:$0xf0]  ;;  %v1026_v42 = vld [vmem:[%s1207_s24 + $0xc4] sm:$0xf]  ;;  %v919_v43 = vld [vmem:[%s1207_s24 + $0xc8] sm:$0xf0] }
  0x16   : > { %v850_v41 = vor.u32 %v1008_v39, %v847_v40  ;;  %v837_v44 = vld [vmem:[%s1207_s24 + $0x20] sm:$0xf]  ;;  %v1007_v45 = vld [vmem:[%s1207_s24 + $0x24] sm:$0xf0]  ;;  %v922_v46 = vor.u32 %v1026_v42, %v919_v43  ;;  %v1010_v51 = vld [vmem:[%s1207_s24 + $0x44] sm:$0xf] }
  0x17   : > { %v901_v47 = vld [vmem:[%s1207_s24 + $0xa0] sm:$0xf]  ;;  %v1023_v48 = vld [vmem:[%s1207_s24 + $0xa4] sm:$0xf0]  ;;  %v838_v49 = vor.u32 %v1007_v45, %v837_v44  ;;  %v855_v52 = vld [vmem:[%s1207_s24 + $0x48] sm:$0xf0] }
  0x18   : > { %482 = vmatpush.bf16.msra.mxu0 %v1038_v7  ;;  %1141 = vmatpush.bf16.msra.mxu2 %v1038_v7  ;;  %v902_v50 = vor.u32 %v1023_v48, %v901_v47  ;;  %v858_v53 = vor.u32 %v1010_v51, %v855_v52  ;;  %v1028_v54 = vld [vmem:[%s1207_s24 + $0xd4] sm:$0xf]  ;;  %v927_v55 = vld [vmem:[%s1207_s24 + $0xd8] sm:$0xf0]  ;;  %v845_v56 = vld [vmem:[%s1207_s24 + $0x30] sm:$0xf] }
  0x19   : > { %v1009_v57 = vld [vmem:[%s1207_s24 + $0x34] sm:$0xf0]  ;;  %v930_v58 = vor.u32 %v1028_v54, %v927_v55  ;;  %v909_v59 = vld [vmem:[%s1207_s24 + $0xb0] sm:$0xf]  ;;  %v1012_v63 = vld [vmem:[%s1207_s24 + $0x54] sm:$0xf] }
  0x1a   : > { %v1025_v60 = vld [vmem:[%s1207_s24 + $0xb4] sm:$0xf0]  ;;  %v846_v61 = vor.u32 %v1009_v57, %v845_v56  ;;  %v863_v0 = vld [vmem:[%s1207_s24 + $0x58] sm:$0xf0]  ;;  %v1030_v2 = vld [vmem:[%s1207_s24 + $0xe4] sm:$0xf] }
  0x1b   : > { %v910_v62 = vor.u32 %v1025_v60, %v909_v59  ;;  %v866_v1 = vor.u32 %v1012_v63, %v863_v0  ;;  %v935_v3 = vld [vmem:[%s1207_s24 + $0xe8] sm:$0xf0]  ;;  %v853_v4 = vld [vmem:[%s1207_s24 + $0x40] sm:$0xf]  ;;  %v1011_v5 = vld [vmem:[%s1207_s24 + $0x44] sm:$0xf0] }
  0x1c   : > { %483 = vmatpush.bf16.msra.mxu0 %v1037_v11  ;;  %1142 = vmatpush.bf16.msra.mxu2 %v1037_v11  ;;  %v938_v6 = vor.u32 %v1030_v2, %v935_v3  ;;  %v917_v7 = vld [vmem:[%s1207_s24 + $0xc0] sm:$0xf]  ;;  %v1027_v8 = vld [vmem:[%s1207_s24 + $0xc4] sm:$0xf0]  ;;  %v854_v9 = vor.u32 %v1011_v5, %v853_v4  ;;  %v1014_v11 = vld [vmem:[%s1207_s24 + $0x64] sm:$0xf] }
  0x1d   : > { %v918_v10 = vor.u32 %v1027_v8, %v917_v7  ;;  %v1032_v14 = vld [vmem:[%s1207_s24 + $0xf4] sm:$0xf]  ;;  %v1013_v17 = vld [vmem:[%s1207_s24 + $0x54] sm:$0xf0]  ;;  %v879_v24 = vld [vmem:[%s1207_s24 + $0x78] sm:$0xf0] }
  0x1e   : > { %v1029_v20 = vld [vmem:[%s1207_s24 + $0xd4] sm:$0xf0]  ;;  %v1016_v23 = vld [vmem:[%s1207_s24 + $0x74] sm:$0xf]  ;;  %v1015_v27 = vld [vmem:[%s1207_s24 + $0x64] sm:$0xf0] }
  0x1f   : > { %v933_v28 = vld [vmem:[%s1207_s24 + $0xe0] sm:$0xf]  ;;  %v1018_v32 = vld [vmem:[%s1207_s24 + $0x84] sm:$0xf]  ;;  %v887_v33 = vld [vmem:[%s1207_s24 + $0x88] sm:$0xf0] }
  0x20   : > { %484 = vmatpush.bf16.msra.mxu0 %v1036_v12  ;;  %1143 = vmatpush.bf16.msra.mxu2 %v1036_v12  ;;  %v871_v12 = vld [vmem:[%s1207_s24 + $0x68] sm:$0xf0]  ;;  %v877_v36 = vld [vmem:[%s1207_s24 + $0x70] sm:$0xf]  ;;  %v1033_v39 = vld [vmem:[%s1207_s24 + $0xf4] sm:$0xf0] }
  0x21   : > { %984 = vmatmul.msk.bf16.gmra.mxu1 %vm430_vm0, %v834_v15  ;;  %v874_v13 = vor.u32 %v1014_v11, %v871_v12  ;;  %v943_v15 = vld [vmem:[%s1207_s24 + $0xf8] sm:$0xf0] }
  0x22   : > { %993 = vmatmul.msk.bf16.gmra.mxu3 %vm430_vm0, %v906_v22  ;;  %v946_v18 = vor.u32 %v1032_v14, %v943_v15 }
  0x24   : > { %485 = vmatpush.bf16.msra.mxu0 %v1035_v16  ;;  %1144 = vmatpush.bf16.msra.mxu2 %v1035_v16  ;;  %v861_v16 = vld [vmem:[%s1207_s24 + $0x50] sm:$0xf] }
  0x25   : > { %v862_v21 = vor.u32 %v1013_v17, %v861_v16 }
  0x28   : > { %486 = vmatpush.bf16.msra.mxu0 %v1034_v19  ;;  %1145 = vmatpush.bf16.msra.mxu2 %v1034_v19  ;;  %v925_v19 = vld [vmem:[%s1207_s24 + $0xd0] sm:$0xf] }
  0x29   : > { %v926_v22 = vor.u32 %v1029_v20, %v925_v19 }
  0x2b   : > { %487 = vmatmul.bf16.vlgmr.msra.gmra.mxu0 %v822_v25  ;;  %527 = vmatmul.bf16.vlgmr.msra.gmra.mxu2 %v886_v26  ;;  %v882_v25 = vor.u32 %v1016_v23, %v879_v24  ;;  %v869_v26 = vld [vmem:[%s1207_s24 + $0x60] sm:$0xf] }
  0x2c   : > { %v870_v30 = vor.u32 %v1015_v27, %v869_v26 }
  0x31   : > { %985 = vmatmul.msk.bf16.gmra.mxu1 %vm430_vm0, %v842_v29  ;;  %v1031_v29 = vld [vmem:[%s1207_s24 + $0xe4] sm:$0xf0] }
  0x32   : > { %994 = vmatmul.msk.bf16.gmra.mxu3 %vm430_vm0, %v914_v34  ;;  %v934_v31 = vor.u32 %v1031_v29, %v933_v28  ;;  %v890_v34 = vor.u32 %v1018_v32, %v887_v33 }
  0x3b   : > { %492 = vmatmul.bf16.gmra.mxu0 %v830_v37  ;;  %532 = vmatmul.bf16.gmra.mxu2 %v894_v38  ;;  %v1017_v37 = vld [vmem:[%s1207_s24 + $0x74] sm:$0xf0]  ;;  %v941_v38 = vld [vmem:[%s1207_s24 + $0xf0] sm:$0xf] }
  0x3c   : > { %v878_v40 = vor.u32 %v1017_v37, %v877_v36 }
  0x41   : > { %986 = vmatmul.msk.bf16.gmra.mxu1 %vm430_vm0, %v850_v41  ;;  %v942_v41 = vor.u32 %v1033_v39, %v941_v38 }
  0x42   : > { %995 = vmatmul.msk.bf16.gmra.mxu3 %vm430_vm0, %v922_v46  ;;  %v1310_v46 = vld [vmem:[%s1377_s2] ss:$0 sm:$0xff] }
  0x4b   : > { %497 = vmatmul.bf16.gmra.mxu0 %v838_v49  ;;  %537 = vmatmul.bf16.gmra.mxu2 %v902_v50 }
  0x51   : > { %987 = vmatmul.msk.bf16.gmra.mxu1 %vm430_vm0, %v858_v53 }
  0x52   : > { %996 = vmatmul.msk.bf16.gmra.mxu3 %vm430_vm0, %v930_v58 }
  0x5b   : > { %502 = vmatmul.bf16.gmra.mxu0 %v846_v61  ;;  %542 = vmatmul.bf16.gmra.mxu2 %v910_v62 }
  0x61   : > { %988 = vmatmul.msk.bf16.gmra.mxu1 %vm430_vm0, %v866_v1 }
  0x62   : > { %997 = vmatmul.msk.bf16.gmra.mxu3 %vm430_vm0, %v938_v6 }
  0x6b   : > { %507 = vmatmul.bf16.gmra.mxu0 %v854_v9  ;;  %547 = vmatmul.bf16.gmra.mxu2 %v918_v10 }
  0x71   : > { %989 = vmatmul.msk.bf16.gmra.mxu1 %vm430_vm0, %v874_v13 }
  0x72   : > { %998 = vmatmul.msk.bf16.gmra.mxu3 %vm430_vm0, %v946_v18 }
  0x7b   : > { %512 = vmatmul.bf16.gmra.mxu0 %v862_v21  ;;  %552 = vmatmul.bf16.gmra.mxu2 %v926_v22 }
  0x81   : > { %990 = vmatmul.msk.bf16.gmra.mxu1 %vm430_vm0, %v882_v25 }
  0x8b   : > { %517 = vmatmul.bf16.gmra.mxu0 %v870_v30  ;;  %557 = vmatmul.bf16.gmra.mxu2 %v934_v31 }
  0x8e   : > { %v577_v35 = vpop.f32.mrf.mxu1 }
  0x91   : > { %991 = vmatmul.msk.bf16.gmra.mxu1 %vm430_vm0, %v890_v34 }
  0x95   : > { %v622_v44 = vpop.f32.mrf.mxu3 }
  0x96   : > { %v579_v42 = vpop.f32.mrf.mxu1 }
  0x9b   : > { %522 = vmatmul.bf16.gmra.mxu0 %v878_v40  ;;  %562 = vmatmul.bf16.gmra.mxu2 %v942_v41 }
  0x9d   : > { %v624_v54 = vpop.f32.mrf.mxu3 }
  0x9e   : > { %v582_v43 = vpop.f32.mrf.mxu1 }
  0xa5   : > { %v627_v62 = vpop.f32.mrf.mxu3 }
  0xa6   : > { %v584_v47 = vpop.f32.mrf.mxu1 }
  0xa8   : > { %v488_v45 = vpop.f32.mrf.mxu0 }
  0xa9   : > { %v489_v48 = vadd.f32 %v1310_v46, %v488_v45 }
  0xab   : > { %v578_v51 = vadd.f32 %v577_v35, %v489_v48 }
  0xad   : > { %v657_v56 = vmax.f32 %v578_v51, 0.0  ;;  %v629_v9 = vpop.f32.mrf.mxu3 }
  0xae   : > { %v1313_v49 = vpop.f32.mrf.mxu2  ;;  %v587_v53 = vpop.f32.mrf.mxu1 }
  0xb0   : > { %v490_v50 = vpop.f32.mrf.mxu0 }
  0xb1   : > { %v491_v52 = vadd.f32 %v1310_v46, %v490_v50 }
  0xb3   : > { %v580_v55 = vadd.f32 %v579_v42, %v491_v52 }
  0xb5   : > { %v658_v57 = vmax.f32 %v580_v55, 0.0  ;;  %v632_v22 = vpop.f32.mrf.mxu3 }
  0xb6   : > { %v1322_v59 = vpop.f32.mrf.mxu2  ;;  %v589_v61 = vpop.f32.mrf.mxu1 }
  0xb7   : > { %v1046_v58 = vpack.c.bf16 %v658_v57, %v657_v56 }
  0xb8   : > { %v493_v60 = vpop.f32.mrf.mxu0 }
  0xb9   : > { %1047 = vst [vmem:[%s1320_s16] sm:$0xff] %v1046_v58   ;;  %v494_v63 = vadd.f32 %v1310_v46, %v493_v60 }
  0xbb   : > { %v583_v2 = vadd.f32 %v582_v43, %v494_v63 }
  0xbd   : > { %v659_v7 = vmax.f32 %v583_v2, 0.0  ;;  %v634_v37 = vpop.f32.mrf.mxu3 }
  0xbe   : > { %v533_v0 = vpop.f32.mrf.mxu2  ;;  %v592_v4 = vpop.f32.mrf.mxu1 }
  0xbf   : > { %v534_v6 = vadd.f32 %v1310_v46, %v533_v0 }
  0xc0   : > { %v495_v1 = vpop.f32.mrf.mxu0 }
  0xc1   : > { %v496_v3 = vadd.f32 %v1310_v46, %v495_v1  ;;  %v623_v12 = vadd.f32 %v622_v44, %v534_v6 }
  0xc3   : > { %v585_v5 = vadd.f32 %v584_v47, %v496_v3  ;;  %v675_v17 = vmax.f32 %v623_v12, 0.0 }
  0xc5   : > { %v660_v8 = vmax.f32 %v585_v5, 0.0  ;;  %v637_v51 = vpop.f32.mrf.mxu3 }
  0xc6   : > { %v535_v11 = vpop.f32.mrf.mxu2  ;;  %v594_v15 = vpop.f32.mrf.mxu1 }
  0xc7   : > { %v1051_v10 = vpack.c.bf16 %v660_v8, %v659_v7  ;;  %v536_v13 = vadd.f32 %v1310_v46, %v535_v11 }
  0xc8   : > { %v498_v14 = vpop.f32.mrf.mxu0 }
  0xc9   : > { %1123 = vst [vmem:[%s1320_s16 + $0x8] sm:$0xff] %v1051_v10   ;;  %v625_v16 = vadd.f32 %v624_v54, %v536_v13  ;;  %v499_v19 = vadd.f32 %v1310_v46, %v498_v14 }
  0xcb   : > { %v676_v18 = vmax.f32 %v625_v16, 0.0  ;;  %v588_v24 = vadd.f32 %v587_v53, %v499_v19 }
  0xcd   : > { %v1091_v20 = vpack.c.bf16 %v676_v18, %v675_v17  ;;  %v661_v29 = vmax.f32 %v588_v24, 0.0  ;;  %v639_v2 = vpop.f32.mrf.mxu3 }
  0xce   : > { %v538_v21 = vpop.f32.mrf.mxu2  ;;  %v597_v26 = vpop.f32.mrf.mxu1 }
  0xcf   : > { %1131 = vst [vmem:[%s1320_s16 + $0x48] sm:$0xff] %v1091_v20   ;;  %v539_v28 = vadd.f32 %v1310_v46, %v538_v21 }
  0xd0   : > { %v500_v23 = vpop.f32.mrf.mxu0 }
  0xd1   : > { %v501_v25 = vadd.f32 %v1310_v46, %v500_v23  ;;  %v628_v33 = vadd.f32 %v627_v62, %v539_v28 }
  0xd3   : > { %v590_v27 = vadd.f32 %v589_v61, %v501_v25  ;;  %v677_v39 = vmax.f32 %v628_v33, 0.0 }
  0xd5   : > { %v662_v30 = vmax.f32 %v590_v27, 0.0 }
  0xd6   : > { %v540_v32 = vpop.f32.mrf.mxu2  ;;  %v599_v36 = vpop.f32.mrf.mxu1 }
  0xd7   : > { %v1056_v31 = vpack.c.bf16 %v662_v30, %v661_v29  ;;  %v541_v34 = vadd.f32 %v1310_v46, %v540_v32 }
  0xd8   : > { %v503_v35 = vpop.f32.mrf.mxu0 }
  0xd9   : > { %1124 = vst [vmem:[%s1320_s16 + $0x10] sm:$0xff] %v1056_v31   ;;  %v630_v38 = vadd.f32 %v629_v9, %v541_v34  ;;  %v504_v41 = vadd.f32 %v1310_v46, %v503_v35 }
  0xdb   : > { %v678_v40 = vmax.f32 %v630_v38, 0.0  ;;  %v593_v45 = vadd.f32 %v592_v4, %v504_v41 }
  0xdd   : > { %v1096_v42 = vpack.c.bf16 %v678_v40, %v677_v39  ;;  %v663_v53 = vmax.f32 %v593_v45, 0.0 }
  0xde   : > { %v543_v43 = vpop.f32.mrf.mxu2  ;;  %v602_v48 = vpop.f32.mrf.mxu1 }
  0xdf   : > { %1132 = vst [vmem:[%s1320_s16 + $0x50] sm:$0xff] %v1096_v42   ;;  %v544_v52 = vadd.f32 %v1310_v46, %v543_v43 }
  0xe0   : > { %v505_v44 = vpop.f32.mrf.mxu0 }
  0xe1   : > { %v506_v47 = vadd.f32 %v1310_v46, %v505_v44  ;;  %v633_v57 = vadd.f32 %v632_v22, %v544_v52 }
  0xe3   : > { %v595_v50 = vadd.f32 %v594_v15, %v506_v47  ;;  %v679_v63 = vmax.f32 %v633_v57, 0.0  ;;  %v642_v15 = vpop.f32.mrf.mxu3 }
  0xe5   : > { %v664_v54 = vmax.f32 %v595_v50, 0.0 }
  0xe6   : > { %v545_v56 = vpop.f32.mrf.mxu2  ;;  %v604_v61 = vpop.f32.mrf.mxu1 }
  0xe7   : > { %v1061_v55 = vpack.c.bf16 %v664_v54, %v663_v53  ;;  %v546_v58 = vadd.f32 %v1310_v46, %v545_v56 }
  0xe8   : > { %v508_v60 = vpop.f32.mrf.mxu0 }
  0xe9   : > { %1125 = vst [vmem:[%s1320_s16 + $0x18] sm:$0xff] %v1061_v55   ;;  %v635_v62 = vadd.f32 %v634_v37, %v546_v58  ;;  %v509_v1 = vadd.f32 %v1310_v46, %v508_v60  ;;  %v529_v60 = vadd.f32 %v1310_v46, %v1313_v49 }
  0xeb   : > { %v680_v0 = vmax.f32 %v635_v62, 0.0  ;;  %v598_v6 = vadd.f32 %v597_v26, %v509_v1  ;;  %v644_v30 = vpop.f32.mrf.mxu3 }
  0xed   : > { %v1101_v3 = vpack.c.bf16 %v680_v0, %v679_v63  ;;  %v665_v11 = vmax.f32 %v598_v6, 0.0  ;;  %v531_v63 = vadd.f32 %v1310_v46, %v1322_v59 }
  0xee   : > { %v548_v4 = vpop.f32.mrf.mxu2  ;;  %v607_v8 = vpop.f32.mrf.mxu1 }
  0xef   : > { %1133 = vst [vmem:[%s1320_s16 + $0x58] sm:$0xff] %v1101_v3   ;;  %v549_v10 = vadd.f32 %v1310_v46, %v548_v4 }
  0xf0   : > { %v510_v5 = vpop.f32.mrf.mxu0 }
  0xf1   : > { %v511_v7 = vadd.f32 %v1310_v46, %v510_v5  ;;  %v638_v16 = vadd.f32 %v637_v51, %v549_v10 }
  0xf3   : > { %v600_v9 = vadd.f32 %v599_v36, %v511_v7  ;;  %v681_v21 = vmax.f32 %v638_v16, 0.0  ;;  %v647_v42 = vpop.f32.mrf.mxu3 }
  0xf5   : > { %v666_v12 = vmax.f32 %v600_v9, 0.0 }
  0xf6   : > { %v550_v14 = vpop.f32.mrf.mxu2  ;;  %v609_v19 = vpop.f32.mrf.mxu1 }
  0xf7   : > { %v1066_v13 = vpack.c.bf16 %v666_v12, %v665_v11  ;;  %v551_v17 = vadd.f32 %v1310_v46, %v550_v14 }
  0xf8   : > { %v513_v18 = vpop.f32.mrf.mxu0 }
  0xf9   : > { %1126 = vst [vmem:[%s1320_s16 + $0x20] sm:$0xff] %v1066_v13   ;;  %v640_v20 = vadd.f32 %v639_v2, %v551_v17  ;;  %v514_v23 = vadd.f32 %v1310_v46, %v513_v18 }
  0xfb   : > { %v682_v22 = vmax.f32 %v640_v20, 0.0  ;;  %v603_v27 = vadd.f32 %v602_v48, %v514_v23  ;;  %v649_v58 = vpop.f32.mrf.mxu3 }
  0xfd   : > { %v1106_v24 = vpack.c.bf16 %v682_v22, %v681_v21  ;;  %v667_v33 = vmax.f32 %v603_v27, 0.0 }
  0xfe   : > { %v553_v25 = vpop.f32.mrf.mxu2  ;;  %v612_v29 = vpop.f32.mrf.mxu1 }
  0xff   : > { %1134 = vst [vmem:[%s1320_s16 + $0x60] sm:$0xff] %v1106_v24   ;;  %v554_v32 = vadd.f32 %v1310_v46, %v553_v25 }
 0x100   : > { %v515_v26 = vpop.f32.mrf.mxu0 }
 0x101   : > { %v516_v28 = vadd.f32 %v1310_v46, %v515_v26  ;;  %v643_v37 = vadd.f32 %v642_v15, %v554_v32 }
 0x103   : > { %v605_v31 = vadd.f32 %v604_v61, %v516_v28  ;;  %v683_v43 = vmax.f32 %v643_v37, 0.0  ;;  %v652_v59 = vpop.f32.mrf.mxu3 }
 0x105   : > { %v668_v34 = vmax.f32 %v605_v31, 0.0 }
 0x106   : > { %v555_v36 = vpop.f32.mrf.mxu2  ;;  %v614_v40 = vpop.f32.mrf.mxu1 }
 0x107   : > { %v1071_v35 = vpack.c.bf16 %v668_v34, %v667_v33  ;;  %v556_v38 = vadd.f32 %v1310_v46, %v555_v36 }
 0x108   : > { %v518_v39 = vpop.f32.mrf.mxu0 }
 0x109   : > { %1127 = vst [vmem:[%s1320_s16 + $0x28] sm:$0xff] %v1071_v35   ;;  %v645_v41 = vadd.f32 %v644_v30, %v556_v38  ;;  %v519_v45 = vadd.f32 %v1310_v46, %v518_v39 }
 0x10b   : > { %v684_v44 = vmax.f32 %v645_v41, 0.0  ;;  %v608_v51 = vadd.f32 %v607_v8, %v519_v45  ;;  %v654_v25 = vpop.f32.mrf.mxu3 }
 0x10d   : > { %v1111_v47 = vpack.c.bf16 %v684_v44, %v683_v43  ;;  %v669_v56 = vmax.f32 %v608_v51, 0.0 }
 0x10e   : > { %v558_v48 = vpop.f32.mrf.mxu2  ;;  %v617_v53 = vpop.f32.mrf.mxu1 }
 0x10f   : > { %1135 = vst [vmem:[%s1320_s16 + $0x68] sm:$0xff] %v1111_v47   ;;  %v559_v55 = vadd.f32 %v1310_v46, %v558_v48  ;;  %v618_v1 = vadd.f32 %v617_v53, %v529_v60 }
 0x110   : > { %v520_v50 = vpop.f32.mrf.mxu0 }
 0x111   : > { %v521_v52 = vadd.f32 %v1310_v46, %v520_v50  ;;  %v648_v0 = vadd.f32 %v647_v42, %v559_v55  ;;  %v673_v8 = vmax.f32 %v618_v1, 0.0 }
 0x113   : > { %v610_v54 = vadd.f32 %v609_v19, %v521_v52  ;;  %v685_v7 = vmax.f32 %v648_v0, 0.0 }
 0x115   : > { %v670_v57 = vmax.f32 %v610_v54, 0.0 }
 0x116   : > { %v560_v62 = vpop.f32.mrf.mxu2  ;;  %v619_v4 = vpop.f32.mrf.mxu1 }
 0x117   : > { %v1076_v61 = vpack.c.bf16 %v670_v57, %v669_v56  ;;  %v561_v2 = vadd.f32 %v1310_v46, %v560_v62  ;;  %v620_v6 = vadd.f32 %v619_v4, %v531_v63 }
 0x118   : > { %v523_v3 = vpop.f32.mrf.mxu0 }
 0x119   : > { %1128 = vst [vmem:[%s1320_s16 + $0x30] sm:$0xff] %v1076_v61   ;;  %v650_v5 = vadd.f32 %v649_v58, %v561_v2  ;;  %v674_v49 = vmax.f32 %v620_v6, 0.0  ;;  %v524_v10 = vadd.f32 %v1310_v46, %v523_v3 }
 0x11b   : > { %v686_v9 = vmax.f32 %v650_v5, 0.0  ;;  %v1086_v12 = vpack.c.bf16 %v674_v49, %v673_v8  ;;  %v613_v15 = vadd.f32 %v612_v29, %v524_v10 }
 0x11d   : > { %v1116_v11 = vpack.c.bf16 %v686_v9, %v685_v7  ;;  %1130 = vst [vmem:[%s1320_s16 + $0x40] sm:$0xff] %v1086_v12   ;;  %v671_v19 = vmax.f32 %v613_v15, 0.0 }
 0x11e   : > { %v563_v13 = vpop.f32.mrf.mxu2 }
 0x11f   : > { %1136 = vst [vmem:[%s1320_s16 + $0x70] sm:$0xff] %v1116_v11   ;;  %v564_v18 = vadd.f32 %v1310_v46, %v563_v13 }
 0x120   : > { %v525_v14 = vpop.f32.mrf.mxu0 }
 0x121   : > { %v526_v16 = vadd.f32 %v1310_v46, %v525_v14  ;;  %v653_v23 = vadd.f32 %v652_v59, %v564_v18 }
 0x123   : > { %v615_v17 = vadd.f32 %v614_v40, %v526_v16  ;;  %v687_v27 = vmax.f32 %v653_v23, 0.0 }
 0x125   : > { %v672_v20 = vmax.f32 %v615_v17, 0.0 }
 0x126   : > { %v565_v22 = vpop.f32.mrf.mxu2 }
 0x127   : > { %v1081_v21 = vpack.c.bf16 %v672_v20, %v671_v19  ;;  %v566_v24 = vadd.f32 %v1310_v46, %v565_v22 }
 0x129   : > { %1129 = vst [vmem:[%s1320_s16 + $0x38] sm:$0xff] %v1081_v21   ;;  %v655_v26 = vadd.f32 %v654_v25, %v566_v24 }
 0x12b   : > { %v688_v28 = vmax.f32 %v655_v26, 0.0 }
 0x12d   : > { %v1121_v29 = vpack.c.bf16 %v688_v28, %v687_v27 }
 0x12f   : > { %1137 = vst [vmem:[%s1320_s16 + $0x78] sm:$0xff] %v1121_v29  }
 0x130 PF: > { %s13_s12 = sadd.s32 1, %s1162_s12  }
 0x131   : > { %p10_p4 = scmp.ge.s32.totalorder %s13_s12, 4  }
 0x133   :  { %12 = sbr.rel (!%p10_p4) target bundleno = 1 (0x1), region = 62 }

// kernel: _lambda_.13
= control target key start
LH: loop header
LB: loop body
LE: loop exit
PB: predicated region body
PF: predicated region fallthrough
CT: control target
= control target key end

     0   :  { %s1152_s12 = smov 0   ;;  %s1343_s0 = inlined_call_operand.vmem [shape: bf16[512,144], index: 0, kind: input, shape index: {}]   ;;  %s1344_s1 = inlined_call_operand.vmem [shape: bf16[144,128], index: 1, kind: input, shape index: {}]   ;;  %s1345_s2 = inlined_call_operand.vmem [shape: f32[1,128], index: 2, kind: input, shape index: {}]   ;;  %s1346_s3 = inlined_call_operand.vmem [shape: bf16[512,128], index: 3, kind: output, shape index: {}]  }
   0x1 LB: > { %s777_s13 = sadd.s32 4294967295, %s1130_s12   ;;  %p781_p0 = scmp.ge.s32.totalorder %s1130_s12, 1  ;;  %s1130_s12 = sphi %s1152_s12, %s13_s12  }
   0x2   : > { %p139_p1 = scmp.lt.s32.totalorder %s1130_s12, 3 }
   0x4   : > { %p140_p2 = pnand %p781_p0, %p139_p1 }
   0x5   : > { %s782_s18 = sshll.u32 (!%p140_p2), %s777_s13, 5 }
   0x6   : > { %143 = sbr.rel (%p140_p2) target bundleno = 302 (0x12e), region = 32  ;;  %p165_p3 = scmp.lt.s32.totalorder (!%p140_p2), %s782_s18, 63 }
   0xb   : > { %v1009_v0 = vld [vmem:[%s1344_s1 + $0x38] sm:$0xff]  ;;  %v1010_v1 = vld [vmem:[%s1344_s1 + $0x40] sm:$0xff]  ;;  %v1008_v2 = vld [vmem:[%s1344_s1 + $0x30] sm:$0xff]  ;;  %s1348_s18 = smov (!%p165_p3, %s782_s18), 63  ;;  %vm430_vm0 = vcmask 130048  }
   0xc   : > { %479 = vmatpush.bf16.msra.mxu0 %v1009_v0  ;;  %1106 = vmatpush.bf16.msra.mxu2 %v1009_v0  ;;  %s969_s21 = sshll.u32 %s1348_s18, 3  ;;  %v1007_v3 = vld [vmem:[%s1344_s1 + $0x28] sm:$0xff]  ;;  %v1006_v7 = vld [vmem:[%s1344_s1 + $0x20] sm:$0xff]  ;;  %v1005_v11 = vld [vmem:[%s1344_s1 + $0x18] sm:$0xff]  ;;  %s786_s13 = sshll.u32 %s1348_s18, 2 }
   0xd   : > { %575 = vmatpush.bf16.msra.mxu1 %v1010_v1  ;;  %1114 = vmatpush.bf16.msra.mxu3 %v1010_v1  ;;  %s1175_s24 = scalar_lea.vmem %s1343_s0, %s969_s21  ;;  %v1004_v12 = vld [vmem:[%s1344_s1 + $0x10] sm:$0xff]  ;;  %v1003_v16 = vld [vmem:[%s1344_s1 + $0x8] sm:$0xff]  ;;  %v1002_v19 = vld [vmem:[%s1344_s1] sm:$0xff]  ;;  %s1288_s16 = scalar_lea.vmem %s1346_s3, %s786_s13 }
   0xe   : > { %v970_v4 = vld [vmem:[%s1175_s24 + $0x4] sm:$0xf]  ;;  %v791_v5 = vld [vmem:[%s1175_s24 + $0x8] sm:$0xf0]  ;;  %v988_v8 = vld [vmem:[%s1175_s24 + $0x94] sm:$0xf] }
   0xf   : > { %v794_v6 = vor.u32 %v970_v4, %v791_v5  ;;  %v863_v9 = vld [vmem:[%s1175_s24 + $0x98] sm:$0xf0]  ;;  %v972_v13 = vld [vmem:[%s1175_s24 + $0x14] sm:$0xf]  ;;  %v990_v17 = vld [vmem:[%s1175_s24 + $0xa4] sm:$0xf] }
  0x10   : > { %480 = vmatpush.bf16.msra.mxu0 %v1008_v2  ;;  %1107 = vmatpush.bf16.msra.mxu2 %v1008_v2  ;;  %v866_v10 = vor.u32 %v988_v8, %v863_v9  ;;  %v799_v14 = vld [vmem:[%s1175_s24 + $0x18] sm:$0xf0]  ;;  %v871_v18 = vld [vmem:[%s1175_s24 + $0xa8] sm:$0xf0]  ;;  %v789_v20 = vld [vmem:[%s1175_s24] sm:$0xf] }
  0x11   : > { %951 = vmatmul.msk.bf16.vlgmr.msra.gmra.mxu1 %vm430_vm0, %v794_v6  ;;  %v802_v15 = vor.u32 %v972_v13, %v799_v14  ;;  %v971_v21 = vld [vmem:[%s1175_s24 + $0x4] sm:$0xf0]  ;;  %v874_v22 = vor.u32 %v990_v17, %v871_v18  ;;  %v853_v23 = vld [vmem:[%s1175_s24 + $0x80] sm:$0xf]  ;;  %v974_v27 = vld [vmem:[%s1175_s24 + $0x24] sm:$0xf] }
  0x12   : > { %960 = vmatmul.msk.bf16.vlgmr.msra.gmra.mxu3 %vm430_vm0, %v866_v10  ;;  %v987_v24 = vld [vmem:[%s1175_s24 + $0x84] sm:$0xf0]  ;;  %v790_v25 = vor.u32 %v971_v21, %v789_v20  ;;  %v807_v28 = vld [vmem:[%s1175_s24 + $0x28] sm:$0xf0]  ;;  %v992_v30 = vld [vmem:[%s1175_s24 + $0xb4] sm:$0xf] }
  0x13   : > { %v854_v26 = vor.u32 %v987_v24, %v853_v23  ;;  %v810_v29 = vor.u32 %v974_v27, %v807_v28  ;;  %v879_v31 = vld [vmem:[%s1175_s24 + $0xb8] sm:$0xf0]  ;;  %v797_v32 = vld [vmem:[%s1175_s24 + $0x10] sm:$0xf]  ;;  %v973_v33 = vld [vmem:[%s1175_s24 + $0x14] sm:$0xf0] }
  0x14   : > { %481 = vmatpush.bf16.msra.mxu0 %v1007_v3  ;;  %1108 = vmatpush.bf16.msra.mxu2 %v1007_v3  ;;  %v882_v34 = vor.u32 %v992_v30, %v879_v31  ;;  %v861_v35 = vld [vmem:[%s1175_s24 + $0x90] sm:$0xf]  ;;  %v989_v36 = vld [vmem:[%s1175_s24 + $0x94] sm:$0xf0]  ;;  %v798_v37 = vor.u32 %v973_v33, %v797_v32  ;;  %v976_v39 = vld [vmem:[%s1175_s24 + $0x34] sm:$0xf] }
  0x15   : > { %v862_v38 = vor.u32 %v989_v36, %v861_v35  ;;  %v815_v40 = vld [vmem:[%s1175_s24 + $0x38] sm:$0xf0]  ;;  %v994_v42 = vld [vmem:[%s1175_s24 + $0xc4] sm:$0xf]  ;;  %v887_v43 = vld [vmem:[%s1175_s24 + $0xc8] sm:$0xf0] }
  0x16   : > { %v818_v41 = vor.u32 %v976_v39, %v815_v40  ;;  %v805_v44 = vld [vmem:[%s1175_s24 + $0x20] sm:$0xf]  ;;  %v975_v45 = vld [vmem:[%s1175_s24 + $0x24] sm:$0xf0]  ;;  %v890_v46 = vor.u32 %v994_v42, %v887_v43  ;;  %v978_v51 = vld [vmem:[%s1175_s24 + $0x44] sm:$0xf] }
  0x17   : > { %v869_v47 = vld [vmem:[%s1175_s24 + $0xa0] sm:$0xf]  ;;  %v991_v48 = vld [vmem:[%s1175_s24 + $0xa4] sm:$0xf0]  ;;  %v806_v49 = vor.u32 %v975_v45, %v805_v44  ;;  %v823_v52 = vld [vmem:[%s1175_s24 + $0x48] sm:$0xf0] }
  0x18   : > { %482 = vmatpush.bf16.msra.mxu0 %v1006_v7  ;;  %1109 = vmatpush.bf16.msra.mxu2 %v1006_v7  ;;  %v870_v50 = vor.u32 %v991_v48, %v869_v47  ;;  %v826_v53 = vor.u32 %v978_v51, %v823_v52  ;;  %v996_v54 = vld [vmem:[%s1175_s24 + $0xd4] sm:$0xf]  ;;  %v895_v55 = vld [vmem:[%s1175_s24 + $0xd8] sm:$0xf0]  ;;  %v813_v56 = vld [vmem:[%s1175_s24 + $0x30] sm:$0xf] }
  0x19   : > { %v977_v57 = vld [vmem:[%s1175_s24 + $0x34] sm:$0xf0]  ;;  %v898_v58 = vor.u32 %v996_v54, %v895_v55  ;;  %v877_v59 = vld [vmem:[%s1175_s24 + $0xb0] sm:$0xf]  ;;  %v980_v63 = vld [vmem:[%s1175_s24 + $0x54] sm:$0xf] }
  0x1a   : > { %v993_v60 = vld [vmem:[%s1175_s24 + $0xb4] sm:$0xf0]  ;;  %v814_v61 = vor.u32 %v977_v57, %v813_v56  ;;  %v831_v0 = vld [vmem:[%s1175_s24 + $0x58] sm:$0xf0]  ;;  %v998_v2 = vld [vmem:[%s1175_s24 + $0xe4] sm:$0xf] }
  0x1b   : > { %v878_v62 = vor.u32 %v993_v60, %v877_v59  ;;  %v834_v1 = vor.u32 %v980_v63, %v831_v0  ;;  %v903_v3 = vld [vmem:[%s1175_s24 + $0xe8] sm:$0xf0]  ;;  %v821_v4 = vld [vmem:[%s1175_s24 + $0x40] sm:$0xf]  ;;  %v979_v5 = vld [vmem:[%s1175_s24 + $0x44] sm:$0xf0] }
  0x1c   : > { %483 = vmatpush.bf16.msra.mxu0 %v1005_v11  ;;  %1110 = vmatpush.bf16.msra.mxu2 %v1005_v11  ;;  %v906_v6 = vor.u32 %v998_v2, %v903_v3  ;;  %v885_v7 = vld [vmem:[%s1175_s24 + $0xc0] sm:$0xf]  ;;  %v995_v8 = vld [vmem:[%s1175_s24 + $0xc4] sm:$0xf0]  ;;  %v822_v9 = vor.u32 %v979_v5, %v821_v4  ;;  %v982_v11 = vld [vmem:[%s1175_s24 + $0x64] sm:$0xf] }
  0x1d   : > { %v886_v10 = vor.u32 %v995_v8, %v885_v7  ;;  %v1000_v14 = vld [vmem:[%s1175_s24 + $0xf4] sm:$0xf]  ;;  %v981_v17 = vld [vmem:[%s1175_s24 + $0x54] sm:$0xf0]  ;;  %v847_v24 = vld [vmem:[%s1175_s24 + $0x78] sm:$0xf0] }
  0x1e   : > { %v997_v20 = vld [vmem:[%s1175_s24 + $0xd4] sm:$0xf0]  ;;  %v984_v23 = vld [vmem:[%s1175_s24 + $0x74] sm:$0xf]  ;;  %v983_v27 = vld [vmem:[%s1175_s24 + $0x64] sm:$0xf0] }
  0x1f   : > { %v901_v28 = vld [vmem:[%s1175_s24 + $0xe0] sm:$0xf]  ;;  %v986_v32 = vld [vmem:[%s1175_s24 + $0x84] sm:$0xf]  ;;  %v855_v33 = vld [vmem:[%s1175_s24 + $0x88] sm:$0xf0] }
  0x20   : > { %484 = vmatpush.bf16.msra.mxu0 %v1004_v12  ;;  %1111 = vmatpush.bf16.msra.mxu2 %v1004_v12  ;;  %v839_v12 = vld [vmem:[%s1175_s24 + $0x68] sm:$0xf0]  ;;  %v845_v36 = vld [vmem:[%s1175_s24 + $0x70] sm:$0xf]  ;;  %v1001_v39 = vld [vmem:[%s1175_s24 + $0xf4] sm:$0xf0] }
  0x21   : > { %952 = vmatmul.msk.bf16.gmra.mxu1 %vm430_vm0, %v802_v15  ;;  %v842_v13 = vor.u32 %v982_v11, %v839_v12  ;;  %v911_v15 = vld [vmem:[%s1175_s24 + $0xf8] sm:$0xf0]  ;;  %v1278_v47 = vld [vmem:[%s1345_s2] ss:$0 sm:$0xff] }
  0x22   : > { %961 = vmatmul.msk.bf16.gmra.mxu3 %vm430_vm0, %v874_v22  ;;  %v914_v18 = vor.u32 %v1000_v14, %v911_v15 }
  0x24   : > { %485 = vmatpush.bf16.msra.mxu0 %v1003_v16  ;;  %1112 = vmatpush.bf16.msra.mxu2 %v1003_v16  ;;  %v829_v16 = vld [vmem:[%s1175_s24 + $0x50] sm:$0xf] }
  0x25   : > { %v830_v21 = vor.u32 %v981_v17, %v829_v16 }
  0x28   : > { %486 = vmatpush.bf16.msra.mxu0 %v1002_v19  ;;  %1113 = vmatpush.bf16.msra.mxu2 %v1002_v19  ;;  %v893_v19 = vld [vmem:[%s1175_s24 + $0xd0] sm:$0xf] }
  0x29   : > { %v894_v22 = vor.u32 %v997_v20, %v893_v19 }
  0x2b   : > { %487 = vmatmul.bf16.vlgmr.msra.gmra.mxu0 %v790_v25  ;;  %527 = vmatmul.bf16.vlgmr.msra.gmra.mxu2 %v854_v26  ;;  %v850_v25 = vor.u32 %v984_v23, %v847_v24  ;;  %v837_v26 = vld [vmem:[%s1175_s24 + $0x60] sm:$0xf] }
  0x2c   : > { %v838_v30 = vor.u32 %v983_v27, %v837_v26 }
  0x31   : > { %953 = vmatmul.msk.bf16.gmra.mxu1 %vm430_vm0, %v810_v29  ;;  %v999_v29 = vld [vmem:[%s1175_s24 + $0xe4] sm:$0xf0] }
  0x32   : > { %962 = vmatmul.msk.bf16.gmra.mxu3 %vm430_vm0, %v882_v34  ;;  %v902_v31 = vor.u32 %v999_v29, %v901_v28  ;;  %v858_v34 = vor.u32 %v986_v32, %v855_v33 }
  0x3b   : > { %492 = vmatmul.bf16.gmra.mxu0 %v798_v37  ;;  %532 = vmatmul.bf16.gmra.mxu2 %v862_v38  ;;  %v985_v37 = vld [vmem:[%s1175_s24 + $0x74] sm:$0xf0]  ;;  %v909_v38 = vld [vmem:[%s1175_s24 + $0xf0] sm:$0xf] }
  0x3c   : > { %v846_v40 = vor.u32 %v985_v37, %v845_v36 }
  0x41   : > { %954 = vmatmul.msk.bf16.gmra.mxu1 %vm430_vm0, %v818_v41  ;;  %v910_v41 = vor.u32 %v1001_v39, %v909_v38 }
  0x42   : > { %963 = vmatmul.msk.bf16.gmra.mxu3 %vm430_vm0, %v890_v46 }
  0x4b   : > { %497 = vmatmul.bf16.gmra.mxu0 %v806_v49  ;;  %537 = vmatmul.bf16.gmra.mxu2 %v870_v50 }
  0x51   : > { %955 = vmatmul.msk.bf16.gmra.mxu1 %vm430_vm0, %v826_v53 }
  0x52   : > { %964 = vmatmul.msk.bf16.gmra.mxu3 %vm430_vm0, %v898_v58 }
  0x5b   : > { %502 = vmatmul.bf16.gmra.mxu0 %v814_v61  ;;  %542 = vmatmul.bf16.gmra.mxu2 %v878_v62 }
  0x61   : > { %956 = vmatmul.msk.bf16.gmra.mxu1 %vm430_vm0, %v834_v1 }
  0x62   : > { %965 = vmatmul.msk.bf16.gmra.mxu3 %vm430_vm0, %v906_v6 }
  0x6b   : > { %507 = vmatmul.bf16.gmra.mxu0 %v822_v9  ;;  %547 = vmatmul.bf16.gmra.mxu2 %v886_v10 }
  0x71   : > { %957 = vmatmul.msk.bf16.gmra.mxu1 %vm430_vm0, %v842_v13 }
  0x72   : > { %966 = vmatmul.msk.bf16.gmra.mxu3 %vm430_vm0, %v914_v18 }
  0x7b   : > { %512 = vmatmul.bf16.gmra.mxu0 %v830_v21  ;;  %552 = vmatmul.bf16.gmra.mxu2 %v894_v22 }
  0x81   : > { %958 = vmatmul.msk.bf16.gmra.mxu1 %vm430_vm0, %v850_v25 }
  0x8b   : > { %517 = vmatmul.bf16.gmra.mxu0 %v838_v30  ;;  %557 = vmatmul.bf16.gmra.mxu2 %v902_v31 }
  0x8e   : > { %v577_v35 = vpop.f32.mrf.mxu1 }
  0x91   : > { %959 = vmatmul.msk.bf16.gmra.mxu1 %vm430_vm0, %v858_v34 }
  0x95   : > { %v622_v44 = vpop.f32.mrf.mxu3 }
  0x96   : > { %v579_v42 = vpop.f32.mrf.mxu1 }
  0x9b   : > { %522 = vmatmul.bf16.gmra.mxu0 %v846_v40  ;;  %562 = vmatmul.bf16.gmra.mxu2 %v910_v41 }
  0x9d   : > { %v624_v53 = vpop.f32.mrf.mxu3 }
  0x9e   : > { %v582_v43 = vpop.f32.mrf.mxu1 }
  0xa5   : > { %v627_v60 = vpop.f32.mrf.mxu3 }
  0xa6   : > { %v584_v46 = vpop.f32.mrf.mxu1 }
  0xa8   : > { %v488_v45 = vpop.f32.mrf.mxu0 }
  0xa9   : > { %v489_v48 = vadd.f32 %v1278_v47, %v488_v45 }
  0xab   : > { %v578_v54 = vadd.f32 %v577_v35, %v489_v48 }
  0xad   : > { %v629_v5 = vpop.f32.mrf.mxu3 }
  0xae   : > { %v1281_v49 = vpop.f32.mrf.mxu2  ;;  %v587_v52 = vpop.f32.mrf.mxu1 }
  0xb0   : > { %v490_v50 = vpop.f32.mrf.mxu0 }
  0xb1   : > { %v491_v51 = vadd.f32 %v1278_v47, %v490_v50 }
  0xb3   : > { %v580_v55 = vadd.f32 %v579_v42, %v491_v51 }
  0xb5   : > { %v1014_v56 = vpack.c.bf16 %v580_v55, %v578_v54  ;;  %v632_v16 = vpop.f32.mrf.mxu3 }
  0xb6   : > { %v1291_v57 = vpop.f32.mrf.mxu2  ;;  %v589_v59 = vpop.f32.mrf.mxu1 }
  0xb7   : > { %1015 = vst [vmem:[%s1288_s16] sm:$0xff] %v1014_v56  }
  0xb8   : > { %v493_v58 = vpop.f32.mrf.mxu0 }
  0xb9   : > { %v494_v61 = vadd.f32 %v1278_v47, %v493_v58 }
  0xbb   : > { %v583_v2 = vadd.f32 %v582_v43, %v494_v61 }
  0xbd   : > { %v634_v28 = vpop.f32.mrf.mxu3 }
  0xbe   : > { %v533_v62 = vpop.f32.mrf.mxu2  ;;  %v592_v1 = vpop.f32.mrf.mxu1 }
  0xbf   : > { %v534_v6 = vadd.f32 %v1278_v47, %v533_v62 }
  0xc0   : > { %v495_v63 = vpop.f32.mrf.mxu0 }
  0xc1   : > { %v496_v0 = vadd.f32 %v1278_v47, %v495_v63  ;;  %v623_v11 = vadd.f32 %v622_v44, %v534_v6 }
  0xc3   : > { %v585_v3 = vadd.f32 %v584_v46, %v496_v0 }
  0xc5   : > { %v1019_v4 = vpack.c.bf16 %v585_v3, %v583_v2  ;;  %v637_v39 = vpop.f32.mrf.mxu3 }
  0xc6   : > { %v535_v7 = vpop.f32.mrf.mxu2  ;;  %v594_v10 = vpop.f32.mrf.mxu1 }
  0xc7   : > { %1091 = vst [vmem:[%s1288_s16 + $0x8] sm:$0xff] %v1019_v4   ;;  %v536_v8 = vadd.f32 %v1278_v47, %v535_v7 }
  0xc8   : > { %v498_v9 = vpop.f32.mrf.mxu0 }
  0xc9   : > { %v625_v12 = vadd.f32 %v624_v53, %v536_v8  ;;  %v499_v14 = vadd.f32 %v1278_v47, %v498_v9 }
  0xcb   : > { %v1059_v13 = vpack.c.bf16 %v625_v12, %v623_v11  ;;  %v588_v20 = vadd.f32 %v587_v52, %v499_v14 }
  0xcd   : > { %1099 = vst [vmem:[%s1288_s16 + $0x48] sm:$0xff] %v1059_v13   ;;  %v639_v51 = vpop.f32.mrf.mxu3 }
  0xce   : > { %v538_v15 = vpop.f32.mrf.mxu2  ;;  %v597_v19 = vpop.f32.mrf.mxu1 }
  0xcf   : > { %v539_v23 = vadd.f32 %v1278_v47, %v538_v15 }
  0xd0   : > { %v500_v17 = vpop.f32.mrf.mxu0 }
  0xd1   : > { %v501_v18 = vadd.f32 %v1278_v47, %v500_v17  ;;  %v628_v29 = vadd.f32 %v627_v60, %v539_v23 }
  0xd3   : > { %v590_v21 = vadd.f32 %v589_v59, %v501_v18 }
  0xd5   : > { %v1024_v22 = vpack.c.bf16 %v590_v21, %v588_v20  ;;  %v642_v63 = vpop.f32.mrf.mxu3 }
  0xd6   : > { %v540_v24 = vpop.f32.mrf.mxu2  ;;  %v599_v27 = vpop.f32.mrf.mxu1 }
  0xd7   : > { %1092 = vst [vmem:[%s1288_s16 + $0x10] sm:$0xff] %v1024_v22   ;;  %v541_v25 = vadd.f32 %v1278_v47, %v540_v24 }
  0xd8   : > { %v503_v26 = vpop.f32.mrf.mxu0 }
  0xd9   : > { %v630_v30 = vadd.f32 %v629_v5, %v541_v25  ;;  %v504_v32 = vadd.f32 %v1278_v47, %v503_v26 }
  0xdb   : > { %v1064_v31 = vpack.c.bf16 %v630_v30, %v628_v29  ;;  %v593_v37 = vadd.f32 %v592_v1, %v504_v32 }
  0xdd   : > { %1100 = vst [vmem:[%s1288_s16 + $0x50] sm:$0xff] %v1064_v31   ;;  %v644_v11 = vpop.f32.mrf.mxu3 }
  0xde   : > { %v543_v33 = vpop.f32.mrf.mxu2  ;;  %v602_v36 = vpop.f32.mrf.mxu1 }
  0xdf   : > { %v544_v41 = vadd.f32 %v1278_v47, %v543_v33 }
  0xe0   : > { %v505_v34 = vpop.f32.mrf.mxu0 }
  0xe1   : > { %v506_v35 = vadd.f32 %v1278_v47, %v505_v34  ;;  %v633_v46 = vadd.f32 %v632_v16, %v544_v41 }
  0xe3   : > { %v595_v38 = vadd.f32 %v594_v10, %v506_v35  ;;  %v529_v35 = vadd.f32 %v1278_v47, %v1281_v49 }
  0xe5   : > { %v1029_v40 = vpack.c.bf16 %v595_v38, %v593_v37  ;;  %v647_v22 = vpop.f32.mrf.mxu3 }
  0xe6   : > { %v545_v42 = vpop.f32.mrf.mxu2  ;;  %v604_v45 = vpop.f32.mrf.mxu1 }
  0xe7   : > { %1093 = vst [vmem:[%s1288_s16 + $0x18] sm:$0xff] %v1029_v40   ;;  %v546_v43 = vadd.f32 %v1278_v47, %v545_v42 }
  0xe8   : > { %v508_v44 = vpop.f32.mrf.mxu0 }
  0xe9   : > { %v635_v48 = vadd.f32 %v634_v28, %v546_v43  ;;  %v509_v52 = vadd.f32 %v1278_v47, %v508_v44 }
  0xeb   : > { %v1069_v50 = vpack.c.bf16 %v635_v48, %v633_v46  ;;  %v598_v58 = vadd.f32 %v597_v19, %v509_v52 }
  0xed   : > { %1101 = vst [vmem:[%s1288_s16 + $0x58] sm:$0xff] %v1069_v50   ;;  %v649_v32 = vpop.f32.mrf.mxu3 }
  0xee   : > { %v548_v53 = vpop.f32.mrf.mxu2  ;;  %v607_v56 = vpop.f32.mrf.mxu1 }
  0xef   : > { %v549_v61 = vadd.f32 %v1278_v47, %v548_v53 }
  0xf0   : > { %v510_v54 = vpop.f32.mrf.mxu0 }
  0xf1   : > { %v511_v55 = vadd.f32 %v1278_v47, %v510_v54  ;;  %v638_v3 = vadd.f32 %v637_v39, %v549_v61 }
  0xf3   : > { %v600_v59 = vadd.f32 %v599_v27, %v511_v55 }
  0xf5   : > { %v1034_v60 = vpack.c.bf16 %v600_v59, %v598_v58  ;;  %v652_v49 = vpop.f32.mrf.mxu3 }
  0xf6   : > { %v550_v62 = vpop.f32.mrf.mxu2  ;;  %v609_v2 = vpop.f32.mrf.mxu1 }
  0xf7   : > { %1094 = vst [vmem:[%s1288_s16 + $0x20] sm:$0xff] %v1034_v60   ;;  %v551_v0 = vadd.f32 %v1278_v47, %v550_v62 }
  0xf8   : > { %v513_v1 = vpop.f32.mrf.mxu0 }
  0xf9   : > { %v640_v4 = vadd.f32 %v639_v51, %v551_v0  ;;  %v514_v6 = vadd.f32 %v1278_v47, %v513_v1 }
  0xfb   : > { %v1074_v5 = vpack.c.bf16 %v640_v4, %v638_v3  ;;  %v603_v12 = vadd.f32 %v602_v36, %v514_v6  ;;  %v531_v36 = vadd.f32 %v1278_v47, %v1291_v57 }
  0xfd   : > { %1102 = vst [vmem:[%s1288_s16 + $0x60] sm:$0xff] %v1074_v5   ;;  %v654_v58 = vpop.f32.mrf.mxu3 }
  0xfe   : > { %v553_v7 = vpop.f32.mrf.mxu2  ;;  %v612_v10 = vpop.f32.mrf.mxu1 }
  0xff   : > { %v554_v15 = vadd.f32 %v1278_v47, %v553_v7 }
 0x100   : > { %v515_v8 = vpop.f32.mrf.mxu0 }
 0x101   : > { %v516_v9 = vadd.f32 %v1278_v47, %v515_v8  ;;  %v643_v20 = vadd.f32 %v642_v63, %v554_v15 }
 0x103   : > { %v605_v13 = vadd.f32 %v604_v45, %v516_v9 }
 0x105   : > { %v1039_v14 = vpack.c.bf16 %v605_v13, %v603_v12 }
 0x106   : > { %v555_v16 = vpop.f32.mrf.mxu2  ;;  %v614_v19 = vpop.f32.mrf.mxu1 }
 0x107   : > { %1095 = vst [vmem:[%s1288_s16 + $0x28] sm:$0xff] %v1039_v14   ;;  %v556_v17 = vadd.f32 %v1278_v47, %v555_v16 }
 0x108   : > { %v518_v18 = vpop.f32.mrf.mxu0 }
 0x109   : > { %v645_v21 = vadd.f32 %v644_v11, %v556_v17  ;;  %v519_v24 = vadd.f32 %v1278_v47, %v518_v18 }
 0x10b   : > { %v1079_v23 = vpack.c.bf16 %v645_v21, %v643_v20  ;;  %v608_v29 = vadd.f32 %v607_v56, %v519_v24 }
 0x10d   : > { %1103 = vst [vmem:[%s1288_s16 + $0x68] sm:$0xff] %v1079_v23  }
 0x10e   : > { %v558_v25 = vpop.f32.mrf.mxu2  ;;  %v617_v28 = vpop.f32.mrf.mxu1 }
 0x10f   : > { %v559_v33 = vadd.f32 %v1278_v47, %v558_v25  ;;  %v618_v41 = vadd.f32 %v617_v28, %v529_v35 }
 0x110   : > { %v520_v26 = vpop.f32.mrf.mxu0 }
 0x111   : > { %v521_v27 = vadd.f32 %v1278_v47, %v520_v26  ;;  %v648_v40 = vadd.f32 %v647_v22, %v559_v33 }
 0x113   : > { %v610_v30 = vadd.f32 %v609_v2, %v521_v27 }
 0x115   : > { %v1044_v31 = vpack.c.bf16 %v610_v30, %v608_v29 }
 0x116   : > { %v560_v34 = vpop.f32.mrf.mxu2  ;;  %v619_v39 = vpop.f32.mrf.mxu1 }
 0x117   : > { %1096 = vst [vmem:[%s1288_s16 + $0x30] sm:$0xff] %v1044_v31   ;;  %v561_v37 = vadd.f32 %v1278_v47, %v560_v34  ;;  %v620_v43 = vadd.f32 %v619_v39, %v531_v36 }
 0x118   : > { %v523_v38 = vpop.f32.mrf.mxu0 }
 0x119   : > { %v650_v42 = vadd.f32 %v649_v32, %v561_v37  ;;  %v1054_v45 = vpack.c.bf16 %v620_v43, %v618_v41  ;;  %v524_v46 = vadd.f32 %v1278_v47, %v523_v38 }
 0x11b   : > { %v1084_v44 = vpack.c.bf16 %v650_v42, %v648_v40  ;;  %1098 = vst [vmem:[%s1288_s16 + $0x40] sm:$0xff] %v1054_v45   ;;  %v613_v51 = vadd.f32 %v612_v10, %v524_v46 }
 0x11d   : > { %1104 = vst [vmem:[%s1288_s16 + $0x70] sm:$0xff] %v1084_v44  }
 0x11e   : > { %v563_v48 = vpop.f32.mrf.mxu2 }
 0x11f   : > { %v564_v54 = vadd.f32 %v1278_v47, %v563_v48 }
 0x120   : > { %v525_v50 = vpop.f32.mrf.mxu0 }
 0x121   : > { %v526_v57 = vadd.f32 %v1278_v47, %v525_v50  ;;  %v653_v59 = vadd.f32 %v652_v49, %v564_v54 }
 0x123   : > { %v615_v52 = vadd.f32 %v614_v19, %v526_v57 }
 0x125   : > { %v1049_v53 = vpack.c.bf16 %v615_v52, %v613_v51 }
 0x126   : > { %v565_v55 = vpop.f32.mrf.mxu2 }
 0x127   : > { %1097 = vst [vmem:[%s1288_s16 + $0x38] sm:$0xff] %v1049_v53   ;;  %v566_v56 = vadd.f32 %v1278_v47, %v565_v55 }
 0x129   : > { %v655_v60 = vadd.f32 %v654_v58, %v566_v56 }
 0x12b   : > { %v1089_v61 = vpack.c.bf16 %v655_v60, %v653_v59 }
 0x12d   : > { %1105 = vst [vmem:[%s1288_s16 + $0x78] sm:$0xff] %v1089_v61  }
 0x12e PF: > { %s13_s12 = sadd.s32 1, %s1130_s12  }
 0x12f   : > { %p10_p4 = scmp.ge.s32.totalorder %s13_s12, 4  }
 0x131   :  { %12 = sbr.rel (!%p10_p4) target bundleno = 1 (0x1), region = 62 }

// kernel: _lambda_.14
= control target key start
LH: loop header
LB: loop body
LE: loop exit
PB: predicated region body
PF: predicated region fallthrough
CT: control target
= control target key end

     0   :  { %s1849_s15 = smov 0   ;;  %s2172_s0 = inlined_call_operand.vmem [shape: bf16[512,288], index: 0, kind: input, shape index: {}]   ;;  %s2173_s1 = inlined_call_operand.vmem [shape: bf16[288,128], index: 1, kind: input, shape index: {}]   ;;  %s2174_s2 = inlined_call_operand.vmem [shape: f32[1,128], index: 2, kind: input, shape index: {}]   ;;  %s2175_s3 = inlined_call_operand.vmem [shape: bf16[512,128], index: 3, kind: input, shape index: {}]   ;;  %s2176_s4 = inlined_call_operand.vmem [shape: bf16[512,128], index: 4, kind: output, shape index: {}]  }
   0x1 LB: > { %s1255_s16 = sadd.s32 4294967295, %s1822_s15   ;;  %p1259_p0 = scmp.ge.s32.totalorder %s1822_s15, 1  ;;  %s1822_s15 = sphi %s1849_s15, %s14_s15  }
   0x2   : > { %p175_p1 = scmp.lt.s32.totalorder %s1822_s15, 3 }
   0x4   : > { %p176_p2 = pnand %p1259_p0, %p175_p1 }
   0x5   : > { %s1260_s23 = sshll.u32 (!%p176_p2), %s1255_s16, 5 }
   0x6   : > { %179 = sbr.rel (%p176_p2) target bundleno = 378 (0x17a), region = 36  ;;  %p208_p3 = scmp.lt.s32.totalorder (!%p176_p2), %s1260_s23, 63 }
   0xb   : > { %v1603_v0 = vld [vmem:[%s2173_s1 + $0x38] sm:$0xff]  ;;  %v1863_v1 = vld [vmem:[%s2173_s1 + $0x88] sm:$0xff]  ;;  %v1602_v3 = vld [vmem:[%s2173_s1 + $0x30] sm:$0xff]  ;;  %s2178_s23 = smov (!%p208_p3, %s1260_s23), 63  ;;  %vm679_vm0 = vcmask 261120  }
   0xc   : > { %v1868_v2 = vld [vmem:[%s2173_s1 + $0x78] sm:$0xff]  ;;  %728 = vmatpush.bf16.msra.mxu0 %v1603_v0  ;;  %1788 = vmatpush.bf16.msra.mxu3 %v1603_v0  ;;  %v1878_v4 = vld [vmem:[%s2173_s1 + $0x80] sm:$0xff]  ;;  %v1610_v5 = vld [vmem:[%s2173_s1 + $0x70] sm:$0xff]  ;;  %s1806_s30 = smul.u32 12, %s2178_s23  ;;  %s1263_s11 = sshll.u32 %s2178_s23, 2 }
   0xd   : > { %912 = vmatpush.bf16.msra.mxu2 %v1863_v1  ;;  %817 = vmatpush.bf16.msra.mxu1 %v1868_v2  ;;  %v1601_v6 = vld [vmem:[%s2173_s1 + $0x28] sm:$0xff]  ;;  %v1600_v11 = vld [vmem:[%s2173_s1 + $0x20] sm:$0xff]  ;;  %v1599_v13 = vld [vmem:[%s2173_s1 + $0x18] sm:$0xff]  ;;  %s2027_s14 = scalar_lea.vmem %s2175_s3, %s1263_s11  ;;  %s2051_s18 = scalar_lea.vmem %s2176_s4, %s1263_s11 }
   0xe   : > { %s1893_s9 = scalar_lea.vmem %s2172_s0, %s1806_s30  ;;  %v1609_v7 = vld [vmem:[%s2173_s1 + $0x68] sm:$0xff]  ;;  %v1608_v12 = vld [vmem:[%s2173_s1 + $0x60] sm:$0xff]  ;;  %v1607_v14 = vld [vmem:[%s2173_s1 + $0x58] sm:$0xff] }
   0xf   : > { %v1276_v8 = vld [vmem:[%s1893_s9 + $0x8] sm:$0xf]  ;;  %v1550_v9 = vld [vmem:[%s1893_s9 + $0x10] sm:$0xf0]  ;;  %v1288_v17 = vld [vmem:[%s1893_s9 + $0x20] sm:$0xf] }
  0x10   : > { %729 = vmatpush.bf16.msra.mxu0 %v1602_v3  ;;  %1789 = vmatpush.bf16.msra.mxu3 %v1602_v3  ;;  %v1277_v10 = vor.u32 %v1550_v9, %v1276_v8  ;;  %v1598_v15 = vld [vmem:[%s2173_s1 + $0x10] sm:$0xff]  ;;  %v1553_v18 = vld [vmem:[%s1893_s9 + $0x28] sm:$0xf0]  ;;  %v1596_v22 = vld [vmem:[%s2173_s1] sm:$0xff] }
  0x11   : > { %913 = vmatpush.bf16.msra.mxu2 %v1878_v4  ;;  %818 = vmatpush.bf16.msra.mxu1 %v1610_v5  ;;  %v1606_v16 = vld [vmem:[%s2173_s1 + $0x50] sm:$0xff]  ;;  %v1597_v19 = vld [vmem:[%s2173_s1 + $0x8] sm:$0xff]  ;;  %v1289_v20 = vor.u32 %v1553_v18, %v1288_v17  ;;  %v1268_v23 = vld [vmem:[%s1893_s9] sm:$0xf] }
  0x12   : > { %v1605_v21 = vld [vmem:[%s2173_s1 + $0x48] sm:$0xff]  ;;  %v1412_v25 = vld [vmem:[%s1893_s9 + $0x120] sm:$0xf]  ;;  %v1548_v28 = vld [vmem:[%s1893_s9 + $0x4] sm:$0xf] }
  0x13   : > { %v1549_v24 = vld [vmem:[%s1893_s9 + $0x8] sm:$0xf0]  ;;  %v1604_v27 = vld [vmem:[%s2173_s1 + $0x40] sm:$0xff]  ;;  %v1270_v29 = vld [vmem:[%s1893_s9 + $0xc] sm:$0xf0] }
  0x14   : > { %730 = vmatpush.bf16.msra.mxu0 %v1601_v6  ;;  %1790 = vmatpush.bf16.msra.mxu3 %v1601_v6  ;;  %v1585_v26 = vld [vmem:[%s1893_s9 + $0x128] sm:$0xf0]  ;;  %v1269_v30 = vor.u32 %v1549_v24, %v1268_v23  ;;  %v1273_v32 = vor.u32 %v1548_v28, %v1270_v29  ;;  %v1300_v33 = vld [vmem:[%s1893_s9 + $0x38] sm:$0xf]  ;;  %v1556_v34 = vld [vmem:[%s1893_s9 + $0x40] sm:$0xf0] }
  0x15   : > { %1530 = vmatmul.msk.bf16.vlgmr.msra.gmra.mxu2 %vm679_vm0, %v1277_v10  ;;  %819 = vmatpush.bf16.msra.mxu1 %v1609_v7  ;;  %v1413_v31 = vor.u32 %v1585_v26, %v1412_v25  ;;  %v1301_v35 = vor.u32 %v1556_v34, %v1300_v33  ;;  %v1280_v36 = vld [vmem:[%s1893_s9 + $0x18] sm:$0xf]  ;;  %v1552_v37 = vld [vmem:[%s1893_s9 + $0x20] sm:$0xf0]  ;;  %v1551_v40 = vld [vmem:[%s1893_s9 + $0x1c] sm:$0xf] }
  0x16   : > { %v1424_v38 = vld [vmem:[%s1893_s9 + $0x138] sm:$0xf]  ;;  %v1588_v39 = vld [vmem:[%s1893_s9 + $0x140] sm:$0xf0]  ;;  %v1282_v41 = vld [vmem:[%s1893_s9 + $0x24] sm:$0xf0]  ;;  %v1281_v42 = vor.u32 %v1552_v37, %v1280_v36 }
  0x17   : > { %v1425_v43 = vor.u32 %v1588_v39, %v1424_v38  ;;  %v1285_v44 = vor.u32 %v1551_v40, %v1282_v41  ;;  %v1312_v45 = vld [vmem:[%s1893_s9 + $0x50] sm:$0xf]  ;;  %v1559_v46 = vld [vmem:[%s1893_s9 + $0x58] sm:$0xf0]  ;;  %v1554_v52 = vld [vmem:[%s1893_s9 + $0x34] sm:$0xf] }
  0x18   : > { %731 = vmatpush.bf16.msra.mxu0 %v1600_v11  ;;  %1791 = vmatpush.bf16.msra.mxu3 %v1600_v11  ;;  %v1313_v47 = vor.u32 %v1559_v46, %v1312_v45  ;;  %v1292_v48 = vld [vmem:[%s1893_s9 + $0x30] sm:$0xf]  ;;  %v1555_v49 = vld [vmem:[%s1893_s9 + $0x38] sm:$0xf0]  ;;  %v1294_v53 = vld [vmem:[%s1893_s9 + $0x3c] sm:$0xf0] }
  0x19   : > { %820 = vmatpush.bf16.msra.mxu1 %v1608_v12  ;;  %v1436_v50 = vld [vmem:[%s1893_s9 + $0x150] sm:$0xf]  ;;  %v1591_v51 = vld [vmem:[%s1893_s9 + $0x158] sm:$0xf0]  ;;  %v1293_v54 = vor.u32 %v1555_v49, %v1292_v48  ;;  %v1297_v56 = vor.u32 %v1554_v52, %v1294_v53  ;;  %v1324_v57 = vld [vmem:[%s1893_s9 + $0x68] sm:$0xf] }
  0x1a   : > { %v1437_v55 = vor.u32 %v1591_v51, %v1436_v50  ;;  %v1562_v58 = vld [vmem:[%s1893_s9 + $0x70] sm:$0xf0]  ;;  %v1304_v60 = vld [vmem:[%s1893_s9 + $0x48] sm:$0xf]  ;;  %v1557_v0 = vld [vmem:[%s1893_s9 + $0x4c] sm:$0xf] }
  0x1b   : > { %v1325_v59 = vor.u32 %v1562_v58, %v1324_v57  ;;  %v1558_v61 = vld [vmem:[%s1893_s9 + $0x50] sm:$0xf0]  ;;  %v1448_v62 = vld [vmem:[%s1893_s9 + $0x168] sm:$0xf]  ;;  %v1565_v6 = vld [vmem:[%s1893_s9 + $0x88] sm:$0xf0] }
  0x1c   : > { %732 = vmatpush.bf16.msra.mxu0 %v1599_v13  ;;  %1792 = vmatpush.bf16.msra.mxu3 %v1599_v13  ;;  %v1594_v63 = vld [vmem:[%s1893_s9 + $0x170] sm:$0xf0]  ;;  %v1316_v8 = vld [vmem:[%s1893_s9 + $0x60] sm:$0xf]  ;;  %v1561_v9 = vld [vmem:[%s1893_s9 + $0x68] sm:$0xf0] }
  0x1d   : > { %821 = vmatpush.bf16.msra.mxu1 %v1607_v14  ;;  %v1449_v3 = vor.u32 %v1594_v63, %v1448_v62  ;;  %v1584_v10 = vld [vmem:[%s1893_s9 + $0x124] sm:$0xf]  ;;  %v1414_v11 = vld [vmem:[%s1893_s9 + $0x12c] sm:$0xf0]  ;;  %v1348_v17 = vld [vmem:[%s1893_s9 + $0x98] sm:$0xf] }
  0x1e   : > { %v1318_v13 = vld [vmem:[%s1893_s9 + $0x6c] sm:$0xf0]  ;;  %v1568_v18 = vld [vmem:[%s1893_s9 + $0xa0] sm:$0xf0]  ;;  %v1426_v23 = vld [vmem:[%s1893_s9 + $0x144] sm:$0xf0] }
  0x1f   : > { %v1563_v24 = vld [vmem:[%s1893_s9 + $0x7c] sm:$0xf]  ;;  %v1330_v25 = vld [vmem:[%s1893_s9 + $0x84] sm:$0xf0]  ;;  %v1360_v29 = vld [vmem:[%s1893_s9 + $0xb0] sm:$0xf] }
  0x20   : > { %733 = vmatpush.bf16.msra.mxu0 %v1598_v15  ;;  %1793 = vmatpush.bf16.msra.mxu3 %v1598_v15  ;;  %v1417_v15 = vor.u32 %v1584_v10, %v1414_v11  ;;  %v1333_v28 = vor.u32 %v1563_v24, %v1330_v25  ;;  %v1567_v33 = vld [vmem:[%s1893_s9 + $0x98] sm:$0xf0]  ;;  %v1590_v34 = vld [vmem:[%s1893_s9 + $0x154] sm:$0xf]  ;;  %v1342_v37 = vld [vmem:[%s1893_s9 + $0x9c] sm:$0xf0] }
  0x21   : > { %822 = vmatpush.bf16.msra.mxu1 %v1606_v16  ;;  %v1566_v36 = vld [vmem:[%s1893_s9 + $0x94] sm:$0xf]  ;;  %v1372_v41 = vld [vmem:[%s1893_s9 + $0xc8] sm:$0xf]  ;;  %v1593_v46 = vld [vmem:[%s1893_s9 + $0x16c] sm:$0xf] }
  0x22   : > { %v1345_v40 = vor.u32 %v1566_v36, %v1342_v37  ;;  %v1570_v45 = vld [vmem:[%s1893_s9 + $0xb0] sm:$0xf0]  ;;  %v1569_v48 = vld [vmem:[%s1893_s9 + $0xac] sm:$0xf]  ;;  %v1354_v49 = vld [vmem:[%s1893_s9 + $0xb4] sm:$0xf0] }
  0x23   : > { %v1357_v53 = vor.u32 %v1569_v48, %v1354_v49  ;;  %v1364_v58 = vld [vmem:[%s1893_s9 + $0xc0] sm:$0xf]  ;;  %v1572_v63 = vld [vmem:[%s1893_s9 + $0xc4] sm:$0xf]  ;;  %v1396_v11 = vld [vmem:[%s1893_s9 + $0xf8] sm:$0xf] }
  0x24   : > { %734 = vmatpush.bf16.msra.mxu0 %v1597_v19  ;;  %1794 = vmatpush.bf16.msra.mxu3 %v1597_v19  ;;  %v1349_v19 = vor.u32 %v1568_v18, %v1348_v17  ;;  %v2016_v62 = vld [vmem:[%s2174_s2] ss:$0 sm:$0xff]  ;;  %v1456_v24 = vld [vmem:[%s1893_s9 + $0x170] sm:$0xf]  ;;  %v1595_v25 = vld [vmem:[%s1893_s9 + $0x178] sm:$0xf0] }
  0x25   : > { %1531 = vmatmul.msk.bf16.gmra.mxu2 %vm679_vm0, %v1289_v20  ;;  %823 = vmatpush.bf16.msra.mxu1 %v1605_v21  ;;  %v1328_v20 = vld [vmem:[%s1893_s9 + $0x78] sm:$0xf] }
  0x28   : > { %735 = vmatpush.bf16.msra.mxu0 %v1596_v22  ;;  %1795 = vmatpush.bf16.msra.mxu3 %v1596_v22  ;;  %v1587_v22 = vld [vmem:[%s1893_s9 + $0x13c] sm:$0xf] }
  0x29   : > { %824 = vmatpush.bf16.msra.mxu1 %v1604_v27 }
  0x2b   : > { %736 = vmatmul.bf16.vlgmr.msra.gmra.mxu0 %v1269_v30  ;;  %796 = vmatmul.bf16.vlgmr.msra.gmra.mxu3 %v1413_v31  ;;  %v1571_v30 = vld [vmem:[%s1893_s9 + $0xb8] sm:$0xf0] }
  0x2c   : > { %1796 = vmatpush.bf16.msrb.mxu3 %v1868_v2  ;;  %825 = vmatmul.bf16.vlgmr.msra.gmra.mxu1 %v1273_v32  ;;  %v1305_v2 = vor.u32 %v1558_v61, %v1304_v60  ;;  %v1361_v31 = vor.u32 %v1571_v30, %v1360_v29  ;;  %v1340_v32 = vld [vmem:[%s1893_s9 + $0x90] sm:$0xf]  ;;  %v1444_v60 = vld [vmem:[%s1893_s9 + $0x158] sm:$0xf]  ;;  %v1592_v61 = vld [vmem:[%s1893_s9 + $0x160] sm:$0xf0] }
  0x2d   : > { %v1341_v38 = vor.u32 %v1567_v33, %v1340_v32  ;;  %v1378_v29 = vld [vmem:[%s1893_s9 + $0xe4] sm:$0xf0]  ;;  %v1457_v33 = vor.u32 %v1595_v25, %v1456_v24 }
  0x2e   : > { %v1400_v25 = vld [vmem:[%s1893_s9 + $0x108] sm:$0xf] }
  0x30   : > { %1797 = vmatpush.bf16.msrb.mxu3 %v1610_v5  ;;  %v1336_v5 = vld [vmem:[%s1893_s9 + $0x80] sm:$0xf] }
  0x34   : > { %1798 = vmatpush.bf16.msrb.mxu3 %v1609_v7  ;;  %v1337_v7 = vor.u32 %v1565_v6, %v1336_v5 }
  0x35   : > { %1532 = vmatmul.msk.bf16.gmra.mxu2 %vm679_vm0, %v1301_v35  ;;  %v1438_v35 = vld [vmem:[%s1893_s9 + $0x15c] sm:$0xf0] }
  0x36   : > { %v1441_v39 = vor.u32 %v1590_v34, %v1438_v35 }
  0x38   : > { %1799 = vmatpush.bf16.msrb.mxu3 %v1608_v12  ;;  %v1560_v12 = vld [vmem:[%s1893_s9 + $0x64] sm:$0xf] }
  0x3b   : > { %741 = vmatmul.bf16.gmra.mxu0 %v1281_v42  ;;  %801 = vmatmul.bf16.gmra.mxu3 %v1425_v43  ;;  %v1574_v42 = vld [vmem:[%s1893_s9 + $0xd0] sm:$0xf0] }
  0x3c   : > { %1800 = vmatpush.bf16.msrb.mxu3 %v1607_v14  ;;  %830 = vmatmul.bf16.gmra.mxu1 %v1285_v44  ;;  %v1317_v14 = vor.u32 %v1561_v9, %v1316_v8  ;;  %v1373_v43 = vor.u32 %v1574_v42, %v1372_v41  ;;  %v1352_v44 = vld [vmem:[%s1893_s9 + $0xa8] sm:$0xf]  ;;  %v1615_v9 = vld [vmem:[%s2027_s14] sm:$0xff]  }
  0x3d   : > { %v1353_v50 = vor.u32 %v1570_v45, %v1352_v44  ;;  %v1408_v45 = vld [vmem:[%s1893_s9 + $0x110] sm:$0xf] }
  0x40   : > { %1801 = vmatpush.bf16.msrb.mxu3 %v1606_v16  ;;  %v1321_v16 = vor.u32 %v1560_v12, %v1318_v13  ;;  %v1580_v12 = vld [vmem:[%s1893_s9 + $0x100] sm:$0xf0] }
  0x44   : > { %1802 = vmatpush.bf16.msrb.mxu3 %v1605_v21  ;;  %v1564_v21 = vld [vmem:[%s1893_s9 + $0x80] sm:$0xf0] }
  0x45   : > { %1533 = vmatmul.msk.bf16.gmra.mxu2 %vm679_vm0, %v1313_v47  ;;  %v1329_v26 = vor.u32 %v1564_v21, %v1328_v20  ;;  %v1450_v47 = vld [vmem:[%s1893_s9 + $0x174] sm:$0xf0]  ;;  %v1617_v21 = vunpack.c.h.bf16 %v1615_v9 }
  0x46   : > { %v1453_v51 = vor.u32 %v1593_v46, %v1450_v47  ;;  %v1583_v46 = vld [vmem:[%s1893_s9 + $0x118] sm:$0xf0] }
  0x48   : > { %1803 = vmatpush.bf16.msrb.mxu3 %v1604_v27  ;;  %v1429_v27 = vor.u32 %v1587_v22, %v1426_v23  ;;  %v1376_v22 = vld [vmem:[%s1893_s9 + $0xd8] sm:$0xf]  ;;  %v1576_v23 = vld [vmem:[%s1893_s9 + $0xe0] sm:$0xf0] }
  0x49   : > { %v1377_v32 = vor.u32 %v1576_v23, %v1376_v22 }
  0x4b   : > { %746 = vmatmul.bf16.gmra.mxu0 %v1293_v54  ;;  %806 = vmatmul.bf16.gmra.mxu3 %v1437_v55  ;;  %v1384_v54 = vld [vmem:[%s1893_s9 + $0xe0] sm:$0xf]  ;;  %v1577_v55 = vld [vmem:[%s1893_s9 + $0xe8] sm:$0xf0] }
  0x4c   : > { %1804 = vmatpush.bf16.msra.mxu3 %v1863_v1  ;;  %835 = vmatmul.bf16.gmra.mxu1 %v1297_v56  ;;  %v1306_v1 = vld [vmem:[%s1893_s9 + $0x54] sm:$0xf0]  ;;  %v1385_v57 = vor.u32 %v1577_v55, %v1384_v54 }
  0x50   : > { %1805 = vmatpush.bf16.msra.mxu3 %v1878_v4  ;;  %v1309_v4 = vor.u32 %v1557_v0, %v1306_v1  ;;  %v1366_v0 = vld [vmem:[%s1893_s9 + $0xcc] sm:$0xf0] }
  0x51   : > { %v1369_v5 = vor.u32 %v1572_v63, %v1366_v0 }
  0x55   : > { %1534 = vmatmul.msk.bf16.gmra.mxu2 %vm679_vm0, %v1325_v59  ;;  %v1573_v59 = vld [vmem:[%s1893_s9 + $0xc8] sm:$0xf0] }
  0x56   : > { %v1365_v1 = vor.u32 %v1573_v59, %v1364_v58 }
  0x5b   : > { %751 = vmatmul.bf16.gmra.mxu0 %v1305_v2  ;;  %811 = vmatmul.bf16.gmra.mxu3 %v1449_v3  ;;  %v1445_v2 = vor.u32 %v1592_v61, %v1444_v60  ;;  %v1578_v60 = vld [vmem:[%s1893_s9 + $0xf4] sm:$0xf]  ;;  %v1390_v61 = vld [vmem:[%s1893_s9 + $0xfc] sm:$0xf0] }
  0x5c   : > { %840 = vmatmul.bf16.gmra.mxu1 %v1309_v4 }
  0x65   : > { %1535 = vmatmul.msk.bf16.gmra.mxu2 %vm679_vm0, %v1337_v7 }
  0x6b   : > { %756 = vmatmul.bf16.gmra.mxu0 %v1317_v14  ;;  %885 = vmatmul.bf16.vlgmr.msrb.gmra.mxu3 %v1417_v15 }
  0x6c   : > { %845 = vmatmul.bf16.gmra.mxu1 %v1321_v16  ;;  %v1616_v16 = vunpack.c.l.bf16 %v1615_v9 }
  0x75   : > { %1536 = vmatmul.msk.bf16.gmra.mxu2 %vm679_vm0, %v1349_v19  ;;  %v1397_v19 = vor.u32 %v1580_v12, %v1396_v11  ;;  %v1759_v12 = vld [vmem:[%s2027_s14 + $0x10] sm:$0xff]  }
  0x76   : > { %v1625_v24 = vunpack.c.h.bf16 %v1759_v12 }
  0x7b   : > { %761 = vmatmul.bf16.gmra.mxu0 %v1329_v26  ;;  %890 = vmatmul.bf16.gmra.mxu3 %v1429_v27 }
  0x7c   : > { %850 = vmatmul.bf16.gmra.mxu1 %v1333_v28  ;;  %v1575_v28 = vld [vmem:[%s1893_s9 + $0xdc] sm:$0xf] }
  0x7d   : > { %v1381_v36 = vor.u32 %v1575_v28, %v1378_v29  ;;  %v1581_v29 = vld [vmem:[%s1893_s9 + $0x10c] sm:$0xf] }
  0x85   : > { %1537 = vmatmul.msk.bf16.gmra.mxu2 %vm679_vm0, %v1361_v31 }
  0x8b   : > { %766 = vmatmul.bf16.gmra.mxu0 %v1341_v38  ;;  %895 = vmatmul.bf16.gmra.mxu3 %v1441_v39 }
  0x8c   : > { %855 = vmatmul.bf16.gmra.mxu1 %v1345_v40 }
  0x95   : > { %1538 = vmatmul.msk.bf16.gmra.mxu2 %vm679_vm0, %v1373_v43  ;;  %v1758_v43 = vld [vmem:[%s2027_s14 + $0x8] sm:$0xff]  }
  0x96   : > { %v1621_v55 = vunpack.c.h.bf16 %v1758_v43 }
  0x98   : > { %v915_v52 = vpop.f32.mrf.mxu2 }
  0x9b   : > { %771 = vmatmul.bf16.gmra.mxu0 %v1353_v50  ;;  %900 = vmatmul.bf16.gmra.mxu3 %v1453_v51  ;;  %v1620_v50 = vunpack.c.l.bf16 %v1758_v43 }
  0x9c   : > { %860 = vmatmul.bf16.gmra.mxu1 %v1357_v53  ;;  %v1409_v53 = vor.u32 %v1583_v46, %v1408_v45  ;;  %v1760_v45 = vld [vmem:[%s2027_s14 + $0x18] sm:$0xff]  }
  0xa0   : > { %v917_v56 = vpop.f32.mrf.mxu2 }
  0xa5   : > { %1539 = vmatmul.msk.bf16.gmra.mxu2 %vm679_vm0, %v1385_v57  ;;  %v1579_v57 = vld [vmem:[%s1893_s9 + $0xf8] sm:$0xf0] }
  0xa8   : > { %v920_v3 = vpop.f32.mrf.mxu2  ;;  %v737_v4 = vpop.f32.mrf.mxu0 }
  0xa9   : > { %v738_v6 = vadd.f32 %v2016_v62, %v737_v4  ;;  %v826_v7 = vpop.f32.mrf.mxu1  ;;  %v1393_v4 = vor.u32 %v1578_v60, %v1390_v61 }
  0xab   : > { %776 = vmatmul.bf16.gmra.mxu0 %v1365_v1  ;;  %1544 = vmatmul.msk.bf16.vlgmr.msra.gmra.mxu3 %vm679_vm0, %v1445_v2  ;;  %v827_v8 = vadd.f32 %v826_v7, %v738_v6 }
  0xac   : > { %865 = vmatmul.bf16.gmra.mxu1 %v1369_v5 }
  0xad   : > { %v916_v15 = vadd.f32 %v915_v52, %v827_v8 }
  0xae   : > { %v2031_v10 = vpop.f32.mrf.mxu3 }
  0xaf   : > { %v1059_v26 = vadd.f32 %v1616_v16, %v916_v15  ;;  %v1586_v15 = vld [vmem:[%s1893_s9 + $0x130] sm:$0xf0] }
  0xb0   : > { %v922_v13 = vpop.f32.mrf.mxu2  ;;  %v739_v14 = vpop.f32.mrf.mxu0 }
  0xb1   : > { %v740_v17 = vadd.f32 %v2016_v62, %v739_v14  ;;  %v828_v18 = vpop.f32.mrf.mxu1  ;;  %v1091_v37 = vmax.f32 %v1059_v26, 0.0  ;;  %v1420_v14 = vld [vmem:[%s1893_s9 + $0x128] sm:$0xf]  ;;  %v1582_v26 = vld [vmem:[%s1893_s9 + $0x110] sm:$0xf0] }
  0xb2   : > { %v1421_v22 = vor.u32 %v1586_v15, %v1420_v14 }
  0xb3   : > { %v829_v20 = vadd.f32 %v828_v18, %v740_v17 }
  0xb5   : > { %v918_v27 = vadd.f32 %v917_v56, %v829_v20  ;;  %1540 = vmatmul.msk.bf16.gmra.mxu2 %vm679_vm0, %v1397_v19  ;;  %v1388_v56 = vld [vmem:[%s1893_s9 + $0xf0] sm:$0xf]  ;;  %v1624_v19 = vunpack.c.l.bf16 %v1759_v12 }
  0xb6   : > { %v2043_v30 = vpop.f32.mrf.mxu3  ;;  %v1389_v1 = vor.u32 %v1579_v57, %v1388_v56  ;;  %v1629_v57 = vunpack.c.h.bf16 %v1760_v45 }
  0xb7   : > { %v1060_v31 = vadd.f32 %v1617_v21, %v918_v27 }
  0xb8   : > { %v925_v34 = vpop.f32.mrf.mxu2  ;;  %v742_v35 = vpop.f32.mrf.mxu0 }
  0xb9   : > { %v1092_v38 = vmax.f32 %v1060_v31, 0.0  ;;  %v743_v39 = vadd.f32 %v2016_v62, %v742_v35  ;;  %v831_v40 = vpop.f32.mrf.mxu1  ;;  %v1402_v31 = vld [vmem:[%s1893_s9 + $0x114] sm:$0xf0] }
  0xbb   : > { %v1681_v41 = vpack.c.bf16 %v1092_v38, %v1091_v37  ;;  %781 = vmatmul.bf16.gmra.mxu0 %v1377_v32  ;;  %1545 = vmatmul.msk.bf16.gmra.mxu3 %vm679_vm0, %v1457_v33  ;;  %v832_v42 = vadd.f32 %v831_v40, %v743_v39  ;;  %v1405_v37 = vor.u32 %v1581_v29, %v1402_v31 }
  0xbc   : > { %870 = vmatmul.bf16.gmra.mxu1 %v1381_v36 }
  0xbd   : > { %1682 = vst [vmem:[%s2051_s18] sm:$0xff] %v1681_v41   ;;  %v921_v49 = vadd.f32 %v920_v3, %v832_v42 }
  0xbe   : > { %v2056_v44 = vpop.f32.mrf.mxu3 }
  0xbf   : > { %v1061_v58 = vadd.f32 %v1620_v50, %v921_v49 }
  0xc0   : > { %v927_v47 = vpop.f32.mrf.mxu2  ;;  %v744_v48 = vpop.f32.mrf.mxu0 }
  0xc1   : > { %v745_v51 = vadd.f32 %v2016_v62, %v744_v48  ;;  %v833_v52 = vpop.f32.mrf.mxu1  ;;  %v1093_v5 = vmax.f32 %v1061_v58, 0.0  ;;  %v1589_v48 = vld [vmem:[%s1893_s9 + $0x148] sm:$0xf0] }
  0xc3   : > { %v834_v54 = vadd.f32 %v833_v52, %v745_v51  ;;  %v1628_v52 = vunpack.c.l.bf16 %v1760_v45 }
  0xc5   : > { %v923_v59 = vadd.f32 %v922_v13, %v834_v54  ;;  %1541 = vmatmul.msk.bf16.gmra.mxu2 %vm679_vm0, %v1409_v53 }
  0xc6   : > { %v2066_v63 = vpop.f32.mrf.mxu3 }
  0xc7   : > { %v1062_v0 = vadd.f32 %v1621_v55, %v923_v59 }
  0xc8   : > { %v930_v2 = vpop.f32.mrf.mxu2  ;;  %v747_v3 = vpop.f32.mrf.mxu0 }
  0xc9   : > { %v1094_v6 = vmax.f32 %v1062_v0, 0.0  ;;  %v748_v7 = vadd.f32 %v2016_v62, %v747_v3  ;;  %v836_v8 = vpop.f32.mrf.mxu1 }
  0xcb   : > { %v1686_v9 = vpack.c.bf16 %v1094_v6, %v1093_v5  ;;  %786 = vmatmul.bf16.gmra.mxu0 %v1389_v1  ;;  %v837_v11 = vadd.f32 %v836_v8, %v748_v7  ;;  %v798_v7 = vadd.f32 %v2016_v62, %v2031_v10 }
  0xcc   : > { %875 = vmatmul.bf16.gmra.mxu1 %v1393_v4 }
  0xcd   : > { %1773 = vst [vmem:[%s2051_s18 + $0x8] sm:$0xff] %v1686_v9   ;;  %v926_v18 = vadd.f32 %v925_v34, %v837_v11  ;;  %v1401_v34 = vor.u32 %v1582_v26, %v1400_v25  ;;  %v1761_v9 = vld [vmem:[%s2027_s14 + $0x20] sm:$0xff]  }
  0xce   : > { %v2071_v13 = vpop.f32.mrf.mxu3 }
  0xcf   : > { %v1063_v27 = vadd.f32 %v1624_v19, %v926_v18 }
  0xd0   : > { %v932_v16 = vpop.f32.mrf.mxu2  ;;  %v749_v17 = vpop.f32.mrf.mxu0 }
  0xd1   : > { %v750_v20 = vadd.f32 %v2016_v62, %v749_v17  ;;  %v838_v21 = vpop.f32.mrf.mxu1  ;;  %v1095_v38 = vmax.f32 %v1063_v27, 0.0  ;;  %v1632_v17 = vunpack.c.l.bf16 %v1761_v9 }
  0xd3   : > { %v839_v23 = vadd.f32 %v838_v21, %v750_v20  ;;  %v1633_v21 = vunpack.c.h.bf16 %v1761_v9 }
  0xd5   : > { %v928_v28 = vadd.f32 %v927_v47, %v839_v23  ;;  %1542 = vmatmul.msk.bf16.gmra.mxu2 %vm679_vm0, %v1421_v22  ;;  %v1432_v47 = vld [vmem:[%s1893_s9 + $0x140] sm:$0xf]  ;;  %v800_v22 = vadd.f32 %v2016_v62, %v2043_v30 }
  0xd6   : > { %v2081_v32 = vpop.f32.mrf.mxu3  ;;  %v1433_v55 = vor.u32 %v1589_v48, %v1432_v47 }
  0xd7   : > { %v1064_v33 = vadd.f32 %v1625_v24, %v928_v28 }
  0xd8   : > { %v935_v35 = vpop.f32.mrf.mxu2  ;;  %v752_v36 = vpop.f32.mrf.mxu0 }
  0xd9   : > { %v1096_v39 = vmax.f32 %v1064_v33, 0.0  ;;  %v753_v40 = vadd.f32 %v2016_v62, %v752_v36  ;;  %v841_v41 = vpop.f32.mrf.mxu1  ;;  %v803_v36 = vadd.f32 %v2016_v62, %v2056_v44  ;;  %v805_v44 = vadd.f32 %v2016_v62, %v2066_v63 }
  0xdb   : > { %v1691_v42 = vpack.c.bf16 %v1096_v39, %v1095_v38  ;;  %791 = vmatmul.bf16.gmra.mxu0 %v1401_v34  ;;  %v842_v43 = vadd.f32 %v841_v41, %v753_v40 }
  0xdc   : > { %880 = vmatmul.bf16.gmra.mxu1 %v1405_v37  ;;  %v1762_v37 = vld [vmem:[%s2027_s14 + $0x28] sm:$0xff]  }
  0xdd   : > { %1774 = vst [vmem:[%s2051_s18 + $0x10] sm:$0xff] %v1691_v42   ;;  %v931_v51 = vadd.f32 %v930_v2, %v842_v43  ;;  %v1636_v43 = vunpack.c.l.bf16 %v1762_v37 }
  0xde   : > { %v2086_v46 = vpop.f32.mrf.mxu3 }
  0xdf   : > { %v1065_v58 = vadd.f32 %v1628_v52, %v931_v51 }
  0xe0   : > { %v937_v49 = vpop.f32.mrf.mxu2  ;;  %v754_v50 = vpop.f32.mrf.mxu0 }
  0xe1   : > { %v755_v53 = vadd.f32 %v2016_v62, %v754_v50  ;;  %v843_v54 = vpop.f32.mrf.mxu1  ;;  %v1097_v3 = vmax.f32 %v1065_v58, 0.0 }
  0xe3   : > { %v844_v56 = vadd.f32 %v843_v54, %v755_v53 }
  0xe5   : > { %v933_v59 = vadd.f32 %v932_v16, %v844_v56  ;;  %1543 = vmatmul.msk.bf16.gmra.mxu2 %vm679_vm0, %v1433_v55 }
  0xe6   : > { %v2092_v60 = vpop.f32.mrf.mxu3 }
  0xe7   : > { %v1066_v61 = vadd.f32 %v1629_v57, %v933_v59 }
  0xe8   : > { %v940_v0 = vpop.f32.mrf.mxu2  ;;  %v757_v1 = vpop.f32.mrf.mxu0 }
  0xe9   : > { %v1098_v2 = vmax.f32 %v1066_v61, 0.0  ;;  %v758_v4 = vadd.f32 %v2016_v62, %v757_v1  ;;  %v846_v5 = vpop.f32.mrf.mxu1 }
  0xeb   : > { %v1696_v6 = vpack.c.bf16 %v1098_v2, %v1097_v3  ;;  %v847_v8 = vadd.f32 %v846_v5, %v758_v4  ;;  %v1763_v3 = vld [vmem:[%s2027_s14 + $0x30] sm:$0xff]  }
  0xed   : > { %1775 = vst [vmem:[%s2051_s18 + $0x18] sm:$0xff] %v1696_v6   ;;  %v936_v16 = vadd.f32 %v935_v35, %v847_v8  ;;  %v1640_v6 = vunpack.c.l.bf16 %v1763_v3 }
  0xee   : > { %v886_v11 = vpop.f32.mrf.mxu3 }
  0xef   : > { %v2099_v12 = vadd.f32 %v886_v11, %v798_v7  ;;  %v1067_v10 = vadd.f32 %v1632_v17, %v936_v16  ;;  %v1641_v11 = vunpack.c.h.bf16 %v1763_v3  ;;  %v810_v3 = vadd.f32 %v2016_v62, %v2081_v32 }
  0xf0   : > { %v942_v14 = vpop.f32.mrf.mxu2  ;;  %v759_v15 = vpop.f32.mrf.mxu0 }
  0xf1   : > { %v760_v18 = vadd.f32 %v2016_v62, %v759_v15  ;;  %v848_v19 = vpop.f32.mrf.mxu1  ;;  %v1099_v29 = vmax.f32 %v1067_v10, 0.0 }
  0xf3   : > { %v849_v20 = vadd.f32 %v848_v19, %v760_v18 }
  0xf5   : > { %v938_v23 = vadd.f32 %v937_v49, %v849_v20  ;;  %v1637_v49 = vunpack.c.h.bf16 %v1762_v37 }
  0xf6   : > { %v888_v24 = vpop.f32.mrf.mxu3 }
  0xf7   : > { %v1068_v25 = vadd.f32 %v1633_v21, %v938_v23  ;;  %v2104_v26 = vadd.f32 %v888_v24, %v800_v22 }
  0xf8   : > { %v945_v27 = vpop.f32.mrf.mxu2  ;;  %v762_v28 = vpop.f32.mrf.mxu0 }
  0xf9   : > { %v1100_v31 = vmax.f32 %v1068_v25, 0.0  ;;  %v763_v33 = vadd.f32 %v2016_v62, %v762_v28  ;;  %v851_v34 = vpop.f32.mrf.mxu1  ;;  %v1764_v25 = vld [vmem:[%s2027_s14 + $0x38] sm:$0xff]  }
  0xfb   : > { %v1701_v35 = vpack.c.bf16 %v1100_v31, %v1099_v29  ;;  %v852_v30 = vadd.f32 %v851_v34, %v763_v33  ;;  %v1644_v33 = vunpack.c.l.bf16 %v1764_v25 }
  0xfd   : > { %1776 = vst [vmem:[%s2051_s18 + $0x20] sm:$0xff] %v1701_v35   ;;  %v941_v42 = vadd.f32 %v940_v0, %v852_v30  ;;  %v1645_v30 = vunpack.c.h.bf16 %v1764_v25 }
  0xfe   : > { %v891_v38 = vpop.f32.mrf.mxu3 }
  0xff   : > { %v2111_v39 = vadd.f32 %v891_v38, %v803_v36  ;;  %v1069_v50 = vadd.f32 %v1636_v43, %v941_v42 }
 0x100   : > { %v947_v40 = vpop.f32.mrf.mxu2  ;;  %v764_v41 = vpop.f32.mrf.mxu0 }
 0x101   : > { %v765_v45 = vadd.f32 %v2016_v62, %v764_v41  ;;  %v853_v47 = vpop.f32.mrf.mxu1  ;;  %v1101_v57 = vmax.f32 %v1069_v50, 0.0 }
 0x103   : > { %v854_v48 = vadd.f32 %v853_v47, %v765_v45 }
 0x105   : > { %v943_v51 = vadd.f32 %v942_v14, %v854_v48 }
 0x106   : > { %v893_v52 = vpop.f32.mrf.mxu3 }
 0x107   : > { %v1070_v53 = vadd.f32 %v1637_v49, %v943_v51  ;;  %v2116_v54 = vadd.f32 %v893_v52, %v805_v44  ;;  %v1765_v51 = vld [vmem:[%s2027_s14 + $0x40] sm:$0xff]  }
 0x108   : > { %v950_v55 = vpop.f32.mrf.mxu2  ;;  %v767_v56 = vpop.f32.mrf.mxu0 }
 0x109   : > { %v1102_v58 = vmax.f32 %v1070_v53, 0.0  ;;  %v768_v59 = vadd.f32 %v2016_v62, %v767_v56  ;;  %v856_v61 = vpop.f32.mrf.mxu1  ;;  %v808_v53 = vadd.f32 %v2016_v62, %v2071_v13 }
 0x10b   : > { %v1706_v0 = vpack.c.bf16 %v1102_v58, %v1101_v57  ;;  %v857_v1 = vadd.f32 %v856_v61, %v768_v59  ;;  %v1648_v61 = vunpack.c.l.bf16 %v1765_v51 }
 0x10d   : > { %1777 = vst [vmem:[%s2051_s18 + $0x28] sm:$0xff] %v1706_v0   ;;  %v946_v5 = vadd.f32 %v945_v27, %v857_v1 }
 0x10e   : > { %v896_v2 = vpop.f32.mrf.mxu3 }
 0x10f   : > { %v1071_v14 = vadd.f32 %v1640_v6, %v946_v5  ;;  %v897_v58 = vadd.f32 %v896_v2, %v808_v53  ;;  %v1649_v6 = vunpack.c.h.bf16 %v1765_v51 }
 0x110   : > { %v952_v4 = vpop.f32.mrf.mxu2  ;;  %v769_v63 = vpop.f32.mrf.mxu0 }
 0x111   : > { %v770_v7 = vadd.f32 %v2016_v62, %v769_v63  ;;  %v858_v8 = vpop.f32.mrf.mxu1  ;;  %v1103_v20 = vmax.f32 %v1071_v14, 0.0 }
 0x113   : > { %v859_v9 = vadd.f32 %v858_v8, %v770_v7 }
 0x115   : > { %v948_v15 = vadd.f32 %v947_v40, %v859_v9 }
 0x116   : > { %v898_v16 = vpop.f32.mrf.mxu3 }
 0x117   : > { %v1072_v17 = vadd.f32 %v1641_v11, %v948_v15  ;;  %v899_v7 = vadd.f32 %v898_v16, %v810_v3 }
 0x118   : > { %v955_v18 = vpop.f32.mrf.mxu2  ;;  %v772_v19 = vpop.f32.mrf.mxu0 }
 0x119   : > { %v1104_v21 = vmax.f32 %v1072_v17, 0.0  ;;  %v773_v22 = vadd.f32 %v2016_v62, %v772_v19  ;;  %v861_v10 = vpop.f32.mrf.mxu1 }
 0x11b   : > { %v1711_v23 = vpack.c.bf16 %v1104_v21, %v1103_v20  ;;  %v862_v24 = vadd.f32 %v861_v10, %v773_v22 }
 0x11d   : > { %1778 = vst [vmem:[%s2051_s18 + $0x30] sm:$0xff] %v1711_v23   ;;  %v951_v31 = vadd.f32 %v950_v55, %v862_v24  ;;  %v1771_v55 = vld [vmem:[%s2027_s14 + $0x70] sm:$0xff]  }
 0x11e   : > { %v2125_v27 = vpop.f32.mrf.mxu3  ;;  %v1672_v63 = vunpack.c.l.bf16 %v1771_v55  ;;  %v1673_v13 = vunpack.c.h.bf16 %v1771_v55 }
 0x11f   : > { %v1073_v37 = vadd.f32 %v1644_v33, %v951_v31  ;;  %v813_v31 = vadd.f32 %v2016_v62, %v2086_v46  ;;  %v1772_v33 = vld [vmem:[%s2027_s14 + $0x78] sm:$0xff]  }
 0x120   : > { %v957_v28 = vpop.f32.mrf.mxu2  ;;  %v774_v29 = vpop.f32.mrf.mxu0  ;;  %v1677_v51 = vunpack.c.h.bf16 %v1772_v33 }
 0x121   : > { %v775_v34 = vadd.f32 %v2016_v62, %v774_v29  ;;  %v863_v35 = vpop.f32.mrf.mxu1  ;;  %v1105_v45 = vmax.f32 %v1073_v37, 0.0 }
 0x123   : > { %v864_v36 = vadd.f32 %v863_v35, %v775_v34 }
 0x125   : > { %v953_v38 = vadd.f32 %v952_v4, %v864_v36  ;;  %v902_v36 = vadd.f32 %v2125_v27, %v813_v31 }
 0x126   : > { %v2128_v40 = vpop.f32.mrf.mxu3 }
 0x127   : > { %v1074_v41 = vadd.f32 %v1645_v30, %v953_v38 }
 0x128   : > { %v960_v42 = vpop.f32.mrf.mxu2  ;;  %v777_v43 = vpop.f32.mrf.mxu0 }
 0x129   : > { %v1106_v47 = vmax.f32 %v1074_v41, 0.0  ;;  %v778_v48 = vadd.f32 %v2016_v62, %v777_v43  ;;  %v866_v49 = vpop.f32.mrf.mxu1  ;;  %v815_v43 = vadd.f32 %v2016_v62, %v2092_v60 }
 0x12b   : > { %v1716_v44 = vpack.c.bf16 %v1106_v47, %v1105_v45  ;;  %v867_v50 = vadd.f32 %v866_v49, %v778_v48  ;;  %v1676_v47 = vunpack.c.l.bf16 %v1772_v33  ;;  %v904_v46 = vadd.f32 %v2128_v40, %v815_v43 }
 0x12d   : > { %1779 = vst [vmem:[%s2051_s18 + $0x38] sm:$0xff] %v1716_v44   ;;  %v956_v59 = vadd.f32 %v955_v18, %v867_v50 }
 0x12e   : > { %v985_v52 = vpop.f32.mrf.mxu3 }
 0x12f   : > { %v986_v4 = vadd.f32 %v985_v52, %v897_v58  ;;  %v1075_v8 = vadd.f32 %v1648_v61, %v956_v59 }
 0x130   : > { %v962_v56 = vpop.f32.mrf.mxu2  ;;  %v779_v57 = vpop.f32.mrf.mxu0 }
 0x131   : > { %v780_v0 = vadd.f32 %v2016_v62, %v779_v57  ;;  %v868_v1 = vpop.f32.mrf.mxu1  ;;  %v1087_v14 = vadd.f32 %v1672_v63, %v986_v4  ;;  %v1107_v19 = vmax.f32 %v1075_v8, 0.0  ;;  %v1767_v63 = vld [vmem:[%s2027_s14 + $0x50] sm:$0xff]  }
 0x132   : > { %v1656_v8 = vunpack.c.l.bf16 %v1767_v63 }
 0x133   : > { %v869_v5 = vadd.f32 %v868_v1, %v780_v0  ;;  %v1119_v16 = vmax.f32 %v1087_v14, 0.0  ;;  %v1657_v14 = vunpack.c.h.bf16 %v1767_v63 }
 0x135   : > { %v958_v9 = vadd.f32 %v957_v28, %v869_v5  ;;  %v1766_v28 = vld [vmem:[%s2027_s14 + $0x48] sm:$0xff]  }
 0x136   : > { %v987_v11 = vpop.f32.mrf.mxu3  ;;  %v1652_v37 = vunpack.c.l.bf16 %v1766_v28  ;;  %v1653_v49 = vunpack.c.h.bf16 %v1766_v28  ;;  %v1768_v28 = vld [vmem:[%s2027_s14 + $0x58] sm:$0xff]  }
 0x137   : > { %v1076_v2 = vadd.f32 %v1649_v6, %v958_v9  ;;  %v988_v15 = vadd.f32 %v987_v11, %v899_v7  ;;  %v1660_v31 = vunpack.c.l.bf16 %v1768_v28 }
 0x138   : > { %v965_v17 = vpop.f32.mrf.mxu2  ;;  %v782_v18 = vpop.f32.mrf.mxu0 }
 0x139   : > { %v1108_v32 = vmax.f32 %v1076_v2, 0.0  ;;  %v1088_v20 = vadd.f32 %v1673_v13, %v988_v15  ;;  %v783_v21 = vadd.f32 %v2016_v62, %v782_v18  ;;  %v871_v22 = vpop.f32.mrf.mxu1 }
 0x13b   : > { %v1721_v10 = vpack.c.bf16 %v1108_v32, %v1107_v19  ;;  %v1120_v23 = vmax.f32 %v1088_v20, 0.0  ;;  %v872_v25 = vadd.f32 %v871_v22, %v783_v21 }
 0x13d   : > { %1780 = vst [vmem:[%s2051_s18 + $0x40] sm:$0xff] %v1721_v10   ;;  %v1751_v24 = vpack.c.bf16 %v1120_v23, %v1119_v16  ;;  %v961_v30 = vadd.f32 %v960_v42, %v872_v25  ;;  %v1769_v10 = vld [vmem:[%s2027_s14 + $0x60] sm:$0xff]  }
 0x13e   : > { %v990_v29 = vpop.f32.mrf.mxu3 }
 0x13f   : > { %1786 = vst [vmem:[%s2051_s18 + $0x70] sm:$0xff] %v1751_v24   ;;  %v991_v45 = vadd.f32 %v990_v29, %v902_v36  ;;  %v1077_v44 = vadd.f32 %v1652_v37, %v961_v30  ;;  %v1664_v24 = vunpack.c.l.bf16 %v1769_v10  ;;  %v1665_v29 = vunpack.c.h.bf16 %v1769_v10 }
 0x140   : > { %v967_v34 = vpop.f32.mrf.mxu2  ;;  %v784_v35 = vpop.f32.mrf.mxu0 }
 0x141   : > { %v785_v38 = vadd.f32 %v2016_v62, %v784_v35  ;;  %v873_v41 = vpop.f32.mrf.mxu1  ;;  %v1089_v27 = vadd.f32 %v1676_v47, %v991_v45  ;;  %v1109_v58 = vmax.f32 %v1077_v44, 0.0 }
 0x143   : > { %v874_v48 = vadd.f32 %v873_v41, %v785_v38  ;;  %v1121_v1 = vmax.f32 %v1089_v27, 0.0 }
 0x145   : > { %v963_v50 = vadd.f32 %v962_v56, %v874_v48 }
 0x146   : > { %v992_v52 = vpop.f32.mrf.mxu3 }
 0x147   : > { %v1078_v42 = vadd.f32 %v1653_v49, %v963_v50  ;;  %v993_v53 = vadd.f32 %v992_v52, %v904_v46 }
 0x148   : > { %v970_v55 = vpop.f32.mrf.mxu2  ;;  %v787_v57 = vpop.f32.mrf.mxu0 }
 0x149   : > { %v1110_v60 = vmax.f32 %v1078_v42, 0.0  ;;  %v1090_v59 = vadd.f32 %v1677_v51, %v993_v53  ;;  %v788_v61 = vadd.f32 %v2016_v62, %v787_v57  ;;  %v876_v0 = vpop.f32.mrf.mxu1 }
 0x14b   : > { %v1726_v40 = vpack.c.bf16 %v1110_v60, %v1109_v58  ;;  %v1122_v3 = vmax.f32 %v1090_v59, 0.0  ;;  %v877_v4 = vadd.f32 %v876_v0, %v788_v61 }
 0x14d   : > { %1781 = vst [vmem:[%s2051_s18 + $0x48] sm:$0xff] %v1726_v40   ;;  %v1756_v56 = vpack.c.bf16 %v1122_v3, %v1121_v1  ;;  %v966_v7 = vadd.f32 %v965_v17, %v877_v4 }
 0x14f   : > { %1787 = vst [vmem:[%s2051_s18 + $0x78] sm:$0xff] %v1756_v56   ;;  %v1079_v2 = vadd.f32 %v1656_v8, %v966_v7 }
 0x150   : > { %v972_v5 = vpop.f32.mrf.mxu2  ;;  %v789_v6 = vpop.f32.mrf.mxu0 }
 0x151   : > { %v790_v9 = vadd.f32 %v2016_v62, %v789_v6  ;;  %v878_v13 = vpop.f32.mrf.mxu1  ;;  %v1111_v20 = vmax.f32 %v1079_v2, 0.0 }
 0x153   : > { %v879_v11 = vadd.f32 %v878_v13, %v790_v9 }
 0x155   : > { %v968_v15 = vadd.f32 %v967_v34, %v879_v11 }
 0x157   : > { %v1080_v18 = vadd.f32 %v1657_v14, %v968_v15 }
 0x158   : > { %v975_v19 = vpop.f32.mrf.mxu2  ;;  %v792_v32 = vpop.f32.mrf.mxu0 }
 0x159   : > { %v1112_v21 = vmax.f32 %v1080_v18, 0.0  ;;  %v793_v22 = vadd.f32 %v2016_v62, %v792_v32  ;;  %v881_v16 = vpop.f32.mrf.mxu1  ;;  %v976_v23 = vadd.f32 %v975_v19, %v2099_v12  ;;  %v1661_v12 = vunpack.c.h.bf16 %v1768_v28 }
 0x15b   : > { %v1731_v17 = vpack.c.bf16 %v1112_v21, %v1111_v20  ;;  %v882_v25 = vadd.f32 %v881_v16, %v793_v22  ;;  %v1083_v35 = vadd.f32 %v1664_v24, %v976_v23 }
 0x15d   : > { %1782 = vst [vmem:[%s2051_s18 + $0x50] sm:$0xff] %v1731_v17   ;;  %v971_v36 = vadd.f32 %v970_v55, %v882_v25  ;;  %v1115_v45 = vmax.f32 %v1083_v35, 0.0 }
 0x15f   : > { %v1081_v47 = vadd.f32 %v1660_v31, %v971_v36 }
 0x160   : > { %v977_v33 = vpop.f32.mrf.mxu2  ;;  %v794_v34 = vpop.f32.mrf.mxu0 }
 0x161   : > { %v978_v30 = vadd.f32 %v977_v33, %v2104_v26  ;;  %v795_v37 = vadd.f32 %v2016_v62, %v794_v34  ;;  %v883_v38 = vpop.f32.mrf.mxu1  ;;  %v1113_v51 = vmax.f32 %v1081_v47, 0.0  ;;  %v1770_v26 = vld [vmem:[%s2027_s14 + $0x68] sm:$0xff]  }
 0x162   : > { %v1668_v42 = vunpack.c.l.bf16 %v1770_v26  ;;  %v1669_v53 = vunpack.c.h.bf16 %v1770_v26 }
 0x163   : > { %v1084_v41 = vadd.f32 %v1665_v29, %v978_v30  ;;  %v884_v43 = vadd.f32 %v883_v38, %v795_v37 }
 0x165   : > { %v1116_v48 = vmax.f32 %v1084_v41, 0.0  ;;  %v973_v49 = vadd.f32 %v972_v5, %v884_v43 }
 0x167   : > { %v1741_v46 = vpack.c.bf16 %v1116_v48, %v1115_v45  ;;  %v1082_v44 = vadd.f32 %v1661_v12, %v973_v49 }
 0x168   : > { %v980_v50 = vpop.f32.mrf.mxu2 }
 0x169   : > { %1784 = vst [vmem:[%s2051_s18 + $0x60] sm:$0xff] %v1741_v46   ;;  %v1114_v52 = vmax.f32 %v1082_v44, 0.0  ;;  %v981_v62 = vadd.f32 %v980_v50, %v2111_v39 }
 0x16b   : > { %v1736_v27 = vpack.c.bf16 %v1114_v52, %v1113_v51  ;;  %v1085_v57 = vadd.f32 %v1668_v42, %v981_v62 }
 0x16d   : > { %1783 = vst [vmem:[%s2051_s18 + $0x58] sm:$0xff] %v1736_v27   ;;  %v1117_v59 = vmax.f32 %v1085_v57, 0.0 }
 0x170   : > { %v982_v55 = vpop.f32.mrf.mxu2 }
 0x171   : > { %v983_v58 = vadd.f32 %v982_v55, %v2116_v54 }
 0x173   : > { %v1086_v60 = vadd.f32 %v1669_v53, %v983_v58 }
 0x175   : > { %v1118_v61 = vmax.f32 %v1086_v60, 0.0 }
 0x177   : > { %v1746_v0 = vpack.c.bf16 %v1118_v61, %v1117_v59 }
 0x179   : > { %1785 = vst [vmem:[%s2051_s18 + $0x68] sm:$0xff] %v1746_v0  }
 0x17a PF: > { %s14_s15 = sadd.s32 1, %s1822_s15  }
 0x17b   : > { %p11_p4 = scmp.ge.s32.totalorder %s14_s15, 4  }
 0x17d   :  { %13 = sbr.rel (!%p11_p4) target bundleno = 1 (0x1), region = 69 }

// kernel: _lambda_.15
= control target key start
LH: loop header
LB: loop body
LE: loop exit
PB: predicated region body
PF: predicated region fallthrough
CT: control target
= control target key end

     0   :  { %vm315_vm0 = vcmask 261120   ;;  %s1092_s1 = inlined_call_operand.vmem [shape: bf16[288,128], index: 1, kind: input, shape index: {}]   ;;  %s1093_s0 = inlined_call_operand.vmem [shape: bf16[128,288], index: 0, kind: input, shape index: {}]   ;;  %s1094_s2 = inlined_call_operand.vmem [shape: f32[1,128], index: 2, kind: input, shape index: {}]   ;;  %s1095_s3 = inlined_call_operand.vmem [shape: bf16[128,128], index: 3, kind: output, shape index: {}]  }
   0x1   :  { %v746_v0 = vld [vmem:[%s1092_s1 + $0x38] sm:$0xff]  ;;  %v756_v1 = vld [vmem:[%s1092_s1 + $0x88] sm:$0xff]  ;;  %v745_v3 = vld [vmem:[%s1092_s1 + $0x30] sm:$0xff] }
   0x2   :  { %v754_v2 = vld [vmem:[%s1092_s1 + $0x78] sm:$0xff]  ;;  %340 = vmatpush.bf16.msra.mxu0 %v746_v0  ;;  %804 = vmatpush.bf16.msra.mxu3 %v746_v0  ;;  %v755_v4 = vld [vmem:[%s1092_s1 + $0x80] sm:$0xff]  ;;  %v753_v5 = vld [vmem:[%s1092_s1 + $0x70] sm:$0xff] }
   0x3   :  { %444 = vmatpush.bf16.msra.mxu2 %v756_v1  ;;  %389 = vmatpush.bf16.msra.mxu1 %v754_v2  ;;  %v549_v6 = vld [vmem:[%s1093_s0 + $0x8] sm:$0xf]  ;;  %v717_v7 = vld [vmem:[%s1093_s0 + $0x10] sm:$0xf0]  ;;  %v743_v11 = vld [vmem:[%s1092_s1 + $0x20] sm:$0xff] }
   0x4   :  { %v550_v8 = vor.u32 %v717_v7, %v549_v6  ;;  %v744_v9 = vld [vmem:[%s1092_s1 + $0x28] sm:$0xff]  ;;  %v751_v12 = vld [vmem:[%s1092_s1 + $0x60] sm:$0xff]  ;;  %v742_v13 = vld [vmem:[%s1092_s1 + $0x18] sm:$0xff] }
   0x5   :  { %v752_v10 = vld [vmem:[%s1092_s1 + $0x68] sm:$0xff]  ;;  %v750_v14 = vld [vmem:[%s1092_s1 + $0x58] sm:$0xff]  ;;  %v741_v15 = vld [vmem:[%s1092_s1 + $0x10] sm:$0xff] }
   0x6   :  { %341 = vmatpush.bf16.msra.mxu0 %v745_v3  ;;  %805 = vmatpush.bf16.msra.mxu3 %v745_v3  ;;  %v749_v16 = vld [vmem:[%s1092_s1 + $0x50] sm:$0xff]  ;;  %v561_v17 = vld [vmem:[%s1093_s0 + $0x20] sm:$0xf]  ;;  %v720_v18 = vld [vmem:[%s1093_s0 + $0x28] sm:$0xf0] }
   0x7   :  { %445 = vmatpush.bf16.msra.mxu2 %v755_v4  ;;  %390 = vmatpush.bf16.msra.mxu1 %v753_v5  ;;  %v562_v19 = vor.u32 %v720_v18, %v561_v17  ;;  %v740_v20 = vld [vmem:[%s1092_s1 + $0x8] sm:$0xff]  ;;  %v739_v22 = vld [vmem:[%s1092_s1] sm:$0xff]  ;;  %v613_v26 = vld [vmem:[%s1093_s0 + $0x90] sm:$0xf] }
   0x8   :  { %v748_v21 = vld [vmem:[%s1092_s1 + $0x48] sm:$0xff]  ;;  %v747_v23 = vld [vmem:[%s1092_s1 + $0x40] sm:$0xff]  ;;  %v734_v27 = vld [vmem:[%s1093_s0 + $0x98] sm:$0xf0] }
   0x9   :  { %v541_v24 = vld [vmem:[%s1093_s0] sm:$0xf]  ;;  %v716_v25 = vld [vmem:[%s1093_s0 + $0x8] sm:$0xf0]  ;;  %v715_v28 = vld [vmem:[%s1093_s0 + $0x4] sm:$0xf]  ;;  %v614_v31 = vor.u32 %v734_v27, %v613_v26 }
   0xa   :  { %707 = vmatmul.msk.bf16.vlgmr.msra.gmra.mxu2 %vm315_vm0, %v550_v8  ;;  %342 = vmatpush.bf16.msra.mxu0 %v744_v9  ;;  %v543_v29 = vld [vmem:[%s1093_s0 + $0xc] sm:$0xf0]  ;;  %v542_v30 = vor.u32 %v716_v25, %v541_v24  ;;  %v573_v33 = vld [vmem:[%s1093_s0 + $0x38] sm:$0xf]  ;;  %v723_v34 = vld [vmem:[%s1093_s0 + $0x40] sm:$0xf0] }
   0xb   :  { %806 = vmatpush.bf16.msra.mxu3 %v744_v9  ;;  %391 = vmatpush.bf16.msra.mxu1 %v752_v10  ;;  %v546_v32 = vor.u32 %v715_v28, %v543_v29  ;;  %v574_v35 = vor.u32 %v723_v34, %v573_v33  ;;  %v553_v36 = vld [vmem:[%s1093_s0 + $0x18] sm:$0xf]  ;;  %v719_v37 = vld [vmem:[%s1093_s0 + $0x20] sm:$0xf0]  ;;  %v625_v38 = vld [vmem:[%s1093_s0 + $0xa8] sm:$0xf] }
   0xc   :  { %v737_v39 = vld [vmem:[%s1093_s0 + $0xb0] sm:$0xf0]  ;;  %v718_v40 = vld [vmem:[%s1093_s0 + $0x1c] sm:$0xf]  ;;  %v555_v41 = vld [vmem:[%s1093_s0 + $0x24] sm:$0xf0]  ;;  %v554_v42 = vor.u32 %v719_v37, %v553_v36 }
   0xd   :  { %v626_v43 = vor.u32 %v737_v39, %v625_v38  ;;  %v558_v44 = vor.u32 %v718_v40, %v555_v41  ;;  %v585_v45 = vld [vmem:[%s1093_s0 + $0x50] sm:$0xf]  ;;  %v726_v46 = vld [vmem:[%s1093_s0 + $0x58] sm:$0xf0]  ;;  %v733_v50 = vld [vmem:[%s1093_s0 + $0x94] sm:$0xf] }
   0xe   :  { %343 = vmatpush.bf16.msra.mxu0 %v743_v11  ;;  %v586_v47 = vor.u32 %v726_v46, %v585_v45  ;;  %v565_v48 = vld [vmem:[%s1093_s0 + $0x30] sm:$0xf]  ;;  %v722_v49 = vld [vmem:[%s1093_s0 + $0x38] sm:$0xf0]  ;;  %v615_v51 = vld [vmem:[%s1093_s0 + $0x9c] sm:$0xf0] }
   0xf   :  { %807 = vmatpush.bf16.msra.mxu3 %v743_v11  ;;  %392 = vmatpush.bf16.msra.mxu1 %v751_v12  ;;  %v721_v52 = vld [vmem:[%s1093_s0 + $0x34] sm:$0xf]  ;;  %v567_v53 = vld [vmem:[%s1093_s0 + $0x3c] sm:$0xf0]  ;;  %v566_v54 = vor.u32 %v722_v49, %v565_v48  ;;  %v618_v55 = vor.u32 %v733_v50, %v615_v51  ;;  %v597_v57 = vld [vmem:[%s1093_s0 + $0x68] sm:$0xf] }
  0x10   :  { %v570_v56 = vor.u32 %v721_v52, %v567_v53  ;;  %v729_v58 = vld [vmem:[%s1093_s0 + $0x70] sm:$0xf0]  ;;  %v577_v60 = vld [vmem:[%s1093_s0 + $0x48] sm:$0xf]  ;;  %v736_v62 = vld [vmem:[%s1093_s0 + $0xac] sm:$0xf] }
  0x11   :  { %v598_v59 = vor.u32 %v729_v58, %v597_v57  ;;  %v725_v61 = vld [vmem:[%s1093_s0 + $0x50] sm:$0xf0]  ;;  %v627_v63 = vld [vmem:[%s1093_s0 + $0xb4] sm:$0xf0]  ;;  %v724_v0 = vld [vmem:[%s1093_s0 + $0x4c] sm:$0xf] }
  0x12   :  { %344 = vmatpush.bf16.msra.mxu0 %v742_v13  ;;  %v579_v1 = vld [vmem:[%s1093_s0 + $0x54] sm:$0xf0]  ;;  %v630_v3 = vor.u32 %v736_v62, %v627_v63  ;;  %v732_v6 = vld [vmem:[%s1093_s0 + $0x88] sm:$0xf0]  ;;  %v589_v8 = vld [vmem:[%s1093_s0 + $0x60] sm:$0xf] }
  0x13   :  { %808 = vmatpush.bf16.msra.mxu3 %v742_v13  ;;  %393 = vmatpush.bf16.msra.mxu1 %v750_v14  ;;  %v582_v4 = vor.u32 %v724_v0, %v579_v1  ;;  %v728_v9 = vld [vmem:[%s1093_s0 + $0x68] sm:$0xf0]  ;;  %v591_v11 = vld [vmem:[%s1093_s0 + $0x6c] sm:$0xf0]  ;;  %v601_v17 = vld [vmem:[%s1093_s0 + $0x78] sm:$0xf] }
  0x14   :  { %v731_v18 = vld [vmem:[%s1093_s0 + $0x80] sm:$0xf0]  ;;  %v738_v24 = vld [vmem:[%s1093_s0 + $0xb8] sm:$0xf0]  ;;  %v1050_v29 = vld [vmem:[%s1094_s2] ss:$0 sm:$0xff] }
  0x16   :  { %345 = vmatpush.bf16.msra.mxu0 %v741_v15 }
  0x17   :  { %809 = vmatpush.bf16.msra.mxu3 %v741_v15  ;;  %394 = vmatpush.bf16.msra.mxu1 %v749_v16  ;;  %v735_v15 = vld [vmem:[%s1093_s0 + $0xa0] sm:$0xf0] }
  0x1a   :  { %708 = vmatmul.msk.bf16.gmra.mxu2 %vm315_vm0, %v562_v19  ;;  %346 = vmatpush.bf16.msra.mxu0 %v740_v20  ;;  %v730_v19 = vld [vmem:[%s1093_s0 + $0x7c] sm:$0xf] }
  0x1b   :  { %810 = vmatpush.bf16.msra.mxu3 %v740_v20  ;;  %395 = vmatpush.bf16.msra.mxu1 %v748_v21  ;;  %v603_v20 = vld [vmem:[%s1093_s0 + $0x84] sm:$0xf0] }
  0x1e   :  { %347 = vmatpush.bf16.msra.mxu0 %v739_v22 }
  0x1f   :  { %811 = vmatpush.bf16.msra.mxu3 %v739_v22  ;;  %396 = vmatpush.bf16.msra.mxu1 %v747_v23  ;;  %v606_v22 = vor.u32 %v730_v19, %v603_v20 }
  0x21   :  { %348 = vmatmul.bf16.vlgmr.msra.gmra.mxu0 %v542_v30 }
  0x22   :  { %378 = vmatmul.bf16.vlgmr.msra.gmra.mxu3 %v614_v31  ;;  %397 = vmatmul.bf16.vlgmr.msra.gmra.mxu1 %v546_v32 }
  0x23   :  { %812 = vmatpush.bf16.msrb.mxu3 %v754_v2  ;;  %v578_v2 = vor.u32 %v725_v61, %v577_v60 }
  0x27   :  { %813 = vmatpush.bf16.msrb.mxu3 %v753_v5  ;;  %v609_v5 = vld [vmem:[%s1093_s0 + $0x80] sm:$0xf] }
  0x28   :  { %v610_v7 = vor.u32 %v732_v6, %v609_v5 }
  0x2a   :  { %709 = vmatmul.msk.bf16.gmra.mxu2 %vm315_vm0, %v574_v35 }
  0x2b   :  { %814 = vmatpush.bf16.msrb.mxu3 %v752_v10  ;;  %v727_v10 = vld [vmem:[%s1093_s0 + $0x64] sm:$0xf] }
  0x2c   :  { %v594_v13 = vor.u32 %v727_v10, %v591_v11 }
  0x2f   :  { %815 = vmatpush.bf16.msrb.mxu3 %v751_v12  ;;  %v590_v12 = vor.u32 %v728_v9, %v589_v8 }
  0x31   :  { %353 = vmatmul.bf16.gmra.mxu0 %v554_v42 }
  0x32   :  { %383 = vmatmul.bf16.gmra.mxu3 %v626_v43  ;;  %402 = vmatmul.bf16.gmra.mxu1 %v558_v44 }
  0x33   :  { %816 = vmatpush.bf16.msrb.mxu3 %v750_v14  ;;  %v621_v14 = vld [vmem:[%s1093_s0 + $0x98] sm:$0xf] }
  0x37   :  { %817 = vmatpush.bf16.msrb.mxu3 %v749_v16  ;;  %v622_v16 = vor.u32 %v735_v15, %v621_v14 }
  0x3a   :  { %710 = vmatmul.msk.bf16.gmra.mxu2 %vm315_vm0, %v586_v47 }
  0x3b   :  { %818 = vmatpush.bf16.msrb.mxu3 %v748_v21  ;;  %v602_v21 = vor.u32 %v731_v18, %v601_v17 }
  0x3f   :  { %819 = vmatpush.bf16.msrb.mxu3 %v747_v23  ;;  %v633_v23 = vld [vmem:[%s1093_s0 + $0xb0] sm:$0xf] }
  0x40   :  { %v634_v25 = vor.u32 %v738_v24, %v633_v23 }
  0x41   :  { %358 = vmatmul.bf16.gmra.mxu0 %v566_v54 }
  0x42   :  { %427 = vmatmul.bf16.vlgmr.msrb.gmra.mxu3 %v618_v55  ;;  %407 = vmatmul.bf16.gmra.mxu1 %v570_v56 }
  0x4a   :  { %711 = vmatmul.msk.bf16.gmra.mxu2 %vm315_vm0, %v598_v59 }
  0x51   :  { %363 = vmatmul.bf16.gmra.mxu0 %v578_v2 }
  0x52   :  { %432 = vmatmul.bf16.gmra.mxu3 %v630_v3  ;;  %412 = vmatmul.bf16.gmra.mxu1 %v582_v4 }
  0x5a   :  { %712 = vmatmul.msk.bf16.gmra.mxu2 %vm315_vm0, %v610_v7 }
  0x61   :  { %368 = vmatmul.bf16.gmra.mxu0 %v590_v12 }
  0x62   :  { %417 = vmatmul.bf16.gmra.mxu1 %v594_v13 }
  0x6a   :  { %713 = vmatmul.msk.bf16.gmra.mxu2 %vm315_vm0, %v622_v16 }
  0x71   :  { %373 = vmatmul.bf16.gmra.mxu0 %v602_v21 }
  0x72   :  { %422 = vmatmul.bf16.gmra.mxu1 %v606_v22 }
  0x7a   :  { %714 = vmatmul.msk.bf16.gmra.mxu2 %vm315_vm0, %v634_v25 }
  0x8d   :  { %v447_v26 = vpop.f32.mrf.mxu2 }
  0x95   :  { %v449_v27 = vpop.f32.mrf.mxu2 }
  0x9d   :  { %v452_v28 = vpop.f32.mrf.mxu2 }
  0x9e   :  { %v349_v30 = vpop.f32.mrf.mxu0 }
  0x9f   :  { %v398_v31 = vpop.f32.mrf.mxu1  ;;  %v350_v32 = vadd.f32 %v1050_v29, %v349_v30 }
  0xa1   :  { %v399_v33 = vadd.f32 %v398_v31, %v350_v32 }
  0xa3   :  { %v448_v38 = vadd.f32 %v447_v26, %v399_v33 }
  0xa5   :  { %v454_v34 = vpop.f32.mrf.mxu2  ;;  %v487_v41 = vmax.f32 %v448_v38, 0.0  ;;  %v379_v55 = vpop.f32.mrf.mxu3 }
  0xa6   :  { %v351_v35 = vpop.f32.mrf.mxu0 }
  0xa7   :  { %v352_v36 = vadd.f32 %v1050_v29, %v351_v35  ;;  %v400_v37 = vpop.f32.mrf.mxu1 }
  0xa9   :  { %v401_v39 = vadd.f32 %v400_v37, %v352_v36 }
  0xab   :  { %v450_v40 = vadd.f32 %v449_v27, %v401_v39 }
  0xad   :  { %v488_v42 = vmax.f32 %v450_v40, 0.0  ;;  %v457_v43 = vpop.f32.mrf.mxu2  ;;  %v381_v0 = vpop.f32.mrf.mxu3 }
  0xae   :  { %v354_v44 = vpop.f32.mrf.mxu0 }
  0xaf   :  { %v760_v45 = vpack.c.bf16 %v488_v42, %v487_v41  ;;  %v403_v46 = vpop.f32.mrf.mxu1  ;;  %v355_v47 = vadd.f32 %v1050_v29, %v354_v44 }
  0xb1   :  { %761 = vst [vmem:[%s1095_s3] sm:$0xff] %v760_v45   ;;  %v404_v48 = vadd.f32 %v403_v46, %v355_v47  ;;  %v380_v47 = vadd.f32 %v1050_v29, %v379_v55 }
  0xb3   :  { %v453_v53 = vadd.f32 %v452_v28, %v404_v48 }
  0xb5   :  { %v459_v49 = vpop.f32.mrf.mxu2  ;;  %v489_v57 = vmax.f32 %v453_v53, 0.0  ;;  %v384_v13 = vpop.f32.mrf.mxu3 }
  0xb6   :  { %v356_v50 = vpop.f32.mrf.mxu0 }
  0xb7   :  { %v357_v51 = vadd.f32 %v1050_v29, %v356_v50  ;;  %v405_v52 = vpop.f32.mrf.mxu1 }
  0xb9   :  { %v406_v54 = vadd.f32 %v405_v52, %v357_v51  ;;  %v382_v51 = vadd.f32 %v1050_v29, %v381_v0 }
  0xbb   :  { %v455_v56 = vadd.f32 %v454_v34, %v406_v54 }
  0xbd   :  { %v490_v58 = vmax.f32 %v455_v56, 0.0  ;;  %v462_v59 = vpop.f32.mrf.mxu2  ;;  %v386_v22 = vpop.f32.mrf.mxu3 }
  0xbe   :  { %v359_v60 = vpop.f32.mrf.mxu0 }
  0xbf   :  { %v765_v61 = vpack.c.bf16 %v490_v58, %v489_v57  ;;  %v408_v62 = vpop.f32.mrf.mxu1  ;;  %v360_v63 = vadd.f32 %v1050_v29, %v359_v60 }
  0xc1   :  { %797 = vst [vmem:[%s1095_s3 + $0x8] sm:$0xff] %v765_v61   ;;  %v409_v1 = vadd.f32 %v408_v62, %v360_v63 }
  0xc3   :  { %v458_v6 = vadd.f32 %v457_v43, %v409_v1 }
  0xc5   :  { %v464_v2 = vpop.f32.mrf.mxu2  ;;  %v491_v9 = vmax.f32 %v458_v6, 0.0  ;;  %v428_v34 = vpop.f32.mrf.mxu3 }
  0xc6   :  { %v361_v3 = vpop.f32.mrf.mxu0  ;;  %v429_v53 = vadd.f32 %v428_v34, %v380_v47 }
  0xc7   :  { %v362_v4 = vadd.f32 %v1050_v29, %v361_v3  ;;  %v410_v5 = vpop.f32.mrf.mxu1 }
  0xc9   :  { %v411_v7 = vadd.f32 %v410_v5, %v362_v4 }
  0xcb   :  { %v460_v8 = vadd.f32 %v459_v49, %v411_v7 }
  0xcd   :  { %v492_v10 = vmax.f32 %v460_v8, 0.0  ;;  %v467_v11 = vpop.f32.mrf.mxu2  ;;  %v430_v43 = vpop.f32.mrf.mxu3  ;;  %v385_v8 = vadd.f32 %v1050_v29, %v384_v13 }
  0xce   :  { %v364_v12 = vpop.f32.mrf.mxu0  ;;  %v431_v54 = vadd.f32 %v430_v43, %v382_v51 }
  0xcf   :  { %v770_v14 = vpack.c.bf16 %v492_v10, %v491_v9  ;;  %v413_v15 = vpop.f32.mrf.mxu1  ;;  %v365_v16 = vadd.f32 %v1050_v29, %v364_v12  ;;  %v387_v10 = vadd.f32 %v1050_v29, %v386_v22 }
  0xd1   :  { %798 = vst [vmem:[%s1095_s3 + $0x10] sm:$0xff] %v770_v14   ;;  %v414_v17 = vadd.f32 %v413_v15, %v365_v16 }
  0xd3   :  { %v463_v23 = vadd.f32 %v462_v59, %v414_v17 }
  0xd5   :  { %v469_v18 = vpop.f32.mrf.mxu2  ;;  %v493_v26 = vmax.f32 %v463_v23, 0.0  ;;  %v433_v61 = vpop.f32.mrf.mxu3 }
  0xd6   :  { %v366_v19 = vpop.f32.mrf.mxu0  ;;  %v434_v12 = vadd.f32 %v433_v61, %v385_v8 }
  0xd7   :  { %v367_v20 = vadd.f32 %v1050_v29, %v366_v19  ;;  %v415_v21 = vpop.f32.mrf.mxu1 }
  0xd9   :  { %v416_v24 = vadd.f32 %v415_v21, %v367_v20 }
  0xdb   :  { %v465_v25 = vadd.f32 %v464_v2, %v416_v24 }
  0xdd   :  { %v494_v27 = vmax.f32 %v465_v25, 0.0  ;;  %v472_v28 = vpop.f32.mrf.mxu2 }
  0xde   :  { %v369_v30 = vpop.f32.mrf.mxu0 }
  0xdf   :  { %v775_v31 = vpack.c.bf16 %v494_v27, %v493_v26  ;;  %v418_v32 = vpop.f32.mrf.mxu1  ;;  %v370_v33 = vadd.f32 %v1050_v29, %v369_v30 }
  0xe1   :  { %799 = vst [vmem:[%s1095_s3 + $0x18] sm:$0xff] %v775_v31   ;;  %v419_v35 = vadd.f32 %v418_v32, %v370_v33 }
  0xe3   :  { %v468_v40 = vadd.f32 %v467_v11, %v419_v35  ;;  %v435_v11 = vpop.f32.mrf.mxu3 }
  0xe4   :  { %v436_v14 = vadd.f32 %v435_v11, %v387_v10 }
  0xe5   :  { %v474_v36 = vpop.f32.mrf.mxu2  ;;  %v495_v44 = vmax.f32 %v468_v40, 0.0 }
  0xe6   :  { %v371_v37 = vpop.f32.mrf.mxu0 }
  0xe7   :  { %v372_v38 = vadd.f32 %v1050_v29, %v371_v37  ;;  %v420_v39 = vpop.f32.mrf.mxu1 }
  0xe9   :  { %v421_v41 = vadd.f32 %v420_v39, %v372_v38 }
  0xeb   :  { %v470_v42 = vadd.f32 %v469_v18, %v421_v41 }
  0xed   :  { %v496_v45 = vmax.f32 %v470_v42, 0.0  ;;  %v477_v46 = vpop.f32.mrf.mxu2 }
  0xee   :  { %v374_v48 = vpop.f32.mrf.mxu0  ;;  %v478_v56 = vadd.f32 %v477_v46, %v429_v53 }
  0xef   :  { %v780_v49 = vpack.c.bf16 %v496_v45, %v495_v44  ;;  %v423_v50 = vpop.f32.mrf.mxu1  ;;  %v375_v52 = vadd.f32 %v1050_v29, %v374_v48 }
  0xf0   :  { %v499_v63 = vmax.f32 %v478_v56, 0.0 }
  0xf1   :  { %800 = vst [vmem:[%s1095_s3 + $0x20] sm:$0xff] %v780_v49   ;;  %v424_v57 = vadd.f32 %v423_v50, %v375_v52 }
  0xf3   :  { %v473_v0 = vadd.f32 %v472_v28, %v424_v57 }
  0xf5   :  { %v479_v58 = vpop.f32.mrf.mxu2  ;;  %v497_v5 = vmax.f32 %v473_v0, 0.0 }
  0xf6   :  { %v480_v59 = vadd.f32 %v479_v58, %v431_v54  ;;  %v376_v60 = vpop.f32.mrf.mxu0 }
  0xf7   :  { %v377_v55 = vadd.f32 %v1050_v29, %v376_v60  ;;  %v425_v62 = vpop.f32.mrf.mxu1 }
  0xf8   :  { %v500_v1 = vmax.f32 %v480_v59, 0.0 }
  0xf9   :  { %v426_v2 = vadd.f32 %v425_v62, %v377_v55 }
  0xfa   :  { %v790_v3 = vpack.c.bf16 %v500_v1, %v499_v63 }
  0xfb   :  { %v475_v4 = vadd.f32 %v474_v36, %v426_v2 }
  0xfc   :  { %802 = vst [vmem:[%s1095_s3 + $0x30] sm:$0xff] %v790_v3  }
  0xfd   :  { %v498_v6 = vmax.f32 %v475_v4, 0.0  ;;  %v482_v7 = vpop.f32.mrf.mxu2 }
  0xfe   :  { %v483_v15 = vadd.f32 %v482_v7, %v434_v12 }
  0xff   :  { %v785_v9 = vpack.c.bf16 %v498_v6, %v497_v5 }
 0x100   :  { %v501_v18 = vmax.f32 %v483_v15, 0.0 }
 0x101   :  { %801 = vst [vmem:[%s1095_s3 + $0x28] sm:$0xff] %v785_v9  }
 0x105   :  { %v484_v16 = vpop.f32.mrf.mxu2 }
 0x106   :  { %v485_v17 = vadd.f32 %v484_v16, %v436_v14 }
 0x108   :  { %v502_v19 = vmax.f32 %v485_v17, 0.0 }
 0x10a   :  { %v795_v20 = vpack.c.bf16 %v502_v19, %v501_v18 }
 0x10c   :  { %803 = vst [vmem:[%s1095_s3 + $0x38] sm:$0xff] %v795_v20  }

// kernel: _lambda_.16
= control target key start
LH: loop header
LB: loop body
LE: loop exit
PB: predicated region body
PF: predicated region fallthrough
CT: control target
= control target key end

     0   :  { %vm315_vm0 = vcmask 261120   ;;  %s1076_s1 = inlined_call_operand.vmem [shape: bf16[288,128], index: 1, kind: input, shape index: {}]   ;;  %s1077_s0 = inlined_call_operand.vmem [shape: bf16[128,288], index: 0, kind: input, shape index: {}]   ;;  %s1078_s2 = inlined_call_operand.vmem [shape: f32[1,128], index: 2, kind: input, shape index: {}]   ;;  %s1079_s3 = inlined_call_operand.vmem [shape: bf16[128,128], index: 3, kind: output, shape index: {}]  }
   0x1   :  { %v730_v0 = vld [vmem:[%s1076_s1 + $0x38] sm:$0xff]  ;;  %v740_v1 = vld [vmem:[%s1076_s1 + $0x88] sm:$0xff]  ;;  %v729_v3 = vld [vmem:[%s1076_s1 + $0x30] sm:$0xff] }
   0x2   :  { %v738_v2 = vld [vmem:[%s1076_s1 + $0x78] sm:$0xff]  ;;  %340 = vmatpush.bf16.msra.mxu0 %v730_v0  ;;  %788 = vmatpush.bf16.msra.mxu3 %v730_v0  ;;  %v739_v4 = vld [vmem:[%s1076_s1 + $0x80] sm:$0xff]  ;;  %v737_v5 = vld [vmem:[%s1076_s1 + $0x70] sm:$0xff] }
   0x3   :  { %444 = vmatpush.bf16.msra.mxu2 %v740_v1  ;;  %389 = vmatpush.bf16.msra.mxu1 %v738_v2  ;;  %v533_v6 = vld [vmem:[%s1077_s0 + $0x8] sm:$0xf]  ;;  %v701_v7 = vld [vmem:[%s1077_s0 + $0x10] sm:$0xf0]  ;;  %v727_v11 = vld [vmem:[%s1076_s1 + $0x20] sm:$0xff] }
   0x4   :  { %v534_v8 = vor.u32 %v701_v7, %v533_v6  ;;  %v728_v9 = vld [vmem:[%s1076_s1 + $0x28] sm:$0xff]  ;;  %v735_v12 = vld [vmem:[%s1076_s1 + $0x60] sm:$0xff]  ;;  %v726_v13 = vld [vmem:[%s1076_s1 + $0x18] sm:$0xff] }
   0x5   :  { %v736_v10 = vld [vmem:[%s1076_s1 + $0x68] sm:$0xff]  ;;  %v734_v14 = vld [vmem:[%s1076_s1 + $0x58] sm:$0xff]  ;;  %v725_v15 = vld [vmem:[%s1076_s1 + $0x10] sm:$0xff] }
   0x6   :  { %341 = vmatpush.bf16.msra.mxu0 %v729_v3  ;;  %789 = vmatpush.bf16.msra.mxu3 %v729_v3  ;;  %v733_v16 = vld [vmem:[%s1076_s1 + $0x50] sm:$0xff]  ;;  %v545_v17 = vld [vmem:[%s1077_s0 + $0x20] sm:$0xf]  ;;  %v704_v18 = vld [vmem:[%s1077_s0 + $0x28] sm:$0xf0] }
   0x7   :  { %445 = vmatpush.bf16.msra.mxu2 %v739_v4  ;;  %390 = vmatpush.bf16.msra.mxu1 %v737_v5  ;;  %v546_v19 = vor.u32 %v704_v18, %v545_v17  ;;  %v724_v20 = vld [vmem:[%s1076_s1 + $0x8] sm:$0xff]  ;;  %v723_v22 = vld [vmem:[%s1076_s1] sm:$0xff]  ;;  %v597_v26 = vld [vmem:[%s1077_s0 + $0x90] sm:$0xf] }
   0x8   :  { %v732_v21 = vld [vmem:[%s1076_s1 + $0x48] sm:$0xff]  ;;  %v731_v23 = vld [vmem:[%s1076_s1 + $0x40] sm:$0xff]  ;;  %v718_v27 = vld [vmem:[%s1077_s0 + $0x98] sm:$0xf0] }
   0x9   :  { %v525_v24 = vld [vmem:[%s1077_s0] sm:$0xf]  ;;  %v700_v25 = vld [vmem:[%s1077_s0 + $0x8] sm:$0xf0]  ;;  %v699_v28 = vld [vmem:[%s1077_s0 + $0x4] sm:$0xf]  ;;  %v598_v31 = vor.u32 %v718_v27, %v597_v26 }
   0xa   :  { %691 = vmatmul.msk.bf16.vlgmr.msra.gmra.mxu2 %vm315_vm0, %v534_v8  ;;  %342 = vmatpush.bf16.msra.mxu0 %v728_v9  ;;  %v527_v29 = vld [vmem:[%s1077_s0 + $0xc] sm:$0xf0]  ;;  %v526_v30 = vor.u32 %v700_v25, %v525_v24  ;;  %v557_v33 = vld [vmem:[%s1077_s0 + $0x38] sm:$0xf]  ;;  %v707_v34 = vld [vmem:[%s1077_s0 + $0x40] sm:$0xf0] }
   0xb   :  { %790 = vmatpush.bf16.msra.mxu3 %v728_v9  ;;  %391 = vmatpush.bf16.msra.mxu1 %v736_v10  ;;  %v530_v32 = vor.u32 %v699_v28, %v527_v29  ;;  %v558_v35 = vor.u32 %v707_v34, %v557_v33  ;;  %v537_v36 = vld [vmem:[%s1077_s0 + $0x18] sm:$0xf]  ;;  %v703_v37 = vld [vmem:[%s1077_s0 + $0x20] sm:$0xf0]  ;;  %v609_v38 = vld [vmem:[%s1077_s0 + $0xa8] sm:$0xf] }
   0xc   :  { %v721_v39 = vld [vmem:[%s1077_s0 + $0xb0] sm:$0xf0]  ;;  %v702_v40 = vld [vmem:[%s1077_s0 + $0x1c] sm:$0xf]  ;;  %v539_v41 = vld [vmem:[%s1077_s0 + $0x24] sm:$0xf0]  ;;  %v538_v42 = vor.u32 %v703_v37, %v537_v36 }
   0xd   :  { %v610_v43 = vor.u32 %v721_v39, %v609_v38  ;;  %v542_v44 = vor.u32 %v702_v40, %v539_v41  ;;  %v569_v45 = vld [vmem:[%s1077_s0 + $0x50] sm:$0xf]  ;;  %v710_v46 = vld [vmem:[%s1077_s0 + $0x58] sm:$0xf0]  ;;  %v717_v50 = vld [vmem:[%s1077_s0 + $0x94] sm:$0xf] }
   0xe   :  { %343 = vmatpush.bf16.msra.mxu0 %v727_v11  ;;  %v570_v47 = vor.u32 %v710_v46, %v569_v45  ;;  %v549_v48 = vld [vmem:[%s1077_s0 + $0x30] sm:$0xf]  ;;  %v706_v49 = vld [vmem:[%s1077_s0 + $0x38] sm:$0xf0]  ;;  %v599_v51 = vld [vmem:[%s1077_s0 + $0x9c] sm:$0xf0] }
   0xf   :  { %791 = vmatpush.bf16.msra.mxu3 %v727_v11  ;;  %392 = vmatpush.bf16.msra.mxu1 %v735_v12  ;;  %v705_v52 = vld [vmem:[%s1077_s0 + $0x34] sm:$0xf]  ;;  %v551_v53 = vld [vmem:[%s1077_s0 + $0x3c] sm:$0xf0]  ;;  %v550_v54 = vor.u32 %v706_v49, %v549_v48  ;;  %v602_v55 = vor.u32 %v717_v50, %v599_v51  ;;  %v581_v57 = vld [vmem:[%s1077_s0 + $0x68] sm:$0xf] }
  0x10   :  { %v554_v56 = vor.u32 %v705_v52, %v551_v53  ;;  %v713_v58 = vld [vmem:[%s1077_s0 + $0x70] sm:$0xf0]  ;;  %v561_v60 = vld [vmem:[%s1077_s0 + $0x48] sm:$0xf]  ;;  %v720_v62 = vld [vmem:[%s1077_s0 + $0xac] sm:$0xf] }
  0x11   :  { %v582_v59 = vor.u32 %v713_v58, %v581_v57  ;;  %v709_v61 = vld [vmem:[%s1077_s0 + $0x50] sm:$0xf0]  ;;  %v611_v63 = vld [vmem:[%s1077_s0 + $0xb4] sm:$0xf0]  ;;  %v708_v0 = vld [vmem:[%s1077_s0 + $0x4c] sm:$0xf] }
  0x12   :  { %344 = vmatpush.bf16.msra.mxu0 %v726_v13  ;;  %v563_v1 = vld [vmem:[%s1077_s0 + $0x54] sm:$0xf0]  ;;  %v614_v3 = vor.u32 %v720_v62, %v611_v63  ;;  %v716_v6 = vld [vmem:[%s1077_s0 + $0x88] sm:$0xf0]  ;;  %v573_v8 = vld [vmem:[%s1077_s0 + $0x60] sm:$0xf] }
  0x13   :  { %792 = vmatpush.bf16.msra.mxu3 %v726_v13  ;;  %393 = vmatpush.bf16.msra.mxu1 %v734_v14  ;;  %v566_v4 = vor.u32 %v708_v0, %v563_v1  ;;  %v712_v9 = vld [vmem:[%s1077_s0 + $0x68] sm:$0xf0]  ;;  %v575_v11 = vld [vmem:[%s1077_s0 + $0x6c] sm:$0xf0]  ;;  %v585_v17 = vld [vmem:[%s1077_s0 + $0x78] sm:$0xf] }
  0x14   :  { %v715_v18 = vld [vmem:[%s1077_s0 + $0x80] sm:$0xf0]  ;;  %v722_v24 = vld [vmem:[%s1077_s0 + $0xb8] sm:$0xf0] }
  0x16   :  { %345 = vmatpush.bf16.msra.mxu0 %v725_v15 }
  0x17   :  { %793 = vmatpush.bf16.msra.mxu3 %v725_v15  ;;  %394 = vmatpush.bf16.msra.mxu1 %v733_v16  ;;  %v719_v15 = vld [vmem:[%s1077_s0 + $0xa0] sm:$0xf0] }
  0x1a   :  { %692 = vmatmul.msk.bf16.gmra.mxu2 %vm315_vm0, %v546_v19  ;;  %346 = vmatpush.bf16.msra.mxu0 %v724_v20  ;;  %v714_v19 = vld [vmem:[%s1077_s0 + $0x7c] sm:$0xf] }
  0x1b   :  { %794 = vmatpush.bf16.msra.mxu3 %v724_v20  ;;  %395 = vmatpush.bf16.msra.mxu1 %v732_v21  ;;  %v587_v20 = vld [vmem:[%s1077_s0 + $0x84] sm:$0xf0] }
  0x1e   :  { %347 = vmatpush.bf16.msra.mxu0 %v723_v22 }
  0x1f   :  { %795 = vmatpush.bf16.msra.mxu3 %v723_v22  ;;  %396 = vmatpush.bf16.msra.mxu1 %v731_v23  ;;  %v590_v22 = vor.u32 %v714_v19, %v587_v20 }
  0x21   :  { %348 = vmatmul.bf16.vlgmr.msra.gmra.mxu0 %v526_v30  ;;  %v1034_v30 = vld [vmem:[%s1078_s2] ss:$0 sm:$0xff] }
  0x22   :  { %378 = vmatmul.bf16.vlgmr.msra.gmra.mxu3 %v598_v31  ;;  %397 = vmatmul.bf16.vlgmr.msra.gmra.mxu1 %v530_v32 }
  0x23   :  { %796 = vmatpush.bf16.msrb.mxu3 %v738_v2  ;;  %v562_v2 = vor.u32 %v709_v61, %v561_v60 }
  0x27   :  { %797 = vmatpush.bf16.msrb.mxu3 %v737_v5  ;;  %v593_v5 = vld [vmem:[%s1077_s0 + $0x80] sm:$0xf] }
  0x28   :  { %v594_v7 = vor.u32 %v716_v6, %v593_v5 }
  0x2a   :  { %693 = vmatmul.msk.bf16.gmra.mxu2 %vm315_vm0, %v558_v35 }
  0x2b   :  { %798 = vmatpush.bf16.msrb.mxu3 %v736_v10  ;;  %v711_v10 = vld [vmem:[%s1077_s0 + $0x64] sm:$0xf] }
  0x2c   :  { %v578_v13 = vor.u32 %v711_v10, %v575_v11 }
  0x2f   :  { %799 = vmatpush.bf16.msrb.mxu3 %v735_v12  ;;  %v574_v12 = vor.u32 %v712_v9, %v573_v8 }
  0x31   :  { %353 = vmatmul.bf16.gmra.mxu0 %v538_v42 }
  0x32   :  { %383 = vmatmul.bf16.gmra.mxu3 %v610_v43  ;;  %402 = vmatmul.bf16.gmra.mxu1 %v542_v44 }
  0x33   :  { %800 = vmatpush.bf16.msrb.mxu3 %v734_v14  ;;  %v605_v14 = vld [vmem:[%s1077_s0 + $0x98] sm:$0xf] }
  0x37   :  { %801 = vmatpush.bf16.msrb.mxu3 %v733_v16  ;;  %v606_v16 = vor.u32 %v719_v15, %v605_v14 }
  0x3a   :  { %694 = vmatmul.msk.bf16.gmra.mxu2 %vm315_vm0, %v570_v47 }
  0x3b   :  { %802 = vmatpush.bf16.msrb.mxu3 %v732_v21  ;;  %v586_v21 = vor.u32 %v715_v18, %v585_v17 }
  0x3f   :  { %803 = vmatpush.bf16.msrb.mxu3 %v731_v23  ;;  %v617_v23 = vld [vmem:[%s1077_s0 + $0xb0] sm:$0xf] }
  0x40   :  { %v618_v25 = vor.u32 %v722_v24, %v617_v23 }
  0x41   :  { %358 = vmatmul.bf16.gmra.mxu0 %v550_v54 }
  0x42   :  { %427 = vmatmul.bf16.vlgmr.msrb.gmra.mxu3 %v602_v55  ;;  %407 = vmatmul.bf16.gmra.mxu1 %v554_v56 }
  0x4a   :  { %695 = vmatmul.msk.bf16.gmra.mxu2 %vm315_vm0, %v582_v59 }
  0x51   :  { %363 = vmatmul.bf16.gmra.mxu0 %v562_v2 }
  0x52   :  { %432 = vmatmul.bf16.gmra.mxu3 %v614_v3  ;;  %412 = vmatmul.bf16.gmra.mxu1 %v566_v4 }
  0x5a   :  { %696 = vmatmul.msk.bf16.gmra.mxu2 %vm315_vm0, %v594_v7 }
  0x61   :  { %368 = vmatmul.bf16.gmra.mxu0 %v574_v12 }
  0x62   :  { %417 = vmatmul.bf16.gmra.mxu1 %v578_v13 }
  0x6a   :  { %697 = vmatmul.msk.bf16.gmra.mxu2 %vm315_vm0, %v606_v16 }
  0x71   :  { %373 = vmatmul.bf16.gmra.mxu0 %v586_v21 }
  0x72   :  { %422 = vmatmul.bf16.gmra.mxu1 %v590_v22 }
  0x7a   :  { %698 = vmatmul.msk.bf16.gmra.mxu2 %vm315_vm0, %v618_v25 }
  0x8d   :  { %v447_v26 = vpop.f32.mrf.mxu2 }
  0x95   :  { %v449_v27 = vpop.f32.mrf.mxu2 }
  0x9d   :  { %v452_v28 = vpop.f32.mrf.mxu2 }
  0x9e   :  { %v349_v29 = vpop.f32.mrf.mxu0 }
  0x9f   :  { %v398_v31 = vpop.f32.mrf.mxu1  ;;  %v350_v32 = vadd.f32 %v1034_v30, %v349_v29 }
  0xa1   :  { %v399_v35 = vadd.f32 %v398_v31, %v350_v32 }
  0xa3   :  { %v448_v39 = vadd.f32 %v447_v26, %v399_v35 }
  0xa5   :  { %v454_v33 = vpop.f32.mrf.mxu2  ;;  %v379_v52 = vpop.f32.mrf.mxu3 }
  0xa6   :  { %v351_v34 = vpop.f32.mrf.mxu0 }
  0xa7   :  { %v352_v36 = vadd.f32 %v1034_v30, %v351_v34  ;;  %v400_v37 = vpop.f32.mrf.mxu1 }
  0xa9   :  { %v401_v38 = vadd.f32 %v400_v37, %v352_v36 }
  0xab   :  { %v450_v40 = vadd.f32 %v449_v27, %v401_v38 }
  0xad   :  { %v744_v41 = vpack.c.bf16 %v450_v40, %v448_v39  ;;  %v457_v42 = vpop.f32.mrf.mxu2  ;;  %v381_v60 = vpop.f32.mrf.mxu3  ;;  %v380_v40 = vadd.f32 %v1034_v30, %v379_v52 }
  0xae   :  { %v354_v43 = vpop.f32.mrf.mxu0 }
  0xaf   :  { %745 = vst [vmem:[%s1079_s3] sm:$0xff] %v744_v41   ;;  %v403_v44 = vpop.f32.mrf.mxu1  ;;  %v355_v45 = vadd.f32 %v1034_v30, %v354_v43  ;;  %v382_v41 = vadd.f32 %v1034_v30, %v381_v60 }
  0xb1   :  { %v404_v48 = vadd.f32 %v403_v44, %v355_v45 }
  0xb3   :  { %v453_v53 = vadd.f32 %v452_v28, %v404_v48 }
  0xb5   :  { %v459_v46 = vpop.f32.mrf.mxu2  ;;  %v384_v8 = vpop.f32.mrf.mxu3 }
  0xb6   :  { %v356_v47 = vpop.f32.mrf.mxu0 }
  0xb7   :  { %v357_v49 = vadd.f32 %v1034_v30, %v356_v47  ;;  %v405_v50 = vpop.f32.mrf.mxu1 }
  0xb9   :  { %v406_v51 = vadd.f32 %v405_v50, %v357_v49 }
  0xbb   :  { %v455_v54 = vadd.f32 %v454_v33, %v406_v51 }
  0xbd   :  { %v749_v55 = vpack.c.bf16 %v455_v54, %v453_v53  ;;  %v462_v56 = vpop.f32.mrf.mxu2  ;;  %v386_v16 = vpop.f32.mrf.mxu3 }
  0xbe   :  { %v359_v57 = vpop.f32.mrf.mxu0  ;;  %v387_v60 = vadd.f32 %v1034_v30, %v386_v16 }
  0xbf   :  { %781 = vst [vmem:[%s1079_s3 + $0x8] sm:$0xff] %v749_v55   ;;  %v408_v58 = vpop.f32.mrf.mxu1  ;;  %v360_v59 = vadd.f32 %v1034_v30, %v359_v57 }
  0xc1   :  { %v409_v63 = vadd.f32 %v408_v58, %v360_v59  ;;  %v385_v59 = vadd.f32 %v1034_v30, %v384_v8 }
  0xc3   :  { %v458_v3 = vadd.f32 %v457_v42, %v409_v63 }
  0xc5   :  { %v464_v61 = vpop.f32.mrf.mxu2  ;;  %v428_v24 = vpop.f32.mrf.mxu3 }
  0xc6   :  { %v361_v62 = vpop.f32.mrf.mxu0  ;;  %v429_v43 = vadd.f32 %v428_v24, %v380_v40 }
  0xc7   :  { %v362_v0 = vadd.f32 %v1034_v30, %v361_v62  ;;  %v410_v1 = vpop.f32.mrf.mxu1 }
  0xc9   :  { %v411_v2 = vadd.f32 %v410_v1, %v362_v0 }
  0xcb   :  { %v460_v4 = vadd.f32 %v459_v46, %v411_v2 }
  0xcd   :  { %v754_v5 = vpack.c.bf16 %v460_v4, %v458_v3  ;;  %v467_v6 = vpop.f32.mrf.mxu2  ;;  %v430_v35 = vpop.f32.mrf.mxu3 }
  0xce   :  { %v364_v7 = vpop.f32.mrf.mxu0  ;;  %v431_v44 = vadd.f32 %v430_v35, %v382_v41 }
  0xcf   :  { %782 = vst [vmem:[%s1079_s3 + $0x10] sm:$0xff] %v754_v5   ;;  %v413_v9 = vpop.f32.mrf.mxu1  ;;  %v365_v10 = vadd.f32 %v1034_v30, %v364_v7 }
  0xd1   :  { %v414_v13 = vadd.f32 %v413_v9, %v365_v10 }
  0xd3   :  { %v463_v18 = vadd.f32 %v462_v56, %v414_v13 }
  0xd5   :  { %v469_v11 = vpop.f32.mrf.mxu2  ;;  %v433_v49 = vpop.f32.mrf.mxu3 }
  0xd6   :  { %v366_v12 = vpop.f32.mrf.mxu0  ;;  %v434_v62 = vadd.f32 %v433_v49, %v385_v59 }
  0xd7   :  { %v367_v14 = vadd.f32 %v1034_v30, %v366_v12  ;;  %v415_v15 = vpop.f32.mrf.mxu1 }
  0xd9   :  { %v416_v17 = vadd.f32 %v415_v15, %v367_v14 }
  0xdb   :  { %v465_v19 = vadd.f32 %v464_v61, %v416_v17 }
  0xdd   :  { %v759_v20 = vpack.c.bf16 %v465_v19, %v463_v18  ;;  %v472_v21 = vpop.f32.mrf.mxu2  ;;  %v435_v61 = vpop.f32.mrf.mxu3 }
  0xde   :  { %v369_v22 = vpop.f32.mrf.mxu0  ;;  %v436_v63 = vadd.f32 %v435_v61, %v387_v60 }
  0xdf   :  { %783 = vst [vmem:[%s1079_s3 + $0x18] sm:$0xff] %v759_v20   ;;  %v418_v23 = vpop.f32.mrf.mxu1  ;;  %v370_v25 = vadd.f32 %v1034_v30, %v369_v22 }
  0xe1   :  { %v419_v28 = vadd.f32 %v418_v23, %v370_v25 }
  0xe3   :  { %v468_v33 = vadd.f32 %v467_v6, %v419_v28 }
  0xe5   :  { %v474_v26 = vpop.f32.mrf.mxu2 }
  0xe6   :  { %v371_v27 = vpop.f32.mrf.mxu0 }
  0xe7   :  { %v372_v29 = vadd.f32 %v1034_v30, %v371_v27  ;;  %v420_v31 = vpop.f32.mrf.mxu1 }
  0xe9   :  { %v421_v32 = vadd.f32 %v420_v31, %v372_v29 }
  0xeb   :  { %v470_v34 = vadd.f32 %v469_v11, %v421_v32 }
  0xed   :  { %v764_v36 = vpack.c.bf16 %v470_v34, %v468_v33  ;;  %v477_v37 = vpop.f32.mrf.mxu2 }
  0xee   :  { %v374_v38 = vpop.f32.mrf.mxu0  ;;  %v478_v46 = vadd.f32 %v477_v37, %v429_v43 }
  0xef   :  { %784 = vst [vmem:[%s1079_s3 + $0x20] sm:$0xff] %v764_v36   ;;  %v423_v39 = vpop.f32.mrf.mxu1  ;;  %v375_v42 = vadd.f32 %v1034_v30, %v374_v38 }
  0xf1   :  { %v424_v50 = vadd.f32 %v423_v39, %v375_v42 }
  0xf3   :  { %v473_v52 = vadd.f32 %v472_v21, %v424_v50 }
  0xf5   :  { %v479_v45 = vpop.f32.mrf.mxu2 }
  0xf6   :  { %v480_v47 = vadd.f32 %v479_v45, %v431_v44  ;;  %v376_v48 = vpop.f32.mrf.mxu0 }
  0xf7   :  { %v377_v51 = vadd.f32 %v1034_v30, %v376_v48  ;;  %v425_v53 = vpop.f32.mrf.mxu1 }
  0xf8   :  { %v774_v54 = vpack.c.bf16 %v480_v47, %v478_v46 }
  0xf9   :  { %v426_v55 = vadd.f32 %v425_v53, %v377_v51 }
  0xfa   :  { %786 = vst [vmem:[%s1079_s3 + $0x30] sm:$0xff] %v774_v54  }
  0xfb   :  { %v475_v56 = vadd.f32 %v474_v26, %v426_v55 }
  0xfd   :  { %v769_v57 = vpack.c.bf16 %v475_v56, %v473_v52  ;;  %v482_v58 = vpop.f32.mrf.mxu2 }
  0xfe   :  { %v483_v1 = vadd.f32 %v482_v58, %v434_v62 }
  0xff   :  { %785 = vst [vmem:[%s1079_s3 + $0x28] sm:$0xff] %v769_v57  }
 0x105   :  { %v484_v0 = vpop.f32.mrf.mxu2 }
 0x106   :  { %v485_v2 = vadd.f32 %v484_v0, %v436_v63 }
 0x108   :  { %v779_v3 = vpack.c.bf16 %v485_v2, %v483_v1 }
 0x10a   :  { %787 = vst [vmem:[%s1079_s3 + $0x38] sm:$0xff] %v779_v3  }

// kernel: _lambda_.17
= control target key start
LH: loop header
LB: loop body
LE: loop exit
PB: predicated region body
PF: predicated region fallthrough
CT: control target
= control target key end

     0   :  { %s2031_s0 = inlined_call_operand.vmem [shape: bf16[128,576], index: 0, kind: input, shape index: {}]   ;;  %s2032_s1 = inlined_call_operand.vmem [shape: bf16[576,128], index: 1, kind: input, shape index: {}]   ;;  %s2033_s2 = inlined_call_operand.vmem [shape: f32[1,128], index: 2, kind: input, shape index: {}]   ;;  %s2034_s3 = inlined_call_operand.vmem [shape: bf16[128,128], index: 3, kind: input, shape index: {}]   ;;  %s2035_s4 = inlined_call_operand.vmem [shape: f32[2,128], index: 4, kind: input, shape index: {}]   ;;  %s2036_s5 = inlined_call_operand.vmem [shape: f32[128,128], index: 5, kind: input, shape index: {}]   ;;  %s2037_s6 = inlined_call_operand.vmem [shape: f32[1,128], index: 6, kind: input, shape index: {}]   ;;  %s2038_s7 = inlined_call_operand.hbm [shape: f32[2,128], index: 7, kind: output, shape index: {}]  }
   0x1   :  { %v1339_v0 = vld [vmem:[%s2032_s1 + $0x38] sm:$0xff]  ;;  %v1338_v1 = vld [vmem:[%s2032_s1 + $0x30] sm:$0xff]  ;;  %v1337_v2 = vld [vmem:[%s2032_s1 + $0x28] sm:$0xff] }
   0x2   :  { %1407 = vmatpush.bf16.msra.mxu1 %v1339_v0  ;;  %1408 = vmatpush.bf16.msra.mxu2 %v1339_v0 }
   0x3   :  { %1409 = vmatpush.bf16.msra.mxu3 %v1339_v0  ;;  %593 = vmatpush.bf16.msra.mxu0 %v1339_v0 }
   0x6   :  { %1410 = vmatpush.bf16.msra.mxu1 %v1338_v1  ;;  %1411 = vmatpush.bf16.msra.mxu2 %v1338_v1 }
   0x7   :  { %1412 = vmatpush.bf16.msra.mxu3 %v1338_v1  ;;  %594 = vmatpush.bf16.msra.mxu0 %v1338_v1 }
   0x8   :  { %12 = vsyncpa [#allocation3], 0  ;;  %v1336_v3 = vld [vmem:[%s2032_s1 + $0x20] sm:$0xff]  ;;  %v1335_v4 = vld [vmem:[%s2032_s1 + $0x18] sm:$0xff]  ;;  %vm568_vm0 = vcmask 523264   ;;  %s1460_s21 = smov [#allocation2]  }
   0x9   :  { %v1334_v5 = vld [vmem:[%s2032_s1 + $0x10] sm:$0xff]  ;;  %v1333_v6 = vld [vmem:[%s2032_s1 + $0x8] sm:$0xff]  ;;  %v1332_v7 = vld [vmem:[%s2032_s1] sm:$0xff] }
   0xa   :  { %1413 = vmatpush.bf16.msra.mxu1 %v1337_v2  ;;  %1414 = vmatpush.bf16.msra.mxu2 %v1337_v2  ;;  %v1022_v8 = vld [vmem:[%s2031_s0 + $0x50] sm:$0xf]  ;;  %v1304_v9 = vld [vmem:[%s2031_s0 + $0x60] sm:$0xf0]  ;;  %v1062_v10 = vld [vmem:[%s2031_s0 + $0xa0] sm:$0xf] }
   0xb   :  { %1415 = vmatpush.bf16.msra.mxu3 %v1337_v2  ;;  %595 = vmatpush.bf16.msra.mxu0 %v1337_v2  ;;  %v1314_v11 = vld [vmem:[%s2031_s0 + $0xb0] sm:$0xf0]  ;;  %v1102_v12 = vld [vmem:[%s2031_s0 + $0xf0] sm:$0xf]  ;;  %v1324_v13 = vld [vmem:[%s2031_s0 + $0x100] sm:$0xf0]  ;;  %v1023_v18 = vor.u32 %v1304_v9, %v1022_v8 }
   0xc   :  { %v982_v14 = vld [vmem:[%s2031_s0] sm:$0xf]  ;;  %v1294_v15 = vld [vmem:[%s2031_s0 + $0x10] sm:$0xf0]  ;;  %v1347_v16 = vld [vmem:[%s2032_s1 + $0x78] sm:$0xff]  ;;  %v1063_v19 = vor.u32 %v1314_v11, %v1062_v10  ;;  %v1103_v20 = vor.u32 %v1324_v13, %v1102_v12 }
   0xd   :  { %v1355_v17 = vld [vmem:[%s2032_s1 + $0xb8] sm:$0xff]  ;;  %v983_v21 = vor.u32 %v1294_v15, %v982_v14  ;;  %v1346_v24 = vld [vmem:[%s2032_s1 + $0x70] sm:$0xff]  ;;  %v1345_v28 = vld [vmem:[%s2032_s1 + $0x68] sm:$0xff] }
   0xe   :  { %1416 = vmatpush.bf16.msra.mxu1 %v1336_v3  ;;  %1417 = vmatpush.bf16.msra.mxu2 %v1336_v3  ;;  %v1363_v22 = vld [vmem:[%s2032_s1 + $0xf8] sm:$0xff]  ;;  %v1354_v25 = vld [vmem:[%s2032_s1 + $0xb0] sm:$0xff]  ;;  %v1353_v29 = vld [vmem:[%s2032_s1 + $0xa8] sm:$0xff] }
   0xf   :  { %1418 = vmatpush.bf16.msra.mxu3 %v1336_v3  ;;  %596 = vmatpush.bf16.msra.mxu0 %v1336_v3  ;;  %v1367_v23 = vld [vmem:[%s2032_s1 + $0x118] sm:$0xff]  ;;  %v1362_v26 = vld [vmem:[%s2032_s1 + $0xf0] sm:$0xff]  ;;  %v1361_v30 = vld [vmem:[%s2032_s1 + $0xe8] sm:$0xff] }
  0x10   :  { %v1366_v27 = vld [vmem:[%s2032_s1 + $0x110] sm:$0xff]  ;;  %v1365_v31 = vld [vmem:[%s2032_s1 + $0x108] sm:$0xff]  ;;  %v1344_v32 = vld [vmem:[%s2032_s1 + $0x60] sm:$0xff] }
  0x11   :  { %v1352_v33 = vld [vmem:[%s2032_s1 + $0xa0] sm:$0xff]  ;;  %v1042_v35 = vld [vmem:[%s2031_s0 + $0x78] sm:$0xf]  ;;  %v1309_v36 = vld [vmem:[%s2031_s0 + $0x88] sm:$0xf0] }
  0x12   :  { %1419 = vmatpush.bf16.msra.mxu1 %v1335_v4  ;;  %1420 = vmatpush.bf16.msra.mxu2 %v1335_v4  ;;  %v1360_v34 = vld [vmem:[%s2032_s1 + $0xe0] sm:$0xff]  ;;  %v1082_v37 = vld [vmem:[%s2031_s0 + $0xc8] sm:$0xf]  ;;  %v1319_v38 = vld [vmem:[%s2031_s0 + $0xd8] sm:$0xf0]  ;;  %v1043_v46 = vor.u32 %v1309_v36, %v1042_v35 }
  0x13   :  { %1421 = vmatpush.bf16.msra.mxu3 %v1335_v4  ;;  %597 = vmatpush.bf16.msra.mxu0 %v1335_v4  ;;  %v1122_v39 = vld [vmem:[%s2031_s0 + $0x118] sm:$0xf]  ;;  %v1329_v40 = vld [vmem:[%s2031_s0 + $0x128] sm:$0xf0]  ;;  %v1002_v41 = vld [vmem:[%s2031_s0 + $0x28] sm:$0xf]  ;;  %v1083_v47 = vor.u32 %v1319_v38, %v1082_v37 }
  0x14   :  { %v1299_v42 = vld [vmem:[%s2031_s0 + $0x38] sm:$0xf0]  ;;  %v1364_v43 = vld [vmem:[%s2032_s1 + $0x100] sm:$0xff]  ;;  %v1123_v48 = vor.u32 %v1329_v40, %v1122_v39  ;;  %v1342_v51 = vld [vmem:[%s2032_s1 + $0x50] sm:$0xff] }
  0x15   :  { %v1343_v44 = vld [vmem:[%s2032_s1 + $0x58] sm:$0xff]  ;;  %v1003_v49 = vor.u32 %v1299_v42, %v1002_v41  ;;  %v1350_v52 = vld [vmem:[%s2032_s1 + $0x90] sm:$0xff]  ;;  %v1341_v54 = vld [vmem:[%s2032_s1 + $0x48] sm:$0xff] }
  0x16   :  { %1422 = vmatpush.bf16.msra.mxu1 %v1334_v5  ;;  %1423 = vmatpush.bf16.msra.mxu2 %v1334_v5  ;;  %v1351_v45 = vld [vmem:[%s2032_s1 + $0x98] sm:$0xff]  ;;  %v1358_v53 = vld [vmem:[%s2032_s1 + $0xd0] sm:$0xff]  ;;  %v1349_v55 = vld [vmem:[%s2032_s1 + $0x88] sm:$0xff] }
  0x17   :  { %1424 = vmatpush.bf16.msra.mxu3 %v1334_v5  ;;  %598 = vmatpush.bf16.msra.mxu0 %v1334_v5  ;;  %v1359_v50 = vld [vmem:[%s2032_s1 + $0xd8] sm:$0xff]  ;;  %v1357_v56 = vld [vmem:[%s2032_s1 + $0xc8] sm:$0xff]  ;;  %v1340_v57 = vld [vmem:[%s2032_s1 + $0x40] sm:$0xff] }
  0x18   :  { %v1348_v58 = vld [vmem:[%s2032_s1 + $0x80] sm:$0xff]  ;;  %v984_v61 = vld [vmem:[%s2031_s0 + $0x14] sm:$0xf0]  ;;  %v990_v62 = vld [vmem:[%s2031_s0 + $0x8] sm:$0xf] }
  0x19   :  { %v1356_v59 = vld [vmem:[%s2032_s1 + $0xc0] sm:$0xff]  ;;  %v1295_v63 = vld [vmem:[%s2031_s0 + $0x18] sm:$0xf0]  ;;  %v1293_v0 = vld [vmem:[%s2031_s0 + $0xc] sm:$0xf]  ;;  %s971_s1 = sshll.u32 %s2038_s7, 4  ;;  %s972_s1 = int_to_ptr.hbm [resolvable:$true] %s971_s1 }
  0x1a   :  { %1425 = vmatpush.bf16.msra.mxu1 %v1333_v6  ;;  %1426 = vmatpush.bf16.msra.mxu2 %v1333_v6  ;;  %v1292_v60 = vld [vmem:[%s2031_s0 + $0x4] sm:$0xf]  ;;  %v992_v1 = vld [vmem:[%s2031_s0 + $0x1c] sm:$0xf0]  ;;  %v998_v2 = vld [vmem:[%s2031_s0 + $0x10] sm:$0xf]  ;;  %v991_v5 = vor.u32 %v1295_v63, %v990_v62 }
  0x1b   :  { %1427 = vmatpush.bf16.msra.mxu3 %v1333_v6  ;;  %599 = vmatpush.bf16.msra.mxu0 %v1333_v6  ;;  %v1296_v3 = vld [vmem:[%s2031_s0 + $0x20] sm:$0xf0]  ;;  %v987_v4 = vor.u32 %v1292_v60, %v984_v61  ;;  %v995_v6 = vor.u32 %v1293_v0, %v992_v1  ;;  %v1297_v8 = vld [vmem:[%s2031_s0 + $0x2c] sm:$0xf]  ;;  %v1004_v9 = vld [vmem:[%s2031_s0 + $0x3c] sm:$0xf0] }
  0x1c   :  { %v1010_v10 = vld [vmem:[%s2031_s0 + $0x30] sm:$0xf]  ;;  %v1300_v11 = vld [vmem:[%s2031_s0 + $0x40] sm:$0xf0]  ;;  %v1298_v12 = vld [vmem:[%s2031_s0 + $0x34] sm:$0xf] }
  0x1d   :  { %v1012_v13 = vld [vmem:[%s2031_s0 + $0x44] sm:$0xf0]  ;;  %v1018_v14 = vld [vmem:[%s2031_s0 + $0x38] sm:$0xf]  ;;  %v1301_v15 = vld [vmem:[%s2031_s0 + $0x48] sm:$0xf0] }
  0x1e   :  { %1428 = vmatpush.bf16.msra.mxu1 %v1332_v7  ;;  %1429 = vmatpush.bf16.msra.mxu2 %v1332_v7  ;;  %v1310_v35 = vld [vmem:[%s2031_s0 + $0x90] sm:$0xf0]  ;;  %v1308_v36 = vld [vmem:[%s2031_s0 + $0x84] sm:$0xf]  ;;  %v1052_v37 = vld [vmem:[%s2031_s0 + $0x94] sm:$0xf0] }
  0x1f   :  { %1430 = vmatpush.bf16.msra.mxu3 %v1332_v7  ;;  %600 = vmatpush.bf16.msra.mxu0 %v1332_v7  ;;  %v999_v7 = vor.u32 %v1296_v3, %v998_v2  ;;  %v1058_v38 = vld [vmem:[%s2031_s0 + $0x88] sm:$0xf]  ;;  %v1311_v39 = vld [vmem:[%s2031_s0 + $0x98] sm:$0xf0]  ;;  %v1055_v42 = vor.u32 %v1308_v36, %v1052_v37  ;;  %v1318_v60 = vld [vmem:[%s2031_s0 + $0xd4] sm:$0xf] }
  0x20   :  { %v1092_v61 = vld [vmem:[%s2031_s0 + $0xe4] sm:$0xf0]  ;;  %v1098_v62 = vld [vmem:[%s2031_s0 + $0xd8] sm:$0xf]  ;;  %v1321_v63 = vld [vmem:[%s2031_s0 + $0xe8] sm:$0xf0] }
  0x21   :  { %611 = vmatmul.bf16.vlgmr.msra.gmra.mxu1 %v1023_v18  ;;  %621 = vmatmul.bf16.vlgmr.msra.gmra.mxu2 %v1063_v19  ;;  %v1015_v18 = vor.u32 %v1298_v12, %v1012_v13  ;;  %v1019_v19 = vor.u32 %v1301_v15, %v1018_v14  ;;  %v1095_v2 = vor.u32 %v1318_v60, %v1092_v61 }
  0x22   :  { %642 = vmatpush.bf16.msrb.mxu1 %v1347_v16  ;;  %691 = vmatpush.bf16.msrb.mxu2 %v1355_v17  ;;  %v1007_v16 = vor.u32 %v1297_v8, %v1004_v9  ;;  %v1011_v17 = vor.u32 %v1300_v11, %v1010_v10  ;;  %v1099_v3 = vor.u32 %v1321_v63, %v1098_v62  ;;  %v1323_v8 = vld [vmem:[%s2031_s0 + $0xfc] sm:$0xf]  ;;  %v1112_v9 = vld [vmem:[%s2031_s0 + $0x10c] sm:$0xf0]  ;;  %v1118_v10 = vld [vmem:[%s2031_s0 + $0x100] sm:$0xf] }
  0x23   :  { %631 = vmatmul.bf16.vlgmr.msra.gmra.mxu3 %v1103_v20  ;;  %601 = vmatmul.bf16.vlgmr.msra.gmra.mxu0 %v983_v21  ;;  %v1302_v20 = vld [vmem:[%s2031_s0 + $0x54] sm:$0xf]  ;;  %v1024_v21 = vld [vmem:[%s2031_s0 + $0x64] sm:$0xf0]  ;;  %v1115_v15 = vor.u32 %v1323_v8, %v1112_v9 }
  0x24   :  { %740 = vmatpush.bf16.msrb.mxu3 %v1363_v22  ;;  %793 = vmatpush.bf16.msrb.mxu0 %v1367_v23  ;;  %v1030_v22 = vld [vmem:[%s2031_s0 + $0x58] sm:$0xf]  ;;  %v1305_v23 = vld [vmem:[%s2031_s0 + $0x68] sm:$0xf0]  ;;  %v1326_v11 = vld [vmem:[%s2031_s0 + $0x110] sm:$0xf0] }
  0x26   :  { %643 = vmatpush.bf16.msrb.mxu1 %v1346_v24  ;;  %692 = vmatpush.bf16.msrb.mxu2 %v1354_v25  ;;  %v1303_v24 = vld [vmem:[%s2031_s0 + $0x5c] sm:$0xf]  ;;  %v1032_v25 = vld [vmem:[%s2031_s0 + $0x6c] sm:$0xf0] }
  0x28   :  { %741 = vmatpush.bf16.msrb.mxu3 %v1362_v26  ;;  %794 = vmatpush.bf16.msrb.mxu0 %v1366_v27  ;;  %v1038_v26 = vld [vmem:[%s2031_s0 + $0x60] sm:$0xf]  ;;  %v1306_v27 = vld [vmem:[%s2031_s0 + $0x70] sm:$0xf0] }
  0x2a   :  { %644 = vmatpush.bf16.msrb.mxu1 %v1345_v28  ;;  %693 = vmatpush.bf16.msrb.mxu2 %v1353_v29  ;;  %v1027_v28 = vor.u32 %v1302_v20, %v1024_v21  ;;  %v1031_v29 = vor.u32 %v1305_v23, %v1030_v22  ;;  %v1327_v22 = vld [vmem:[%s2031_s0 + $0x11c] sm:$0xf]  ;;  %v1124_v23 = vld [vmem:[%s2031_s0 + $0x12c] sm:$0xf0] }
  0x2c   :  { %742 = vmatpush.bf16.msrb.mxu3 %v1361_v30  ;;  %795 = vmatpush.bf16.msrb.mxu0 %v1365_v31  ;;  %v1035_v30 = vor.u32 %v1303_v24, %v1032_v25  ;;  %v1039_v31 = vor.u32 %v1306_v27, %v1038_v26  ;;  %v1130_v24 = vld [vmem:[%s2031_s0 + $0x120] sm:$0xf]  ;;  %v1330_v25 = vld [vmem:[%s2031_s0 + $0x130] sm:$0xf0]  ;;  %v1328_v26 = vld [vmem:[%s2031_s0 + $0x124] sm:$0xf] }
  0x2d   :  { %v1132_v27 = vld [vmem:[%s2031_s0 + $0x134] sm:$0xf0] }
  0x2e   :  { %645 = vmatpush.bf16.msrb.mxu1 %v1344_v32  ;;  %694 = vmatpush.bf16.msrb.mxu2 %v1352_v33  ;;  %v1307_v32 = vld [vmem:[%s2031_s0 + $0x7c] sm:$0xf]  ;;  %v1044_v33 = vld [vmem:[%s2031_s0 + $0x8c] sm:$0xf0] }
  0x2f   :  { %v1047_v40 = vor.u32 %v1307_v32, %v1044_v33  ;;  %v1127_v32 = vor.u32 %v1327_v22, %v1124_v23  ;;  %v1131_v33 = vor.u32 %v1330_v25, %v1130_v24 }
  0x30   :  { %743 = vmatpush.bf16.msrb.mxu3 %v1360_v34  ;;  %796 = vmatpush.bf16.msrb.mxu0 %v1364_v43  ;;  %v1050_v34 = vld [vmem:[%s2031_s0 + $0x80] sm:$0xf]  ;;  %v1059_v43 = vor.u32 %v1311_v39, %v1058_v38 }
  0x31   :  { %616 = vmatmul.bf16.gmra.mxu1 %v1043_v46  ;;  %626 = vmatmul.bf16.gmra.mxu2 %v1083_v47  ;;  %v1051_v41 = vor.u32 %v1310_v35, %v1050_v34  ;;  %v1070_v46 = vld [vmem:[%s2031_s0 + $0xa8] sm:$0xf]  ;;  %v1315_v47 = vld [vmem:[%s2031_s0 + $0xb8] sm:$0xf0]  ;;  %v1135_v35 = vor.u32 %v1328_v26, %v1132_v27 }
  0x32   :  { %646 = vmatpush.bf16.msrb.mxu1 %v1343_v44  ;;  %695 = vmatpush.bf16.msrb.mxu2 %v1351_v45  ;;  %v1312_v44 = vld [vmem:[%s2031_s0 + $0xa4] sm:$0xf]  ;;  %v1064_v45 = vld [vmem:[%s2031_s0 + $0xb4] sm:$0xf0] }
  0x33   :  { %636 = vmatmul.bf16.gmra.mxu3 %v1123_v48  ;;  %606 = vmatmul.bf16.gmra.mxu0 %v1003_v49  ;;  %v1313_v48 = vld [vmem:[%s2031_s0 + $0xac] sm:$0xf]  ;;  %v1072_v49 = vld [vmem:[%s2031_s0 + $0xbc] sm:$0xf0] }
  0x34   :  { %744 = vmatpush.bf16.msrb.mxu3 %v1359_v50  ;;  %v1078_v50 = vld [vmem:[%s2031_s0 + $0xb0] sm:$0xf] }
  0x36   :  { %647 = vmatpush.bf16.msrb.mxu1 %v1342_v51  ;;  %696 = vmatpush.bf16.msrb.mxu2 %v1350_v52  ;;  %v1316_v51 = vld [vmem:[%s2031_s0 + $0xc0] sm:$0xf0]  ;;  %v1067_v52 = vor.u32 %v1312_v44, %v1064_v45 }
  0x38   :  { %745 = vmatpush.bf16.msrb.mxu3 %v1358_v53  ;;  %v1071_v53 = vor.u32 %v1315_v47, %v1070_v46 }
  0x3a   :  { %648 = vmatpush.bf16.msrb.mxu1 %v1341_v54  ;;  %697 = vmatpush.bf16.msrb.mxu2 %v1349_v55  ;;  %v1075_v54 = vor.u32 %v1313_v48, %v1072_v49  ;;  %v1079_v55 = vor.u32 %v1316_v51, %v1078_v50 }
  0x3c   :  { %746 = vmatpush.bf16.msrb.mxu3 %v1357_v56  ;;  %v1317_v56 = vld [vmem:[%s2031_s0 + $0xcc] sm:$0xf] }
  0x3e   :  { %649 = vmatpush.bf16.msrb.mxu1 %v1340_v57  ;;  %698 = vmatpush.bf16.msrb.mxu2 %v1348_v58  ;;  %v1084_v57 = vld [vmem:[%s2031_s0 + $0xdc] sm:$0xf0]  ;;  %v1090_v58 = vld [vmem:[%s2031_s0 + $0xd0] sm:$0xf] }
  0x3f   :  { %v1087_v0 = vor.u32 %v1317_v56, %v1084_v57 }
  0x40   :  { %747 = vmatpush.bf16.msrb.mxu3 %v1356_v59  ;;  %v1320_v59 = vld [vmem:[%s2031_s0 + $0xe0] sm:$0xf0] }
  0x41   :  { %650 = vmatmul.bf16.vlgmr.msrb.gmra.mxu1 %v987_v4  ;;  %699 = vmatmul.bf16.vlgmr.msrb.gmra.mxu2 %v991_v5  ;;  %v1091_v1 = vor.u32 %v1320_v59, %v1090_v58  ;;  %v1322_v4 = vld [vmem:[%s2031_s0 + $0xf4] sm:$0xf]  ;;  %v1104_v5 = vld [vmem:[%s2031_s0 + $0x104] sm:$0xf0] }
  0x42   :  { %v1107_v12 = vor.u32 %v1322_v4, %v1104_v5 }
  0x43   :  { %748 = vmatmul.bf16.vlgmr.msrb.gmra.mxu3 %v995_v6  ;;  %1284 = vmatmul.msk.bf16.vlgmr.msrb.gmra.mxu0 %vm568_vm0, %v999_v7  ;;  %v1110_v6 = vld [vmem:[%s2031_s0 + $0xf8] sm:$0xf]  ;;  %v1325_v7 = vld [vmem:[%s2031_s0 + $0x108] sm:$0xf0] }
  0x44   :  { %v1111_v13 = vor.u32 %v1325_v7, %v1110_v6 }
  0x51   :  { %655 = vmatmul.bf16.gmra.mxu1 %v1007_v16  ;;  %704 = vmatmul.bf16.gmra.mxu2 %v1011_v17  ;;  %v1119_v16 = vor.u32 %v1326_v11, %v1118_v10 }
  0x53   :  { %753 = vmatmul.bf16.gmra.mxu3 %v1015_v18  ;;  %1285 = vmatmul.msk.bf16.gmra.mxu0 %vm568_vm0, %v1019_v19 }
  0x61   :  { %660 = vmatmul.bf16.gmra.mxu1 %v1027_v28  ;;  %709 = vmatmul.bf16.gmra.mxu2 %v1031_v29  ;;  %v1138_v28 = vld [vmem:[%s2031_s0 + $0x128] sm:$0xf]  ;;  %v1331_v29 = vld [vmem:[%s2031_s0 + $0x138] sm:$0xf0] }
  0x62   :  { %v1139_v36 = vor.u32 %v1331_v29, %v1138_v28 }
  0x63   :  { %758 = vmatmul.bf16.gmra.mxu3 %v1035_v30  ;;  %1286 = vmatmul.msk.bf16.gmra.mxu0 %vm568_vm0, %v1039_v31 }
  0x71   :  { %665 = vmatmul.bf16.gmra.mxu1 %v1047_v40  ;;  %714 = vmatmul.bf16.gmra.mxu2 %v1051_v41 }
  0x73   :  { %763 = vmatmul.bf16.gmra.mxu3 %v1055_v42  ;;  %1287 = vmatmul.msk.bf16.gmra.mxu0 %vm568_vm0, %v1059_v43  ;;  %v1880_v42 = vld [vmem:[%s2033_s2] ss:$0 sm:$0xff]  ;;  %s969_s2 = sshll.u32 %s1460_s21, 4  ;;  %s970_s2 = int_to_ptr.vmem [resolvable:$true] %s969_s2 }
  0x81   :  { %670 = vmatmul.bf16.gmra.mxu1 %v1067_v52  ;;  %719 = vmatmul.bf16.gmra.mxu2 %v1071_v53 }
  0x83   :  { %768 = vmatmul.bf16.gmra.mxu3 %v1075_v54  ;;  %1288 = vmatmul.msk.bf16.gmra.mxu0 %vm568_vm0, %v1079_v55 }
  0x91   :  { %675 = vmatmul.bf16.gmra.mxu1 %v1087_v0  ;;  %724 = vmatmul.bf16.gmra.mxu2 %v1091_v1 }
  0x93   :  { %773 = vmatmul.bf16.gmra.mxu3 %v1095_v2  ;;  %1289 = vmatmul.msk.bf16.gmra.mxu0 %vm568_vm0, %v1099_v3 }
  0x9e   :  { %v1831_v14 = vpop.f32.mrf.mxu1 }
  0xa0   :  { %v602_v17 = vpop.f32.mrf.mxu0 }
  0xa1   :  { %680 = vmatmul.bf16.gmra.mxu1 %v1107_v12  ;;  %729 = vmatmul.bf16.gmra.mxu2 %v1111_v13  ;;  %v603_v44 = vadd.f32 %v1880_v42, %v602_v17  ;;  %v613_v13 = vadd.f32 %v1880_v42, %v1831_v14 }
  0xa3   :  { %778 = vmatmul.bf16.gmra.mxu3 %v1115_v15  ;;  %1290 = vmatmul.msk.bf16.gmra.mxu0 %vm568_vm0, %v1119_v16 }
  0xa4   :  { %v1834_v18 = vpop.f32.mrf.mxu2 }
  0xa6   :  { %v1836_v19 = vpop.f32.mrf.mxu3  ;;  %v1838_v20 = vpop.f32.mrf.mxu1 }
  0xa7   :  { %v615_v26 = vadd.f32 %v1880_v42, %v1838_v20 }
  0xa8   :  { %v604_v21 = vpop.f32.mrf.mxu0 }
  0xa9   :  { %v605_v50 = vadd.f32 %v1880_v42, %v604_v21 }
  0xac   :  { %v1864_v30 = vpop.f32.mrf.mxu2 }
  0xae   :  { %v1866_v31 = vpop.f32.mrf.mxu3  ;;  %v1868_v34 = vpop.f32.mrf.mxu1 }
  0xb0   :  { %v607_v37 = vpop.f32.mrf.mxu0 }
  0xb1   :  { %685 = vmatmul.bf16.gmra.mxu1 %v1127_v32  ;;  %734 = vmatmul.bf16.gmra.mxu2 %v1131_v33  ;;  %v608_v59 = vadd.f32 %v1880_v42, %v607_v37  ;;  %v618_v37 = vadd.f32 %v1880_v42, %v1868_v34 }
  0xb3   :  { %783 = vmatmul.bf16.gmra.mxu3 %v1135_v35  ;;  %1291 = vmatmul.msk.bf16.gmra.mxu0 %vm568_vm0, %v1139_v36 }
  0xb4   :  { %v1871_v38 = vpop.f32.mrf.mxu2 }
  0xb6   :  { %v1873_v39 = vpop.f32.mrf.mxu3  ;;  %v1875_v40 = vpop.f32.mrf.mxu1 }
  0xb8   :  { %v609_v41 = vpop.f32.mrf.mxu0 }
  0xb9   :  { %v610_v4 = vadd.f32 %v1880_v42, %v609_v41 }
  0xbc   :  { %v1882_v43 = vpop.f32.mrf.mxu2 }
  0xbe   :  { %v1885_v45 = vpop.f32.mrf.mxu3  ;;  %v651_v46 = vpop.f32.mrf.mxu1 }
  0xbf   :  { %v652_v47 = vadd.f32 %v651_v46, %v603_v44 }
  0xc0   :  { %v798_v48 = vpop.f32.mrf.mxu0 }
  0xc4   :  { %v700_v49 = vpop.f32.mrf.mxu2 }
  0xc5   :  { %v701_v51 = vadd.f32 %v700_v49, %v652_v47 }
  0xc6   :  { %v749_v52 = vpop.f32.mrf.mxu3  ;;  %v653_v53 = vpop.f32.mrf.mxu1 }
  0xc7   :  { %v750_v54 = vadd.f32 %v749_v52, %v701_v51  ;;  %v654_v55 = vadd.f32 %v653_v53, %v605_v50  ;;  %v620_v51 = vadd.f32 %v1880_v42, %v1875_v40 }
  0xc8   :  { %v800_v56 = vpop.f32.mrf.mxu0 }
  0xc9   :  { %v1888_v57 = vadd.f32 %v798_v48, %v750_v54 }
  0xcc   :  { %v702_v58 = vpop.f32.mrf.mxu2 }
  0xcd   :  { %v703_v60 = vadd.f32 %v702_v58, %v654_v55 }
  0xce   :  { %v751_v61 = vpop.f32.mrf.mxu3  ;;  %v656_v62 = vpop.f32.mrf.mxu1 }
  0xcf   :  { %v752_v63 = vadd.f32 %v751_v61, %v703_v60  ;;  %v657_v0 = vadd.f32 %v656_v62, %v608_v59  ;;  %v623_v60 = vadd.f32 %v1880_v42, %v1834_v18 }
  0xd0   :  { %v803_v1 = vpop.f32.mrf.mxu0 }
  0xd1   :  { %v1891_v2 = vadd.f32 %v800_v56, %v752_v63 }
  0xd4   :  { %v705_v3 = vpop.f32.mrf.mxu2 }
  0xd5   :  { %v706_v5 = vadd.f32 %v705_v3, %v657_v0 }
  0xd6   :  { %v754_v6 = vpop.f32.mrf.mxu3  ;;  %v658_v7 = vpop.f32.mrf.mxu1 }
  0xd7   :  { %v755_v8 = vadd.f32 %v754_v6, %v706_v5  ;;  %v659_v9 = vadd.f32 %v658_v7, %v610_v4 }
  0xd8   :  { %v805_v10 = vpop.f32.mrf.mxu0 }
  0xd9   :  { %v1894_v11 = vadd.f32 %v803_v1, %v755_v8 }
  0xdc   :  { %v707_v12 = vpop.f32.mrf.mxu2 }
  0xdd   :  { %v708_v15 = vadd.f32 %v707_v12, %v659_v9 }
  0xde   :  { %v756_v16 = vpop.f32.mrf.mxu3  ;;  %v661_v17 = vpop.f32.mrf.mxu1 }
  0xdf   :  { %v757_v21 = vadd.f32 %v756_v16, %v708_v15  ;;  %v662_v22 = vadd.f32 %v661_v17, %v613_v13 }
  0xe0   :  { %v808_v23 = vpop.f32.mrf.mxu0 }
  0xe1   :  { %v1898_v24 = vadd.f32 %v805_v10, %v757_v21 }
  0xe4   :  { %v710_v25 = vpop.f32.mrf.mxu2 }
  0xe5   :  { %v711_v27 = vadd.f32 %v710_v25, %v662_v22 }
  0xe6   :  { %v759_v28 = vpop.f32.mrf.mxu3  ;;  %v663_v29 = vpop.f32.mrf.mxu1 }
  0xe7   :  { %v760_v32 = vadd.f32 %v759_v28, %v711_v27  ;;  %v664_v33 = vadd.f32 %v663_v29, %v615_v26 }
  0xe8   :  { %v810_v35 = vpop.f32.mrf.mxu0 }
  0xe9   :  { %v1902_v36 = vadd.f32 %v808_v23, %v760_v32 }
  0xec   :  { %v712_v14 = vpop.f32.mrf.mxu2 }
  0xed   :  { %v713_v41 = vadd.f32 %v712_v14, %v664_v33 }
  0xee   :  { %v761_v44 = vpop.f32.mrf.mxu3  ;;  %v666_v46 = vpop.f32.mrf.mxu1 }
  0xef   :  { %v762_v47 = vadd.f32 %v761_v44, %v713_v41  ;;  %v667_v48 = vadd.f32 %v666_v46, %v618_v37  ;;  %v638_v41 = vadd.f32 %v1880_v42, %v1873_v39  ;;  %v635_v46 = vadd.f32 %v1880_v42, %v1866_v31 }
  0xf0   :  { %v813_v49 = vpop.f32.mrf.mxu0  ;;  %v628_v31 = vadd.f32 %v1880_v42, %v1871_v38 }
  0xf1   :  { %v1906_v50 = vadd.f32 %v810_v35, %v762_v47 }
  0xf4   :  { %v715_v20 = vpop.f32.mrf.mxu2 }
  0xf5   :  { %v716_v52 = vadd.f32 %v715_v20, %v667_v48  ;;  %v633_v20 = vadd.f32 %v1880_v42, %v1836_v19  ;;  %v1406_v19 = vld [vmem:[%s2034_s3 + $0x38] sm:$0xff]  }
  0xf6   :  { %v764_v53 = vpop.f32.mrf.mxu3  ;;  %v668_v54 = vpop.f32.mrf.mxu1  ;;  %v1398_v38 = vunpack.c.l.bf16 %v1406_v19 }
  0xf7   :  { %v765_v55 = vadd.f32 %v764_v53, %v716_v52  ;;  %v669_v56 = vadd.f32 %v668_v54, %v620_v51  ;;  %v630_v54 = vadd.f32 %v1880_v42, %v1882_v43 }
  0xf8   :  { %v815_v58 = vpop.f32.mrf.mxu0 }
  0xf9   :  { %v1910_v59 = vadd.f32 %v813_v49, %v765_v55  ;;  %v640_v55 = vadd.f32 %v1880_v42, %v1885_v45 }
  0xfc   :  { %v717_v34 = vpop.f32.mrf.mxu2 }
  0xfd   :  { %v718_v61 = vadd.f32 %v717_v34, %v669_v56 }
  0xfe   :  { %v766_v62 = vpop.f32.mrf.mxu3  ;;  %v671_v63 = vpop.f32.mrf.mxu1 }
  0xff   :  { %v767_v0 = vadd.f32 %v766_v62, %v718_v61  ;;  %v672_v1 = vadd.f32 %v671_v63, %v623_v60  ;;  %v625_v62 = vadd.f32 %v1880_v42, %v1864_v30 }
 0x100   :  { %v818_v3 = vpop.f32.mrf.mxu0 }
 0x101   :  { %v1914_v4 = vadd.f32 %v815_v58, %v767_v0 }
 0x104   :  { %v720_v40 = vpop.f32.mrf.mxu2 }
 0x105   :  { %v721_v5 = vadd.f32 %v720_v40, %v672_v1 }
 0x106   :  { %v769_v6 = vpop.f32.mrf.mxu3  ;;  %v673_v7 = vpop.f32.mrf.mxu1 }
 0x107   :  { %v770_v8 = vadd.f32 %v769_v6, %v721_v5 }
 0x108   :  { %v1916_v9 = vpop.f32.mrf.mxu0 }
 0x109   :  { %v1918_v10 = vadd.f32 %v818_v3, %v770_v8  ;;  %v674_v3 = vadd.f32 %v673_v7, %v625_v62 }
 0x10c   :  { %v722_v12 = vpop.f32.mrf.mxu2 }
 0x10e   :  { %v1920_v13 = vpop.f32.mrf.mxu3  ;;  %v676_v18 = vpop.f32.mrf.mxu1 }
 0x10f   :  { %v677_v43 = vadd.f32 %v676_v18, %v628_v31  ;;  %v934_v31 = vld [vmem:[%s2036_s5 + $0x58] sm:$0xff] }
 0x110   :  { %v1922_v15 = vpop.f32.mrf.mxu0 }
 0x114   :  { %v725_v16 = vpop.f32.mrf.mxu2 }
 0x115   :  { %v726_v40 = vadd.f32 %v725_v16, %v677_v43 }
 0x116   :  { %v774_v17 = vpop.f32.mrf.mxu3  ;;  %v678_v21 = vpop.f32.mrf.mxu1 }
 0x117   :  { %v679_v58 = vadd.f32 %v678_v21, %v630_v54 }
 0x118   :  { %v825_v22 = vpop.f32.mrf.mxu0 }
 0x11c   :  { %v727_v23 = vpop.f32.mrf.mxu2 }
 0x11d   :  { %v728_v0 = vadd.f32 %v727_v23, %v679_v58 }
 0x11e   :  { %v776_v25 = vpop.f32.mrf.mxu3  ;;  %v681_v26 = vpop.f32.mrf.mxu1 }
 0x11f   :  { %v682_v39 = vadd.f32 %v681_v26, %v633_v20  ;;  %v1399_v26 = vunpack.c.h.bf16 %v1406_v19  ;;  %v777_v30 = vadd.f32 %v776_v25, %v728_v0  ;;  %v938_v25 = vld [vmem:[%s2036_s5 + $0x78] sm:$0xff]  ;;  %v1401_v0 = vld [vmem:[%s2034_s3 + $0x10] sm:$0xff]  }
 0x120   :  { %v828_v27 = vpop.f32.mrf.mxu0  ;;  %943 = vmatpush.msra.mxu2 %v938_v25  ;;  %v1433_v25 = vld [vmem:[%s2037_s6] ss:$0 sm:$0xff] }
 0x124   :  { %v730_v28 = vpop.f32.mrf.mxu2 }
 0x125   :  { %v731_v34 = vadd.f32 %v730_v28, %v682_v39  ;;  %v1405_v28 = vld [vmem:[%s2034_s3 + $0x30] sm:$0xff]  }
 0x126   :  { %v779_v29 = vpop.f32.mrf.mxu3  ;;  %v683_v32 = vpop.f32.mrf.mxu1  ;;  %v1395_v23 = vunpack.c.h.bf16 %v1405_v28 }
 0x127   :  { %v684_v51 = vadd.f32 %v683_v32, %v635_v46  ;;  %v780_v6 = vadd.f32 %v779_v29, %v731_v34  ;;  %v723_v32 = vadd.f32 %v722_v12, %v674_v3  ;;  %v1404_v29 = vld [vmem:[%s2034_s3 + $0x28] sm:$0xff]   ;;  %v1379_v3 = vunpack.c.h.bf16 %v1401_v0 }
 0x128   :  { %v830_v33 = vpop.f32.mrf.mxu0  ;;  %v1390_v20 = vunpack.c.l.bf16 %v1404_v29 }
 0x129   :  { %v829_v7 = vadd.f32 %v828_v27, %v780_v6  ;;  %v772_v46 = vadd.f32 %v1920_v13, %v723_v32  ;;  %v936_v13 = vld [vmem:[%s2036_s5 + $0x68] sm:$0xff]  ;;  %v930_v6 = vld [vmem:[%s2036_s5 + $0x38] sm:$0xff] }
 0x12c   :  { %v732_v35 = vpop.f32.mrf.mxu2 }
 0x12d   :  { %v733_v56 = vadd.f32 %v732_v35, %v684_v51  ;;  %v821_v51 = vadd.f32 %v1916_v9, %v772_v46  ;;  %v1402_v9 = vld [vmem:[%s2034_s3 + $0x18] sm:$0xff]  }
 0x12e   :  { %v781_v14 = vpop.f32.mrf.mxu3  ;;  %v686_v37 = vpop.f32.mrf.mxu1  ;;  %v1382_v43 = vunpack.c.l.bf16 %v1402_v9 }
 0x12f   :  { %v687_v47 = vadd.f32 %v686_v37, %v638_v41  ;;  %v782_v45 = vadd.f32 %v781_v14, %v733_v56  ;;  %v1394_v14 = vunpack.c.l.bf16 %v1405_v28  ;;  %v775_v37 = vadd.f32 %v774_v17, %v726_v40  ;;  %v937_v17 = vld [vmem:[%s2036_s5 + $0x70] sm:$0xff]  ;;  %v931_v40 = vld [vmem:[%s2036_s5 + $0x40] sm:$0xff] }
 0x130   :  { %v833_v49 = vpop.f32.mrf.mxu0  ;;  %944 = vmatpush.msra.mxu2 %v937_v17  ;;  %v929_v28 = vld [vmem:[%s2036_s5 + $0x30] sm:$0xff] }
 0x131   :  { %v831_v42 = vadd.f32 %v830_v33, %v782_v45  ;;  %v824_v27 = vadd.f32 %v1922_v15, %v775_v37  ;;  %v935_v15 = vld [vmem:[%s2036_s5 + $0x60] sm:$0xff] }
 0x132   :  { %945 = vmatpush.msra.mxu2 %v936_v13 }
 0x133   :  { %v883_v12 = vadd.f32 %v1395_v23, %v831_v42  ;;  %v880_v39 = vadd.f32 %v1390_v20, %v824_v27  ;;  %v1369_v42 = vld [vmem:[%s2034_s3] sm:$0xff]  }
 0x134   :  { %v735_v44 = vpop.f32.mrf.mxu2  ;;  %946 = vmatpush.msra.mxu2 %v935_v15  ;;  %v1371_v23 = vunpack.c.h.bf16 %v1369_v42 }
 0x135   :  { %v736_v52 = vadd.f32 %v735_v44, %v687_v47  ;;  %v1391_v44 = vunpack.c.h.bf16 %v1404_v29  ;;  %v826_v47 = vadd.f32 %v825_v22, %v777_v30  ;;  %v1403_v22 = vld [vmem:[%s2034_s3 + $0x20] sm:$0xff]   ;;  %v896_v19 = vmax.f32 %v880_v39, 0.0  ;;  %v928_v30 = vld [vmem:[%s2036_s5 + $0x28] sm:$0xff]  ;;  %v925_v29 = vld [vmem:[%s2036_s5 + $0x10] sm:$0xff] }
 0x136   :  { %v784_v48 = vpop.f32.mrf.mxu3  ;;  %v688_v53 = vpop.f32.mrf.mxu1  ;;  %v1387_v54 = vunpack.c.h.bf16 %v1403_v22  ;;  %v1386_v56 = vunpack.c.l.bf16 %v1403_v22  ;;  %947 = vmatpush.msra.mxu2 %v934_v31 }
 0x137   :  { %v785_v60 = vadd.f32 %v784_v48, %v736_v52  ;;  %v689_v61 = vadd.f32 %v688_v53, %v640_v55  ;;  %v899_v52 = vmax.f32 %v883_v12, 0.0  ;;  %v881_v53 = vadd.f32 %v1391_v44, %v826_v47  ;;  %v902_v12 = vld [vmem:[%s2035_s4] sm:$0x3] }
 0x138   :  { %v835_v35 = vpop.f32.mrf.mxu0  ;;  %v879_v34 = vadd.f32 %v1387_v54, %v821_v51  ;;  %v878_v62 = vadd.f32 %v1386_v56, %v1918_v10 }
 0x139   :  { %v834_v8 = vadd.f32 %v833_v49, %v785_v60  ;;  %v882_v49 = vadd.f32 %v1394_v14, %v829_v7  ;;  %v897_v58 = vmax.f32 %v881_v53, 0.0  ;;  %v1383_v60 = vunpack.c.h.bf16 %v1402_v9  ;;  %v927_v14 = vld [vmem:[%s2036_s5 + $0x20] sm:$0xff] }
 0x13a   :  { %v895_v45 = vmax.f32 %v879_v34, 0.0  ;;  %v894_v10 = vmax.f32 %v878_v62, 0.0  ;;  %v1370_v7 = vunpack.c.l.bf16 %v1369_v42 }
 0x13b   :  { %v884_v41 = vadd.f32 %v1398_v38, %v834_v8  ;;  %v898_v55 = vmax.f32 %v882_v49, 0.0  ;;  %v1378_v38 = vunpack.c.l.bf16 %v1401_v0  ;;  %v1400_v8 = vld [vmem:[%s2034_s3 + $0x8] sm:$0xff]  }
 0x13c   :  { %v737_v63 = vpop.f32.mrf.mxu2  ;;  %v870_v46 = vadd.f32 %v1370_v7, %v1888_v57 }
 0x13d   :  { %v738_v1 = vadd.f32 %v737_v63, %v689_v61  ;;  %v900_v33 = vmax.f32 %v884_v41, 0.0  ;;  %v933_v61 = vld [vmem:[%s2036_s5 + $0x50] sm:$0xff]  ;;  %v932_v63 = vld [vmem:[%s2036_s5 + $0x48] sm:$0xff]  ;;  %v874_v32 = vadd.f32 %v1378_v38, %v1902_v36 }
 0x13e   :  { %v786_v5 = vpop.f32.mrf.mxu3  ;;  %948 = vmatpush.msra.mxu2 %v933_v61 }
 0x13f   :  { %v787_v21 = vadd.f32 %v786_v5, %v738_v1  ;;  %v877_v1 = vadd.f32 %v1383_v60, %v1914_v4  ;;  %v876_v5 = vadd.f32 %v1382_v43, %v1910_v59  ;;  %v890_v36 = vmax.f32 %v874_v32, 0.0 }
 0x140   :  { %949 = vmatpush.msra.mxu2 %v932_v63 }
 0x141   :  { %v836_v18 = vadd.f32 %v835_v35, %v787_v21  ;;  %v893_v4 = vmax.f32 %v877_v1, 0.0  ;;  %v875_v21 = vadd.f32 %v1379_v3, %v1906_v50  ;;  %v892_v59 = vmax.f32 %v876_v5, 0.0 }
 0x142   :  { %950 = vmatpush.msra.mxu2 %v931_v40  ;;  %v1374_v35 = vunpack.c.l.bf16 %v1400_v8 }
 0x143   :  { %v885_v16 = vadd.f32 %v1399_v26, %v836_v18  ;;  %v1375_v26 = vunpack.c.h.bf16 %v1400_v8  ;;  %v891_v50 = vmax.f32 %v875_v21, 0.0 }
 0x144   :  { %951 = vmatpush.msra.mxu2 %v930_v6  ;;  %v872_v37 = vadd.f32 %v1374_v35, %v1894_v11  ;;  %v924_v11 = vld [vmem:[%s2036_s5 + $0x8] sm:$0xff] }
 0x145   :  { %v901_v48 = vmax.f32 %v885_v16, 0.0  ;;  %v873_v18 = vadd.f32 %v1375_v26, %v1898_v24  ;;  %v926_v16 = vld [vmem:[%s2036_s5 + $0x18] sm:$0xff]  ;;  %v871_v24 = vadd.f32 %v1371_v23, %v1891_v2  ;;  %v923_v2 = vld [vmem:[%s2036_s5] sm:$0xff] }
 0x146   :  { %952 = vmatpush.msra.mxu2 %v929_v28  ;;  %v888_v44 = vmax.f32 %v872_v37, 0.0 }
 0x147   :  { %903 = vmatpush.msra.mxu1 %v901_v48  ;;  %v889_v41 = vmax.f32 %v873_v18, 0.0  ;;  %v887_v47 = vmax.f32 %v871_v24, 0.0  ;;  %v886_v48 = vmax.f32 %v870_v46, 0.0 }
 0x148   :  { %953 = vmatpush.msra.mxu2 %v928_v30 }
 0x149   :  { %904 = vmatpush.msra.mxu1 %v900_v33 }
 0x14a   :  { %954 = vmatpush.msra.mxu2 %v927_v14 }
 0x14b   :  { %905 = vmatpush.msra.mxu1 %v899_v52 }
 0x14c   :  { %955 = vmatpush.msra.mxu2 %v926_v16 }
 0x14d   :  { %906 = vmatpush.msra.mxu1 %v898_v55 }
 0x14e   :  { %956 = vmatpush.msra.mxu2 %v925_v29 }
 0x14f   :  { %907 = vmatpush.msra.mxu1 %v897_v58 }
 0x150   :  { %957 = vmatpush.msra.mxu2 %v924_v11 }
 0x151   :  { %908 = vmatpush.msra.mxu1 %v896_v19 }
 0x152   :  { %958 = vmatpush.msra.mxu2 %v923_v2 }
 0x153   :  { %909 = vmatpush.msra.mxu1 %v895_v45 }
 0x155   :  { %910 = vmatpush.msra.mxu1 %v894_v10 }
 0x157   :  { %911 = vmatpush.msra.mxu1 %v893_v4 }
 0x159   :  { %912 = vmatpush.msra.mxu1 %v892_v59 }
 0x15b   :  { %913 = vmatpush.msra.mxu1 %v891_v50 }
 0x15d   :  { %914 = vmatpush.msra.mxu1 %v890_v36 }
 0x15f   :  { %915 = vmatpush.msra.mxu1 %v889_v41 }
 0x161   :  { %916 = vmatpush.msra.mxu1 %v888_v44 }
 0x163   :  { %917 = vmatpush.msra.mxu1 %v887_v47 }
 0x165   :  { %918 = vmatpush.msra.mxu1 %v886_v48 }
 0x166   :  { %919 = vmatmul.f32.vlgmr.msra.gmra.mxu1 %v902_v12 }
 0x1e3   :  { %v920_v57 = vpop.f32.mrf.mxu1 }
 0x1e4   :  { %959 = vmatmul.f32.vlgmr.msra.gmra.mxu2 %v920_v57 }
 0x267   :  { %v960_v17 = vpop.f32.mrf.mxu2 }
 0x268   :  { %v961_v27 = vadd.f32 %v1433_v25, %v960_v17 }
 0x26a   :  { %963 = vst [vmem:[#allocation2] sm:$0x3] %v961_v27 }
 0x26b   :  { %974 = dma.vmem_to_hbm [thread:$0]  %s970_s2, 32, %s972_s1, [#allocation3]  }
 0x26c   :  { %1458 = dma.done.wait [#allocation3], 32  }
 0x26d   :  { %1459 = vsyncadd [#allocation3], 4294967264 }
 0x26e   :  { %979 = vsyncpa [#allocation3], 1 }

</bundles_post_ra>
